<compile_context>
chip_gen: v7x
topology: tpu7x:2x2x1
jax: 0.10.0
libtpu: 0.0.40
codegen_flags: <defaults>
</compile_context>

<pallas_src>
import functools

import jax
import jax.numpy as jnp
from jax.experimental import pallas as pl
from jax.experimental.pallas import tpu as pltpu

BN_EPS = 1e-5    # torch.nn.BatchNorm1d default eps
L2_EPS = 1e-12   # F.normalize default eps


def _round_up(x, m):
    return ((x + m - 1) // m) * m


# --------------------------------------------------------------------------
# Fused kernel: num_layers x [GINConv -> BN -> ReLU]  +  mean-pool head
# --------------------------------------------------------------------------
def _fused_gin_kernel(eps_ref,                    # SMEM  [L]        per-layer GIN eps
                      h0_ref,                     # VMEM  [Np, Dp]   atom-encoded node feats
                      src_ref,                    # VMEM  [Ep, Np]   bf16 one-hot gather
                      dstT_ref,                   # VMEM  [Np, Ep]   bf16 one-hot scatter-add
                      mask_ref,                   # VMEM  [Np, 1]    1.0 real node, 0.0 pad
                      invc_ref,                   # VMEM  [Gp, 1]    1/|graph| (0 for pad)
                      eemb_ref,                   # VMEM  [L, Ep, Dp] per-layer bond embeddings
                      w1_ref, b1_ref, g1_ref, be1_ref,   # [L,Dp,Hp], [L,1,Hp] x3
                      w2_ref, b2_ref, g2_ref, be2_ref,   # [L,Hp,Dp], [L,1,Dp] x3
                      pool_ref,                   # VMEM  [Gp, Np]   bf16 mean-pool one-hot
                      wp_ref, bp_ref,             # VMEM  [Dp, Tp], [1, Tp]
                      o_ref,                      # VMEM  [Gp, Tp]
                      *, num_layers, inv_n):
    mask = mask_ref[...]                                   # [Np, 1]
    src = src_ref[...].astype(jnp.float32)                 # exact upcast of 0/1, done once
    dstT = dstT_ref[...].astype(jnp.float32)
    h = h0_ref[...] * mask                                 # padded rows -> 0

    def batch_norm(x, gamma, beta):
        # Training-mode BatchNorm1d with batch statistics over the *real* node rows only
        # (padded rows masked out), single pass via sum / sum-of-squares, biased variance.
        xm = x * mask
        m = jnp.sum(xm, axis=0, keepdims=True) * inv_n
        v = jnp.maximum(jnp.sum(xm * xm, axis=0, keepdims=True) * inv_n - m * m, 0.0)
        return (x - m) * jax.lax.rsqrt(v + BN_EPS) * gamma + beta

    for l in range(num_layers):
        # message = relu(x[src] + edge_emb): gather via one-hot matmul on the MXU
        msg = jnp.maximum(
            jnp.dot(src, h, preferred_element_type=jnp.float32) + eemb_ref[l], 0.0)
        # 'add' aggregation at destination nodes via one-hot matmul (scatter-add)
        aggr = jnp.dot(dstT, msg, preferred_element_type=jnp.float32)
        hin = (1.0 + eps_ref[l]) * h + aggr
        # MLP: Linear(D,2D) -> BatchNorm1d(2D) -> ReLU -> Linear(2D,D)
        h1 = jnp.dot(hin, w1_ref[l], preferred_element_type=jnp.float32) + b1_ref[l]
        h1 = jnp.maximum(batch_norm(h1, g1_ref[l], be1_ref[l]), 0.0)
        h2 = jnp.dot(h1, w2_ref[l], preferred_element_type=jnp.float32) + b2_ref[l]
        # per-GNN-layer BatchNorm1d(D) + ReLU (drop_ratio=0 -> dropout is identity)
        h = jnp.maximum(batch_norm(h2, g2_ref[l], be2_ref[l]), 0.0) * mask

    # global_mean_pool + graph_pred_linear + F.normalize(p=2, dim=1)
    pool = pool_ref[...].astype(jnp.float32)               # [Gp, Np]
    pooled = jnp.dot(pool, h, preferred_element_type=jnp.float32) * invc_ref[...]
    g = jnp.dot(pooled, wp_ref[...], preferred_element_type=jnp.float32) + bp_ref[...]
    nrm = jnp.sqrt(jnp.sum(g * g, axis=1, keepdims=True))
    o_ref[...] = g / jnp.maximum(nrm, L2_EPS)


# --------------------------------------------------------------------------
# Wrapper: embedding lookups + padding + one pallas_call
# --------------------------------------------------------------------------
def gin_graph_repr_forward(params, x_feats, edge_index, edge_attr, batch, num_graphs):
    """x_feats: int32 [N, 9], edge_index: int32 [2, E], edge_attr: int32 [E, 3],
    batch: int32 [N].  JK='last', graph_pooling='mean', drop_ratio=0."""
    N = x_feats.shape[0]
    E = edge_attr.shape[0]
    D = params["atom_tables"].shape[-1]
    T = params["wp"].shape[1]
    L = len(params["layers"])

    # node/edge/feature dims -> multiples of 128 (lane-dense everywhere they appear as the
    # minor dim); graph count only appears as a sublane dim -> multiple of 8.
    Dp = _round_up(D, 128)
    Hp = _round_up(2 * D, 128)
    Tp = _round_up(T, 128)
    Np = _round_up(N, 128)
    Ep = _round_up(E, 128)
    Gp = _round_up(num_graphs, 8)

    # AtomEncoder: sum of per-feature embedding lookups (data-dependent gather -> JAX glue)
    h0 = jnp.zeros((N, D), jnp.float32)
    for i in range(x_feats.shape[1]):
        h0 = h0 + params["atom_tables"][i][x_feats[:, i]]
    h0 = jnp.pad(h0, ((0, Np - N), (0, Dp - D)))

    # BondEncoder per layer (glue gather), stacked so the fused kernel sees one array
    eembs = []
    for lk in params["layers"]:
        e = jnp.zeros((E, D), jnp.float32)
        for i in range(edge_attr.shape[1]):
            e = e + lk["bond_tables"][i][edge_attr[:, i]]
        eembs.append(jnp.pad(e, ((0, Ep - E), (0, Dp - D))))
    eemb = jnp.stack(eembs, axis=0)                                   # [L, Ep, Dp]

    # one-hot incidence / pooling matrices in bfloat16 (0/1 exact); kernel upcasts to f32
    src_oh = jnp.pad(jax.nn.one_hot(edge_index[0], Np, dtype=jnp.bfloat16),
                     ((0, Ep - E), (0, 0)))                           # [Ep, Np]
    dst_oh_t = jnp.pad(jax.nn.one_hot(edge_index[1], Np, dtype=jnp.bfloat16),
                       ((0, Ep - E), (0, 0))).T                       # [Np, Ep]
    pool_oh = jnp.pad(jax.nn.one_hot(batch, Gp, dtype=jnp.bfloat16).T,
                      ((0, 0), (0, Np - N)))                          # [Gp, Np]
    node_mask = (jnp.arange(Np) < N).astype(jnp.float32)[:, None]     # [Np, 1]

    # exact f32 per-graph reciprocal counts (0 for padded graph rows)
    counts = jax.ops.segment_sum(jnp.ones((N,), jnp.float32), batch,
                                 num_segments=num_graphs)
    inv_counts = jnp.pad(1.0 / jnp.maximum(counts, 1.0),
                         (0, Gp - num_graphs)).reshape(Gp, 1)         # [Gp, 1]

    def pad2(a, r, c):
        return jnp.pad(a, ((0, r - a.shape[0]), (0, c - a.shape[1])))

    eps = jnp.stack([lk["eps"].reshape(()) for lk in params["layers"]])          # [L]
    w1s = jnp.stack([pad2(lk["w1"], Dp, Hp) for lk in params["layers"]])
    b1s = jnp.stack([pad2(lk["b1"], 1, Hp) for lk in params["layers"]])
    g1s = jnp.stack([pad2(lk["g1"], 1, Hp) for lk in params["layers"]])
    be1s = jnp.stack([pad2(lk["be1"], 1, Hp) for lk in params["layers"]])
    w2s = jnp.stack([pad2(lk["w2"], Hp, Dp) for lk in params["layers"]])
    b2s = jnp.stack([pad2(lk["b2"], 1, Dp) for lk in params["layers"]])
    g2s = jnp.stack([pad2(lk["g2"], 1, Dp) for lk in params["layers"]])
    be2s = jnp.stack([pad2(lk["be2"], 1, Dp) for lk in params["layers"]])
    wp = pad2(params["wp"], Dp, Tp)
    bp = pad2(params["bp"], 1, Tp)

    args = (eps, h0, src_oh, dst_oh_t, node_mask, inv_counts, eemb,
            w1s, b1s, g1s, be1s, w2s, b2s, g2s, be2s,
            pool_oh, wp, bp)

    vmem = pl.BlockSpec(memory_space=pltpu.MemorySpace.VMEM)
    smem = pl.BlockSpec(memory_space=pltpu.MemorySpace.SMEM)

    out = pl.pallas_call(
        functools.partial(_fused_gin_kernel, num_layers=L, inv_n=1.0 / N),
        in_specs=[smem] + [vmem] * (len(args) - 1),
        out_specs=vmem,
        out_shape=jax.ShapeDtypeStruct((Gp, Tp), jnp.float32),
        compiler_params=pltpu.CompilerParams(vmem_limit_bytes=32 * 1024 * 1024),
    )(*args)
    return out[:num_graphs, :T]


# --------------------------------------------------------------------------
# Pure-JAX reference (for a correctness check in __main__)
# --------------------------------------------------------------------------
def _reference_forward(params, x_feats, edge_index, edge_attr, batch, num_graphs):
    N = x_feats.shape[0]
    h = jnp.zeros((N, params["atom_tables"].shape[-1]), jnp.float32)
    for i in range(x_feats.shape[1]):
        h = h + params["atom_tables"][i][x_feats[:, i]]
    for lk in params["layers"]:
        e = jnp.zeros((edge_attr.shape[0], h.shape[1]), jnp.float32)
        for i in range(edge_attr.shape[1]):
            e = e + lk["bond_tables"][i][edge_attr[:, i]]
        msg = jax.nn.relu(h[edge_index[0]] + e)
        aggr = jax.ops.segment_sum(msg, edge_index[1], num_segments=N)
        hin = (1.0 + lk["eps"][0, 0]) * h + aggr
        h1 = hin @ lk["w1"] + lk["b1"]
        m = h1.mean(0, keepdims=True)
        v = ((h1 - m) ** 2).mean(0, keepdims=True)
        h1 = jax.nn.relu((h1 - m) / jnp.sqrt(v + BN_EPS) * lk["g1"] + lk["be1"])
        h2 = h1 @ lk["w2"] + lk["b2"]
        m = h2.mean(0, keepdims=True)
        v = ((h2 - m) ** 2).mean(0, keepdims=True)
        h = jax.nn.relu((h2 - m) / jnp.sqrt(v + BN_EPS) * lk["g2"] + lk["be2"])
    pooled = jax.ops.segment_sum(h, batch, num_segments=num_graphs)
    counts = jax.ops.segment_sum(jnp.ones((N, 1), jnp.float32), batch,
                                 num_segments=num_graphs)
    pooled = pooled / jnp.maximum(counts, 1.0)
    g = pooled @ params["wp"] + params["bp"]
    nrm = jnp.sqrt(jnp.sum(g * g, axis=1, keepdims=True))
    return g / jnp.maximum(nrm, L2_EPS)


# --------------------------------------------------------------------------
# Parameter construction (deterministic, synthetic)
# --------------------------------------------------------------------------
def make_params(key, num_layers, emb_dim, num_tasks,
                num_atom_feats=9, atom_vocab=16,
                num_bond_feats=3, bond_vocab=8):
    p = {}
    k = key
    k, sub = jax.random.split(k)
    p["atom_tables"] = jax.random.normal(
        sub, (num_atom_feats, atom_vocab, emb_dim), jnp.float32) * 0.1
    p["layers"] = []
    for _ in range(num_layers):
        lk = {}
        k, s1, s2, s3, s4 = jax.random.split(k, 5)
        lk["bond_tables"] = jax.random.normal(
            s1, (num_bond_feats, bond_vocab, emb_dim), jnp.float32) * 0.1
        lk["eps"] = jnp.zeros((1, 1), jnp.float32)            # torch.Tensor([0])
        lk["w1"] = jax.random.normal(s2, (emb_dim, 2 * emb_dim), jnp.float32) / jnp.sqrt(emb_dim)
        lk["b1"] = jnp.zeros((1, 2 * emb_dim), jnp.float32)
        lk["g1"] = jnp.ones((1, 2 * emb_dim), jnp.float32)    # BN1 gamma
        lk["be1"] = jnp.zeros((1, 2 * emb_dim), jnp.float32)  # BN1 beta
        lk["w2"] = jax.random.normal(s3, (2 * emb_dim, emb_dim), jnp.float32) / jnp.sqrt(2 * emb_dim)
        lk["b2"] = jnp.zeros((1, emb_dim), jnp.float32)
        lk["g2"] = jnp.ones((1, emb_dim), jnp.float32)        # per-layer BN gamma
        lk["be2"] = jnp.zeros((1, emb_dim), jnp.float32)      # per-layer BN beta
        p["layers"].append(lk)
    k, sub = jax.random.split(k)
    p["wp"] = jax.random.normal(sub, (emb_dim, num_tasks), jnp.float32) / jnp.sqrt(emb_dim)
    p["bp"] = jnp.zeros((1, num_tasks), jnp.float32)
    return p


if __name__ == "__main__":
    NUM_LAYERS = 5
    EMB_DIM = 32
    NUM_TASKS = 64
    N_NODES = 16
    N_EDGES = 32
    N_GRAPHS = 2

    key = jax.random.PRNGKey(0)
    kp, kx, ke, ka = jax.random.split(key, 4)

    params = make_params(kp, NUM_LAYERS, EMB_DIM, NUM_TASKS)

    x_feats = jax.random.randint(kx, (N_NODES, 9), 0, 16, dtype=jnp.int32)
    edge_index = jax.random.randint(ke, (2, N_EDGES), 0, N_NODES, dtype=jnp.int32)
    edge_attr = jax.random.randint(ka, (N_EDGES, 3), 0, 8, dtype=jnp.int32)
    batch = jnp.concatenate([
        jnp.zeros((N_NODES // 2,), jnp.int32),
        jnp.ones((N_NODES - N_NODES // 2,), jnp.int32),
    ])

    out = gin_graph_repr_forward(params, x_feats, edge_index, edge_attr,
                                 batch, N_GRAPHS)
    out = jax.block_until_ready(out)
    assert out.shape == (N_GRAPHS, NUM_TASKS)
    assert bool(jnp.all(jnp.isfinite(out)))

    ref = _reference_forward(params, x_feats, edge_index, edge_attr, batch, N_GRAPHS)
    max_err = float(jnp.max(jnp.abs(out - ref)))
    assert max_err < 1e-3, f"mismatch vs reference: {max_err}"

    print("KERNEL_OK")
</pallas_src>

<mosaic_0001>
module attributes {stable_mosaic.version = 11 : i64} {
  func.func @_fused_gin_kernel(%arg0: memref<5xf32, #tpu.memory_space<smem>>, %arg1: memref<128x128xf32, #tpu.memory_space<vmem>>, %arg2: memref<128x128xbf16, #tpu.memory_space<vmem>>, %arg3: memref<128x128xbf16, #tpu.memory_space<vmem>>, %arg4: memref<128x1xf32, #tpu.memory_space<vmem>>, %arg5: memref<8x1xf32, #tpu.memory_space<vmem>>, %arg6: memref<5x128x128xf32, #tpu.memory_space<vmem>>, %arg7: memref<5x128x128xf32, #tpu.memory_space<vmem>>, %arg8: memref<5x1x128xf32, #tpu.memory_space<vmem>>, %arg9: memref<5x1x128xf32, #tpu.memory_space<vmem>>, %arg10: memref<5x1x128xf32, #tpu.memory_space<vmem>>, %arg11: memref<5x128x128xf32, #tpu.memory_space<vmem>>, %arg12: memref<5x1x128xf32, #tpu.memory_space<vmem>>, %arg13: memref<5x1x128xf32, #tpu.memory_space<vmem>>, %arg14: memref<5x1x128xf32, #tpu.memory_space<vmem>>, %arg15: memref<8x128xbf16, #tpu.memory_space<vmem>>, %arg16: memref<128x128xf32, #tpu.memory_space<vmem>>, %arg17: memref<1x128xf32, #tpu.memory_space<vmem>>, %arg18: memref<8x128xf32, #tpu.memory_space<vmem>>) attributes {dimension_semantics = [], scalar_prefetch = 0 : i64, scratch_operands = 0 : i64, tpu.core_type = #tpu.core_type<tc>} {
    %c0 = arith.constant 0 : index
    %c0_0 = arith.constant 0 : index
    %0 = vector.load %arg4[%c0, %c0_0] : memref<128x1xf32, #tpu.memory_space<vmem>>, vector<128x1xf32>
    %c0_1 = arith.constant 0 : index
    %c0_2 = arith.constant 0 : index
    %1 = vector.load %arg2[%c0_1, %c0_2] : memref<128x128xbf16, #tpu.memory_space<vmem>>, vector<128x128xbf16>
    %2 = arith.extf %1 : vector<128x128xbf16> to vector<128x128xf32>
    %c0_3 = arith.constant 0 : index
    %c0_4 = arith.constant 0 : index
    %3 = vector.load %arg3[%c0_3, %c0_4] : memref<128x128xbf16, #tpu.memory_space<vmem>>, vector<128x128xbf16>
    %4 = arith.extf %3 : vector<128x128xbf16> to vector<128x128xf32>
    %c0_5 = arith.constant 0 : index
    %c0_6 = arith.constant 0 : index
    %5 = vector.load %arg1[%c0_5, %c0_6] : memref<128x128xf32, #tpu.memory_space<vmem>>, vector<128x128xf32>
    %6 = vector.broadcast %0 : vector<128x1xf32> to vector<128x128xf32>
    %7 = arith.mulf %5, %6 : vector<128x128xf32>
    %cst = arith.constant dense<0.000000e+00> : vector<128x128xf32>
    %8 = tpu.matmul %2, %7, %cst {dimension_numbers = #tpu.dot_dimension_numbers<[1], [0], [0], [1], [0, 0, 1, 1], [], []>} : vector<128x128xf32>, vector<128x128xf32>, vector<128x128xf32> -> vector<128x128xf32>
    %c0_7 = arith.constant 0 : index
    %c0_8 = arith.constant 0 : index
    %c0_9 = arith.constant 0 : index
    %9 = vector.load %arg6[%c0_7, %c0_8, %c0_9] : memref<5x128x128xf32, #tpu.memory_space<vmem>>, vector<1x128x128xf32>
    %10 = vector.shape_cast %9 : vector<1x128x128xf32> to vector<128x128xf32>
    %11 = arith.addf %8, %10 : vector<128x128xf32>
    %cst_10 = arith.constant 0.000000e+00 : f32
    %12 = vector.broadcast %cst_10 : f32 to vector<128x128xf32>
    %13 = arith.maximumf %11, %12 : vector<128x128xf32>
    %cst_11 = arith.constant dense<0.000000e+00> : vector<128x128xf32>
    %14 = tpu.matmul %4, %13, %cst_11 {dimension_numbers = #tpu.dot_dimension_numbers<[1], [0], [0], [1], [0, 0, 1, 1], [], []>} : vector<128x128xf32>, vector<128x128xf32>, vector<128x128xf32> -> vector<128x128xf32>
    %c0_12 = arith.constant 0 : index
    %15 = memref.load %arg0[%c0_12] : memref<5xf32, #tpu.memory_space<smem>>
    %cst_13 = arith.constant 1.000000e+00 : f32
    %16 = arith.addf %cst_13, %15 : f32
    %17 = vector.broadcast %16 : f32 to vector<128x128xf32>
    %18 = arith.mulf %17, %7 : vector<128x128xf32>
    %19 = arith.addf %18, %14 : vector<128x128xf32>
    %c0_14 = arith.constant 0 : index
    %c0_15 = arith.constant 0 : index
    %c0_16 = arith.constant 0 : index
    %20 = vector.load %arg7[%c0_14, %c0_15, %c0_16] : memref<5x128x128xf32, #tpu.memory_space<vmem>>, vector<1x128x128xf32>
    %21 = vector.shape_cast %20 : vector<1x128x128xf32> to vector<128x128xf32>
    %cst_17 = arith.constant dense<0.000000e+00> : vector<128x128xf32>
    %22 = tpu.matmul %19, %21, %cst_17 {dimension_numbers = #tpu.dot_dimension_numbers<[1], [0], [0], [1], [0, 0, 1, 1], [], []>} : vector<128x128xf32>, vector<128x128xf32>, vector<128x128xf32> -> vector<128x128xf32>
    %c0_18 = arith.constant 0 : index
    %c0_19 = arith.constant 0 : index
    %c0_20 = arith.constant 0 : index
    %23 = vector.load %arg8[%c0_18, %c0_19, %c0_20] : memref<5x1x128xf32, #tpu.memory_space<vmem>>, vector<1x1x128xf32>
    %24 = vector.shape_cast %23 : vector<1x1x128xf32> to vector<1x128xf32>
    %25 = vector.broadcast %24 : vector<1x128xf32> to vector<128x128xf32>
    %26 = arith.addf %22, %25 : vector<128x128xf32>
    %c0_21 = arith.constant 0 : index
    %c0_22 = arith.constant 0 : index
    %c0_23 = arith.constant 0 : index
    %27 = vector.load %arg9[%c0_21, %c0_22, %c0_23] : memref<5x1x128xf32, #tpu.memory_space<vmem>>, vector<1x1x128xf32>
    %28 = vector.shape_cast %27 : vector<1x1x128xf32> to vector<1x128xf32>
    %c0_24 = arith.constant 0 : index
    %c0_25 = arith.constant 0 : index
    %c0_26 = arith.constant 0 : index
    %29 = vector.load %arg10[%c0_24, %c0_25, %c0_26] : memref<5x1x128xf32, #tpu.memory_space<vmem>>, vector<1x1x128xf32>
    %30 = vector.shape_cast %29 : vector<1x1x128xf32> to vector<1x128xf32>
    %31 = vector.broadcast %0 : vector<128x1xf32> to vector<128x128xf32>
    %32 = arith.mulf %26, %31 : vector<128x128xf32>
    %cst_27 = arith.constant dense<0.000000e+00> : vector<128xf32>
    %33 = vector.multi_reduction <add>, %32, %cst_27 [0] : vector<128x128xf32> to vector<128xf32>
    %34 = vector.shape_cast %33 : vector<128xf32> to vector<1x128xf32>
    %cst_28 = arith.constant 6.250000e-02 : f32
    %35 = vector.broadcast %cst_28 : f32 to vector<1x128xf32>
    %36 = arith.mulf %34, %35 : vector<1x128xf32>
    %37 = arith.mulf %32, %32 : vector<128x128xf32>
    %cst_29 = arith.constant dense<0.000000e+00> : vector<128xf32>
    %38 = vector.multi_reduction <add>, %37, %cst_29 [0] : vector<128x128xf32> to vector<128xf32>
    %39 = vector.shape_cast %38 : vector<128xf32> to vector<1x128xf32>
    %cst_30 = arith.constant 6.250000e-02 : f32
    %40 = vector.broadcast %cst_30 : f32 to vector<1x128xf32>
    %41 = arith.mulf %39, %40 : vector<1x128xf32>
    %42 = arith.mulf %36, %36 : vector<1x128xf32>
    %43 = arith.subf %41, %42 : vector<1x128xf32>
    %cst_31 = arith.constant 0.000000e+00 : f32
    %44 = vector.broadcast %cst_31 : f32 to vector<1x128xf32>
    %45 = arith.maximumf %43, %44 : vector<1x128xf32>
    %46 = vector.broadcast %36 : vector<1x128xf32> to vector<128x128xf32>
    %47 = arith.subf %26, %46 : vector<128x128xf32>
    %cst_32 = arith.constant 9.99999974E-6 : f32
    %48 = vector.broadcast %cst_32 : f32 to vector<1x128xf32>
    %49 = arith.addf %45, %48 : vector<1x128xf32>
    %50 = math.rsqrt %49 : vector<1x128xf32>
    %51 = vector.broadcast %50 : vector<1x128xf32> to vector<128x128xf32>
    %52 = arith.mulf %47, %51 : vector<128x128xf32>
    %53 = vector.broadcast %28 : vector<1x128xf32> to vector<128x128xf32>
    %54 = arith.mulf %52, %53 : vector<128x128xf32>
    %55 = vector.broadcast %30 : vector<1x128xf32> to vector<128x128xf32>
    %56 = arith.addf %54, %55 : vector<128x128xf32>
    %cst_33 = arith.constant 0.000000e+00 : f32
    %57 = vector.broadcast %cst_33 : f32 to vector<128x128xf32>
    %58 = arith.maximumf %56, %57 : vector<128x128xf32>
    %c0_34 = arith.constant 0 : index
    %c0_35 = arith.constant 0 : index
    %c0_36 = arith.constant 0 : index
    %59 = vector.load %arg11[%c0_34, %c0_35, %c0_36] : memref<5x128x128xf32, #tpu.memory_space<vmem>>, vector<1x128x128xf32>
    %60 = vector.shape_cast %59 : vector<1x128x128xf32> to vector<128x128xf32>
    %cst_37 = arith.constant dense<0.000000e+00> : vector<128x128xf32>
    %61 = tpu.matmul %58, %60, %cst_37 {dimension_numbers = #tpu.dot_dimension_numbers<[1], [0], [0], [1], [0, 0, 1, 1], [], []>} : vector<128x128xf32>, vector<128x128xf32>, vector<128x128xf32> -> vector<128x128xf32>
    %c0_38 = arith.constant 0 : index
    %c0_39 = arith.constant 0 : index
    %c0_40 = arith.constant 0 : index
    %62 = vector.load %arg12[%c0_38, %c0_39, %c0_40] : memref<5x1x128xf32, #tpu.memory_space<vmem>>, vector<1x1x128xf32>
    %63 = vector.shape_cast %62 : vector<1x1x128xf32> to vector<1x128xf32>
    %64 = vector.broadcast %63 : vector<1x128xf32> to vector<128x128xf32>
    %65 = arith.addf %61, %64 : vector<128x128xf32>
    %c0_41 = arith.constant 0 : index
    %c0_42 = arith.constant 0 : index
    %c0_43 = arith.constant 0 : index
    %66 = vector.load %arg13[%c0_41, %c0_42, %c0_43] : memref<5x1x128xf32, #tpu.memory_space<vmem>>, vector<1x1x128xf32>
    %67 = vector.shape_cast %66 : vector<1x1x128xf32> to vector<1x128xf32>
    %c0_44 = arith.constant 0 : index
    %c0_45 = arith.constant 0 : index
    %c0_46 = arith.constant 0 : index
    %68 = vector.load %arg14[%c0_44, %c0_45, %c0_46] : memref<5x1x128xf32, #tpu.memory_space<vmem>>, vector<1x1x128xf32>
    %69 = vector.shape_cast %68 : vector<1x1x128xf32> to vector<1x128xf32>
    %70 = vector.broadcast %0 : vector<128x1xf32> to vector<128x128xf32>
    %71 = arith.mulf %65, %70 : vector<128x128xf32>
    %cst_47 = arith.constant dense<0.000000e+00> : vector<128xf32>
    %72 = vector.multi_reduction <add>, %71, %cst_47 [0] : vector<128x128xf32> to vector<128xf32>
    %73 = vector.shape_cast %72 : vector<128xf32> to vector<1x128xf32>
    %cst_48 = arith.constant 6.250000e-02 : f32
    %74 = vector.broadcast %cst_48 : f32 to vector<1x128xf32>
    %75 = arith.mulf %73, %74 : vector<1x128xf32>
    %76 = arith.mulf %71, %71 : vector<128x128xf32>
    %cst_49 = arith.constant dense<0.000000e+00> : vector<128xf32>
    %77 = vector.multi_reduction <add>, %76, %cst_49 [0] : vector<128x128xf32> to vector<128xf32>
    %78 = vector.shape_cast %77 : vector<128xf32> to vector<1x128xf32>
    %cst_50 = arith.constant 6.250000e-02 : f32
    %79 = vector.broadcast %cst_50 : f32 to vector<1x128xf32>
    %80 = arith.mulf %78, %79 : vector<1x128xf32>
    %81 = arith.mulf %75, %75 : vector<1x128xf32>
    %82 = arith.subf %80, %81 : vector<1x128xf32>
    %cst_51 = arith.constant 0.000000e+00 : f32
    %83 = vector.broadcast %cst_51 : f32 to vector<1x128xf32>
    %84 = arith.maximumf %82, %83 : vector<1x128xf32>
    %85 = vector.broadcast %75 : vector<1x128xf32> to vector<128x128xf32>
    %86 = arith.subf %65, %85 : vector<128x128xf32>
    %cst_52 = arith.constant 9.99999974E-6 : f32
    %87 = vector.broadcast %cst_52 : f32 to vector<1x128xf32>
    %88 = arith.addf %84, %87 : vector<1x128xf32>
    %89 = math.rsqrt %88 : vector<1x128xf32>
    %90 = vector.broadcast %89 : vector<1x128xf32> to vector<128x128xf32>
    %91 = arith.mulf %86, %90 : vector<128x128xf32>
    %92 = vector.broadcast %67 : vector<1x128xf32> to vector<128x128xf32>
    %93 = arith.mulf %91, %92 : vector<128x128xf32>
    %94 = vector.broadcast %69 : vector<1x128xf32> to vector<128x128xf32>
    %95 = arith.addf %93, %94 : vector<128x128xf32>
    %cst_53 = arith.constant 0.000000e+00 : f32
    %96 = vector.broadcast %cst_53 : f32 to vector<128x128xf32>
    %97 = arith.maximumf %95, %96 : vector<128x128xf32>
    %98 = vector.broadcast %0 : vector<128x1xf32> to vector<128x128xf32>
    %99 = arith.mulf %97, %98 : vector<128x128xf32>
    %cst_54 = arith.constant dense<0.000000e+00> : vector<128x128xf32>
    %100 = tpu.matmul %2, %99, %cst_54 {dimension_numbers = #tpu.dot_dimension_numbers<[1], [0], [0], [1], [0, 0, 1, 1], [], []>} : vector<128x128xf32>, vector<128x128xf32>, vector<128x128xf32> -> vector<128x128xf32>
    %c1 = arith.constant 1 : index
    %c0_55 = arith.constant 0 : index
    %c0_56 = arith.constant 0 : index
    %101 = vector.load %arg6[%c1, %c0_55, %c0_56] : memref<5x128x128xf32, #tpu.memory_space<vmem>>, vector<1x128x128xf32>
    %102 = vector.shape_cast %101 : vector<1x128x128xf32> to vector<128x128xf32>
    %103 = arith.addf %100, %102 : vector<128x128xf32>
    %cst_57 = arith.constant 0.000000e+00 : f32
    %104 = vector.broadcast %cst_57 : f32 to vector<128x128xf32>
    %105 = arith.maximumf %103, %104 : vector<128x128xf32>
    %cst_58 = arith.constant dense<0.000000e+00> : vector<128x128xf32>
    %106 = tpu.matmul %4, %105, %cst_58 {dimension_numbers = #tpu.dot_dimension_numbers<[1], [0], [0], [1], [0, 0, 1, 1], [], []>} : vector<128x128xf32>, vector<128x128xf32>, vector<128x128xf32> -> vector<128x128xf32>
    %c1_59 = arith.constant 1 : index
    %107 = memref.load %arg0[%c1_59] : memref<5xf32, #tpu.memory_space<smem>>
    %cst_60 = arith.constant 1.000000e+00 : f32
    %108 = arith.addf %cst_60, %107 : f32
    %109 = vector.broadcast %108 : f32 to vector<128x128xf32>
    %110 = arith.mulf %109, %99 : vector<128x128xf32>
    %111 = arith.addf %110, %106 : vector<128x128xf32>
    %c1_61 = arith.constant 1 : index
    %c0_62 = arith.constant 0 : index
    %c0_63 = arith.constant 0 : index
    %112 = vector.load %arg7[%c1_61, %c0_62, %c0_63] : memref<5x128x128xf32, #tpu.memory_space<vmem>>, vector<1x128x128xf32>
    %113 = vector.shape_cast %112 : vector<1x128x128xf32> to vector<128x128xf32>
    %cst_64 = arith.constant dense<0.000000e+00> : vector<128x128xf32>
    %114 = tpu.matmul %111, %113, %cst_64 {dimension_numbers = #tpu.dot_dimension_numbers<[1], [0], [0], [1], [0, 0, 1, 1], [], []>} : vector<128x128xf32>, vector<128x128xf32>, vector<128x128xf32> -> vector<128x128xf32>
    %c1_65 = arith.constant 1 : index
    %c0_66 = arith.constant 0 : index
    %c0_67 = arith.constant 0 : index
    %115 = vector.load %arg8[%c1_65, %c0_66, %c0_67] : memref<5x1x128xf32, #tpu.memory_space<vmem>>, vector<1x1x128xf32>
    %116 = vector.shape_cast %115 : vector<1x1x128xf32> to vector<1x128xf32>
    %117 = vector.broadcast %116 : vector<1x128xf32> to vector<128x128xf32>
    %118 = arith.addf %114, %117 : vector<128x128xf32>
    %c1_68 = arith.constant 1 : index
    %c0_69 = arith.constant 0 : index
    %c0_70 = arith.constant 0 : index
    %119 = vector.load %arg9[%c1_68, %c0_69, %c0_70] : memref<5x1x128xf32, #tpu.memory_space<vmem>>, vector<1x1x128xf32>
    %120 = vector.shape_cast %119 : vector<1x1x128xf32> to vector<1x128xf32>
    %c1_71 = arith.constant 1 : index
    %c0_72 = arith.constant 0 : index
    %c0_73 = arith.constant 0 : index
    %121 = vector.load %arg10[%c1_71, %c0_72, %c0_73] : memref<5x1x128xf32, #tpu.memory_space<vmem>>, vector<1x1x128xf32>
    %122 = vector.shape_cast %121 : vector<1x1x128xf32> to vector<1x128xf32>
    %123 = vector.broadcast %0 : vector<128x1xf32> to vector<128x128xf32>
    %124 = arith.mulf %118, %123 : vector<128x128xf32>
    %cst_74 = arith.constant dense<0.000000e+00> : vector<128xf32>
    %125 = vector.multi_reduction <add>, %124, %cst_74 [0] : vector<128x128xf32> to vector<128xf32>
    %126 = vector.shape_cast %125 : vector<128xf32> to vector<1x128xf32>
    %cst_75 = arith.constant 6.250000e-02 : f32
    %127 = vector.broadcast %cst_75 : f32 to vector<1x128xf32>
    %128 = arith.mulf %126, %127 : vector<1x128xf32>
    %129 = arith.mulf %124, %124 : vector<128x128xf32>
    %cst_76 = arith.constant dense<0.000000e+00> : vector<128xf32>
    %130 = vector.multi_reduction <add>, %129, %cst_76 [0] : vector<128x128xf32> to vector<128xf32>
    %131 = vector.shape_cast %130 : vector<128xf32> to vector<1x128xf32>
    %cst_77 = arith.constant 6.250000e-02 : f32
    %132 = vector.broadcast %cst_77 : f32 to vector<1x128xf32>
    %133 = arith.mulf %131, %132 : vector<1x128xf32>
    %134 = arith.mulf %128, %128 : vector<1x128xf32>
    %135 = arith.subf %133, %134 : vector<1x128xf32>
    %cst_78 = arith.constant 0.000000e+00 : f32
    %136 = vector.broadcast %cst_78 : f32 to vector<1x128xf32>
    %137 = arith.maximumf %135, %136 : vector<1x128xf32>
    %138 = vector.broadcast %128 : vector<1x128xf32> to vector<128x128xf32>
    %139 = arith.subf %118, %138 : vector<128x128xf32>
    %cst_79 = arith.constant 9.99999974E-6 : f32
    %140 = vector.broadcast %cst_79 : f32 to vector<1x128xf32>
    %141 = arith.addf %137, %140 : vector<1x128xf32>
    %142 = math.rsqrt %141 : vector<1x128xf32>
    %143 = vector.broadcast %142 : vector<1x128xf32> to vector<128x128xf32>
    %144 = arith.mulf %139, %143 : vector<128x128xf32>
    %145 = vector.broadcast %120 : vector<1x128xf32> to vector<128x128xf32>
    %146 = arith.mulf %144, %145 : vector<128x128xf32>
    %147 = vector.broadcast %122 : vector<1x128xf32> to vector<128x128xf32>
    %148 = arith.addf %146, %147 : vector<128x128xf32>
    %cst_80 = arith.constant 0.000000e+00 : f32
    %149 = vector.broadcast %cst_80 : f32 to vector<128x128xf32>
    %150 = arith.maximumf %148, %149 : vector<128x128xf32>
    %c1_81 = arith.constant 1 : index
    %c0_82 = arith.constant 0 : index
    %c0_83 = arith.constant 0 : index
    %151 = vector.load %arg11[%c1_81, %c0_82, %c0_83] : memref<5x128x128xf32, #tpu.memory_space<vmem>>, vector<1x128x128xf32>
    %152 = vector.shape_cast %151 : vector<1x128x128xf32> to vector<128x128xf32>
    %cst_84 = arith.constant dense<0.000000e+00> : vector<128x128xf32>
    %153 = tpu.matmul %150, %152, %cst_84 {dimension_numbers = #tpu.dot_dimension_numbers<[1], [0], [0], [1], [0, 0, 1, 1], [], []>} : vector<128x128xf32>, vector<128x128xf32>, vector<128x128xf32> -> vector<128x128xf32>
    %c1_85 = arith.constant 1 : index
    %c0_86 = arith.constant 0 : index
    %c0_87 = arith.constant 0 : index
    %154 = vector.load %arg12[%c1_85, %c0_86, %c0_87] : memref<5x1x128xf32, #tpu.memory_space<vmem>>, vector<1x1x128xf32>
    %155 = vector.shape_cast %154 : vector<1x1x128xf32> to vector<1x128xf32>
    %156 = vector.broadcast %155 : vector<1x128xf32> to vector<128x128xf32>
    %157 = arith.addf %153, %156 : vector<128x128xf32>
    %c1_88 = arith.constant 1 : index
    %c0_89 = arith.constant 0 : index
    %c0_90 = arith.constant 0 : index
    %158 = vector.load %arg13[%c1_88, %c0_89, %c0_90] : memref<5x1x128xf32, #tpu.memory_space<vmem>>, vector<1x1x128xf32>
    %159 = vector.shape_cast %158 : vector<1x1x128xf32> to vector<1x128xf32>
    %c1_91 = arith.constant 1 : index
    %c0_92 = arith.constant 0 : index
    %c0_93 = arith.constant 0 : index
    %160 = vector.load %arg14[%c1_91, %c0_92, %c0_93] : memref<5x1x128xf32, #tpu.memory_space<vmem>>, vector<1x1x128xf32>
    %161 = vector.shape_cast %160 : vector<1x1x128xf32> to vector<1x128xf32>
    %162 = vector.broadcast %0 : vector<128x1xf32> to vector<128x128xf32>
    %163 = arith.mulf %157, %162 : vector<128x128xf32>
    %cst_94 = arith.constant dense<0.000000e+00> : vector<128xf32>
    %164 = vector.multi_reduction <add>, %163, %cst_94 [0] : vector<128x128xf32> to vector<128xf32>
    %165 = vector.shape_cast %164 : vector<128xf32> to vector<1x128xf32>
    %cst_95 = arith.constant 6.250000e-02 : f32
    %166 = vector.broadcast %cst_95 : f32 to vector<1x128xf32>
    %167 = arith.mulf %165, %166 : vector<1x128xf32>
    %168 = arith.mulf %163, %163 : vector<128x128xf32>
    %cst_96 = arith.constant dense<0.000000e+00> : vector<128xf32>
    %169 = vector.multi_reduction <add>, %168, %cst_96 [0] : vector<128x128xf32> to vector<128xf32>
    %170 = vector.shape_cast %169 : vector<128xf32> to vector<1x128xf32>
    %cst_97 = arith.constant 6.250000e-02 : f32
    %171 = vector.broadcast %cst_97 : f32 to vector<1x128xf32>
    %172 = arith.mulf %170, %171 : vector<1x128xf32>
    %173 = arith.mulf %167, %167 : vector<1x128xf32>
    %174 = arith.subf %172, %173 : vector<1x128xf32>
    %cst_98 = arith.constant 0.000000e+00 : f32
    %175 = vector.broadcast %cst_98 : f32 to vector<1x128xf32>
    %176 = arith.maximumf %174, %175 : vector<1x128xf32>
    %177 = vector.broadcast %167 : vector<1x128xf32> to vector<128x128xf32>
    %178 = arith.subf %157, %177 : vector<128x128xf32>
    %cst_99 = arith.constant 9.99999974E-6 : f32
    %179 = vector.broadcast %cst_99 : f32 to vector<1x128xf32>
    %180 = arith.addf %176, %179 : vector<1x128xf32>
    %181 = math.rsqrt %180 : vector<1x128xf32>
    %182 = vector.broadcast %181 : vector<1x128xf32> to vector<128x128xf32>
    %183 = arith.mulf %178, %182 : vector<128x128xf32>
    %184 = vector.broadcast %159 : vector<1x128xf32> to vector<128x128xf32>
    %185 = arith.mulf %183, %184 : vector<128x128xf32>
    %186 = vector.broadcast %161 : vector<1x128xf32> to vector<128x128xf32>
    %187 = arith.addf %185, %186 : vector<128x128xf32>
    %cst_100 = arith.constant 0.000000e+00 : f32
    %188 = vector.broadcast %cst_100 : f32 to vector<128x128xf32>
    %189 = arith.maximumf %187, %188 : vector<128x128xf32>
    %190 = vector.broadcast %0 : vector<128x1xf32> to vector<128x128xf32>
    %191 = arith.mulf %189, %190 : vector<128x128xf32>
    %cst_101 = arith.constant dense<0.000000e+00> : vector<128x128xf32>
    %192 = tpu.matmul %2, %191, %cst_101 {dimension_numbers = #tpu.dot_dimension_numbers<[1], [0], [0], [1], [0, 0, 1, 1], [], []>} : vector<128x128xf32>, vector<128x128xf32>, vector<128x128xf32> -> vector<128x128xf32>
    %c2 = arith.constant 2 : index
    %c0_102 = arith.constant 0 : index
    %c0_103 = arith.constant 0 : index
    %193 = vector.load %arg6[%c2, %c0_102, %c0_103] : memref<5x128x128xf32, #tpu.memory_space<vmem>>, vector<1x128x128xf32>
    %194 = vector.shape_cast %193 : vector<1x128x128xf32> to vector<128x128xf32>
    %195 = arith.addf %192, %194 : vector<128x128xf32>
    %cst_104 = arith.constant 0.000000e+00 : f32
    %196 = vector.broadcast %cst_104 : f32 to vector<128x128xf32>
    %197 = arith.maximumf %195, %196 : vector<128x128xf32>
    %cst_105 = arith.constant dense<0.000000e+00> : vector<128x128xf32>
    %198 = tpu.matmul %4, %197, %cst_105 {dimension_numbers = #tpu.dot_dimension_numbers<[1], [0], [0], [1], [0, 0, 1, 1], [], []>} : vector<128x128xf32>, vector<128x128xf32>, vector<128x128xf32> -> vector<128x128xf32>
    %c2_106 = arith.constant 2 : index
    %199 = memref.load %arg0[%c2_106] : memref<5xf32, #tpu.memory_space<smem>>
    %cst_107 = arith.constant 1.000000e+00 : f32
    %200 = arith.addf %cst_107, %199 : f32
    %201 = vector.broadcast %200 : f32 to vector<128x128xf32>
    %202 = arith.mulf %201, %191 : vector<128x128xf32>
    %203 = arith.addf %202, %198 : vector<128x128xf32>
    %c2_108 = arith.constant 2 : index
    %c0_109 = arith.constant 0 : index
    %c0_110 = arith.constant 0 : index
    %204 = vector.load %arg7[%c2_108, %c0_109, %c0_110] : memref<5x128x128xf32, #tpu.memory_space<vmem>>, vector<1x128x128xf32>
    %205 = vector.shape_cast %204 : vector<1x128x128xf32> to vector<128x128xf32>
    %cst_111 = arith.constant dense<0.000000e+00> : vector<128x128xf32>
    %206 = tpu.matmul %203, %205, %cst_111 {dimension_numbers = #tpu.dot_dimension_numbers<[1], [0], [0], [1], [0, 0, 1, 1], [], []>} : vector<128x128xf32>, vector<128x128xf32>, vector<128x128xf32> -> vector<128x128xf32>
    %c2_112 = arith.constant 2 : index
    %c0_113 = arith.constant 0 : index
    %c0_114 = arith.constant 0 : index
    %207 = vector.load %arg8[%c2_112, %c0_113, %c0_114] : memref<5x1x128xf32, #tpu.memory_space<vmem>>, vector<1x1x128xf32>
    %208 = vector.shape_cast %207 : vector<1x1x128xf32> to vector<1x128xf32>
    %209 = vector.broadcast %208 : vector<1x128xf32> to vector<128x128xf32>
    %210 = arith.addf %206, %209 : vector<128x128xf32>
    %c2_115 = arith.constant 2 : index
    %c0_116 = arith.constant 0 : index
    %c0_117 = arith.constant 0 : index
    %211 = vector.load %arg9[%c2_115, %c0_116, %c0_117] : memref<5x1x128xf32, #tpu.memory_space<vmem>>, vector<1x1x128xf32>
    %212 = vector.shape_cast %211 : vector<1x1x128xf32> to vector<1x128xf32>
    %c2_118 = arith.constant 2 : index
    %c0_119 = arith.constant 0 : index
    %c0_120 = arith.constant 0 : index
    %213 = vector.load %arg10[%c2_118, %c0_119, %c0_120] : memref<5x1x128xf32, #tpu.memory_space<vmem>>, vector<1x1x128xf32>
    %214 = vector.shape_cast %213 : vector<1x1x128xf32> to vector<1x128xf32>
    %215 = vector.broadcast %0 : vector<128x1xf32> to vector<128x128xf32>
    %216 = arith.mulf %210, %215 : vector<128x128xf32>
    %cst_121 = arith.constant dense<0.000000e+00> : vector<128xf32>
    %217 = vector.multi_reduction <add>, %216, %cst_121 [0] : vector<128x128xf32> to vector<128xf32>
    %218 = vector.shape_cast %217 : vector<128xf32> to vector<1x128xf32>
    %cst_122 = arith.constant 6.250000e-02 : f32
    %219 = vector.broadcast %cst_122 : f32 to vector<1x128xf32>
    %220 = arith.mulf %218, %219 : vector<1x128xf32>
    %221 = arith.mulf %216, %216 : vector<128x128xf32>
    %cst_123 = arith.constant dense<0.000000e+00> : vector<128xf32>
    %222 = vector.multi_reduction <add>, %221, %cst_123 [0] : vector<128x128xf32> to vector<128xf32>
    %223 = vector.shape_cast %222 : vector<128xf32> to vector<1x128xf32>
    %cst_124 = arith.constant 6.250000e-02 : f32
    %224 = vector.broadcast %cst_124 : f32 to vector<1x128xf32>
    %225 = arith.mulf %223, %224 : vector<1x128xf32>
    %226 = arith.mulf %220, %220 : vector<1x128xf32>
    %227 = arith.subf %225, %226 : vector<1x128xf32>
    %cst_125 = arith.constant 0.000000e+00 : f32
    %228 = vector.broadcast %cst_125 : f32 to vector<1x128xf32>
    %229 = arith.maximumf %227, %228 : vector<1x128xf32>
    %230 = vector.broadcast %220 : vector<1x128xf32> to vector<128x128xf32>
    %231 = arith.subf %210, %230 : vector<128x128xf32>
    %cst_126 = arith.constant 9.99999974E-6 : f32
    %232 = vector.broadcast %cst_126 : f32 to vector<1x128xf32>
    %233 = arith.addf %229, %232 : vector<1x128xf32>
    %234 = math.rsqrt %233 : vector<1x128xf32>
    %235 = vector.broadcast %234 : vector<1x128xf32> to vector<128x128xf32>
    %236 = arith.mulf %231, %235 : vector<128x128xf32>
    %237 = vector.broadcast %212 : vector<1x128xf32> to vector<128x128xf32>
    %238 = arith.mulf %236, %237 : vector<128x128xf32>
    %239 = vector.broadcast %214 : vector<1x128xf32> to vector<128x128xf32>
    %240 = arith.addf %238, %239 : vector<128x128xf32>
    %cst_127 = arith.constant 0.000000e+00 : f32
    %241 = vector.broadcast %cst_127 : f32 to vector<128x128xf32>
    %242 = arith.maximumf %240, %241 : vector<128x128xf32>
    %c2_128 = arith.constant 2 : index
    %c0_129 = arith.constant 0 : index
    %c0_130 = arith.constant 0 : index
    %243 = vector.load %arg11[%c2_128, %c0_129, %c0_130] : memref<5x128x128xf32, #tpu.memory_space<vmem>>, vector<1x128x128xf32>
    %244 = vector.shape_cast %243 : vector<1x128x128xf32> to vector<128x128xf32>
    %cst_131 = arith.constant dense<0.000000e+00> : vector<128x128xf32>
    %245 = tpu.matmul %242, %244, %cst_131 {dimension_numbers = #tpu.dot_dimension_numbers<[1], [0], [0], [1], [0, 0, 1, 1], [], []>} : vector<128x128xf32>, vector<128x128xf32>, vector<128x128xf32> -> vector<128x128xf32>
    %c2_132 = arith.constant 2 : index
    %c0_133 = arith.constant 0 : index
    %c0_134 = arith.constant 0 : index
    %246 = vector.load %arg12[%c2_132, %c0_133, %c0_134] : memref<5x1x128xf32, #tpu.memory_space<vmem>>, vector<1x1x128xf32>
    %247 = vector.shape_cast %246 : vector<1x1x128xf32> to vector<1x128xf32>
    %248 = vector.broadcast %247 : vector<1x128xf32> to vector<128x128xf32>
    %249 = arith.addf %245, %248 : vector<128x128xf32>
    %c2_135 = arith.constant 2 : index
    %c0_136 = arith.constant 0 : index
    %c0_137 = arith.constant 0 : index
    %250 = vector.load %arg13[%c2_135, %c0_136, %c0_137] : memref<5x1x128xf32, #tpu.memory_space<vmem>>, vector<1x1x128xf32>
    %251 = vector.shape_cast %250 : vector<1x1x128xf32> to vector<1x128xf32>
    %c2_138 = arith.constant 2 : index
    %c0_139 = arith.constant 0 : index
    %c0_140 = arith.constant 0 : index
    %252 = vector.load %arg14[%c2_138, %c0_139, %c0_140] : memref<5x1x128xf32, #tpu.memory_space<vmem>>, vector<1x1x128xf32>
    %253 = vector.shape_cast %252 : vector<1x1x128xf32> to vector<1x128xf32>
    %254 = vector.broadcast %0 : vector<128x1xf32> to vector<128x128xf32>
    %255 = arith.mulf %249, %254 : vector<128x128xf32>
    %cst_141 = arith.constant dense<0.000000e+00> : vector<128xf32>
    %256 = vector.multi_reduction <add>, %255, %cst_141 [0] : vector<128x128xf32> to vector<128xf32>
    %257 = vector.shape_cast %256 : vector<128xf32> to vector<1x128xf32>
    %cst_142 = arith.constant 6.250000e-02 : f32
    %258 = vector.broadcast %cst_142 : f32 to vector<1x128xf32>
    %259 = arith.mulf %257, %258 : vector<1x128xf32>
    %260 = arith.mulf %255, %255 : vector<128x128xf32>
    %cst_143 = arith.constant dense<0.000000e+00> : vector<128xf32>
    %261 = vector.multi_reduction <add>, %260, %cst_143 [0] : vector<128x128xf32> to vector<128xf32>
    %262 = vector.shape_cast %261 : vector<128xf32> to vector<1x128xf32>
    %cst_144 = arith.constant 6.250000e-02 : f32
    %263 = vector.broadcast %cst_144 : f32 to vector<1x128xf32>
    %264 = arith.mulf %262, %263 : vector<1x128xf32>
    %265 = arith.mulf %259, %259 : vector<1x128xf32>
    %266 = arith.subf %264, %265 : vector<1x128xf32>
    %cst_145 = arith.constant 0.000000e+00 : f32
    %267 = vector.broadcast %cst_145 : f32 to vector<1x128xf32>
    %268 = arith.maximumf %266, %267 : vector<1x128xf32>
    %269 = vector.broadcast %259 : vector<1x128xf32> to vector<128x128xf32>
    %270 = arith.subf %249, %269 : vector<128x128xf32>
    %cst_146 = arith.constant 9.99999974E-6 : f32
    %271 = vector.broadcast %cst_146 : f32 to vector<1x128xf32>
    %272 = arith.addf %268, %271 : vector<1x128xf32>
    %273 = math.rsqrt %272 : vector<1x128xf32>
    %274 = vector.broadcast %273 : vector<1x128xf32> to vector<128x128xf32>
    %275 = arith.mulf %270, %274 : vector<128x128xf32>
    %276 = vector.broadcast %251 : vector<1x128xf32> to vector<128x128xf32>
    %277 = arith.mulf %275, %276 : vector<128x128xf32>
    %278 = vector.broadcast %253 : vector<1x128xf32> to vector<128x128xf32>
    %279 = arith.addf %277, %278 : vector<128x128xf32>
    %cst_147 = arith.constant 0.000000e+00 : f32
    %280 = vector.broadcast %cst_147 : f32 to vector<128x128xf32>
    %281 = arith.maximumf %279, %280 : vector<128x128xf32>
    %282 = vector.broadcast %0 : vector<128x1xf32> to vector<128x128xf32>
    %283 = arith.mulf %281, %282 : vector<128x128xf32>
    %cst_148 = arith.constant dense<0.000000e+00> : vector<128x128xf32>
    %284 = tpu.matmul %2, %283, %cst_148 {dimension_numbers = #tpu.dot_dimension_numbers<[1], [0], [0], [1], [0, 0, 1, 1], [], []>} : vector<128x128xf32>, vector<128x128xf32>, vector<128x128xf32> -> vector<128x128xf32>
    %c3 = arith.constant 3 : index
    %c0_149 = arith.constant 0 : index
    %c0_150 = arith.constant 0 : index
    %285 = vector.load %arg6[%c3, %c0_149, %c0_150] : memref<5x128x128xf32, #tpu.memory_space<vmem>>, vector<1x128x128xf32>
    %286 = vector.shape_cast %285 : vector<1x128x128xf32> to vector<128x128xf32>
    %287 = arith.addf %284, %286 : vector<128x128xf32>
    %cst_151 = arith.constant 0.000000e+00 : f32
    %288 = vector.broadcast %cst_151 : f32 to vector<128x128xf32>
    %289 = arith.maximumf %287, %288 : vector<128x128xf32>
    %cst_152 = arith.constant dense<0.000000e+00> : vector<128x128xf32>
    %290 = tpu.matmul %4, %289, %cst_152 {dimension_numbers = #tpu.dot_dimension_numbers<[1], [0], [0], [1], [0, 0, 1, 1], [], []>} : vector<128x128xf32>, vector<128x128xf32>, vector<128x128xf32> -> vector<128x128xf32>
    %c3_153 = arith.constant 3 : index
    %291 = memref.load %arg0[%c3_153] : memref<5xf32, #tpu.memory_space<smem>>
    %cst_154 = arith.constant 1.000000e+00 : f32
    %292 = arith.addf %cst_154, %291 : f32
    %293 = vector.broadcast %292 : f32 to vector<128x128xf32>
    %294 = arith.mulf %293, %283 : vector<128x128xf32>
    %295 = arith.addf %294, %290 : vector<128x128xf32>
    %c3_155 = arith.constant 3 : index
    %c0_156 = arith.constant 0 : index
    %c0_157 = arith.constant 0 : index
    %296 = vector.load %arg7[%c3_155, %c0_156, %c0_157] : memref<5x128x128xf32, #tpu.memory_space<vmem>>, vector<1x128x128xf32>
    %297 = vector.shape_cast %296 : vector<1x128x128xf32> to vector<128x128xf32>
    %cst_158 = arith.constant dense<0.000000e+00> : vector<128x128xf32>
    %298 = tpu.matmul %295, %297, %cst_158 {dimension_numbers = #tpu.dot_dimension_numbers<[1], [0], [0], [1], [0, 0, 1, 1], [], []>} : vector<128x128xf32>, vector<128x128xf32>, vector<128x128xf32> -> vector<128x128xf32>
    %c3_159 = arith.constant 3 : index
    %c0_160 = arith.constant 0 : index
    %c0_161 = arith.constant 0 : index
    %299 = vector.load %arg8[%c3_159, %c0_160, %c0_161] : memref<5x1x128xf32, #tpu.memory_space<vmem>>, vector<1x1x128xf32>
    %300 = vector.shape_cast %299 : vector<1x1x128xf32> to vector<1x128xf32>
    %301 = vector.broadcast %300 : vector<1x128xf32> to vector<128x128xf32>
    %302 = arith.addf %298, %301 : vector<128x128xf32>
    %c3_162 = arith.constant 3 : index
    %c0_163 = arith.constant 0 : index
    %c0_164 = arith.constant 0 : index
    %303 = vector.load %arg9[%c3_162, %c0_163, %c0_164] : memref<5x1x128xf32, #tpu.memory_space<vmem>>, vector<1x1x128xf32>
    %304 = vector.shape_cast %303 : vector<1x1x128xf32> to vector<1x128xf32>
    %c3_165 = arith.constant 3 : index
    %c0_166 = arith.constant 0 : index
    %c0_167 = arith.constant 0 : index
    %305 = vector.load %arg10[%c3_165, %c0_166, %c0_167] : memref<5x1x128xf32, #tpu.memory_space<vmem>>, vector<1x1x128xf32>
    %306 = vector.shape_cast %305 : vector<1x1x128xf32> to vector<1x128xf32>
    %307 = vector.broadcast %0 : vector<128x1xf32> to vector<128x128xf32>
    %308 = arith.mulf %302, %307 : vector<128x128xf32>
    %cst_168 = arith.constant dense<0.000000e+00> : vector<128xf32>
    %309 = vector.multi_reduction <add>, %308, %cst_168 [0] : vector<128x128xf32> to vector<128xf32>
    %310 = vector.shape_cast %309 : vector<128xf32> to vector<1x128xf32>
    %cst_169 = arith.constant 6.250000e-02 : f32
    %311 = vector.broadcast %cst_169 : f32 to vector<1x128xf32>
    %312 = arith.mulf %310, %311 : vector<1x128xf32>
    %313 = arith.mulf %308, %308 : vector<128x128xf32>
    %cst_170 = arith.constant dense<0.000000e+00> : vector<128xf32>
    %314 = vector.multi_reduction <add>, %313, %cst_170 [0] : vector<128x128xf32> to vector<128xf32>
    %315 = vector.shape_cast %314 : vector<128xf32> to vector<1x128xf32>
    %cst_171 = arith.constant 6.250000e-02 : f32
    %316 = vector.broadcast %cst_171 : f32 to vector<1x128xf32>
    %317 = arith.mulf %315, %316 : vector<1x128xf32>
    %318 = arith.mulf %312, %312 : vector<1x128xf32>
    %319 = arith.subf %317, %318 : vector<1x128xf32>
    %cst_172 = arith.constant 0.000000e+00 : f32
    %320 = vector.broadcast %cst_172 : f32 to vector<1x128xf32>
    %321 = arith.maximumf %319, %320 : vector<1x128xf32>
    %322 = vector.broadcast %312 : vector<1x128xf32> to vector<128x128xf32>
    %323 = arith.subf %302, %322 : vector<128x128xf32>
    %cst_173 = arith.constant 9.99999974E-6 : f32
    %324 = vector.broadcast %cst_173 : f32 to vector<1x128xf32>
    %325 = arith.addf %321, %324 : vector<1x128xf32>
    %326 = math.rsqrt %325 : vector<1x128xf32>
    %327 = vector.broadcast %326 : vector<1x128xf32> to vector<128x128xf32>
    %328 = arith.mulf %323, %327 : vector<128x128xf32>
    %329 = vector.broadcast %304 : vector<1x128xf32> to vector<128x128xf32>
    %330 = arith.mulf %328, %329 : vector<128x128xf32>
    %331 = vector.broadcast %306 : vector<1x128xf32> to vector<128x128xf32>
    %332 = arith.addf %330, %331 : vector<128x128xf32>
    %cst_174 = arith.constant 0.000000e+00 : f32
    %333 = vector.broadcast %cst_174 : f32 to vector<128x128xf32>
    %334 = arith.maximumf %332, %333 : vector<128x128xf32>
    %c3_175 = arith.constant 3 : index
    %c0_176 = arith.constant 0 : index
    %c0_177 = arith.constant 0 : index
    %335 = vector.load %arg11[%c3_175, %c0_176, %c0_177] : memref<5x128x128xf32, #tpu.memory_space<vmem>>, vector<1x128x128xf32>
    %336 = vector.shape_cast %335 : vector<1x128x128xf32> to vector<128x128xf32>
    %cst_178 = arith.constant dense<0.000000e+00> : vector<128x128xf32>
    %337 = tpu.matmul %334, %336, %cst_178 {dimension_numbers = #tpu.dot_dimension_numbers<[1], [0], [0], [1], [0, 0, 1, 1], [], []>} : vector<128x128xf32>, vector<128x128xf32>, vector<128x128xf32> -> vector<128x128xf32>
    %c3_179 = arith.constant 3 : index
    %c0_180 = arith.constant 0 : index
    %c0_181 = arith.constant 0 : index
    %338 = vector.load %arg12[%c3_179, %c0_180, %c0_181] : memref<5x1x128xf32, #tpu.memory_space<vmem>>, vector<1x1x128xf32>
    %339 = vector.shape_cast %338 : vector<1x1x128xf32> to vector<1x128xf32>
    %340 = vector.broadcast %339 : vector<1x128xf32> to vector<128x128xf32>
    %341 = arith.addf %337, %340 : vector<128x128xf32>
    %c3_182 = arith.constant 3 : index
    %c0_183 = arith.constant 0 : index
    %c0_184 = arith.constant 0 : index
    %342 = vector.load %arg13[%c3_182, %c0_183, %c0_184] : memref<5x1x128xf32, #tpu.memory_space<vmem>>, vector<1x1x128xf32>
    %343 = vector.shape_cast %342 : vector<1x1x128xf32> to vector<1x128xf32>
    %c3_185 = arith.constant 3 : index
    %c0_186 = arith.constant 0 : index
    %c0_187 = arith.constant 0 : index
    %344 = vector.load %arg14[%c3_185, %c0_186, %c0_187] : memref<5x1x128xf32, #tpu.memory_space<vmem>>, vector<1x1x128xf32>
    %345 = vector.shape_cast %344 : vector<1x1x128xf32> to vector<1x128xf32>
    %346 = vector.broadcast %0 : vector<128x1xf32> to vector<128x128xf32>
    %347 = arith.mulf %341, %346 : vector<128x128xf32>
    %cst_188 = arith.constant dense<0.000000e+00> : vector<128xf32>
    %348 = vector.multi_reduction <add>, %347, %cst_188 [0] : vector<128x128xf32> to vector<128xf32>
    %349 = vector.shape_cast %348 : vector<128xf32> to vector<1x128xf32>
    %cst_189 = arith.constant 6.250000e-02 : f32
    %350 = vector.broadcast %cst_189 : f32 to vector<1x128xf32>
    %351 = arith.mulf %349, %350 : vector<1x128xf32>
    %352 = arith.mulf %347, %347 : vector<128x128xf32>
    %cst_190 = arith.constant dense<0.000000e+00> : vector<128xf32>
    %353 = vector.multi_reduction <add>, %352, %cst_190 [0] : vector<128x128xf32> to vector<128xf32>
    %354 = vector.shape_cast %353 : vector<128xf32> to vector<1x128xf32>
    %cst_191 = arith.constant 6.250000e-02 : f32
    %355 = vector.broadcast %cst_191 : f32 to vector<1x128xf32>
    %356 = arith.mulf %354, %355 : vector<1x128xf32>
    %357 = arith.mulf %351, %351 : vector<1x128xf32>
    %358 = arith.subf %356, %357 : vector<1x128xf32>
    %cst_192 = arith.constant 0.000000e+00 : f32
    %359 = vector.broadcast %cst_192 : f32 to vector<1x128xf32>
    %360 = arith.maximumf %358, %359 : vector<1x128xf32>
    %361 = vector.broadcast %351 : vector<1x128xf32> to vector<128x128xf32>
    %362 = arith.subf %341, %361 : vector<128x128xf32>
    %cst_193 = arith.constant 9.99999974E-6 : f32
    %363 = vector.broadcast %cst_193 : f32 to vector<1x128xf32>
    %364 = arith.addf %360, %363 : vector<1x128xf32>
    %365 = math.rsqrt %364 : vector<1x128xf32>
    %366 = vector.broadcast %365 : vector<1x128xf32> to vector<128x128xf32>
    %367 = arith.mulf %362, %366 : vector<128x128xf32>
    %368 = vector.broadcast %343 : vector<1x128xf32> to vector<128x128xf32>
    %369 = arith.mulf %367, %368 : vector<128x128xf32>
    %370 = vector.broadcast %345 : vector<1x128xf32> to vector<128x128xf32>
    %371 = arith.addf %369, %370 : vector<128x128xf32>
    %cst_194 = arith.constant 0.000000e+00 : f32
    %372 = vector.broadcast %cst_194 : f32 to vector<128x128xf32>
    %373 = arith.maximumf %371, %372 : vector<128x128xf32>
    %374 = vector.broadcast %0 : vector<128x1xf32> to vector<128x128xf32>
    %375 = arith.mulf %373, %374 : vector<128x128xf32>
    %cst_195 = arith.constant dense<0.000000e+00> : vector<128x128xf32>
    %376 = tpu.matmul %2, %375, %cst_195 {dimension_numbers = #tpu.dot_dimension_numbers<[1], [0], [0], [1], [0, 0, 1, 1], [], []>} : vector<128x128xf32>, vector<128x128xf32>, vector<128x128xf32> -> vector<128x128xf32>
    %c4 = arith.constant 4 : index
    %c0_196 = arith.constant 0 : index
    %c0_197 = arith.constant 0 : index
    %377 = vector.load %arg6[%c4, %c0_196, %c0_197] : memref<5x128x128xf32, #tpu.memory_space<vmem>>, vector<1x128x128xf32>
    %378 = vector.shape_cast %377 : vector<1x128x128xf32> to vector<128x128xf32>
    %379 = arith.addf %376, %378 : vector<128x128xf32>
    %cst_198 = arith.constant 0.000000e+00 : f32
    %380 = vector.broadcast %cst_198 : f32 to vector<128x128xf32>
    %381 = arith.maximumf %379, %380 : vector<128x128xf32>
    %cst_199 = arith.constant dense<0.000000e+00> : vector<128x128xf32>
    %382 = tpu.matmul %4, %381, %cst_199 {dimension_numbers = #tpu.dot_dimension_numbers<[1], [0], [0], [1], [0, 0, 1, 1], [], []>} : vector<128x128xf32>, vector<128x128xf32>, vector<128x128xf32> -> vector<128x128xf32>
    %c4_200 = arith.constant 4 : index
    %383 = memref.load %arg0[%c4_200] : memref<5xf32, #tpu.memory_space<smem>>
    %cst_201 = arith.constant 1.000000e+00 : f32
    %384 = arith.addf %cst_201, %383 : f32
    %385 = vector.broadcast %384 : f32 to vector<128x128xf32>
    %386 = arith.mulf %385, %375 : vector<128x128xf32>
    %387 = arith.addf %386, %382 : vector<128x128xf32>
    %c4_202 = arith.constant 4 : index
    %c0_203 = arith.constant 0 : index
    %c0_204 = arith.constant 0 : index
    %388 = vector.load %arg7[%c4_202, %c0_203, %c0_204] : memref<5x128x128xf32, #tpu.memory_space<vmem>>, vector<1x128x128xf32>
    %389 = vector.shape_cast %388 : vector<1x128x128xf32> to vector<128x128xf32>
    %cst_205 = arith.constant dense<0.000000e+00> : vector<128x128xf32>
    %390 = tpu.matmul %387, %389, %cst_205 {dimension_numbers = #tpu.dot_dimension_numbers<[1], [0], [0], [1], [0, 0, 1, 1], [], []>} : vector<128x128xf32>, vector<128x128xf32>, vector<128x128xf32> -> vector<128x128xf32>
    %c4_206 = arith.constant 4 : index
    %c0_207 = arith.constant 0 : index
    %c0_208 = arith.constant 0 : index
    %391 = vector.load %arg8[%c4_206, %c0_207, %c0_208] : memref<5x1x128xf32, #tpu.memory_space<vmem>>, vector<1x1x128xf32>
    %392 = vector.shape_cast %391 : vector<1x1x128xf32> to vector<1x128xf32>
    %393 = vector.broadcast %392 : vector<1x128xf32> to vector<128x128xf32>
    %394 = arith.addf %390, %393 : vector<128x128xf32>
    %c4_209 = arith.constant 4 : index
    %c0_210 = arith.constant 0 : index
    %c0_211 = arith.constant 0 : index
    %395 = vector.load %arg9[%c4_209, %c0_210, %c0_211] : memref<5x1x128xf32, #tpu.memory_space<vmem>>, vector<1x1x128xf32>
    %396 = vector.shape_cast %395 : vector<1x1x128xf32> to vector<1x128xf32>
    %c4_212 = arith.constant 4 : index
    %c0_213 = arith.constant 0 : index
    %c0_214 = arith.constant 0 : index
    %397 = vector.load %arg10[%c4_212, %c0_213, %c0_214] : memref<5x1x128xf32, #tpu.memory_space<vmem>>, vector<1x1x128xf32>
    %398 = vector.shape_cast %397 : vector<1x1x128xf32> to vector<1x128xf32>
    %399 = vector.broadcast %0 : vector<128x1xf32> to vector<128x128xf32>
    %400 = arith.mulf %394, %399 : vector<128x128xf32>
    %cst_215 = arith.constant dense<0.000000e+00> : vector<128xf32>
    %401 = vector.multi_reduction <add>, %400, %cst_215 [0] : vector<128x128xf32> to vector<128xf32>
    %402 = vector.shape_cast %401 : vector<128xf32> to vector<1x128xf32>
    %cst_216 = arith.constant 6.250000e-02 : f32
    %403 = vector.broadcast %cst_216 : f32 to vector<1x128xf32>
    %404 = arith.mulf %402, %403 : vector<1x128xf32>
    %405 = arith.mulf %400, %400 : vector<128x128xf32>
    %cst_217 = arith.constant dense<0.000000e+00> : vector<128xf32>
    %406 = vector.multi_reduction <add>, %405, %cst_217 [0] : vector<128x128xf32> to vector<128xf32>
    %407 = vector.shape_cast %406 : vector<128xf32> to vector<1x128xf32>
    %cst_218 = arith.constant 6.250000e-02 : f32
    %408 = vector.broadcast %cst_218 : f32 to vector<1x128xf32>
    %409 = arith.mulf %407, %408 : vector<1x128xf32>
    %410 = arith.mulf %404, %404 : vector<1x128xf32>
    %411 = arith.subf %409, %410 : vector<1x128xf32>
    %cst_219 = arith.constant 0.000000e+00 : f32
    %412 = vector.broadcast %cst_219 : f32 to vector<1x128xf32>
    %413 = arith.maximumf %411, %412 : vector<1x128xf32>
    %414 = vector.broadcast %404 : vector<1x128xf32> to vector<128x128xf32>
    %415 = arith.subf %394, %414 : vector<128x128xf32>
    %cst_220 = arith.constant 9.99999974E-6 : f32
    %416 = vector.broadcast %cst_220 : f32 to vector<1x128xf32>
    %417 = arith.addf %413, %416 : vector<1x128xf32>
    %418 = math.rsqrt %417 : vector<1x128xf32>
    %419 = vector.broadcast %418 : vector<1x128xf32> to vector<128x128xf32>
    %420 = arith.mulf %415, %419 : vector<128x128xf32>
    %421 = vector.broadcast %396 : vector<1x128xf32> to vector<128x128xf32>
    %422 = arith.mulf %420, %421 : vector<128x128xf32>
    %423 = vector.broadcast %398 : vector<1x128xf32> to vector<128x128xf32>
    %424 = arith.addf %422, %423 : vector<128x128xf32>
    %cst_221 = arith.constant 0.000000e+00 : f32
    %425 = vector.broadcast %cst_221 : f32 to vector<128x128xf32>
    %426 = arith.maximumf %424, %425 : vector<128x128xf32>
    %c4_222 = arith.constant 4 : index
    %c0_223 = arith.constant 0 : index
    %c0_224 = arith.constant 0 : index
    %427 = vector.load %arg11[%c4_222, %c0_223, %c0_224] : memref<5x128x128xf32, #tpu.memory_space<vmem>>, vector<1x128x128xf32>
    %428 = vector.shape_cast %427 : vector<1x128x128xf32> to vector<128x128xf32>
    %cst_225 = arith.constant dense<0.000000e+00> : vector<128x128xf32>
    %429 = tpu.matmul %426, %428, %cst_225 {dimension_numbers = #tpu.dot_dimension_numbers<[1], [0], [0], [1], [0, 0, 1, 1], [], []>} : vector<128x128xf32>, vector<128x128xf32>, vector<128x128xf32> -> vector<128x128xf32>
    %c4_226 = arith.constant 4 : index
    %c0_227 = arith.constant 0 : index
    %c0_228 = arith.constant 0 : index
    %430 = vector.load %arg12[%c4_226, %c0_227, %c0_228] : memref<5x1x128xf32, #tpu.memory_space<vmem>>, vector<1x1x128xf32>
    %431 = vector.shape_cast %430 : vector<1x1x128xf32> to vector<1x128xf32>
    %432 = vector.broadcast %431 : vector<1x128xf32> to vector<128x128xf32>
    %433 = arith.addf %429, %432 : vector<128x128xf32>
    %c4_229 = arith.constant 4 : index
    %c0_230 = arith.constant 0 : index
    %c0_231 = arith.constant 0 : index
    %434 = vector.load %arg13[%c4_229, %c0_230, %c0_231] : memref<5x1x128xf32, #tpu.memory_space<vmem>>, vector<1x1x128xf32>
    %435 = vector.shape_cast %434 : vector<1x1x128xf32> to vector<1x128xf32>
    %c4_232 = arith.constant 4 : index
    %c0_233 = arith.constant 0 : index
    %c0_234 = arith.constant 0 : index
    %436 = vector.load %arg14[%c4_232, %c0_233, %c0_234] : memref<5x1x128xf32, #tpu.memory_space<vmem>>, vector<1x1x128xf32>
    %437 = vector.shape_cast %436 : vector<1x1x128xf32> to vector<1x128xf32>
    %438 = vector.broadcast %0 : vector<128x1xf32> to vector<128x128xf32>
    %439 = arith.mulf %433, %438 : vector<128x128xf32>
    %cst_235 = arith.constant dense<0.000000e+00> : vector<128xf32>
    %440 = vector.multi_reduction <add>, %439, %cst_235 [0] : vector<128x128xf32> to vector<128xf32>
    %441 = vector.shape_cast %440 : vector<128xf32> to vector<1x128xf32>
    %cst_236 = arith.constant 6.250000e-02 : f32
    %442 = vector.broadcast %cst_236 : f32 to vector<1x128xf32>
    %443 = arith.mulf %441, %442 : vector<1x128xf32>
    %444 = arith.mulf %439, %439 : vector<128x128xf32>
    %cst_237 = arith.constant dense<0.000000e+00> : vector<128xf32>
    %445 = vector.multi_reduction <add>, %444, %cst_237 [0] : vector<128x128xf32> to vector<128xf32>
    %446 = vector.shape_cast %445 : vector<128xf32> to vector<1x128xf32>
    %cst_238 = arith.constant 6.250000e-02 : f32
    %447 = vector.broadcast %cst_238 : f32 to vector<1x128xf32>
    %448 = arith.mulf %446, %447 : vector<1x128xf32>
    %449 = arith.mulf %443, %443 : vector<1x128xf32>
    %450 = arith.subf %448, %449 : vector<1x128xf32>
    %cst_239 = arith.constant 0.000000e+00 : f32
    %451 = vector.broadcast %cst_239 : f32 to vector<1x128xf32>
    %452 = arith.maximumf %450, %451 : vector<1x128xf32>
    %453 = vector.broadcast %443 : vector<1x128xf32> to vector<128x128xf32>
    %454 = arith.subf %433, %453 : vector<128x128xf32>
    %cst_240 = arith.constant 9.99999974E-6 : f32
    %455 = vector.broadcast %cst_240 : f32 to vector<1x128xf32>
    %456 = arith.addf %452, %455 : vector<1x128xf32>
    %457 = math.rsqrt %456 : vector<1x128xf32>
    %458 = vector.broadcast %457 : vector<1x128xf32> to vector<128x128xf32>
    %459 = arith.mulf %454, %458 : vector<128x128xf32>
    %460 = vector.broadcast %435 : vector<1x128xf32> to vector<128x128xf32>
    %461 = arith.mulf %459, %460 : vector<128x128xf32>
    %462 = vector.broadcast %437 : vector<1x128xf32> to vector<128x128xf32>
    %463 = arith.addf %461, %462 : vector<128x128xf32>
    %cst_241 = arith.constant 0.000000e+00 : f32
    %464 = vector.broadcast %cst_241 : f32 to vector<128x128xf32>
    %465 = arith.maximumf %463, %464 : vector<128x128xf32>
    %466 = vector.broadcast %0 : vector<128x1xf32> to vector<128x128xf32>
    %467 = arith.mulf %465, %466 : vector<128x128xf32>
    %c0_242 = arith.constant 0 : index
    %c0_243 = arith.constant 0 : index
    %468 = vector.load %arg15[%c0_242, %c0_243] : memref<8x128xbf16, #tpu.memory_space<vmem>>, vector<8x128xbf16>
    %469 = arith.extf %468 : vector<8x128xbf16> to vector<8x128xf32>
    %cst_244 = arith.constant dense<0.000000e+00> : vector<8x128xf32>
    %470 = tpu.matmul %469, %467, %cst_244 {dimension_numbers = #tpu.dot_dimension_numbers<[1], [0], [0], [1], [0, 0, 1, 1], [], []>} : vector<8x128xf32>, vector<128x128xf32>, vector<8x128xf32> -> vector<8x128xf32>
    %c0_245 = arith.constant 0 : index
    %c0_246 = arith.constant 0 : index
    %471 = vector.load %arg5[%c0_245, %c0_246] : memref<8x1xf32, #tpu.memory_space<vmem>>, vector<8x1xf32>
    %472 = vector.broadcast %471 : vector<8x1xf32> to vector<8x128xf32>
    %473 = arith.mulf %470, %472 : vector<8x128xf32>
    %c0_247 = arith.constant 0 : index
    %c0_248 = arith.constant 0 : index
    %474 = vector.load %arg16[%c0_247, %c0_248] : memref<128x128xf32, #tpu.memory_space<vmem>>, vector<128x128xf32>
    %cst_249 = arith.constant dense<0.000000e+00> : vector<8x128xf32>
    %475 = tpu.matmul %473, %474, %cst_249 {dimension_numbers = #tpu.dot_dimension_numbers<[1], [0], [0], [1], [0, 0, 1, 1], [], []>} : vector<8x128xf32>, vector<128x128xf32>, vector<8x128xf32> -> vector<8x128xf32>
    %c0_250 = arith.constant 0 : index
    %c0_251 = arith.constant 0 : index
    %476 = vector.load %arg17[%c0_250, %c0_251] : memref<1x128xf32, #tpu.memory_space<vmem>>, vector<1x128xf32>
    %477 = vector.broadcast %476 : vector<1x128xf32> to vector<8x128xf32>
    %478 = arith.addf %475, %477 : vector<8x128xf32>
    %479 = arith.mulf %478, %478 : vector<8x128xf32>
    %cst_252 = arith.constant dense<0.000000e+00> : vector<8xf32>
    %480 = vector.multi_reduction <add>, %479, %cst_252 [1] : vector<8x128xf32> to vector<8xf32>
    %481 = vector.shape_cast %480 : vector<8xf32> to vector<8x1xf32>
    %482 = math.sqrt %481 : vector<8x1xf32>
    %cst_253 = arith.constant 9.99999996E-13 : f32
    %483 = vector.broadcast %cst_253 : f32 to vector<8x1xf32>
    %484 = arith.maximumf %482, %483 : vector<8x1xf32>
    %485 = vector.broadcast %484 : vector<8x1xf32> to vector<8x128xf32>
    %486 = arith.divf %478, %485 : vector<8x128xf32>
    %c0_254 = arith.constant 0 : index
    %c0_255 = arith.constant 0 : index
    %487 = vector.load %arg18[%c0_254, %c0_255] : memref<8x128xf32, #tpu.memory_space<vmem>>, vector<8x128xf32>
    tpu.vector_store %arg18[%c0_254, %c0_255], %486 {strides = array<i32>} : memref<8x128xf32, #tpu.memory_space<vmem>>, vector<8x128xf32>,
    return
  }
}

</mosaic_0001>

<bundles_post_ra>
// kernel: tpu_custom_call.1
= control target key start
LH: loop header
LB: loop body
LE: loop exit
PB: predicated region body
PF: predicated region fallthrough
CT: control target
= control target key end

     0   :  { %s11373_s0 = inlined_call_operand.hbm [shape: f32[5], index: 0, kind: input, shape index: {}]   ;;  %s11374_s1 = inlined_call_operand.vmem [shape: f32[128,128], index: 1, kind: input, shape index: {}]   ;;  %s11375_s2 = inlined_call_operand.hbm [shape: bf16[128,128], index: 2, kind: input, shape index: {}]   ;;  %s11376_s3 = inlined_call_operand.hbm [shape: bf16[128,128], index: 3, kind: input, shape index: {}]   ;;  %s11377_s4 = inlined_call_operand.vmem [shape: f32[128,1], index: 4, kind: input, shape index: {}]   ;;  %s11378_s5 = inlined_call_operand.vmem [shape: f32[8,1], index: 5, kind: input, shape index: {}]   ;;  %s11379_s6 = inlined_call_operand.hbm [shape: f32[5,128,128], index: 6, kind: input, shape index: {}]   ;;  %s11380_s7 = inlined_call_operand.hbm [shape: f32[5,128,128], index: 7, kind: input, shape index: {}]   ;;  %s11381_s8 = inlined_call_operand.vmem [shape: f32[5,1,128], index: 8, kind: input, shape index: {}]   ;;  %s11382_s9 = inlined_call_operand.vmem [shape: f32[5,1,128], index: 9, kind: input, shape index: {}]   ;;  %s11383_s10 = inlined_call_operand.vmem [shape: f32[5,1,128], index: 10, kind: input, shape index: {}]   ;;  %s11384_s11 = inlined_call_operand.hbm [shape: f32[5,128,128], index: 11, kind: input, shape index: {}]   ;;  %s11385_s12 = inlined_call_operand.vmem [shape: f32[5,1,128], index: 12, kind: input, shape index: {}]   ;;  %s11386_s13 = inlined_call_operand.vmem [shape: f32[5,1,128], index: 13, kind: input, shape index: {}]   ;;  %s11387_s14 = inlined_call_operand.vmem [shape: f32[5,1,128], index: 14, kind: input, shape index: {}]   ;;  %s11388_s15 = inlined_call_operand.vmem [shape: bf16[8,128], index: 15, kind: input, shape index: {}]   ;;  %s11389_s16 = inlined_call_operand.hbm [shape: f32[128,128], index: 16, kind: input, shape index: {}]   ;;  %s11390_s17 = inlined_call_operand.vmem [shape: f32[1,128], index: 17, kind: input, shape index: {}]   ;;  %s11391_s18 = inlined_call_operand.hbm [shape: f32[8,128], index: 18, kind: output, shape index: {}]  }
   0x1   :  { %11453 = sst [smem:[#allocation48_spill]] %s11373_s0 }
   0x2   :  { %11454 = sst [smem:[#allocation49_spill]] %s11374_s1 }
   0x3   :  { %11455 = sst [smem:[#allocation50_spill]] %s11375_s2 }
   0x4   :  { %23 = vsyncpa [#allocation5], 0 }
   0x5   :  { %24 = vsyncpa [#allocation3], 0 }
   0x6   :  { %25 = vsyncpa [#allocation8], 0 }
   0x7   :  { %26 = vsyncpa [#allocation11], 0 }
   0x8   :  { %27 = vsyncpa [#allocation14], 0 }
   0x9   :  { %28 = vsyncpa [#allocation4], 0  ;;  %s8788_s27 = smov [#allocation7]   ;;  %s8612_s0 = scalar_lea.hbm %s11376_s3, 1024 }
   0xa   :  { %s56_s28 = sshll.u32 %s8788_s27, 4  ;;  %p8613_p0 = scmp.ne.s32.totalorder %s11376_s3, %s8612_s0  ;;  %s57_s28 = int_to_ptr.vmem [resolvable:$true] %s56_s28 }
   0xb   :  { %p8616_p1 = scmp.lt.u32.totalorder %s8612_s0, %s11376_s3 }
   0xd   :  { %p8618_p2 = pnand %p8616_p1, %p8613_p0 }
   0xf   :  { %8621 = shalt.err (!%p8618_p2)
}
  0x10   :  { %s8622_s22 = scalar_lea.vmem %s57_s28, 1024  ;;  %p8627_p4 = scmp.lt.s32.totalorder %s57_s28, %s57_s28 }
  0x11   :  { %p8623_p3 = scmp.ne.s32.totalorder %s57_s28, %s8622_s22  ;;  %p8628_p5 = scmp.lt.s32.totalorder %s8622_s22, %s8622_s22 }
  0x13   :  { %p8629_p6 = por %p8628_p5, %p8627_p4 }
  0x15   :  { %p8630_p7 = pnand %p8629_p6, %p8623_p3 }
  0x17   :  { %8633 = shalt.err (!%p8630_p7)
}
  0x18   :  { %s11395_s2 = smov 64   ;;  %s11396_s23 = smov 4  }
  0x19   :  { %62 = dma.hbm_to_vmem [thread:$0]  %s11376_s3, 1024, %s57_s28, [#allocation8], %s11395_s2, %s11395_s2, %s11396_s23  }
  0x1a   :  { %s8791_s26 = smov [#allocation10]   ;;  %s8634_s0 = scalar_lea.hbm %s11380_s7, 10240 }
  0x1b   :  { %s84_s27 = sshll.u32 %s8791_s26, 4  ;;  %p8635_p8 = scmp.ne.s32.totalorder %s11380_s7, %s8634_s0  ;;  %s85_s27 = int_to_ptr.vmem [resolvable:$true] %s84_s27 }
  0x1c   :  { %p8638_p9 = scmp.lt.u32.totalorder %s8634_s0, %s11380_s7 }
  0x1e   :  { %p8640_p10 = pnand %p8638_p9, %p8635_p8 }
  0x20   :  { %8643 = shalt.err (!%p8640_p10)
}
  0x21   :  { %s8644_s22 = scalar_lea.vmem %s85_s27, 10240  ;;  %p8649_p12 = scmp.lt.s32.totalorder %s85_s27, %s85_s27 }
  0x22   :  { %p8645_p11 = scmp.ne.s32.totalorder %s85_s27, %s8644_s22  ;;  %p8650_p13 = scmp.lt.s32.totalorder %s8644_s22, %s8644_s22 }
  0x24   :  { %p8651_p0 = por %p8650_p13, %p8649_p12 }
  0x26   :  { %p8652_p1 = pnand %p8651_p0, %p8645_p11 }
  0x28   :  { %8655 = shalt.err (!%p8652_p1)
}
  0x29   :  { %s11397_s3 = smov 128   ;;  %s11399_s28 = smov 8  }
  0x2a   :  { %90 = dma.hbm_to_vmem [thread:$0]  %s11380_s7, 10240, %s85_s27, [#allocation11], %s11397_s3, %s11397_s3, %s11399_s28  }
  0x2b   :  { %s11456_s30 = sld [smem:[#allocation48_spill]] }
  0x31   :  { %s8656_s0 = scalar_lea.hbm %s11456_s30, 16 }
  0x32   :  { %p8657_p2 = scmp.ne.s32.totalorder %s11456_s30, %s8656_s0  ;;  %p8660_p3 = scmp.lt.u32.totalorder %s8656_s0, %s11456_s30 }
  0x34   :  { %p8662_p4 = pnand %p8660_p3, %p8657_p2 }
  0x36   :  { %8665 = shalt.err (!%p8662_p4)
}
  0x37   :  { %s8794_s22 = smov [#allocation2]   ;;  %s8795_s7 = smov [#allocation6]  }
  0x38   :  { %36 = dma.hbm_to_smem %s11456_s30, 16, %s8794_s22, [#allocation5]  }
  0x39   :  { %s44_s27 = sshll.u32 %s8795_s7, 4  ;;  %s8796_s24 = smov [#allocation9]   ;;  %s45_s27 = int_to_ptr.vmem [resolvable:$true] %s44_s27 }
  0x3a   :  { %s72_s25 = sshll.u32 %s8796_s24, 4  ;;  %s11457_s19 = sld [smem:[#allocation50_spill]]  ;;  %s73_s25 = int_to_ptr.vmem [resolvable:$true] %s72_s25 }
  0x40   :  { %s8666_s1 = scalar_lea.hbm %s11457_s19, 1024 }
  0x41   :  { %p8667_p5 = scmp.ne.s32.totalorder %s11457_s19, %s8666_s1  ;;  %p8670_p6 = scmp.lt.u32.totalorder %s8666_s1, %s11457_s19 }
  0x43   :  { %p8672_p7 = pnand %p8670_p6, %p8667_p5 }
  0x45   :  { %8675 = shalt.err (!%p8672_p7)
}
  0x46   :  { %s8676_s2 = scalar_lea.vmem %s45_s27, 1024  ;;  %p8681_p9 = scmp.lt.s32.totalorder %s45_s27, %s45_s27 }
  0x47   :  { %p8677_p8 = scmp.ne.s32.totalorder %s45_s27, %s8676_s2  ;;  %p8682_p10 = scmp.lt.s32.totalorder %s8676_s2, %s8676_s2 }
  0x49   :  { %p8683_p11 = por %p8682_p10, %p8681_p9 }
  0x4b   :  { %p8684_p12 = pnand %p8683_p11, %p8677_p8 }
  0x4d   :  { %8687 = shalt.err (!%p8684_p12)
}
  0x4e   :  { %s11458_s23 = smov 4   ;;  %s11459_s30 = smov 64  }
  0x4f   :  { %50 = dma.hbm_to_vmem [thread:$0]  %s11457_s19, 1024, %s45_s27, [#allocation3], %s11459_s30, %s11459_s30, %s11458_s23  }
  0x50   :  { %s8688_s7 = scalar_lea.hbm %s11379_s6, 10240 }
  0x51   :  { %p8689_p13 = scmp.ne.s32.totalorder %s11379_s6, %s8688_s7  ;;  %p8692_p0 = scmp.lt.u32.totalorder %s8688_s7, %s11379_s6 }
  0x53   :  { %p8694_p1 = pnand %p8692_p0, %p8689_p13 }
  0x55   :  { %8697 = shalt.err (!%p8694_p1)
}
  0x56   :  { %s8698_s0 = scalar_lea.vmem %s73_s25, 10240  ;;  %p8703_p3 = scmp.lt.s32.totalorder %s73_s25, %s73_s25 }
  0x57   :  { %p8699_p2 = scmp.ne.s32.totalorder %s73_s25, %s8698_s0  ;;  %p8704_p4 = scmp.lt.s32.totalorder %s8698_s0, %s8698_s0 }
  0x59   :  { %p8705_p5 = por %p8704_p4, %p8703_p3 }
  0x5b   :  { %p8706_p6 = pnand %p8705_p5, %p8699_p2 }
  0x5d   :  { %8709 = shalt.err (!%p8706_p6)
}
  0x5e   :  { %s11460_s27 = smov 8   ;;  %s11461_s19 = smov 128  }
  0x5f   :  { %78 = dma.hbm_to_vmem [thread:$0]  %s11379_s6, 10240, %s73_s25, [#allocation8], %s11461_s19, %s11461_s19, %s11460_s27  }
  0x60   :  { %s8797_s23 = smov [#allocation12]   ;;  %s8798_s21 = smov [#allocation13]  }
  0x61   :  { %s102_s30 = sshll.u32 %s8797_s23, 4  ;;  %s122_s22 = sshll.u32 %s8798_s21, 4  ;;  %s103_s30 = int_to_ptr.vmem [resolvable:$true] %s102_s30  ;;  %s123_s22 = int_to_ptr.vmem [resolvable:$true] %s122_s22 }
  0x62   :  { %s8710_s7 = scalar_lea.hbm %s11384_s11, 10240 }
  0x63   :  { %p8711_p7 = scmp.ne.s32.totalorder %s11384_s11, %s8710_s7  ;;  %p8714_p8 = scmp.lt.u32.totalorder %s8710_s7, %s11384_s11 }
  0x65   :  { %p8716_p9 = pnand %p8714_p8, %p8711_p7 }
  0x67   :  { %8719 = shalt.err (!%p8716_p9)
}
  0x68   :  { %s8720_s6 = scalar_lea.vmem %s103_s30, 10240  ;;  %p8725_p11 = scmp.lt.s32.totalorder %s103_s30, %s103_s30 }
  0x69   :  { %p8721_p10 = scmp.ne.s32.totalorder %s103_s30, %s8720_s6  ;;  %p8726_p12 = scmp.lt.s32.totalorder %s8720_s6, %s8720_s6 }
  0x6b   :  { %p8727_p13 = por %p8726_p12, %p8725_p11 }
  0x6d   :  { %p8728_p0 = pnand %p8727_p13, %p8721_p10 }
  0x6f   :  { %8731 = shalt.err (!%p8728_p0)
}
  0x70   :  { %108 = dma.hbm_to_vmem [thread:$0]  %s11384_s11, 10240, %s103_s30, [#allocation11], %s11461_s19, %s11461_s19, %s11460_s27  }
  0x71   :  { %s8732_s23 = scalar_lea.hbm %s11389_s16, 2048 }
  0x72   :  { %p8733_p1 = scmp.ne.s32.totalorder %s11389_s16, %s8732_s23  ;;  %p8736_p2 = scmp.lt.u32.totalorder %s8732_s23, %s11389_s16 }
  0x74   :  { %p8738_p3 = pnand %p8736_p2, %p8733_p1 }
  0x76   :  { %8741 = shalt.err (!%p8738_p3)
}
  0x77   :  { %s8742_s24 = scalar_lea.vmem %s123_s22, 2048  ;;  %p8747_p5 = scmp.lt.s32.totalorder %s123_s22, %s123_s22 }
  0x78   :  { %p8743_p4 = scmp.ne.s32.totalorder %s123_s22, %s8742_s24  ;;  %p8748_p6 = scmp.lt.s32.totalorder %s8742_s24, %s8742_s24 }
  0x7a   :  { %p8749_p7 = por %p8748_p6, %p8747_p5 }
  0x7c   :  { %p8750_p8 = pnand %p8749_p7, %p8743_p4 }
  0x7e   :  { %8753 = shalt.err (!%p8750_p8)
}
  0x7f   :  { %128 = dma.hbm_to_vmem [thread:$0]  %s11389_s16, 2048, %s123_s22, [#allocation14], %s11461_s19, %s11461_s19, %s11460_s27  }
  0x80   :  { %8776 = dma.done.wait [#allocation5], 16  }
  0x81   :  { %8777 = vsyncadd [#allocation5], 4294967280 }
  0x82   :  { %8778 = dma.done.wait [#allocation3], 1024  }
  0x83   :  { %8779 = vsyncadd [#allocation3], 4294966272 }
  0x84   :  { %8780 = dma.done.wait [#allocation8], 11264  }
  0x85   :  { %8781 = vsyncadd [#allocation8], 4294956032 }
  0x86   :  { %8782 = dma.done.wait [#allocation11], 20480  }
  0x87   :  { %8783 = vsyncadd [#allocation11], 4294946816 }
  0x88   :  { %8784 = dma.done.wait [#allocation14], 2048  }
  0x89   :  { %8785 = vsyncadd [#allocation14], 4294965248 }
  0x8a   :  { %152 = sfence }
  0x8b   :  { %v155_v0 = vld [vmem:[%s11377_s4 + $0x10] sm:$0xff]  ;;  %v153_v1 = vld [vmem:[%s11377_s4] sm:$0xff]  ;;  %v8799_v2 = vmov 0   ;;  %v156_v3 = vld [vmem:[%s11377_s4 + $0x18] sm:$0xff]  ;;  %s11463_s28 = sld [smem:[#allocation49_spill]]  ;;  %s5887_s24 = sld [smem:[#allocation2 + $0x1]] }
  0x8c   :  { %8587 = vset.pattern.permute.xlu1 %v8799_v2  ;;  %8586 = vset.pattern.permute.xlu0 %v8799_v2  ;;  %v154_v4 = vld [vmem:[%s11377_s4 + $0x8] sm:$0xff]  ;;  %v157_v6 = vld [vmem:[%s11377_s4 + $0x20] sm:$0xff]  ;;  %v160_v7 = vld [vmem:[%s11377_s4 + $0x38] sm:$0xff]  ;;  %s5900_s0 = sld [smem:[#allocation2 + $0x2]]  ;;  %s5913_s1 = sld [smem:[#allocation2 + $0x3]]  ;;  %vm8801_vm0 = vmmov 0  }
  0x8d   :  { %261 = vperm.xlu1 %8587, %v155_v0   ;;  %251 = vperm.xlu0 %8586, %v153_v1   ;;  %v158_v5 = vld [vmem:[%s11377_s4 + $0x28] sm:$0xff]  ;;  %v159_v8 = vld [vmem:[%s11377_s4 + $0x30] sm:$0xff]  ;;  %v161_v10 = vld [vmem:[%s11377_s4 + $0x40] sm:$0xff] }
  0x8e   :  { %v162_v9 = vld [vmem:[%s11377_s4 + $0x48] sm:$0xff]  ;;  %v164_v11 = vld [vmem:[%s11377_s4 + $0x58] sm:$0xff]  ;;  %v163_v12 = vld [vmem:[%s11377_s4 + $0x50] sm:$0xff] }
  0x8f   :  { %v166_v13 = vld [vmem:[%s11377_s4 + $0x68] sm:$0xff]  ;;  %v165_v14 = vld [vmem:[%s11377_s4 + $0x60] sm:$0xff]  ;;  %v168_v15 = vld [vmem:[%s11377_s4 + $0x78] sm:$0xff] }
  0x90   :  { %v167_v16 = vld [vmem:[%s11377_s4 + $0x70] sm:$0xff]  ;;  %v5748_v17 = vld [vmem:[%s11378_s5] sm:$0xff]  ;;  %s5926_s4 = sld [smem:[#allocation2 + $0x4]] }
  0x91   :  { %266 = vperm.xlu1 %8587, %v156_v3   ;;  %256 = vperm.xlu0 %8586, %v154_v4   ;;  %v9052_v18 = vld [vmem:[#allocation6] sm:$0xff]   ;;  %v234_v23 = vld [vmem:[%s11463_s28 + $0x8] sm:$0xff]  ;;  %v235_v24 = vld [vmem:[%s11463_s28 + $0x10] sm:$0xff]  ;;  %s1728_s5 = sadd.f32 1.0, %s5887_s24 }
  0x92   :  { %v9055_v19 = vunpack.c.l.bf16 %v9052_v18  ;;  %v233_v22 = vld [vmem:[%s11463_s28] sm:$0xff]  ;;  %v236_v25 = vld [vmem:[%s11463_s28 + $0x18] sm:$0xff]  ;;  %v238_v33 = vld [vmem:[%s11463_s28 + $0x28] sm:$0xff]  ;;  %s2796_s20 = sadd.f32 1.0, %s5900_s0 }
  0x93   :  { %v237_v32 = vld [vmem:[%s11463_s28 + $0x20] sm:$0xff]  ;;  %v239_v40 = vld [vmem:[%s11463_s28 + $0x30] sm:$0xff]  ;;  %v240_v41 = vld [vmem:[%s11463_s28 + $0x38] sm:$0xff]  ;;  %s3864_s6 = sadd.f32 1.0, %s5913_s1 }
  0x94   :  { %11462 = vst [vmem:[#allocation22_spill] sm:$0xff] %v9055_v19  ;;  %6724 = vmatprep.mubr.f32.mxu0 %v9055_v19  ;;  %v241_v47 = vld [vmem:[%s11463_s28 + $0x40] sm:$0xff]  ;;  %v242_v48 = vld [vmem:[%s11463_s28 + $0x48] sm:$0xff]  ;;  %v243_v54 = vld [vmem:[%s11463_s28 + $0x50] sm:$0xff] }
  0x95   :  { %276 = vperm.xlu1 %8587, %v158_v5   ;;  %271 = vperm.xlu0 %8586, %v157_v6   ;;  %v244_v55 = vld [vmem:[%s11463_s28 + $0x58] sm:$0xff]  ;;  %v245_v61 = vld [vmem:[%s11463_s28 + $0x60] sm:$0xff]  ;;  %v246_v62 = vld [vmem:[%s11463_s28 + $0x68] sm:$0xff] }
  0x96   :  { %v247_v4 = vld [vmem:[%s11463_s28 + $0x70] sm:$0xff]  ;;  %v248_v5 = vld [vmem:[%s11463_s28 + $0x78] sm:$0xff]  ;;  %s667_s28 = sld [smem:[#allocation2]]  ;;  %s4932_s7 = sadd.f32 1.0, %s5926_s4 }
  0x99   :  { %286 = vperm.xlu1 %8587, %v160_v7   ;;  %281 = vperm.xlu0 %8586, %v159_v8  }
  0x9c   :  { %s668_s16 = sadd.f32 1.0, %s667_s28 }
  0x9d   :  { %296 = vperm.xlu1 %8587, %v162_v9   ;;  %291 = vperm.xlu0 %8586, %v161_v10  }
  0xa1   :  { %306 = vperm.xlu1 %8587, %v164_v11   ;;  %301 = vperm.xlu0 %8586, %v163_v12   ;;  %v6004_v12 = vld [vmem:[#allocation6 + $0x8] sm:$0xff]  }
  0xa5   :  { %316 = vperm.xlu1 %8587, %v166_v13   ;;  %311 = vperm.xlu0 %8586, %v165_v14   ;;  %v9203_v13 = vunpack.c.h.bf16 %v9052_v18  ;;  %v9205_v14 = vunpack.c.l.bf16 %v6004_v12 }
  0xa9   :  { %326 = vperm.xlu1 %8587, %v168_v15   ;;  %321 = vperm.xlu0 %8586, %v167_v16   ;;  %v6005_v15 = vld [vmem:[#allocation6 + $0x10] sm:$0xff]   ;;  %v9208_v16 = vunpack.c.h.bf16 %v6004_v12  ;;  %v707_v12 = vld [vmem:[#allocation10 + $0x28] sm:$0xff] }
  0xad   :  { %5751 = vperm.xlu0 %8586, %v5748_v17   ;;  %v9211_v17 = vunpack.c.l.bf16 %v6005_v15 }
 0x10c   :  { %v9058_v20 = vpop.permute.xlu1 %261  ;;  %v9060_v21 = vpop.permute.xlu0 %251 }
 0x10d   :  { %v9079_v28 = vmul.f32 %v9060_v21, %v233_v22  ;;  %v9085_v30 = vmul.f32 %v9058_v20, %v235_v24  ;;  %v6006_v22 = vld [vmem:[#allocation6 + $0x18] sm:$0xff]   ;;  %v6007_v24 = vld [vmem:[#allocation6 + $0x20] sm:$0xff]  }
 0x10e   :  { %v9217_v18 = vunpack.c.l.bf16 %v6006_v22 }
 0x110   :  { %v9074_v26 = vpop.permute.xlu1 %266  ;;  %v9076_v27 = vpop.permute.xlu0 %256  ;;  %11464 = vst [vmem:[#allocation23_spill] sm:$0xff] %v9217_v18 }
 0x111   :  { %v9082_v29 = vmul.f32 %v9076_v27, %v234_v23  ;;  %v9088_v31 = vmul.f32 %v9074_v26, %v236_v25  ;;  %v9214_v23 = vunpack.c.h.bf16 %v6005_v15  ;;  %v9220_v25 = vunpack.c.h.bf16 %v6006_v22  ;;  %v708_v22 = vld [vmem:[#allocation10 + $0x30] sm:$0xff] }
 0x113   :  { %v7882_v34 = vpack.c.bf16 %v9082_v29, %v9079_v28  ;;  %v7886_v37 = vpack.c.bf16 %v9088_v31, %v9085_v30  ;;  %11465 = vst [vmem:[#allocation24_spill] sm:$0xff] %v9220_v25 }
 0x114   :  { %v9098_v35 = vpop.permute.xlu1 %276  ;;  %v9100_v36 = vpop.permute.xlu0 %271 }
 0x115   :  { %7883 = vmatprep.subr.bf16.mxu0 %v7882_v34  ;;  %v9105_v38 = vmul.f32 %v9100_v36, %v237_v32  ;;  %v9108_v39 = vmul.f32 %v9098_v35, %v238_v33  ;;  %v9223_v32 = vunpack.c.l.bf16 %v6007_v24  ;;  %v6008_v33 = vld [vmem:[#allocation6 + $0x28] sm:$0xff]  }
 0x116   :  { %7885 = vmatpush3.bf16.msra.mxu0 %v7882_v34  ;;  %v9226_v34 = vunpack.c.h.bf16 %v6007_v24  ;;  %v709_v24 = vld [vmem:[#allocation10 + $0x38] sm:$0xff] }
 0x117   :  { %7887 = vmatprep.subr.bf16.mxu0 %v7886_v37  ;;  %v7890_v44 = vpack.c.bf16 %v9108_v39, %v9105_v38  ;;  %11466 = vst [vmem:[#allocation25_spill] sm:$0xff] %v9223_v32 }
 0x118   :  { %v9116_v42 = vpop.permute.xlu1 %286  ;;  %v9118_v43 = vpop.permute.xlu0 %281  ;;  %11467 = vst [vmem:[#allocation26_spill] sm:$0xff] %v9226_v34 }
 0x119   :  { %v9123_v45 = vmul.f32 %v9118_v43, %v239_v40  ;;  %v9126_v46 = vmul.f32 %v9116_v42, %v240_v41  ;;  %v6009_v40 = vld [vmem:[#allocation6 + $0x30] sm:$0xff]   ;;  %v9232_v41 = vunpack.c.h.bf16 %v6008_v33 }
 0x11a   :  { %7889 = vmatpush3.bf16.msra.mxu0 %v7886_v37  ;;  %v9229_v37 = vunpack.c.l.bf16 %v6008_v33  ;;  %v7958_v33 = vpack.c.bf16 %v709_v24, %v708_v22 }
 0x11b   :  { %7891 = vmatprep.subr.bf16.mxu0 %v7890_v44  ;;  %v7894_v51 = vpack.c.bf16 %v9126_v46, %v9123_v45  ;;  %11469 = vst [vmem:[#allocation28_spill] sm:$0xff] %v9232_v41 }
 0x11c   :  { %v9134_v49 = vpop.permute.xlu1 %296  ;;  %v9136_v50 = vpop.permute.xlu0 %291  ;;  %11468 = vst [vmem:[#allocation27_spill] sm:$0xff] %v9229_v37 }
 0x11d   :  { %v9141_v52 = vmul.f32 %v9136_v50, %v241_v47  ;;  %v9144_v53 = vmul.f32 %v9134_v49, %v242_v48  ;;  %v6010_v47 = vld [vmem:[#allocation6 + $0x38] sm:$0xff]   ;;  %v9238_v48 = vunpack.c.h.bf16 %v6009_v40 }
 0x11e   :  { %7893 = vmatpush3.bf16.msra.mxu0 %v7890_v44  ;;  %v9235_v44 = vunpack.c.l.bf16 %v6009_v40  ;;  %v710_v40 = vld [vmem:[#allocation10 + $0x40] sm:$0xff] }
 0x11f   :  { %7895 = vmatprep.subr.bf16.mxu0 %v7894_v51  ;;  %v7898_v58 = vpack.c.bf16 %v9144_v53, %v9141_v52  ;;  %11471 = vst [vmem:[#allocation30_spill] sm:$0xff] %v9238_v48 }
 0x120   :  { %v9152_v56 = vpop.permute.xlu1 %306  ;;  %v9154_v57 = vpop.permute.xlu0 %301  ;;  %11470 = vst [vmem:[#allocation29_spill] sm:$0xff] %v9235_v44 }
 0x121   :  { %v9159_v59 = vmul.f32 %v9154_v57, %v243_v54  ;;  %v9162_v60 = vmul.f32 %v9152_v56, %v244_v55  ;;  %v9244_v54 = vunpack.c.h.bf16 %v6010_v47  ;;  %v9248_v55 = vld [vmem:[#allocation7] sm:$0xff]  }
 0x122   :  { %7897 = vmatpush3.bf16.msra.mxu0 %v7894_v51  ;;  %v9241_v51 = vunpack.c.l.bf16 %v6010_v47  ;;  %v711_v47 = vld [vmem:[#allocation10 + $0x48] sm:$0xff] }
 0x123   :  { %7899 = vmatprep.subr.bf16.mxu0 %v7898_v58  ;;  %v7902_v1 = vpack.c.bf16 %v9162_v60, %v9159_v59  ;;  %11473 = vst [vmem:[#allocation32_spill] sm:$0xff] %v9244_v54 }
 0x124   :  { %v9170_v63 = vpop.permute.xlu1 %316  ;;  %v9172_v0 = vpop.permute.xlu0 %311  ;;  %11472 = vst [vmem:[#allocation31_spill] sm:$0xff] %v9241_v51 }
 0x125   :  { %v9177_v2 = vmul.f32 %v9172_v0, %v245_v61  ;;  %v9180_v3 = vmul.f32 %v9170_v63, %v246_v62  ;;  %v702_v61 = vld [vmem:[#allocation10] sm:$0xff]  ;;  %v703_v62 = vld [vmem:[#allocation10 + $0x8] sm:$0xff] }
 0x126   :  { %7901 = vmatpush3.bf16.msra.mxu0 %v7898_v58  ;;  %v9251_v58 = vunpack.c.l.bf16 %v9248_v55 }
 0x127   :  { %7903 = vmatprep.subr.bf16.mxu0 %v7902_v1  ;;  %v7906_v8 = vpack.c.bf16 %v9180_v3, %v9177_v2 }
 0x128   :  { %v9188_v6 = vpop.permute.xlu1 %326  ;;  %v9190_v7 = vpop.permute.xlu0 %321  ;;  %6780 = vmatprep.mubr.f32.mxu1 %v9251_v58 }
 0x129   :  { %v9195_v9 = vmul.f32 %v9190_v7, %v247_v4  ;;  %v9198_v10 = vmul.f32 %v9188_v6, %v248_v5  ;;  %v7946_v4 = vpack.c.bf16 %v703_v62, %v702_v61  ;;  %v705_v5 = vld [vmem:[#allocation10 + $0x18] sm:$0xff] }
 0x12a   :  { %7905 = vmatpush3.bf16.msra.mxu0 %v7902_v1  ;;  %v704_v1 = vld [vmem:[#allocation10 + $0x10] sm:$0xff]  ;;  %v713_v61 = vld [vmem:[#allocation10 + $0x58] sm:$0xff] }
 0x12b   :  { %7907 = vmatprep.subr.bf16.mxu0 %v7906_v8  ;;  %v7910_v11 = vpack.c.bf16 %v9198_v10, %v9195_v9 }
 0x12e   :  { %7909 = vmatpush3.bf16.msra.mxu0 %v7906_v8  ;;  %v7950_v8 = vpack.c.bf16 %v705_v5, %v704_v1  ;;  %v714_v1 = vld [vmem:[#allocation10 + $0x60] sm:$0xff]  ;;  %v715_v5 = vld [vmem:[#allocation10 + $0x68] sm:$0xff] }
 0x12f   :  { %7911 = vmatprep.subr.bf16.mxu0 %v7910_v11 }
 0x132   :  { %7913 = vmatpush3.bf16.msra.mxu0 %v7910_v11  ;;  %v706_v11 = vld [vmem:[#allocation10 + $0x20] sm:$0xff] }
 0x133   :  { %7947 = vmatprep.subr.bf16.mxu0 %v7946_v4  ;;  %v7954_v15 = vpack.c.bf16 %v707_v12, %v706_v11  ;;  %v345_v11 = vld [vmem:[#allocation9] sm:$0xff] }
 0x135   :  { %6725 = vmatmul.mubr.f32.vlgmr.msra.gmra.mrb[0].mxu0 %v9203_v13 }
 0x136   :  { %6727 = vmatprep.mubr.f32.mxu0 %v9205_v14  ;;  %7949 = vmatpush3.bf16.msra.mxu0 %v7946_v4  ;;  %v7970_v4 = vpack.c.bf16 %v715_v5, %v714_v1 }
 0x137   :  { %7951 = vmatprep.subr.bf16.mxu0 %v7950_v8 }
 0x139   :  { %6728 = vmatmul.mubr.f32.gmra.mrb[2].mxu0 %v9208_v16 }
 0x13a   :  { %6730 = vmatprep.mubr.f32.mxu0 %v9211_v17  ;;  %7953 = vmatpush3.bf16.msra.mxu0 %v7950_v8  ;;  %v346_v8 = vld [vmem:[#allocation9 + $0x8] sm:$0xff] }
 0x13b   :  { %7955 = vmatprep.subr.bf16.mxu0 %v7954_v15 }
 0x13d   :  { %6731 = vmatmul.mubr.f32.gmra.mrb[4].mxu0 %v9214_v23 }
 0x13e   :  { %6733 = vmatprep.mubr.f32.mxu0 %v9217_v18  ;;  %7957 = vmatpush3.bf16.msra.mxu0 %v7954_v15 }
 0x13f   :  { %7959 = vmatprep.subr.bf16.mxu0 %v7958_v33 }
 0x141   :  { %6734 = vmatmul.mubr.f32.gmra.mrb[6].mxu0 %v9220_v25 }
 0x142   :  { %6736 = vmatprep.mubr.f32.mxu0 %v9223_v32  ;;  %7961 = vmatpush3.bf16.msra.mxu0 %v7958_v33 }
 0x145   :  { %6737 = vmatmul.mubr.f32.gmra.mrb[8].mxu0 %v9226_v34 }
 0x146   :  { %6739 = vmatprep.mubr.f32.mxu0 %v9229_v37 }
 0x149   :  { %6740 = vmatmul.mubr.f32.gmra.mrb[10].mxu0 %v9232_v41 }
 0x14a   :  { %6742 = vmatprep.mubr.f32.mxu0 %v9235_v44 }
 0x14d   :  { %6743 = vmatmul.mubr.f32.gmra.mrb[12].mxu0 %v9238_v48  ;;  %v347_v48 = vld [vmem:[#allocation9 + $0x10] sm:$0xff] }
 0x14e   :  { %6745 = vmatprep.mubr.f32.mxu0 %v9241_v51  ;;  %v712_v51 = vld [vmem:[#allocation10 + $0x50] sm:$0xff] }
 0x14f   :  { %v7966_v62 = vpack.c.bf16 %v713_v61, %v712_v51 }
 0x151   :  { %6746 = vmatmul.mubr.f32.gmra.mrb[14].mxu0 %v9244_v54  ;;  %v7962_v54 = vpack.c.bf16 %v711_v47, %v710_v40  ;;  %v348_v40 = vld [vmem:[#allocation9 + $0x18] sm:$0xff] }
 0x153   :  { %7963 = vmatprep.subr.bf16.mxu0 %v7962_v54 }
 0x154   :  { %7965 = vmatpush3.bf16.msra.mxu0 %v7962_v54  ;;  %v350_v54 = vld [vmem:[#allocation9 + $0x28] sm:$0xff] }
 0x155   :  { %7967 = vmatprep.subr.bf16.mxu0 %v7966_v62 }
 0x158   :  { %7969 = vmatpush3.bf16.msra.mxu0 %v7966_v62  ;;  %v349_v62 = vld [vmem:[#allocation9 + $0x20] sm:$0xff] }
 0x159   :  { %7971 = vmatprep.subr.bf16.mxu0 %v7970_v4 }
 0x15c   :  { %7973 = vmatpush3.bf16.msra.mxu0 %v7970_v4 }
 0x208   :  { %v6726_v12 = vpop.f32.mrb[0].mxu0 }
 0x209   :  { %v433_v22 = vadd.f32 %v6726_v12, %v346_v8  ;;  %v427_v15 = vpop.f32.mrb[1].mxu0  ;;  %v352_v12 = vld [vmem:[#allocation9 + $0x38] sm:$0xff] }
 0x20a   :  { %v428_v24 = vadd.f32 %v427_v15, %v345_v11  ;;  %v351_v15 = vld [vmem:[#allocation9 + $0x30] sm:$0xff] }
 0x20b   :  { %v507_v47 = vmax.f32 %v433_v22, 0.0 }
 0x20c   :  { %v506_v33 = vmax.f32 %v428_v24, 0.0  ;;  %v6729_v44 = vpop.f32.mrb[2].mxu0 }
 0x20d   :  { %v443_v51 = vadd.f32 %v6729_v44, %v348_v40  ;;  %v437_v61 = vpop.f32.mrb[3].mxu0 }
 0x20e   :  { %v438_v41 = vadd.f32 %v437_v61, %v347_v48  ;;  %v7914_v37 = vpack.c.bf16 %v507_v47, %v506_v33  ;;  %v354_v33 = vld [vmem:[#allocation9 + $0x48] sm:$0xff] }
 0x20f   :  { %v509_v1 = vmax.f32 %v443_v51, 0.0  ;;  %v353_v51 = vld [vmem:[#allocation9 + $0x40] sm:$0xff] }
 0x210   :  { %v508_v5 = vmax.f32 %v438_v41, 0.0  ;;  %v6732_v4 = vpop.f32.mrb[4].mxu0  ;;  %7915 = vmatprep.subr.bf16.mxu1 %v7914_v37 }
 0x211   :  { %v453_v34 = vadd.f32 %v6732_v4, %v350_v54  ;;  %v447_v32 = vpop.f32.mrb[5].mxu0  ;;  %7917 = vmatpush3.bf16.msra.mxu1 %v7914_v37  ;;  %v355_v4 = vld [vmem:[#allocation9 + $0x50] sm:$0xff] }
 0x212   :  { %v7918_v8 = vpack.c.bf16 %v509_v1, %v508_v5  ;;  %v448_v11 = vadd.f32 %v447_v32, %v349_v62  ;;  %v356_v62 = vld [vmem:[#allocation9 + $0x58] sm:$0xff] }
 0x213   :  { %v511_v22 = vmax.f32 %v453_v34, 0.0 }
 0x214   :  { %v510_v24 = vmax.f32 %v448_v11, 0.0  ;;  %v6735_v25 = vpop.f32.mrb[6].mxu0  ;;  %7919 = vmatprep.subr.bf16.mxu1 %v7918_v8 }
 0x215   :  { %v463_v44 = vadd.f32 %v6735_v25, %v352_v12  ;;  %v457_v48 = vpop.f32.mrb[7].mxu0  ;;  %7921 = vmatpush3.bf16.msra.mxu1 %v7918_v8 }
 0x216   :  { %v7922_v40 = vpack.c.bf16 %v511_v22, %v510_v24  ;;  %v458_v47 = vadd.f32 %v457_v48, %v351_v15  ;;  %v358_v24 = vld [vmem:[#allocation9 + $0x68] sm:$0xff]  ;;  %v357_v48 = vld [vmem:[#allocation9 + $0x60] sm:$0xff] }
 0x217   :  { %v513_v41 = vmax.f32 %v463_v44, 0.0 }
 0x218   :  { %v512_v61 = vmax.f32 %v458_v47, 0.0  ;;  %v6738_v54 = vpop.f32.mrb[8].mxu0  ;;  %7923 = vmatprep.subr.bf16.mxu1 %v7922_v40 }
 0x219   :  { %v473_v37 = vadd.f32 %v6738_v54, %v354_v33  ;;  %v467_v1 = vpop.f32.mrb[9].mxu0  ;;  %7925 = vmatpush3.bf16.msra.mxu1 %v7922_v40  ;;  %v360_v54 = vld [vmem:[#allocation9 + $0x78] sm:$0xff] }
 0x21a   :  { %v7926_v32 = vpack.c.bf16 %v513_v41, %v512_v61  ;;  %v468_v34 = vadd.f32 %v467_v1, %v353_v51  ;;  %v359_v1 = vld [vmem:[#allocation9 + $0x70] sm:$0xff] }
 0x21b   :  { %v515_v5 = vmax.f32 %v473_v37, 0.0 }
 0x21c   :  { %v514_v11 = vmax.f32 %v468_v34, 0.0  ;;  %v6741_v25 = vpop.f32.mrb[10].mxu0  ;;  %7927 = vmatprep.subr.bf16.mxu1 %v7926_v32 }
 0x21d   :  { %v483_v8 = vadd.f32 %v6741_v25, %v356_v62  ;;  %v477_v12 = vpop.f32.mrb[11].mxu0  ;;  %7929 = vmatpush3.bf16.msra.mxu1 %v7926_v32 }
 0x21e   :  { %v7930_v22 = vpack.c.bf16 %v515_v5, %v514_v11  ;;  %v478_v15 = vadd.f32 %v477_v12, %v355_v4 }
 0x21f   :  { %v517_v44 = vmax.f32 %v483_v8, 0.0 }
 0x220   :  { %v516_v47 = vmax.f32 %v478_v15, 0.0  ;;  %v6744_v33 = vpop.f32.mrb[12].mxu0  ;;  %7931 = vmatprep.subr.bf16.mxu1 %v7930_v22  ;;  %v6011_v15 = vld [vmem:[#allocation7 + $0x8] sm:$0xff]  }
 0x221   :  { %v493_v40 = vadd.f32 %v6744_v33, %v358_v24  ;;  %v487_v41 = vpop.f32.mrb[13].mxu0  ;;  %7933 = vmatpush3.bf16.msra.mxu1 %v7930_v22  ;;  %v9255_v22 = vunpack.c.h.bf16 %v9248_v55  ;;  %v9257_v24 = vunpack.c.l.bf16 %v6011_v15  ;;  %v6013_v33 = vld [vmem:[#allocation7 + $0x18] sm:$0xff]  }
 0x222   :  { %v7934_v51 = vpack.c.bf16 %v517_v44, %v516_v47  ;;  %v488_v61 = vadd.f32 %v487_v41, %v357_v48  ;;  %v6012_v44 = vld [vmem:[#allocation7 + $0x10] sm:$0xff]   ;;  %v9260_v48 = vunpack.c.h.bf16 %v6011_v15  ;;  %v9269_v55 = vunpack.c.l.bf16 %v6013_v33  ;;  %v6014_v41 = vld [vmem:[#allocation7 + $0x20] sm:$0xff]  }
 0x223   :  { %v519_v37 = vmax.f32 %v493_v40, 0.0  ;;  %11474 = vst [vmem:[#allocation33_spill] sm:$0xff] %v9255_v22  ;;  %11475 = vst [vmem:[#allocation34_spill] sm:$0xff] %v9257_v24  ;;  %v9263_v47 = vunpack.c.l.bf16 %v6012_v44  ;;  %v9266_v40 = vunpack.c.h.bf16 %v6012_v44  ;;  %v669_v44 = vstv %s668_s16 }
 0x224   :  { %v518_v34 = vmax.f32 %v488_v61, 0.0  ;;  %v6747_v62 = vpop.f32.mrb[14].mxu0  ;;  %7935 = vmatprep.subr.bf16.mxu1 %v7934_v51  ;;  %11476 = vst [vmem:[#allocation35_spill] sm:$0xff] %v9260_v48  ;;  %11479 = vst [vmem:[#allocation38_spill] sm:$0xff] %v9269_v55  ;;  %v9275_v61 = vunpack.c.l.bf16 %v6014_v41 }
 0x225   :  { %v503_v32 = vadd.f32 %v6747_v62, %v360_v54  ;;  %v497_v5 = vpop.f32.mrb[15].mxu0  ;;  %7937 = vmatpush3.bf16.msra.mxu1 %v7934_v51  ;;  %11477 = vst [vmem:[#allocation36_spill] sm:$0xff] %v9263_v47  ;;  %11478 = vst [vmem:[#allocation37_spill] sm:$0xff] %v9266_v40  ;;  %v9272_v51 = vunpack.c.h.bf16 %v6013_v33  ;;  %v6015_v54 = vld [vmem:[#allocation7 + $0x28] sm:$0xff]   ;;  %v671_v33 = vmul.f32 %v669_v44, %v9082_v29 }
 0x226   :  { %v7938_v4 = vpack.c.bf16 %v519_v37, %v518_v34  ;;  %v498_v11 = vadd.f32 %v497_v5, %v359_v1  ;;  %11481 = vst [vmem:[#allocation40_spill] sm:$0xff] %v9275_v61  ;;  %v9278_v37 = vunpack.c.h.bf16 %v6014_v41  ;;  %v9281_v1 = vunpack.c.l.bf16 %v6015_v54  ;;  %v6016_v34 = vld [vmem:[#allocation7 + $0x30] sm:$0xff]   ;;  %v6017_v5 = vld [vmem:[#allocation7 + $0x38] sm:$0xff]  }
 0x227   :  { %v521_v25 = vmax.f32 %v503_v32, 0.0  ;;  %11480 = vst [vmem:[#allocation39_spill] sm:$0xff] %v9272_v51  ;;  %v9284_v62 = vunpack.c.h.bf16 %v6015_v54  ;;  %v9287_v32 = vunpack.c.l.bf16 %v6016_v34  ;;  %v670_v54 = vmul.f32 %v669_v44, %v9079_v28 }
 0x228   :  { %v520_v8 = vmax.f32 %v498_v11, 0.0  ;;  %7939 = vmatprep.subr.bf16.mxu1 %v7938_v4  ;;  %11482 = vst [vmem:[#allocation41_spill] sm:$0xff] %v9278_v37  ;;  %11483 = vst [vmem:[#allocation42_spill] sm:$0xff] %v9281_v1  ;;  %v9293_v11 = vunpack.c.l.bf16 %v6017_v5  ;;  %v674_v29 = vmul.f32 %v669_v44, %v9105_v38  ;;  %v678_v38 = vmul.f32 %v669_v44, %v9141_v52 }
 0x229   :  { %7941 = vmatpush3.bf16.msra.mxu1 %v7938_v4  ;;  %11484 = vst [vmem:[#allocation43_spill] sm:$0xff] %v9284_v62  ;;  %11485 = vst [vmem:[#allocation44_spill] sm:$0xff] %v9287_v32  ;;  %v9290_v4 = vunpack.c.h.bf16 %v6016_v34  ;;  %v682_v52 = vmul.f32 %v669_v44, %v9177_v2  ;;  %v1046_v2 = vld [vmem:[#allocation12 + $0x8] sm:$0xff] }
 0x22a   :  { %v7942_v12 = vpack.c.bf16 %v521_v25, %v520_v8  ;;  %11487 = vst [vmem:[#allocation46_spill] sm:$0xff] %v9293_v11  ;;  %v9296_v25 = vunpack.c.h.bf16 %v6017_v5  ;;  %v716_v8 = vld [vmem:[#allocation10 + $0x70] sm:$0xff] }
 0x22b   :  { %11486 = vst [vmem:[#allocation45_spill] sm:$0xff] %v9290_v4 }
 0x22c   :  { %7943 = vmatprep.subr.bf16.mxu1 %v7942_v12  ;;  %11488 = vst [vmem:[#allocation47_spill] sm:$0xff] %v9296_v25 }
 0x22d   :  { %7945 = vmatpush3.bf16.msra.mxu1 %v7942_v12  ;;  %v717_v12 = vld [vmem:[#allocation10 + $0x78] sm:$0xff] }
 0x22e   :  { %v7974_v15 = vpack.c.bf16 %v717_v12, %v716_v8 }
 0x230   :  { %6781 = vmatmul.mubr.f32.vlgmr.msra.gmra.mrb[0].mxu1 %v9255_v22  ;;  %7975 = vmatprep.subr.bf16.mxu0 %v7974_v15 }
 0x231   :  { %6783 = vmatprep.mubr.f32.mxu1 %v9257_v24  ;;  %7977 = vmatpush3.bf16.msra.mxu0 %v7974_v15 }
 0x234   :  { %6784 = vmatmul.mubr.f32.gmra.mrb[2].mxu1 %v9260_v48 }
 0x235   :  { %6786 = vmatprep.mubr.f32.mxu1 %v9263_v47 }
 0x238   :  { %6787 = vmatmul.mubr.f32.gmra.mrb[4].mxu1 %v9266_v40 }
 0x239   :  { %6789 = vmatprep.mubr.f32.mxu1 %v9269_v55 }
 0x23c   :  { %6790 = vmatmul.mubr.f32.gmra.mrb[6].mxu1 %v9272_v51 }
 0x23d   :  { %6792 = vmatprep.mubr.f32.mxu1 %v9275_v61 }
 0x240   :  { %6793 = vmatmul.mubr.f32.gmra.mrb[8].mxu1 %v9278_v37 }
 0x241   :  { %6795 = vmatprep.mubr.f32.mxu1 %v9281_v1 }
 0x244   :  { %6796 = vmatmul.mubr.f32.gmra.mrb[10].mxu1 %v9284_v62  ;;  %v675_v62 = vmul.f32 %v669_v44, %v9108_v39  ;;  %v679_v39 = vmul.f32 %v669_v44, %v9144_v53  ;;  %v683_v53 = vmul.f32 %v669_v44, %v9180_v3  ;;  %v1045_v3 = vld [vmem:[#allocation12] sm:$0xff] }
 0x245   :  { %6798 = vmatprep.mubr.f32.mxu1 %v9287_v32 }
 0x248   :  { %6799 = vmatmul.mubr.f32.gmra.mrb[12].mxu1 %v9290_v4 }
 0x249   :  { %6801 = vmatprep.mubr.f32.mxu1 %v9293_v11  ;;  %v673_v11 = vmul.f32 %v669_v44, %v9088_v31  ;;  %v677_v31 = vmul.f32 %v669_v44, %v9126_v46  ;;  %v681_v46 = vmul.f32 %v669_v44, %v9162_v60  ;;  %v685_v60 = vmul.f32 %v669_v44, %v9198_v10 }
 0x24c   :  { %6802 = vmatmul.mubr.f32.gmra.mrb[14].mxu1 %v9296_v25  ;;  %v672_v25 = vmul.f32 %v669_v44, %v9085_v30  ;;  %v676_v30 = vmul.f32 %v669_v44, %v9123_v45  ;;  %v680_v45 = vmul.f32 %v669_v44, %v9159_v59  ;;  %v684_v59 = vmul.f32 %v669_v44, %v9195_v9  ;;  %v1050_v9 = vld [vmem:[#allocation12 + $0x28] sm:$0xff] }
 0x303   :  { %v6782_v41 = vpop.f32.mrb[0].mxu1 }
 0x304   :  { %v687_v34 = vadd.f32 %v6782_v41, %v671_v33  ;;  %v588_v5 = vpop.f32.mrb[1].mxu1 }
 0x305   :  { %v686_v4 = vadd.f32 %v670_v54, %v588_v5 }
 0x307   :  { %v6785_v32 = vpop.f32.mrb[2].mxu1  ;;  %6836 = vmatprep.mubr.f32.mxu0 %v686_v4 }
 0x308   :  { %v689_v8 = vadd.f32 %v6785_v32, %v673_v11  ;;  %v598_v12 = vpop.f32.mrb[3].mxu1  ;;  %6837 = vmatmul.mubr.f32.vlgmr.msra.gmra.mrb[16].mxu0 %v687_v34 }
 0x309   :  { %v688_v15 = vadd.f32 %v672_v25, %v598_v12 }
 0x30b   :  { %v6788_v1 = vpop.f32.mrb[4].mxu1  ;;  %6839 = vmatprep.mubr.f32.mxu0 %v688_v15 }
 0x30c   :  { %v691_v28 = vadd.f32 %v6788_v1, %v675_v62  ;;  %v608_v33 = vpop.f32.mrb[5].mxu1  ;;  %6840 = vmatmul.mubr.f32.gmra.mrb[18].mxu0 %v689_v8 }
 0x30d   :  { %v690_v41 = vadd.f32 %v674_v29, %v608_v33 }
 0x30f   :  { %v6791_v54 = vpop.f32.mrb[6].mxu1  ;;  %6842 = vmatprep.mubr.f32.mxu0 %v690_v41 }
 0x310   :  { %v693_v32 = vadd.f32 %v6791_v54, %v677_v31  ;;  %v618_v4 = vpop.f32.mrb[7].mxu1  ;;  %6843 = vmatmul.mubr.f32.gmra.mrb[20].mxu0 %v691_v28 }
 0x311   :  { %v692_v11 = vadd.f32 %v676_v30, %v618_v4  ;;  %v7978_v4 = vpack.c.bf16 %v1046_v2, %v1045_v3 }
 0x313   :  { %v6794_v25 = vpop.f32.mrb[8].mxu1  ;;  %6845 = vmatprep.mubr.f32.mxu0 %v692_v11  ;;  %7979 = vmatprep.subr.bf16.mxu1 %v7978_v4  ;;  %v1047_v11 = vld [vmem:[#allocation12 + $0x10] sm:$0xff] }
 0x314   :  { %v695_v1 = vadd.f32 %v6794_v25, %v679_v39  ;;  %v628_v62 = vpop.f32.mrb[9].mxu1  ;;  %6846 = vmatmul.mubr.f32.gmra.mrb[22].mxu0 %v693_v32  ;;  %7981 = vmatpush3.bf16.msra.mxu1 %v7978_v4  ;;  %v1048_v39 = vld [vmem:[#allocation12 + $0x18] sm:$0xff]  ;;  %v1049_v25 = vld [vmem:[#allocation12 + $0x20] sm:$0xff] }
 0x315   :  { %v694_v34 = vadd.f32 %v678_v38, %v628_v62  ;;  %v7982_v10 = vpack.c.bf16 %v1048_v39, %v1047_v11  ;;  %v7986_v44 = vpack.c.bf16 %v1050_v9, %v1049_v25  ;;  %v1051_v38 = vld [vmem:[#allocation12 + $0x30] sm:$0xff] }
 0x317   :  { %v6797_v5 = vpop.f32.mrb[10].mxu1  ;;  %6848 = vmatprep.mubr.f32.mxu0 %v694_v34  ;;  %7983 = vmatprep.subr.bf16.mxu1 %v7982_v10  ;;  %v1053_v34 = vld [vmem:[#allocation12 + $0x40] sm:$0xff] }
 0x318   :  { %v697_v8 = vadd.f32 %v6797_v5, %v681_v46  ;;  %v638_v12 = vpop.f32.mrb[11].mxu1  ;;  %6849 = vmatmul.mubr.f32.gmra.mrb[24].mxu0 %v695_v1  ;;  %7985 = vmatpush3.bf16.msra.mxu1 %v7982_v10  ;;  %v1052_v1 = vld [vmem:[#allocation12 + $0x38] sm:$0xff]  ;;  %v1054_v46 = vld [vmem:[#allocation12 + $0x48] sm:$0xff] }
 0x319   :  { %v696_v15 = vadd.f32 %v680_v45, %v638_v12  ;;  %7987 = vmatprep.subr.bf16.mxu1 %v7986_v44  ;;  %v7990_v62 = vpack.c.bf16 %v1052_v1, %v1051_v38  ;;  %v7994_v5 = vpack.c.bf16 %v1054_v46, %v1053_v34  ;;  %v1055_v45 = vld [vmem:[#allocation12 + $0x50] sm:$0xff] }
 0x31b   :  { %v6800_v29 = vpop.f32.mrb[12].mxu1  ;;  %6851 = vmatprep.mubr.f32.mxu0 %v696_v15  ;;  %v1057_v15 = vld [vmem:[#allocation12 + $0x60] sm:$0xff] }
 0x31c   :  { %v699_v28 = vadd.f32 %v6800_v29, %v683_v53  ;;  %v648_v33 = vpop.f32.mrb[13].mxu1  ;;  %6852 = vmatmul.mubr.f32.gmra.mrb[26].mxu0 %v697_v8  ;;  %7989 = vmatpush3.bf16.msra.mxu1 %v7986_v44  ;;  %v1056_v8 = vld [vmem:[#allocation12 + $0x58] sm:$0xff]  ;;  %v1058_v53 = vld [vmem:[#allocation12 + $0x68] sm:$0xff] }
 0x31d   :  { %v698_v41 = vadd.f32 %v682_v52, %v648_v33  ;;  %7991 = vmatprep.subr.bf16.mxu1 %v7990_v62  ;;  %v7998_v12 = vpack.c.bf16 %v1056_v8, %v1055_v45  ;;  %v8002_v29 = vpack.c.bf16 %v1058_v53, %v1057_v15  ;;  %v1059_v52 = vld [vmem:[#allocation12 + $0x70] sm:$0xff] }
 0x31f   :  { %v6803_v31 = vpop.f32.mrb[14].mxu1  ;;  %6854 = vmatprep.mubr.f32.mxu0 %v698_v41  ;;  %v9320_v41 = vld [vmem:[%s11381_s8] ss:$0 sm:$0xff] }
 0x320   :  { %v701_v54 = vadd.f32 %v6803_v31, %v685_v60  ;;  %v658_v30 = vpop.f32.mrb[15].mxu1  ;;  %6855 = vmatmul.mubr.f32.gmra.mrb[28].mxu0 %v699_v28  ;;  %7993 = vmatpush3.bf16.msra.mxu1 %v7990_v62  ;;  %v1060_v28 = vld [vmem:[#allocation12 + $0x78] sm:$0xff] }
 0x321   :  { %v700_v32 = vadd.f32 %v684_v59, %v658_v30  ;;  %7995 = vmatprep.subr.bf16.mxu1 %v7994_v5  ;;  %v8006_v33 = vpack.c.bf16 %v1060_v28, %v1059_v52 }
 0x323   :  { %6857 = vmatprep.mubr.f32.mxu0 %v700_v32 }
 0x324   :  { %6858 = vmatmul.mubr.f32.gmra.mrb[30].mxu0 %v701_v54  ;;  %7997 = vmatpush3.bf16.msra.mxu1 %v7994_v5 }
 0x325   :  { %6948 = vmatprep.mubr.f32.mxu0 %v9055_v19  ;;  %7999 = vmatprep.subr.bf16.mxu1 %v7998_v12 }
 0x328   :  { %8001 = vmatpush3.bf16.msra.mxu1 %v7998_v12 }
 0x329   :  { %8003 = vmatprep.subr.bf16.mxu1 %v8002_v29 }
 0x32c   :  { %8005 = vmatpush3.bf16.msra.mxu1 %v8002_v29 }
 0x32d   :  { %8007 = vmatprep.subr.bf16.mxu1 %v8006_v33 }
 0x330   :  { %8009 = vmatpush3.bf16.msra.mxu1 %v8006_v33 }
 0x3db   :  { %v6838_v60 = vpop.f32.mrb[16].mxu0 }
 0x3dc   :  { %v9323_v31 = vadd.f32 %v6838_v60, %v9320_v41  ;;  %v791_v59 = vpop.f32.mrb[17].mxu0 }
 0x3dd   :  { %v9326_v54 = vadd.f32 %v9320_v41, %v791_v59 }
 0x3de   :  { %v873_v30 = vmul.f32 %v9323_v31, %v9076_v27 }
 0x3df   :  { %v872_v32 = vmul.f32 %v9326_v54, %v9060_v21  ;;  %v6841_v3 = vpop.f32.mrb[18].mxu0 }
 0x3e0   :  { %v911_v2 = vmul.f32 %v873_v30, %v873_v30  ;;  %v9333_v4 = vadd.f32 %v6841_v3, %v9320_v41  ;;  %v801_v11 = vpop.f32.mrb[19].mxu0 }
 0x3e1   :  { %v888_v39 = vadd.f32 %v873_v30, %v872_v32  ;;  %v910_v10 = vmul.f32 %v872_v32, %v872_v32  ;;  %v9336_v25 = vadd.f32 %v9320_v41, %v801_v11 }
 0x3e2   :  { %v875_v44 = vmul.f32 %v9333_v4, %v9074_v26 }
 0x3e3   :  { %v926_v9 = vadd.f32 %v911_v2, %v910_v10  ;;  %v874_v38 = vmul.f32 %v9336_v25, %v9058_v20  ;;  %v6844_v1 = vpop.f32.mrb[20].mxu0 }
 0x3e4   :  { %v9343_v62 = vadd.f32 %v6844_v1, %v9320_v41  ;;  %v811_v34 = vpop.f32.mrb[21].mxu0  ;;  %v913_v12 = vmul.f32 %v875_v44, %v875_v44 }
 0x3e5   :  { %v889_v46 = vadd.f32 %v888_v39, %v874_v38  ;;  %v912_v5 = vmul.f32 %v874_v38, %v874_v38  ;;  %v9346_v45 = vadd.f32 %v9320_v41, %v811_v34 }
 0x3e6   :  { %v877_v8 = vmul.f32 %v9343_v62, %v9098_v35 }
 0x3e7   :  { %v927_v15 = vadd.f32 %v926_v9, %v912_v5  ;;  %v876_v53 = vmul.f32 %v9346_v45, %v9100_v36  ;;  %v890_v29 = vadd.f32 %v889_v46, %v875_v44  ;;  %v6847_v52 = vpop.f32.mrb[22].mxu0 }
 0x3e8   :  { %v9353_v28 = vadd.f32 %v6847_v52, %v9320_v41  ;;  %v821_v33 = vpop.f32.mrb[23].mxu0  ;;  %v915_v3 = vmul.f32 %v877_v8, %v877_v8 }
 0x3e9   :  { %v891_v60 = vadd.f32 %v890_v29, %v876_v53  ;;  %v914_v59 = vmul.f32 %v876_v53, %v876_v53  ;;  %v928_v30 = vadd.f32 %v927_v15, %v913_v12  ;;  %v9356_v32 = vadd.f32 %v9320_v41, %v821_v33 }
 0x3ea   :  { %v879_v11 = vmul.f32 %v9353_v28, %v9116_v42 }
 0x3eb   :  { %v929_v2 = vadd.f32 %v928_v30, %v914_v59  ;;  %v878_v39 = vmul.f32 %v9356_v32, %v9118_v43  ;;  %v892_v10 = vadd.f32 %v891_v60, %v877_v8  ;;  %v6850_v9 = vpop.f32.mrb[24].mxu0 }
 0x3ec   :  { %v9363_v44 = vadd.f32 %v6850_v9, %v9320_v41  ;;  %v831_v38 = vpop.f32.mrb[25].mxu0  ;;  %v917_v15 = vmul.f32 %v879_v11, %v879_v11 }
 0x3ed   :  { %v893_v1 = vadd.f32 %v892_v10, %v878_v39  ;;  %v916_v34 = vmul.f32 %v878_v39, %v878_v39  ;;  %v930_v46 = vadd.f32 %v929_v2, %v915_v3  ;;  %v9366_v5 = vadd.f32 %v9320_v41, %v831_v38 }
 0x3ee   :  { %v881_v12 = vmul.f32 %v9363_v44, %v9134_v49 }
 0x3ef   :  { %v931_v53 = vadd.f32 %v930_v46, %v916_v34  ;;  %v880_v29 = vmul.f32 %v9366_v5, %v9136_v50  ;;  %v894_v8 = vadd.f32 %v893_v1, %v879_v11  ;;  %v6853_v52 = vpop.f32.mrb[26].mxu0 }
 0x3f0   :  { %v9373_v33 = vadd.f32 %v6853_v52, %v9320_v41  ;;  %v841_v60 = vpop.f32.mrb[27].mxu0  ;;  %v919_v39 = vmul.f32 %v881_v12, %v881_v12 }
 0x3f1   :  { %v895_v59 = vadd.f32 %v894_v8, %v880_v29  ;;  %v918_v30 = vmul.f32 %v880_v29, %v880_v29  ;;  %v932_v3 = vadd.f32 %v931_v53, %v917_v15  ;;  %v9376_v2 = vadd.f32 %v9320_v41, %v841_v60 }
 0x3f2   :  { %v883_v9 = vmul.f32 %v9373_v33, %v9152_v56 }
 0x3f3   :  { %v933_v10 = vadd.f32 %v932_v3, %v918_v30  ;;  %v882_v38 = vmul.f32 %v9376_v2, %v9154_v57  ;;  %v896_v11 = vadd.f32 %v895_v59, %v881_v12  ;;  %v6856_v1 = vpop.f32.mrb[28].mxu0 }
 0x3f4   :  { %v9383_v34 = vadd.f32 %v6856_v1, %v9320_v41  ;;  %v851_v46 = vpop.f32.mrb[29].mxu0  ;;  %v921_v60 = vmul.f32 %v883_v9, %v883_v9 }
 0x3f5   :  { %v897_v8 = vadd.f32 %v896_v11, %v882_v38  ;;  %v920_v29 = vmul.f32 %v882_v38, %v882_v38  ;;  %v934_v15 = vadd.f32 %v933_v10, %v919_v39  ;;  %v9386_v53 = vadd.f32 %v9320_v41, %v851_v46 }
 0x3f6   :  { %v885_v52 = vmul.f32 %v9383_v34, %v9170_v63 }
 0x3f7   :  { %v935_v30 = vadd.f32 %v934_v15, %v920_v29  ;;  %v884_v3 = vmul.f32 %v9386_v53, %v9172_v0  ;;  %v898_v12 = vadd.f32 %v897_v8, %v883_v9  ;;  %v6859_v59 = vpop.f32.mrb[30].mxu0 }
 0x3f8   :  { %v9393_v1 = vadd.f32 %v6859_v59, %v9320_v41  ;;  %v861_v19 = vpop.f32.mrb[31].mxu0  ;;  %v923_v46 = vmul.f32 %v885_v52, %v885_v52 }
 0x3f9   :  { %v899_v11 = vadd.f32 %v898_v12, %v884_v3  ;;  %v922_v38 = vmul.f32 %v884_v3, %v884_v3  ;;  %v936_v39 = vadd.f32 %v935_v30, %v921_v60  ;;  %v862_v10 = vadd.f32 %v9320_v41, %v861_v19 }
 0x3fa   :  { %v887_v61 = vmul.f32 %v9393_v1, %v9188_v6 }
 0x3fb   :  { %v937_v37 = vadd.f32 %v936_v39, %v922_v38  ;;  %v886_v29 = vmul.f32 %v862_v10, %v9190_v7  ;;  %v900_v15 = vadd.f32 %v899_v11, %v885_v52 }
 0x3fc   :  { %v925_v55 = vmul.f32 %v887_v61, %v887_v61 }
 0x3fd   :  { %v901_v51 = vadd.f32 %v900_v15, %v886_v29  ;;  %v924_v9 = vmul.f32 %v886_v29, %v886_v29  ;;  %v938_v8 = vadd.f32 %v937_v37, %v923_v46 }
 0x3ff   :  { %v902_v59 = vadd.f32 %v901_v51, %v887_v61  ;;  %v939_v40 = vadd.f32 %v938_v8, %v924_v9 }
 0x401   :  { %v903_v47 = vrot.slane %v902_v59, 4  ;;  %v940_v12 = vadd.f32 %v939_v40, %v925_v55 }
 0x403   :  { %v904_v3 = vadd.f32 %v903_v47, %v902_v59  ;;  %v941_v60 = vrot.slane %v940_v12, 4 }
 0x405   :  { %v905_v30 = vrot.slane %v904_v3, 2  ;;  %v942_v19 = vadd.f32 %v941_v60, %v940_v12 }
 0x407   :  { %v906_v41 = vadd.f32 %v905_v30, %v904_v3  ;;  %v943_v38 = vrot.slane %v942_v19, 2 }
 0x409   :  { %v907_v39 = vrot.slane %v906_v41, 1  ;;  %v944_v48 = vadd.f32 %v943_v38, %v942_v19 }
 0x40b   :  { %v908_v24 = vadd.f32 %v907_v39, %v906_v41  ;;  %v945_v22 = vrot.slane %v944_v48, 1 }
 0x40d   :  { %v909_v18 = vmul.f32 0.0625, %v908_v24  ;;  %v946_v52 = vadd.f32 %v945_v22, %v944_v48 }
 0x40f   :  { %v947_v11 = vmul.f32 0.0625, %v946_v52  ;;  %v948_v29 = vmul.f32 %v909_v18, %v909_v18  ;;  %v965_v37 = vsub.f32 %v862_v10, %v909_v18  ;;  %v951_v51 = vsub.f32 %v9326_v54, %v909_v18 }
 0x410   :  { %v952_v61 = vsub.f32 %v9323_v31, %v909_v18  ;;  %v953_v47 = vsub.f32 %v9336_v25, %v909_v18  ;;  %v954_v40 = vsub.f32 %v9333_v4, %v909_v18  ;;  %v955_v55 = vsub.f32 %v9346_v45, %v909_v18 }
 0x411   :  { %v949_v46 = vsub.f32 %v947_v11, %v948_v29  ;;  %v956_v15 = vsub.f32 %v9343_v62, %v909_v18  ;;  %v957_v9 = vsub.f32 %v9356_v32, %v909_v18  ;;  %v958_v22 = vsub.f32 %v9353_v28, %v909_v18  ;;  %v9417_v28 = vld [vmem:[%s11382_s9] ss:$0 sm:$0xff] }
 0x412   :  { %v959_v24 = vsub.f32 %v9366_v5, %v909_v18  ;;  %v960_v48 = vsub.f32 %v9363_v44, %v909_v18  ;;  %v961_v54 = vsub.f32 %v9376_v2, %v909_v18  ;;  %v962_v31 = vsub.f32 %v9373_v33, %v909_v18 }
 0x413   :  { %v950_v25 = vmax.f32 %v949_v46, 0.0  ;;  %v963_v4 = vsub.f32 %v9386_v53, %v909_v18  ;;  %v964_v45 = vsub.f32 %v9383_v34, %v909_v18  ;;  %v966_v10 = vsub.f32 %v9393_v1, %v909_v18  ;;  %v9424_v53 = vld [vmem:[%s11383_s10] ss:$0 sm:$0xff] }
 0x415   :  { %v967_v62 = vadd.f32 1e-05, %v950_v25 }
 0x417   :  { %8588 = vrsqrt.f32 %v967_v62 }
 0x421   :  { %v8589_v32 = vpop.eup %8588 }
 0x422   :  { %v9419_v44 = vmul.f32 %v8589_v32, %v965_v37  ;;  %v969_v5 = vmul.f32 %v8589_v32, %v951_v51  ;;  %v970_v2 = vmul.f32 %v8589_v32, %v952_v61  ;;  %v971_v33 = vmul.f32 %v8589_v32, %v953_v47 }
 0x423   :  { %v972_v34 = vmul.f32 %v8589_v32, %v954_v40  ;;  %v973_v18 = vmul.f32 %v8589_v32, %v955_v55  ;;  %v974_v1 = vmul.f32 %v8589_v32, %v956_v15  ;;  %v975_v8 = vmul.f32 %v8589_v32, %v957_v9 }
 0x424   :  { %v991_v59 = vmul.f32 %v9417_v28, %v969_v5  ;;  %v992_v12 = vmul.f32 %v9417_v28, %v970_v2  ;;  %v993_v3 = vmul.f32 %v9417_v28, %v971_v33  ;;  %v976_v60 = vmul.f32 %v8589_v32, %v958_v22 }
 0x425   :  { %v994_v30 = vmul.f32 %v9417_v28, %v972_v34  ;;  %v995_v19 = vmul.f32 %v9417_v28, %v973_v18  ;;  %v996_v51 = vmul.f32 %v9417_v28, %v974_v1  ;;  %v997_v61 = vmul.f32 %v9417_v28, %v975_v8 }
 0x426   :  { %v1013_v41 = vadd.f32 %v9424_v53, %v991_v59  ;;  %v1014_v38 = vadd.f32 %v9424_v53, %v992_v12  ;;  %v1015_v39 = vadd.f32 %v9424_v53, %v993_v3  ;;  %v977_v40 = vmul.f32 %v8589_v32, %v959_v24 }
 0x427   :  { %v1016_v29 = vadd.f32 %v9424_v53, %v994_v30  ;;  %v1017_v37 = vadd.f32 %v9424_v53, %v995_v19  ;;  %v978_v55 = vmul.f32 %v8589_v32, %v960_v48  ;;  %v979_v46 = vmul.f32 %v8589_v32, %v961_v54 }
 0x428   :  { %v1029_v52 = vmax.f32 %v1013_v41, 0.0  ;;  %v1030_v11 = vmax.f32 %v1014_v38, 0.0  ;;  %v1031_v47 = vmax.f32 %v1015_v39, 0.0  ;;  %v980_v15 = vmul.f32 %v8589_v32, %v962_v31 }
 0x429   :  { %v981_v9 = vmul.f32 %v8589_v32, %v963_v4  ;;  %v982_v22 = vmul.f32 %v8589_v32, %v964_v45  ;;  %v984_v25 = vmul.f32 %v8589_v32, %v966_v10  ;;  %v1032_v62 = vmax.f32 %v1016_v29, 0.0 }
 0x42a   :  { %6892 = vmatprep.mubr.f32.mxu1 %v1029_v52  ;;  %v1018_v5 = vadd.f32 %v9424_v53, %v996_v51  ;;  %v998_v2 = vmul.f32 %v9417_v28, %v976_v60  ;;  %v1033_v33 = vmax.f32 %v1017_v37, 0.0  ;;  %v1019_v34 = vadd.f32 %v9424_v53, %v997_v61 }
 0x42b   :  { %6893 = vmatmul.mubr.f32.vlgmr.msra.gmra.mrb[16].mxu1 %v1030_v11  ;;  %v999_v18 = vmul.f32 %v9417_v28, %v977_v40  ;;  %v1000_v54 = vmul.f32 %v9417_v28, %v978_v55  ;;  %v1001_v45 = vmul.f32 %v9417_v28, %v979_v46  ;;  %v1002_v1 = vmul.f32 %v9417_v28, %v980_v15 }
 0x42c   :  { %6895 = vmatprep.mubr.f32.mxu1 %v1031_v47  ;;  %v1034_v24 = vmax.f32 %v1018_v5, 0.0  ;;  %v1020_v48 = vadd.f32 %v9424_v53, %v998_v2  ;;  %v1035_v31 = vmax.f32 %v1019_v34, 0.0  ;;  %v1003_v12 = vmul.f32 %v9417_v28, %v981_v9 }
 0x42d   :  { %v1021_v4 = vadd.f32 %v9424_v53, %v999_v18  ;;  %v1022_v32 = vadd.f32 %v9424_v53, %v1000_v54  ;;  %v1023_v59 = vadd.f32 %v9424_v53, %v1001_v45  ;;  %v1024_v60 = vadd.f32 %v9424_v53, %v1002_v1 }
 0x42e   :  { %v1036_v10 = vmax.f32 %v1020_v48, 0.0  ;;  %v1004_v30 = vmul.f32 %v9417_v28, %v982_v22  ;;  %v1025_v41 = vadd.f32 %v9424_v53, %v1003_v12  ;;  %v1005_v38 = vmul.f32 %v9417_v28, %v9419_v44  ;;  %v9463_v44 = vld [vmem:[%s11385_s12] ss:$0 sm:$0xff] }
 0x42f   :  { %6896 = vmatmul.mubr.f32.gmra.mrb[18].mxu1 %v1032_v62  ;;  %v1037_v8 = vmax.f32 %v1021_v4, 0.0  ;;  %v1038_v3 = vmax.f32 %v1022_v32, 0.0  ;;  %v1039_v19 = vmax.f32 %v1023_v59, 0.0  ;;  %v1040_v39 = vmax.f32 %v1024_v60, 0.0 }
 0x430   :  { %6898 = vmatprep.mubr.f32.mxu1 %v1033_v33  ;;  %v1026_v52 = vadd.f32 %v9424_v53, %v1004_v30  ;;  %v1006_v11 = vmul.f32 %v9417_v28, %v984_v25  ;;  %v1041_v29 = vmax.f32 %v1025_v41, 0.0  ;;  %v1027_v37 = vadd.f32 %v9424_v53, %v1005_v38 }
 0x432   :  { %v1042_v51 = vmax.f32 %v1026_v52, 0.0  ;;  %v1028_v61 = vadd.f32 %v9424_v53, %v1006_v11  ;;  %v1043_v47 = vmax.f32 %v1027_v37, 0.0 }
 0x433   :  { %6899 = vmatmul.mubr.f32.gmra.mrb[20].mxu1 %v1034_v24 }
 0x434   :  { %6901 = vmatprep.mubr.f32.mxu1 %v1035_v31  ;;  %v1044_v40 = vmax.f32 %v1028_v61, 0.0 }
 0x437   :  { %6902 = vmatmul.mubr.f32.gmra.mrb[22].mxu1 %v1036_v10 }
 0x438   :  { %6904 = vmatprep.mubr.f32.mxu1 %v1037_v8 }
 0x43b   :  { %6905 = vmatmul.mubr.f32.gmra.mrb[24].mxu1 %v1038_v3 }
 0x43c   :  { %6907 = vmatprep.mubr.f32.mxu1 %v1039_v19 }
 0x43f   :  { %6908 = vmatmul.mubr.f32.gmra.mrb[26].mxu1 %v1040_v39 }
 0x440   :  { %6910 = vmatprep.mubr.f32.mxu1 %v1041_v29 }
 0x443   :  { %6911 = vmatmul.mubr.f32.gmra.mrb[28].mxu1 %v1042_v51 }
 0x444   :  { %6913 = vmatprep.mubr.f32.mxu1 %v1043_v47 }
 0x447   :  { %6914 = vmatmul.mubr.f32.gmra.mrb[30].mxu1 %v1044_v40 }
 0x448   :  { %7004 = vmatprep.mubr.f32.mxu1 %v9251_v58 }
 0x4fe   :  { %v6894_v28 = vpop.f32.mrb[16].mxu1 }
 0x4ff   :  { %v9466_v55 = vadd.f32 %v6894_v28, %v9463_v44  ;;  %v1134_v46 = vpop.f32.mrb[17].mxu1 }
 0x500   :  { %v9469_v15 = vadd.f32 %v9463_v44, %v1134_v46 }
 0x501   :  { %v1216_v53 = vmul.f32 %v9466_v55, %v9076_v27 }
 0x502   :  { %v1215_v9 = vmul.f32 %v9469_v15, %v9060_v21  ;;  %v6897_v22 = vpop.f32.mrb[18].mxu1 }
 0x503   :  { %v1254_v25 = vmul.f32 %v1216_v53, %v1216_v53  ;;  %v9476_v62 = vadd.f32 %v6897_v22, %v9463_v44  ;;  %v1144_v5 = vpop.f32.mrb[19].mxu1 }
 0x504   :  { %v1231_v2 = vadd.f32 %v1216_v53, %v1215_v9  ;;  %v1253_v33 = vmul.f32 %v1215_v9, %v1215_v9  ;;  %v9479_v34 = vadd.f32 %v9463_v44, %v1144_v5 }
 0x505   :  { %v1218_v24 = vmul.f32 %v9476_v62, %v9074_v26 }
 0x506   :  { %v1269_v18 = vadd.f32 %v1254_v25, %v1253_v33  ;;  %v1217_v48 = vmul.f32 %v9479_v34, %v9058_v20  ;;  %v6900_v54 = vpop.f32.mrb[20].mxu1 }
 0x507   :  { %v9486_v31 = vadd.f32 %v6900_v54, %v9463_v44  ;;  %v1154_v4 = vpop.f32.mrb[21].mxu1  ;;  %v1256_v8 = vmul.f32 %v1218_v24, %v1218_v24 }
 0x508   :  { %v1232_v45 = vadd.f32 %v1231_v2, %v1217_v48  ;;  %v1255_v10 = vmul.f32 %v1217_v48, %v1217_v48  ;;  %v9489_v32 = vadd.f32 %v9463_v44, %v1154_v4 }
 0x509   :  { %v1220_v1 = vmul.f32 %v9486_v31, %v9098_v35 }
 0x50a   :  { %v1270_v59 = vadd.f32 %v1269_v18, %v1255_v10  ;;  %v1219_v12 = vmul.f32 %v9489_v32, %v9100_v36  ;;  %v1233_v3 = vadd.f32 %v1232_v45, %v1218_v24  ;;  %v6903_v60 = vpop.f32.mrb[22].mxu1 }
 0x50b   :  { %v9496_v30 = vadd.f32 %v6903_v60, %v9463_v44  ;;  %v1164_v19 = vpop.f32.mrb[23].mxu1  ;;  %v1258_v11 = vmul.f32 %v1220_v1, %v1220_v1 }
 0x50c   :  { %v1234_v41 = vadd.f32 %v1233_v3, %v1219_v12  ;;  %v1257_v38 = vmul.f32 %v1219_v12, %v1219_v12  ;;  %v1271_v39 = vadd.f32 %v1270_v59, %v1256_v8  ;;  %v9499_v52 = vadd.f32 %v9463_v44, %v1164_v19 }
 0x50d   :  { %v1222_v37 = vmul.f32 %v9496_v30, %v9116_v42 }
 0x50e   :  { %v1272_v29 = vadd.f32 %v1271_v39, %v1257_v38  ;;  %v1221_v51 = vmul.f32 %v9499_v52, %v9118_v43  ;;  %v1235_v61 = vadd.f32 %v1234_v41, %v1220_v1  ;;  %v6906_v47 = vpop.f32.mrb[24].mxu1 }
 0x50f   :  { %v9506_v40 = vadd.f32 %v6906_v47, %v9463_v44  ;;  %v1174_v28 = vpop.f32.mrb[25].mxu1  ;;  %v1260_v5 = vmul.f32 %v1222_v37, %v1222_v37 }
 0x510   :  { %v1236_v46 = vadd.f32 %v1235_v61, %v1221_v51  ;;  %v1259_v53 = vmul.f32 %v1221_v51, %v1221_v51  ;;  %v1273_v9 = vadd.f32 %v1272_v29, %v1258_v11  ;;  %v9509_v22 = vadd.f32 %v9463_v44, %v1174_v28 }
 0x511   :  { %v1224_v25 = vmul.f32 %v9506_v40, %v9134_v49 }
 0x512   :  { %v1274_v2 = vadd.f32 %v1273_v9, %v1259_v53  ;;  %v1223_v33 = vmul.f32 %v9509_v22, %v9136_v50  ;;  %v1237_v18 = vadd.f32 %v1236_v46, %v1222_v37  ;;  %v6909_v24 = vpop.f32.mrb[26].mxu1 }
 0x513   :  { %v9516_v48 = vadd.f32 %v6909_v24, %v9463_v44  ;;  %v1184_v54 = vpop.f32.mrb[27].mxu1  ;;  %v1262_v8 = vmul.f32 %v1224_v25, %v1224_v25 }
 0x514   :  { %v1238_v4 = vadd.f32 %v1237_v18, %v1223_v33  ;;  %v1261_v45 = vmul.f32 %v1223_v33, %v1223_v33  ;;  %v1275_v10 = vadd.f32 %v1274_v2, %v1260_v5  ;;  %v9519_v1 = vadd.f32 %v9463_v44, %v1184_v54 }
 0x515   :  { %v1226_v12 = vmul.f32 %v9516_v48, %v9152_v56 }
 0x516   :  { %v1276_v59 = vadd.f32 %v1275_v10, %v1261_v45  ;;  %v1225_v3 = vmul.f32 %v9519_v1, %v9154_v57  ;;  %v1239_v60 = vadd.f32 %v1238_v4, %v1224_v25  ;;  %v6912_v19 = vpop.f32.mrb[28].mxu1 }
 0x517   :  { %v9526_v41 = vadd.f32 %v6912_v19, %v9463_v44  ;;  %v1194_v38 = vpop.f32.mrb[29].mxu1  ;;  %v1264_v61 = vmul.f32 %v1226_v12, %v1226_v12 }
 0x518   :  { %v1240_v39 = vadd.f32 %v1239_v60, %v1225_v3  ;;  %v1263_v11 = vmul.f32 %v1225_v3, %v1225_v3  ;;  %v1277_v29 = vadd.f32 %v1276_v59, %v1262_v8  ;;  %v9529_v37 = vadd.f32 %v9463_v44, %v1194_v38 }
 0x519   :  { %v1228_v51 = vmul.f32 %v9526_v41, %v9170_v63 }
 0x51a   :  { %v1278_v47 = vadd.f32 %v1277_v29, %v1263_v11  ;;  %v1227_v28 = vmul.f32 %v9529_v37, %v9172_v0  ;;  %v1241_v46 = vadd.f32 %v1240_v39, %v1226_v12  ;;  %v6915_v53 = vpop.f32.mrb[30].mxu1 }
 0x51b   :  { %v9536_v9 = vadd.f32 %v6915_v53, %v9463_v44  ;;  %v1204_v25 = vpop.f32.mrb[31].mxu1  ;;  %v1266_v24 = vmul.f32 %v1228_v51, %v1228_v51 }
 0x51c   :  { %v1242_v5 = vadd.f32 %v1241_v46, %v1227_v28  ;;  %v1265_v2 = vmul.f32 %v1227_v28, %v1227_v28  ;;  %v1279_v33 = vadd.f32 %v1278_v47, %v1264_v61  ;;  %v1205_v18 = vadd.f32 %v9463_v44, %v1204_v25 }
 0x51d   :  { %v1230_v4 = vmul.f32 %v9536_v9, %v9188_v6 }
 0x51e   :  { %v1280_v54 = vadd.f32 %v1279_v33, %v1265_v2  ;;  %v1229_v45 = vmul.f32 %v1205_v18, %v9190_v7  ;;  %v1243_v10 = vadd.f32 %v1242_v5, %v1228_v51 }
 0x51f   :  { %v1268_v3 = vmul.f32 %v1230_v4, %v1230_v4 }
 0x520   :  { %v1244_v8 = vadd.f32 %v1243_v10, %v1229_v45  ;;  %v1267_v59 = vmul.f32 %v1229_v45, %v1229_v45  ;;  %v1281_v12 = vadd.f32 %v1280_v54, %v1266_v24 }
 0x522   :  { %v1245_v60 = vadd.f32 %v1244_v8, %v1230_v4  ;;  %v1282_v19 = vadd.f32 %v1281_v12, %v1267_v59 }
 0x524   :  { %v1246_v38 = vrot.slane %v1245_v60, 4  ;;  %v1283_v39 = vadd.f32 %v1282_v19, %v1268_v3 }
 0x526   :  { %v1247_v11 = vadd.f32 %v1246_v38, %v1245_v60  ;;  %v1284_v29 = vrot.slane %v1283_v39, 4 }
 0x528   :  { %v1248_v61 = vrot.slane %v1247_v11, 2  ;;  %v1285_v44 = vadd.f32 %v1284_v29, %v1283_v39 }
 0x52a   :  { %v1249_v47 = vadd.f32 %v1248_v61, %v1247_v11  ;;  %v1286_v28 = vrot.slane %v1285_v44, 2 }
 0x52c   :  { %v1250_v46 = vrot.slane %v1249_v47, 1  ;;  %v1287_v53 = vadd.f32 %v1286_v28, %v1285_v44 }
 0x52e   :  { %v1251_v25 = vadd.f32 %v1250_v46, %v1249_v47  ;;  %v1288_v2 = vrot.slane %v1287_v53, 1 }
 0x530   :  { %v9542_v33 = vmul.f32 0.0625, %v1251_v25  ;;  %v1289_v51 = vadd.f32 %v1288_v2, %v1287_v53 }
 0x532   :  { %v1290_v5 = vmul.f32 0.0625, %v1289_v51  ;;  %v1291_v24 = vmul.f32 %v9542_v33, %v9542_v33  ;;  %v1308_v54 = vsub.f32 %v1205_v18, %v9542_v33  ;;  %v1294_v4 = vsub.f32 %v9469_v15, %v9542_v33 }
 0x533   :  { %v1295_v45 = vsub.f32 %v9466_v55, %v9542_v33  ;;  %v1296_v10 = vsub.f32 %v9479_v34, %v9542_v33  ;;  %v1297_v8 = vsub.f32 %v9476_v62, %v9542_v33  ;;  %v1298_v59 = vsub.f32 %v9489_v32, %v9542_v33 }
 0x534   :  { %v1292_v12 = vsub.f32 %v1290_v5, %v1291_v24  ;;  %v1299_v3 = vsub.f32 %v9486_v31, %v9542_v33  ;;  %v1300_v18 = vsub.f32 %v9499_v52, %v9542_v33  ;;  %v1301_v15 = vsub.f32 %v9496_v30, %v9542_v33 }
 0x535   :  { %v1302_v55 = vsub.f32 %v9509_v22, %v9542_v33  ;;  %v1303_v34 = vsub.f32 %v9506_v40, %v9542_v33  ;;  %v1304_v62 = vsub.f32 %v9519_v1, %v9542_v33  ;;  %v1305_v32 = vsub.f32 %v9516_v48, %v9542_v33  ;;  %v9580_v40 = vld [vmem:[%s11386_s13] ss:$0 sm:$0xff] }
 0x536   :  { %v1293_v60 = vmax.f32 %v1292_v12, 0.0  ;;  %v1306_v31 = vsub.f32 %v9529_v37, %v9542_v33  ;;  %v1307_v52 = vsub.f32 %v9526_v41, %v9542_v33  ;;  %v1309_v30 = vsub.f32 %v9536_v9, %v9542_v33  ;;  %v9585_v37 = vld [vmem:[%s11387_s14] ss:$0 sm:$0xff] }
 0x538   :  { %v1310_v22 = vadd.f32 1e-05, %v1293_v60 }
 0x53a   :  { %8590 = vrsqrt.f32 %v1310_v22 }
 0x544   :  { %v8591_v19 = vpop.eup %8590 }
 0x545   :  { %v1326_v1 = vmul.f32 %v8591_v19, %v1308_v54  ;;  %v1312_v48 = vmul.f32 %v8591_v19, %v1294_v4  ;;  %v1313_v38 = vmul.f32 %v8591_v19, %v1295_v45  ;;  %v1314_v39 = vmul.f32 %v8591_v19, %v1296_v10 }
 0x546   :  { %v1315_v11 = vmul.f32 %v8591_v19, %v1297_v8  ;;  %v1316_v29 = vmul.f32 %v8591_v19, %v1298_v59  ;;  %v1317_v61 = vmul.f32 %v8591_v19, %v1299_v3  ;;  %v1318_v44 = vmul.f32 %v8591_v19, %v1300_v18 }
 0x547   :  { %v1348_v47 = vmul.f32 %v9580_v40, %v1326_v1  ;;  %v1334_v28 = vmul.f32 %v9580_v40, %v1312_v48  ;;  %v1335_v46 = vmul.f32 %v9580_v40, %v1313_v38  ;;  %v1336_v53 = vmul.f32 %v9580_v40, %v1314_v39 }
 0x548   :  { %v1337_v25 = vmul.f32 %v9580_v40, %v1315_v11  ;;  %v1338_v2 = vmul.f32 %v9580_v40, %v1316_v29  ;;  %v1339_v51 = vmul.f32 %v9580_v40, %v1317_v61  ;;  %v1319_v5 = vmul.f32 %v8591_v19, %v1301_v15 }
 0x549   :  { %v1356_v24 = vadd.f32 %v9585_v37, %v1334_v28  ;;  %v1357_v54 = vadd.f32 %v9585_v37, %v1335_v46  ;;  %v1358_v4 = vadd.f32 %v9585_v37, %v1336_v53  ;;  %v1340_v45 = vmul.f32 %v9580_v40, %v1318_v44 }
 0x54a   :  { %v1359_v10 = vadd.f32 %v9585_v37, %v1337_v25  ;;  %v1360_v8 = vadd.f32 %v9585_v37, %v1338_v2  ;;  %v1361_v59 = vadd.f32 %v9585_v37, %v1339_v51  ;;  %v1341_v12 = vmul.f32 %v9580_v40, %v1319_v5 }
 0x54b   :  { %v1372_v3 = vmax.f32 %v1356_v24, 0.0  ;;  %v1373_v18 = vmax.f32 %v1357_v54, 0.0  ;;  %v1374_v60 = vmax.f32 %v1358_v4, 0.0  ;;  %v1362_v15 = vadd.f32 %v9585_v37, %v1340_v45 }
 0x54c   :  { %v1375_v22 = vmax.f32 %v1359_v10, 0.0  ;;  %v1376_v1 = vmax.f32 %v1360_v8, 0.0  ;;  %v1377_v48 = vmax.f32 %v1361_v59, 0.0  ;;  %v1363_v38 = vadd.f32 %v9585_v37, %v1341_v12 }
 0x54d   :  { %v9605_v39 = vmul.f32 %v1372_v3, %v9060_v21  ;;  %v9608_v11 = vmul.f32 %v1373_v18, %v9076_v27  ;;  %v9611_v29 = vmul.f32 %v1374_v60, %v9058_v20  ;;  %v1378_v61 = vmax.f32 %v1362_v15, 0.0 }
 0x54e   :  { %v9614_v44 = vmul.f32 %v1375_v22, %v9074_v26  ;;  %v9617_v28 = vmul.f32 %v1376_v1, %v9100_v36  ;;  %v9620_v46 = vmul.f32 %v1377_v48, %v9098_v35  ;;  %v1379_v53 = vmax.f32 %v1363_v38, 0.0 }
 0x54f   :  { %v8010_v25 = vpack.c.bf16 %v9608_v11, %v9605_v39  ;;  %v9625_v2 = vmul.f32 %v1378_v61, %v9118_v43  ;;  %v1320_v51 = vmul.f32 %v8591_v19, %v1302_v55  ;;  %v1321_v5 = vmul.f32 %v8591_v19, %v1303_v34 }
 0x550   :  { %v8014_v24 = vpack.c.bf16 %v9614_v44, %v9611_v29  ;;  %v8018_v54 = vpack.c.bf16 %v9620_v46, %v9617_v28  ;;  %v9632_v4 = vmul.f32 %v1379_v53, %v9116_v42  ;;  %v1322_v45 = vmul.f32 %v8591_v19, %v1304_v62 }
 0x551   :  { %8011 = vmatprep.subr.bf16.mxu0 %v8010_v25  ;;  %v1342_v10 = vmul.f32 %v9580_v40, %v1320_v51  ;;  %v1343_v8 = vmul.f32 %v9580_v40, %v1321_v5  ;;  %v1323_v59 = vmul.f32 %v8591_v19, %v1305_v32  ;;  %v1324_v12 = vmul.f32 %v8591_v19, %v1306_v31 }
 0x552   :  { %8013 = vmatpush3.bf16.msra.mxu0 %v8010_v25  ;;  %v8022_v55 = vpack.c.bf16 %v9632_v4, %v9625_v2  ;;  %v1344_v34 = vmul.f32 %v9580_v40, %v1322_v45  ;;  %v1325_v3 = vmul.f32 %v8591_v19, %v1307_v52  ;;  %v1327_v62 = vmul.f32 %v8591_v19, %v1309_v30 }
 0x553   :  { %8015 = vmatprep.subr.bf16.mxu0 %v8014_v24  ;;  %v1364_v18 = vadd.f32 %v9585_v37, %v1342_v10  ;;  %v1365_v32 = vadd.f32 %v9585_v37, %v1343_v8  ;;  %v1345_v31 = vmul.f32 %v9580_v40, %v1323_v59  ;;  %v1346_v60 = vmul.f32 %v9580_v40, %v1324_v12 }
 0x554   :  { %v1366_v15 = vadd.f32 %v9585_v37, %v1344_v34  ;;  %v1347_v22 = vmul.f32 %v9580_v40, %v1325_v3  ;;  %v1349_v41 = vmul.f32 %v9580_v40, %v1327_v62  ;;  %v1370_v52 = vadd.f32 %v9585_v37, %v1348_v47 }
 0x555   :  { %v1380_v1 = vmax.f32 %v1364_v18, 0.0  ;;  %v1381_v9 = vmax.f32 %v1365_v32, 0.0  ;;  %v1367_v33 = vadd.f32 %v9585_v37, %v1345_v31  ;;  %v1368_v30 = vadd.f32 %v9585_v37, %v1346_v60  ;;  %v11491_v18 = vld [vmem:[#allocation25_spill] sm:$0xff]  ;;  %v11492_v32 = vld [vmem:[#allocation26_spill] sm:$0xff]  ;;  %v11493_v31 = vld [vmem:[#allocation27_spill] sm:$0xff] }
 0x556   :  { %8017 = vmatpush3.bf16.msra.mxu0 %v8014_v24  ;;  %v1382_v19 = vmax.f32 %v1366_v15, 0.0  ;;  %v1369_v48 = vadd.f32 %v9585_v37, %v1347_v22  ;;  %v1371_v38 = vadd.f32 %v9585_v37, %v1349_v41  ;;  %v1386_v61 = vmax.f32 %v1370_v52, 0.0  ;;  %v11494_v60 = vld [vmem:[#allocation28_spill] sm:$0xff]  ;;  %v11495_v15 = vld [vmem:[#allocation29_spill] sm:$0xff]  ;;  %v11496_v22 = vld [vmem:[#allocation30_spill] sm:$0xff] }
 0x557   :  { %8019 = vmatprep.subr.bf16.mxu0 %v8018_v54  ;;  %v9658_v53 = vmul.f32 %v1380_v1, %v9136_v50  ;;  %v9661_v40 = vmul.f32 %v1381_v9, %v9134_v49  ;;  %v1383_v47 = vmax.f32 %v1367_v33, 0.0  ;;  %v1384_v25 = vmax.f32 %v1368_v30, 0.0  ;;  %v11497_v41 = vld [vmem:[#allocation31_spill] sm:$0xff]  ;;  %v11498_v52 = vld [vmem:[#allocation32_spill] sm:$0xff]  ;;  %v1763_v1 = vld [vmem:[#allocation10 + $0x80] sm:$0xff] }
 0x558   :  { %v9664_v51 = vmul.f32 %v1382_v19, %v9154_v57  ;;  %v1385_v5 = vmax.f32 %v1369_v48, 0.0  ;;  %v1387_v24 = vmax.f32 %v1371_v38, 0.0  ;;  %v9667_v45 = vmul.f32 %v1386_v61, %v9190_v7  ;;  %v1764_v9 = vld [vmem:[#allocation10 + $0x88] sm:$0xff]  ;;  %v1765_v33 = vld [vmem:[#allocation10 + $0x90] sm:$0xff]  ;;  %v1766_v19 = vld [vmem:[#allocation10 + $0x98] sm:$0xff] }
 0x559   :  { %v8026_v37 = vpack.c.bf16 %v9661_v40, %v9658_v53  ;;  %v9672_v10 = vmul.f32 %v1383_v47, %v9152_v56  ;;  %v9675_v8 = vmul.f32 %v1384_v25, %v9172_v0  ;;  %v8074_v30 = vpack.c.bf16 %v1764_v9, %v1763_v1  ;;  %v1767_v38 = vld [vmem:[#allocation10 + $0xa0] sm:$0xff]  ;;  %v1768_v61 = vld [vmem:[#allocation10 + $0xa8] sm:$0xff]  ;;  %v1769_v25 = vld [vmem:[#allocation10 + $0xb0] sm:$0xff] }
 0x55a   :  { %8021 = vmatpush3.bf16.msra.mxu0 %v8018_v54  ;;  %v9678_v59 = vmul.f32 %v1385_v5, %v9170_v63  ;;  %v9681_v12 = vmul.f32 %v1387_v24, %v9188_v6  ;;  %v11489_v54 = vld [vmem:[#allocation23_spill] sm:$0xff]  ;;  %v8078_v48 = vpack.c.bf16 %v1766_v19, %v1765_v33  ;;  %v8082_v47 = vpack.c.bf16 %v1768_v61, %v1767_v38  ;;  %v1770_v5 = vld [vmem:[#allocation10 + $0xb8] sm:$0xff]  ;;  %v1775_v33 = vld [vmem:[#allocation10 + $0xe0] sm:$0xff] }
 0x55b   :  { %8023 = vmatprep.subr.bf16.mxu0 %v8022_v55  ;;  %v8030_v34 = vpack.c.bf16 %v9672_v10, %v9664_v51  ;;  %v8086_v24 = vpack.c.bf16 %v1770_v5, %v1769_v25  ;;  %v1774_v1 = vld [vmem:[#allocation10 + $0xd8] sm:$0xff]  ;;  %v1776_v19 = vld [vmem:[#allocation10 + $0xe8] sm:$0xff]  ;;  %v1405_v38 = vld [vmem:[#allocation9 + $0x80] sm:$0xff] }
 0x55c   :  { %v8034_v3 = vpack.c.bf16 %v9678_v59, %v9675_v8  ;;  %v8038_v62 = vpack.c.bf16 %v9681_v12, %v9667_v45 }
 0x55e   :  { %8025 = vmatpush3.bf16.msra.mxu0 %v8022_v55  ;;  %v11490_v55 = vld [vmem:[#allocation24_spill] sm:$0xff] }
 0x55f   :  { %8027 = vmatprep.subr.bf16.mxu0 %v8026_v37 }
 0x562   :  { %8029 = vmatpush3.bf16.msra.mxu0 %v8026_v37  ;;  %v1771_v37 = vld [vmem:[#allocation10 + $0xc0] sm:$0xff] }
 0x563   :  { %8031 = vmatprep.subr.bf16.mxu0 %v8030_v34 }
 0x566   :  { %8033 = vmatpush3.bf16.msra.mxu0 %v8030_v34  ;;  %v1772_v34 = vld [vmem:[#allocation10 + $0xc8] sm:$0xff] }
 0x567   :  { %8035 = vmatprep.subr.bf16.mxu0 %v8034_v3 }
 0x56a   :  { %8037 = vmatpush3.bf16.msra.mxu0 %v8034_v3  ;;  %v8090_v3 = vpack.c.bf16 %v1772_v34, %v1771_v37  ;;  %v1408_v37 = vld [vmem:[#allocation9 + $0x98] sm:$0xff] }
 0x56b   :  { %8039 = vmatprep.subr.bf16.mxu0 %v8038_v62 }
 0x56e   :  { %8041 = vmatpush3.bf16.msra.mxu0 %v8038_v62  ;;  %v1773_v62 = vld [vmem:[#allocation10 + $0xd0] sm:$0xff] }
 0x56f   :  { %8075 = vmatprep.subr.bf16.mxu0 %v8074_v30  ;;  %v8094_v9 = vpack.c.bf16 %v1774_v1, %v1773_v62 }
 0x571   :  { %6949 = vmatmul.mubr.f32.vlgmr.msra.gmra.mrb[32].mxu0 %v9203_v13 }
 0x572   :  { %6951 = vmatprep.mubr.f32.mxu0 %v9205_v14  ;;  %8077 = vmatpush3.bf16.msra.mxu0 %v8074_v30  ;;  %v8098_v30 = vpack.c.bf16 %v1776_v19, %v1775_v33 }
 0x573   :  { %8079 = vmatprep.subr.bf16.mxu0 %v8078_v48 }
 0x575   :  { %6952 = vmatmul.mubr.f32.gmra.mrb[34].mxu0 %v9208_v16 }
 0x576   :  { %6954 = vmatprep.mubr.f32.mxu0 %v9211_v17  ;;  %8081 = vmatpush3.bf16.msra.mxu0 %v8078_v48  ;;  %v1406_v48 = vld [vmem:[#allocation9 + $0x88] sm:$0xff] }
 0x577   :  { %8083 = vmatprep.subr.bf16.mxu0 %v8082_v47 }
 0x579   :  { %6955 = vmatmul.mubr.f32.gmra.mrb[36].mxu0 %v9214_v23 }
 0x57a   :  { %6957 = vmatprep.mubr.f32.mxu0 %v11489_v54  ;;  %8085 = vmatpush3.bf16.msra.mxu0 %v8082_v47 }
 0x57b   :  { %8087 = vmatprep.subr.bf16.mxu0 %v8086_v24 }
 0x57d   :  { %6958 = vmatmul.mubr.f32.gmra.mrb[38].mxu0 %v11490_v55 }
 0x57e   :  { %6960 = vmatprep.mubr.f32.mxu0 %v11491_v18  ;;  %8089 = vmatpush3.bf16.msra.mxu0 %v8086_v24 }
 0x57f   :  { %8091 = vmatprep.subr.bf16.mxu0 %v8090_v3 }
 0x581   :  { %6961 = vmatmul.mubr.f32.gmra.mrb[40].mxu0 %v11492_v32 }
 0x582   :  { %6963 = vmatprep.mubr.f32.mxu0 %v11493_v31  ;;  %8093 = vmatpush3.bf16.msra.mxu0 %v8090_v3 }
 0x583   :  { %8095 = vmatprep.subr.bf16.mxu0 %v8094_v9 }
 0x585   :  { %6964 = vmatmul.mubr.f32.gmra.mrb[42].mxu0 %v11494_v60 }
 0x586   :  { %6966 = vmatprep.mubr.f32.mxu0 %v11495_v15  ;;  %8097 = vmatpush3.bf16.msra.mxu0 %v8094_v9  ;;  %v1410_v15 = vld [vmem:[#allocation9 + $0xa8] sm:$0xff]  ;;  %v1409_v9 = vld [vmem:[#allocation9 + $0xa0] sm:$0xff] }
 0x587   :  { %8099 = vmatprep.subr.bf16.mxu0 %v8098_v30 }
 0x589   :  { %6967 = vmatmul.mubr.f32.gmra.mrb[44].mxu0 %v11496_v22 }
 0x58a   :  { %6969 = vmatprep.mubr.f32.mxu0 %v11497_v41  ;;  %8101 = vmatpush3.bf16.msra.mxu0 %v8098_v30 }
 0x58d   :  { %6970 = vmatmul.mubr.f32.gmra.mrb[46].mxu0 %v11498_v52  ;;  %v1407_v52 = vld [vmem:[#allocation9 + $0x90] sm:$0xff] }
 0x644   :  { %v6950_v61 = vpop.f32.mrb[32].mxu0 }
 0x645   :  { %v1493_v25 = vadd.f32 %v6950_v61, %v1406_v48  ;;  %v1487_v47 = vpop.f32.mrb[33].mxu0  ;;  %v1412_v61 = vld [vmem:[#allocation9 + $0xb8] sm:$0xff] }
 0x646   :  { %v1488_v5 = vadd.f32 %v1487_v47, %v1405_v38  ;;  %v1411_v47 = vld [vmem:[#allocation9 + $0xb0] sm:$0xff] }
 0x647   :  { %v1567_v34 = vmax.f32 %v1493_v25, 0.0 }
 0x648   :  { %v1566_v24 = vmax.f32 %v1488_v5, 0.0  ;;  %v6953_v41 = vpop.f32.mrb[34].mxu0 }
 0x649   :  { %v1503_v62 = vadd.f32 %v6953_v41, %v1408_v37  ;;  %v1497_v1 = vpop.f32.mrb[35].mxu0 }
 0x64a   :  { %v8042_v22 = vpack.c.bf16 %v1567_v34, %v1566_v24  ;;  %v1498_v3 = vadd.f32 %v1497_v1, %v1407_v52  ;;  %v1414_v24 = vld [vmem:[#allocation9 + $0xc8] sm:$0xff]  ;;  %v1413_v1 = vld [vmem:[#allocation9 + $0xc0] sm:$0xff] }
 0x64b   :  { %v1569_v33 = vmax.f32 %v1503_v62, 0.0 }
 0x64c   :  { %v1568_v19 = vmax.f32 %v1498_v3, 0.0  ;;  %v6956_v30 = vpop.f32.mrb[36].mxu0  ;;  %8043 = vmatprep.subr.bf16.mxu1 %v8042_v22 }
 0x64d   :  { %v1513_v60 = vadd.f32 %v6956_v30, %v1410_v15  ;;  %v1507_v31 = vpop.f32.mrb[37].mxu0  ;;  %8045 = vmatpush3.bf16.msra.mxu1 %v8042_v22  ;;  %v1415_v30 = vld [vmem:[#allocation9 + $0xd0] sm:$0xff] }
 0x64e   :  { %v8046_v48 = vpack.c.bf16 %v1569_v33, %v1568_v19  ;;  %v1508_v38 = vadd.f32 %v1507_v31, %v1409_v9  ;;  %v1416_v9 = vld [vmem:[#allocation9 + $0xd8] sm:$0xff] }
 0x64f   :  { %v1571_v25 = vmax.f32 %v1513_v60, 0.0 }
 0x650   :  { %v1570_v5 = vmax.f32 %v1508_v38, 0.0  ;;  %v6959_v32 = vpop.f32.mrb[38].mxu0  ;;  %8047 = vmatprep.subr.bf16.mxu1 %v8046_v48 }
 0x651   :  { %v1523_v41 = vadd.f32 %v6959_v32, %v1412_v61  ;;  %v1517_v37 = vpop.f32.mrb[39].mxu0  ;;  %8049 = vmatpush3.bf16.msra.mxu1 %v8046_v48 }
 0x652   :  { %v8050_v52 = vpack.c.bf16 %v1571_v25, %v1570_v5  ;;  %v1518_v34 = vadd.f32 %v1517_v37, %v1411_v47  ;;  %v1418_v5 = vld [vmem:[#allocation9 + $0xe8] sm:$0xff]  ;;  %v1417_v37 = vld [vmem:[#allocation9 + $0xe0] sm:$0xff] }
 0x653   :  { %v1573_v62 = vmax.f32 %v1523_v41, 0.0 }
 0x654   :  { %v1572_v3 = vmax.f32 %v1518_v34, 0.0  ;;  %v6962_v15 = vpop.f32.mrb[40].mxu0  ;;  %8051 = vmatprep.subr.bf16.mxu1 %v8050_v52 }
 0x655   :  { %v1533_v22 = vadd.f32 %v6962_v15, %v1414_v24  ;;  %v1527_v33 = vpop.f32.mrb[41].mxu0  ;;  %8053 = vmatpush3.bf16.msra.mxu1 %v8050_v52  ;;  %v1420_v15 = vld [vmem:[#allocation9 + $0xf8] sm:$0xff] }
 0x656   :  { %v8054_v31 = vpack.c.bf16 %v1573_v62, %v1572_v3  ;;  %v1528_v60 = vadd.f32 %v1527_v33, %v1413_v1  ;;  %v1419_v33 = vld [vmem:[#allocation9 + $0xf0] sm:$0xff] }
 0x657   :  { %v1575_v19 = vmax.f32 %v1533_v22, 0.0 }
 0x658   :  { %v1574_v38 = vmax.f32 %v1528_v60, 0.0  ;;  %v6965_v32 = vpop.f32.mrb[42].mxu0  ;;  %8055 = vmatprep.subr.bf16.mxu1 %v8054_v31 }
 0x659   :  { %v1543_v48 = vadd.f32 %v6965_v32, %v1416_v9  ;;  %v1537_v61 = vpop.f32.mrb[43].mxu0  ;;  %8057 = vmatpush3.bf16.msra.mxu1 %v8054_v31 }
 0x65a   :  { %v8058_v25 = vpack.c.bf16 %v1575_v19, %v1574_v38  ;;  %v1538_v47 = vadd.f32 %v1537_v61, %v1415_v30 }
 0x65b   :  { %v1577_v41 = vmax.f32 %v1543_v48, 0.0 }
 0x65c   :  { %v1576_v34 = vmax.f32 %v1538_v47, 0.0  ;;  %v6968_v24 = vpop.f32.mrb[44].mxu0  ;;  %8059 = vmatprep.subr.bf16.mxu1 %v8058_v25  ;;  %v11500_v47 = vld [vmem:[#allocation34_spill] sm:$0xff] }
 0x65d   :  { %v1553_v52 = vadd.f32 %v6968_v24, %v1418_v5  ;;  %v1547_v62 = vpop.f32.mrb[45].mxu0  ;;  %8061 = vmatpush3.bf16.msra.mxu1 %v8058_v25  ;;  %v11499_v25 = vld [vmem:[#allocation33_spill] sm:$0xff]  ;;  %v11501_v5 = vld [vmem:[#allocation35_spill] sm:$0xff] }
 0x65e   :  { %v8062_v1 = vpack.c.bf16 %v1577_v41, %v1576_v34  ;;  %v1548_v3 = vadd.f32 %v1547_v62, %v1417_v37  ;;  %v11502_v41 = vld [vmem:[#allocation36_spill] sm:$0xff]  ;;  %v11503_v37 = vld [vmem:[#allocation37_spill] sm:$0xff]  ;;  %v11504_v34 = vld [vmem:[#allocation38_spill] sm:$0xff] }
 0x65f   :  { %v1579_v22 = vmax.f32 %v1553_v52, 0.0  ;;  %v11505_v24 = vld [vmem:[#allocation39_spill] sm:$0xff]  ;;  %v11506_v52 = vld [vmem:[#allocation40_spill] sm:$0xff]  ;;  %v11507_v62 = vld [vmem:[#allocation41_spill] sm:$0xff] }
 0x660   :  { %v1578_v60 = vmax.f32 %v1548_v3, 0.0  ;;  %v6971_v9 = vpop.f32.mrb[46].mxu0  ;;  %8063 = vmatprep.subr.bf16.mxu1 %v8062_v1  ;;  %v11509_v3 = vld [vmem:[#allocation43_spill] sm:$0xff] }
 0x661   :  { %v1563_v31 = vadd.f32 %v6971_v9, %v1420_v15  ;;  %v1557_v19 = vpop.f32.mrb[47].mxu0  ;;  %8065 = vmatpush3.bf16.msra.mxu1 %v8062_v1  ;;  %v11508_v1 = vld [vmem:[#allocation42_spill] sm:$0xff]  ;;  %v11510_v15 = vld [vmem:[#allocation44_spill] sm:$0xff]  ;;  %v1777_v9 = vld [vmem:[#allocation10 + $0xf0] sm:$0xff] }
 0x662   :  { %v8066_v30 = vpack.c.bf16 %v1579_v22, %v1578_v60  ;;  %v1558_v38 = vadd.f32 %v1557_v19, %v1419_v33  ;;  %v11511_v22 = vld [vmem:[#allocation45_spill] sm:$0xff]  ;;  %v11512_v33 = vld [vmem:[#allocation46_spill] sm:$0xff]  ;;  %v11513_v60 = vld [vmem:[#allocation47_spill] sm:$0xff] }
 0x663   :  { %v1581_v32 = vmax.f32 %v1563_v31, 0.0  ;;  %v1778_v31 = vld [vmem:[#allocation10 + $0xf8] sm:$0xff] }
 0x664   :  { %v1580_v48 = vmax.f32 %v1558_v38, 0.0  ;;  %8067 = vmatprep.subr.bf16.mxu1 %v8066_v30  ;;  %v8102_v19 = vpack.c.bf16 %v1778_v31, %v1777_v9 }
 0x665   :  { %8069 = vmatpush3.bf16.msra.mxu1 %v8066_v30  ;;  %v1729_v30 = vstv %s1728_s5 }
 0x666   :  { %v8070_v61 = vpack.c.bf16 %v1581_v32, %v1580_v48  ;;  %8103 = vmatprep.subr.bf16.mxu0 %v8102_v19  ;;  %v1731_v38 = vmul.f32 %v1729_v30, %v9608_v11  ;;  %v1730_v48 = vmul.f32 %v1729_v30, %v9605_v39  ;;  %v1734_v11 = vmul.f32 %v1729_v30, %v9617_v28 }
 0x667   :  { %8105 = vmatpush3.bf16.msra.mxu0 %v8102_v19  ;;  %v1738_v28 = vmul.f32 %v1729_v30, %v9658_v53  ;;  %v1742_v53 = vmul.f32 %v1729_v30, %v9675_v8  ;;  %v2111_v8 = vld [vmem:[#allocation12 + $0x88] sm:$0xff] }
 0x668   :  { %8071 = vmatprep.subr.bf16.mxu1 %v8070_v61 }
 0x669   :  { %8073 = vmatpush3.bf16.msra.mxu1 %v8070_v61 }
 0x66c   :  { %7005 = vmatmul.mubr.f32.vlgmr.msra.gmra.mrb[32].mxu1 %v11499_v25 }
 0x66d   :  { %7007 = vmatprep.mubr.f32.mxu1 %v11500_v47 }
 0x670   :  { %7008 = vmatmul.mubr.f32.gmra.mrb[34].mxu1 %v11501_v5 }
 0x671   :  { %7010 = vmatprep.mubr.f32.mxu1 %v11502_v41 }
 0x674   :  { %7011 = vmatmul.mubr.f32.gmra.mrb[36].mxu1 %v11503_v37 }
 0x675   :  { %7013 = vmatprep.mubr.f32.mxu1 %v11504_v34 }
 0x678   :  { %7014 = vmatmul.mubr.f32.gmra.mrb[38].mxu1 %v11505_v24 }
 0x679   :  { %7016 = vmatprep.mubr.f32.mxu1 %v11506_v52 }
 0x67c   :  { %7017 = vmatmul.mubr.f32.gmra.mrb[40].mxu1 %v11507_v62 }
 0x67d   :  { %7019 = vmatprep.mubr.f32.mxu1 %v11508_v1  ;;  %v1735_v1 = vmul.f32 %v1729_v30, %v9620_v46  ;;  %v1739_v46 = vmul.f32 %v1729_v30, %v9661_v40  ;;  %v1743_v40 = vmul.f32 %v1729_v30, %v9678_v59  ;;  %v11514_v59 = vld [vmem:[#allocation22_spill] sm:$0xff] }
 0x680   :  { %7020 = vmatmul.mubr.f32.gmra.mrb[42].mxu1 %v11509_v3 }
 0x681   :  { %7022 = vmatprep.mubr.f32.mxu1 %v11510_v15 }
 0x684   :  { %7023 = vmatmul.mubr.f32.gmra.mrb[44].mxu1 %v11511_v22 }
 0x685   :  { %7025 = vmatprep.mubr.f32.mxu1 %v11512_v33  ;;  %v1733_v33 = vmul.f32 %v1729_v30, %v9614_v44  ;;  %v1737_v44 = vmul.f32 %v1729_v30, %v9632_v4  ;;  %v1741_v4 = vmul.f32 %v1729_v30, %v9672_v10  ;;  %v1745_v10 = vmul.f32 %v1729_v30, %v9681_v12 }
 0x688   :  { %7026 = vmatmul.mubr.f32.gmra.mrb[46].mxu1 %v11513_v60  ;;  %v1732_v60 = vmul.f32 %v1729_v30, %v9611_v29  ;;  %v1736_v29 = vmul.f32 %v1729_v30, %v9625_v2  ;;  %v1740_v2 = vmul.f32 %v1729_v30, %v9664_v51  ;;  %v1744_v51 = vmul.f32 %v1729_v30, %v9667_v45  ;;  %v2115_v45 = vld [vmem:[#allocation12 + $0xa8] sm:$0xff] }
 0x73f   :  { %v7006_v32 = vpop.f32.mrb[32].mxu1 }
 0x740   :  { %v1747_v61 = vadd.f32 %v7006_v32, %v1731_v38  ;;  %v1648_v15 = vpop.f32.mrb[33].mxu1 }
 0x741   :  { %v1746_v22 = vadd.f32 %v1730_v48, %v1648_v15 }
 0x743   :  { %v7009_v3 = vpop.f32.mrb[34].mxu1  ;;  %7060 = vmatprep.mubr.f32.mxu0 %v1746_v22 }
 0x744   :  { %v1749_v9 = vadd.f32 %v7009_v3, %v1733_v33  ;;  %v1658_v31 = vpop.f32.mrb[35].mxu1  ;;  %7061 = vmatmul.mubr.f32.vlgmr.msra.gmra.mrb[48].mxu0 %v1747_v61 }
 0x745   :  { %v1748_v19 = vadd.f32 %v1732_v60, %v1658_v31 }
 0x747   :  { %v7012_v62 = vpop.f32.mrb[36].mxu1  ;;  %7063 = vmatprep.mubr.f32.mxu0 %v1748_v19 }
 0x748   :  { %v1751_v39 = vadd.f32 %v7012_v62, %v1735_v1  ;;  %v1668_v38 = vpop.f32.mrb[37].mxu1  ;;  %7064 = vmatmul.mubr.f32.gmra.mrb[50].mxu0 %v1749_v9 }
 0x749   :  { %v1750_v15 = vadd.f32 %v1734_v11, %v1668_v38 }
 0x74b   :  { %v7015_v32 = vpop.f32.mrb[38].mxu1  ;;  %7066 = vmatprep.mubr.f32.mxu0 %v1750_v15 }
 0x74c   :  { %v1753_v3 = vadd.f32 %v7015_v32, %v1737_v44  ;;  %v1678_v22 = vpop.f32.mrb[39].mxu1  ;;  %7067 = vmatmul.mubr.f32.gmra.mrb[52].mxu0 %v1751_v39 }
 0x74d   :  { %v1752_v33 = vadd.f32 %v1736_v29, %v1678_v22  ;;  %v2110_v22 = vld [vmem:[#allocation12 + $0x80] sm:$0xff] }
 0x74f   :  { %v7018_v60 = vpop.f32.mrb[40].mxu1  ;;  %7069 = vmatprep.mubr.f32.mxu0 %v1752_v33  ;;  %v8106_v33 = vpack.c.bf16 %v2111_v8, %v2110_v22 }
 0x750   :  { %v1755_v62 = vadd.f32 %v7018_v60, %v1739_v46  ;;  %v1688_v1 = vpop.f32.mrb[41].mxu1  ;;  %7070 = vmatmul.mubr.f32.gmra.mrb[54].mxu0 %v1753_v3  ;;  %v2112_v46 = vld [vmem:[#allocation12 + $0x90] sm:$0xff]  ;;  %v2113_v60 = vld [vmem:[#allocation12 + $0x98] sm:$0xff] }
 0x751   :  { %v1754_v48 = vadd.f32 %v1738_v28, %v1688_v1  ;;  %8107 = vmatprep.subr.bf16.mxu1 %v8106_v33  ;;  %v8110_v12 = vpack.c.bf16 %v2113_v60, %v2112_v46  ;;  %v2114_v28 = vld [vmem:[#allocation12 + $0xa0] sm:$0xff]  ;;  %v2117_v1 = vld [vmem:[#allocation12 + $0xb8] sm:$0xff] }
 0x752   :  { %8109 = vmatpush3.bf16.msra.mxu1 %v8106_v33  ;;  %v8114_v30 = vpack.c.bf16 %v2115_v45, %v2114_v28 }
 0x753   :  { %v7021_v61 = vpop.f32.mrb[42].mxu1  ;;  %7072 = vmatprep.mubr.f32.mxu0 %v1754_v48  ;;  %8111 = vmatprep.subr.bf16.mxu1 %v8110_v12  ;;  %v2118_v48 = vld [vmem:[#allocation12 + $0xc0] sm:$0xff] }
 0x754   :  { %v1757_v9 = vadd.f32 %v7021_v61, %v1741_v4  ;;  %v1698_v31 = vpop.f32.mrb[43].mxu1  ;;  %7073 = vmatmul.mubr.f32.gmra.mrb[56].mxu0 %v1755_v62  ;;  %v2116_v62 = vld [vmem:[#allocation12 + $0xb0] sm:$0xff]  ;;  %v2119_v61 = vld [vmem:[#allocation12 + $0xc8] sm:$0xff] }
 0x755   :  { %v1756_v19 = vadd.f32 %v1740_v2, %v1698_v31  ;;  %v8118_v4 = vpack.c.bf16 %v2117_v1, %v2116_v62  ;;  %v8122_v2 = vpack.c.bf16 %v2119_v61, %v2118_v48  ;;  %v2121_v31 = vld [vmem:[#allocation12 + $0xd8] sm:$0xff] }
 0x756   :  { %8113 = vmatpush3.bf16.msra.mxu1 %v8110_v12 }
 0x757   :  { %v7024_v11 = vpop.f32.mrb[44].mxu1  ;;  %7075 = vmatprep.mubr.f32.mxu0 %v1756_v19  ;;  %8115 = vmatprep.subr.bf16.mxu1 %v8114_v30 }
 0x758   :  { %v1759_v39 = vadd.f32 %v7024_v11, %v1743_v40  ;;  %v1708_v38 = vpop.f32.mrb[45].mxu1  ;;  %7076 = vmatmul.mubr.f32.gmra.mrb[58].mxu0 %v1757_v9  ;;  %v2120_v9 = vld [vmem:[#allocation12 + $0xd0] sm:$0xff]  ;;  %v2122_v40 = vld [vmem:[#allocation12 + $0xe0] sm:$0xff]  ;;  %v2123_v11 = vld [vmem:[#allocation12 + $0xe8] sm:$0xff] }
 0x759   :  { %v1758_v15 = vadd.f32 %v1742_v53, %v1708_v38  ;;  %v8126_v19 = vpack.c.bf16 %v2121_v31, %v2120_v9  ;;  %v8130_v53 = vpack.c.bf16 %v2123_v11, %v2122_v40  ;;  %v2125_v38 = vld [vmem:[#allocation12 + $0xf8] sm:$0xff] }
 0x75a   :  { %8117 = vmatpush3.bf16.msra.mxu1 %v8114_v30 }
 0x75b   :  { %v7027_v44 = vpop.f32.mrb[46].mxu1  ;;  %7078 = vmatprep.mubr.f32.mxu0 %v1758_v15  ;;  %8119 = vmatprep.subr.bf16.mxu1 %v8118_v4 }
 0x75c   :  { %v1761_v32 = vadd.f32 %v7027_v44, %v1745_v10  ;;  %v1718_v29 = vpop.f32.mrb[47].mxu1  ;;  %7079 = vmatmul.mubr.f32.gmra.mrb[60].mxu0 %v1759_v39  ;;  %v2124_v39 = vld [vmem:[#allocation12 + $0xf0] sm:$0xff]  ;;  %v9739_v10 = vld [vmem:[%s11381_s8 + $0x1] ss:$0 sm:$0xff] }
 0x75d   :  { %v1760_v3 = vadd.f32 %v1744_v51, %v1718_v29  ;;  %v8134_v15 = vpack.c.bf16 %v2125_v38, %v2124_v39 }
 0x75e   :  { %8121 = vmatpush3.bf16.msra.mxu1 %v8118_v4 }
 0x75f   :  { %7081 = vmatprep.mubr.f32.mxu0 %v1760_v3  ;;  %8123 = vmatprep.subr.bf16.mxu1 %v8122_v2 }
 0x760   :  { %7082 = vmatmul.mubr.f32.gmra.mrb[62].mxu0 %v1761_v32 }
 0x761   :  { %7172 = vmatprep.mubr.f32.mxu0 %v11514_v59 }
 0x762   :  { %8125 = vmatpush3.bf16.msra.mxu1 %v8122_v2 }
 0x763   :  { %8127 = vmatprep.subr.bf16.mxu1 %v8126_v19 }
 0x766   :  { %8129 = vmatpush3.bf16.msra.mxu1 %v8126_v19 }
 0x767   :  { %8131 = vmatprep.subr.bf16.mxu1 %v8130_v53 }
 0x76a   :  { %8133 = vmatpush3.bf16.msra.mxu1 %v8130_v53 }
 0x76b   :  { %8135 = vmatprep.subr.bf16.mxu1 %v8134_v15 }
 0x76e   :  { %8137 = vmatpush3.bf16.msra.mxu1 %v8134_v15 }
 0x817   :  { %v7062_v44 = vpop.f32.mrb[48].mxu0 }
 0x818   :  { %v9742_v51 = vadd.f32 %v7062_v44, %v9739_v10  ;;  %v1853_v32 = vpop.f32.mrb[49].mxu0 }
 0x819   :  { %v9745_v29 = vadd.f32 %v9739_v10, %v1853_v32 }
 0x81a   :  { %v1937_v3 = vmul.f32 %v9742_v51, %v9076_v27 }
 0x81b   :  { %v1936_v22 = vmul.f32 %v9745_v29, %v9060_v21  ;;  %v7065_v8 = vpop.f32.mrb[50].mxu0 }
 0x81c   :  { %v1975_v33 = vmul.f32 %v1937_v3, %v1937_v3  ;;  %v9752_v46 = vadd.f32 %v7065_v8, %v9739_v10  ;;  %v1863_v60 = vpop.f32.mrb[51].mxu0 }
 0x81d   :  { %v1952_v12 = vadd.f32 %v1937_v3, %v1936_v22  ;;  %v1974_v28 = vmul.f32 %v1936_v22, %v1936_v22  ;;  %v9755_v45 = vadd.f32 %v9739_v10, %v1863_v60 }
 0x81e   :  { %v1939_v62 = vmul.f32 %v9752_v46, %v9074_v26 }
 0x81f   :  { %v1990_v30 = vadd.f32 %v1975_v33, %v1974_v28  ;;  %v1938_v1 = vmul.f32 %v9755_v45, %v9058_v20  ;;  %v7068_v48 = vpop.f32.mrb[52].mxu0 }
 0x820   :  { %v9762_v4 = vadd.f32 %v7068_v48, %v9739_v10  ;;  %v1873_v61 = vpop.f32.mrb[53].mxu0  ;;  %v1977_v40 = vmul.f32 %v1939_v62, %v1939_v62 }
 0x821   :  { %v1953_v2 = vadd.f32 %v1952_v12, %v1938_v1  ;;  %v1976_v9 = vmul.f32 %v1938_v1, %v1938_v1  ;;  %v9765_v31 = vadd.f32 %v9739_v10, %v1873_v61 }
 0x822   :  { %v1941_v19 = vmul.f32 %v9762_v4, %v9098_v35 }
 0x823   :  { %v1991_v11 = vadd.f32 %v1990_v30, %v1976_v9  ;;  %v1940_v53 = vmul.f32 %v9765_v31, %v9100_v36  ;;  %v1954_v39 = vadd.f32 %v1953_v2, %v1939_v62  ;;  %v7071_v38 = vpop.f32.mrb[54].mxu0 }
 0x824   :  { %v9772_v15 = vadd.f32 %v7071_v38, %v9739_v10  ;;  %v1883_v44 = vpop.f32.mrb[55].mxu0  ;;  %v1979_v33 = vmul.f32 %v1941_v19, %v1941_v19 }
 0x825   :  { %v1955_v32 = vadd.f32 %v1954_v39, %v1940_v53  ;;  %v1978_v3 = vmul.f32 %v1940_v53, %v1940_v53  ;;  %v1992_v22 = vadd.f32 %v1991_v11, %v1977_v40  ;;  %v9775_v8 = vadd.f32 %v9739_v10, %v1883_v44 }
 0x826   :  { %v1943_v12 = vmul.f32 %v9772_v15, %v9116_v42 }
 0x827   :  { %v1993_v60 = vadd.f32 %v1992_v22, %v1978_v3  ;;  %v1942_v28 = vmul.f32 %v9775_v8, %v9118_v43  ;;  %v1956_v30 = vadd.f32 %v1955_v32, %v1941_v19  ;;  %v7074_v62 = vpop.f32.mrb[56].mxu0 }
 0x828   :  { %v9782_v1 = vadd.f32 %v7074_v62, %v9739_v10  ;;  %v1893_v48 = vpop.f32.mrb[57].mxu0  ;;  %v1981_v53 = vmul.f32 %v1943_v12, %v1943_v12 }
 0x829   :  { %v1957_v61 = vadd.f32 %v1956_v30, %v1942_v28  ;;  %v1980_v2 = vmul.f32 %v1942_v28, %v1942_v28  ;;  %v1994_v9 = vadd.f32 %v1993_v60, %v1979_v33  ;;  %v9785_v40 = vadd.f32 %v9739_v10, %v1893_v48 }
 0x82a   :  { %v1945_v11 = vmul.f32 %v9782_v1, %v9134_v49 }
 0x82b   :  { %v1995_v39 = vadd.f32 %v1994_v9, %v1980_v2  ;;  %v1944_v38 = vmul.f32 %v9785_v40, %v9136_v50  ;;  %v1958_v19 = vadd.f32 %v1957_v61, %v1943_v12  ;;  %v7077_v44 = vpop.f32.mrb[58].mxu0 }
 0x82c   :  { %v9792_v32 = vadd.f32 %v7077_v44, %v9739_v10  ;;  %v1903_v3 = vpop.f32.mrb[59].mxu0  ;;  %v1983_v30 = vmul.f32 %v1945_v11, %v1945_v11 }
 0x82d   :  { %v1959_v22 = vadd.f32 %v1958_v19, %v1944_v38  ;;  %v1982_v28 = vmul.f32 %v1944_v38, %v1944_v38  ;;  %v1996_v33 = vadd.f32 %v1995_v39, %v1981_v53  ;;  %v9795_v60 = vadd.f32 %v9739_v10, %v1903_v3 }
 0x82e   :  { %v1947_v48 = vmul.f32 %v9792_v32, %v9152_v56 }
 0x82f   :  { %v1997_v62 = vadd.f32 %v1996_v33, %v1982_v28  ;;  %v1946_v2 = vmul.f32 %v9795_v60, %v9154_v57  ;;  %v1960_v12 = vadd.f32 %v1959_v22, %v1945_v11  ;;  %v7080_v61 = vpop.f32.mrb[60].mxu0 }
 0x830   :  { %v9802_v9 = vadd.f32 %v7080_v61, %v9739_v10  ;;  %v1913_v44 = vpop.f32.mrb[61].mxu0  ;;  %v1985_v28 = vmul.f32 %v1947_v48, %v1947_v48 }
 0x831   :  { %v1961_v19 = vadd.f32 %v1960_v12, %v1946_v2  ;;  %v1984_v38 = vmul.f32 %v1946_v2, %v1946_v2  ;;  %v1998_v53 = vadd.f32 %v1997_v62, %v1983_v30  ;;  %v9805_v39 = vadd.f32 %v9739_v10, %v1913_v44 }
 0x832   :  { %v1949_v3 = vmul.f32 %v9802_v9, %v9170_v63 }
 0x833   :  { %v1999_v33 = vadd.f32 %v1998_v53, %v1984_v38  ;;  %v1948_v59 = vmul.f32 %v9805_v39, %v9172_v0  ;;  %v1962_v11 = vadd.f32 %v1961_v19, %v1947_v48  ;;  %v7083_v22 = vpop.f32.mrb[62].mxu0 }
 0x834   :  { %v9812_v61 = vadd.f32 %v7083_v22, %v9739_v10  ;;  %v1923_v52 = vpop.f32.mrb[63].mxu0  ;;  %v1987_v44 = vmul.f32 %v1949_v3, %v1949_v3 }
 0x835   :  { %v1963_v12 = vadd.f32 %v1962_v11, %v1948_v59  ;;  %v1986_v2 = vmul.f32 %v1948_v59, %v1948_v59  ;;  %v2000_v30 = vadd.f32 %v1999_v33, %v1985_v28  ;;  %v1924_v62 = vadd.f32 %v9739_v10, %v1923_v52 }
 0x836   :  { %v1951_v34 = vmul.f32 %v9812_v61, %v9188_v6 }
 0x837   :  { %v2001_v24 = vadd.f32 %v2000_v30, %v1986_v2  ;;  %v1950_v38 = vmul.f32 %v1924_v62, %v9190_v7  ;;  %v1964_v53 = vadd.f32 %v1963_v12, %v1949_v3 }
 0x838   :  { %v1989_v41 = vmul.f32 %v1951_v34, %v1951_v34 }
 0x839   :  { %v1965_v37 = vadd.f32 %v1964_v53, %v1950_v38  ;;  %v1988_v48 = vmul.f32 %v1950_v38, %v1950_v38  ;;  %v2002_v19 = vadd.f32 %v2001_v24, %v1987_v44 }
 0x83b   :  { %v1966_v22 = vadd.f32 %v1965_v37, %v1951_v34  ;;  %v2003_v5 = vadd.f32 %v2002_v19, %v1988_v48 }
 0x83d   :  { %v1967_v47 = vrot.slane %v1966_v22, 4  ;;  %v2004_v11 = vadd.f32 %v2003_v5, %v1989_v41 }
 0x83f   :  { %v1968_v59 = vadd.f32 %v1967_v47, %v1966_v22  ;;  %v2005_v28 = vrot.slane %v2004_v11, 4 }
 0x841   :  { %v1969_v33 = vrot.slane %v1968_v59, 2  ;;  %v2006_v52 = vadd.f32 %v2005_v28, %v2004_v11 }
 0x843   :  { %v1970_v10 = vadd.f32 %v1969_v33, %v1968_v59  ;;  %v2007_v2 = vrot.slane %v2006_v52, 2 }
 0x845   :  { %v1971_v30 = vrot.slane %v1970_v10, 1  ;;  %v2008_v25 = vadd.f32 %v2007_v2, %v2006_v52 }
 0x847   :  { %v1972_v18 = vadd.f32 %v1971_v30, %v1970_v10  ;;  %v2009_v55 = vrot.slane %v2008_v25, 1 }
 0x849   :  { %v1973_v54 = vmul.f32 0.0625, %v1972_v18  ;;  %v2010_v3 = vadd.f32 %v2009_v55, %v2008_v25 }
 0x84b   :  { %v2011_v12 = vmul.f32 0.0625, %v2010_v3  ;;  %v2012_v38 = vmul.f32 %v1973_v54, %v1973_v54  ;;  %v2029_v24 = vsub.f32 %v1924_v62, %v1973_v54  ;;  %v2015_v37 = vsub.f32 %v9745_v29, %v1973_v54 }
 0x84c   :  { %v2016_v34 = vsub.f32 %v9742_v51, %v1973_v54  ;;  %v2017_v47 = vsub.f32 %v9755_v45, %v1973_v54  ;;  %v2018_v5 = vsub.f32 %v9752_v46, %v1973_v54  ;;  %v2019_v41 = vsub.f32 %v9765_v31, %v1973_v54 }
 0x84d   :  { %v2013_v44 = vsub.f32 %v2011_v12, %v2012_v38  ;;  %v2020_v53 = vsub.f32 %v9762_v4, %v1973_v54  ;;  %v2021_v48 = vsub.f32 %v9775_v8, %v1973_v54  ;;  %v2022_v55 = vsub.f32 %v9772_v15, %v1973_v54  ;;  %v9836_v15 = vld [vmem:[%s11382_s9 + $0x1] ss:$0 sm:$0xff] }
 0x84e   :  { %v2023_v18 = vsub.f32 %v9785_v40, %v1973_v54  ;;  %v2024_v25 = vsub.f32 %v9782_v1, %v1973_v54  ;;  %v2025_v29 = vsub.f32 %v9795_v60, %v1973_v54  ;;  %v2026_v51 = vsub.f32 %v9792_v32, %v1973_v54 }
 0x84f   :  { %v2014_v45 = vmax.f32 %v2013_v44, 0.0  ;;  %v2027_v46 = vsub.f32 %v9805_v39, %v1973_v54  ;;  %v2028_v31 = vsub.f32 %v9802_v9, %v1973_v54  ;;  %v2030_v62 = vsub.f32 %v9812_v61, %v1973_v54  ;;  %v9843_v39 = vld [vmem:[%s11383_s10 + $0x1] ss:$0 sm:$0xff] }
 0x851   :  { %v2031_v4 = vadd.f32 1e-05, %v2014_v45 }
 0x853   :  { %8592 = vrsqrt.f32 %v2031_v4 }
 0x85d   :  { %v8593_v8 = vpop.eup %8592 }
 0x85e   :  { %v9838_v1 = vmul.f32 %v8593_v8, %v2029_v24  ;;  %v2033_v40 = vmul.f32 %v8593_v8, %v2015_v37  ;;  %v2034_v60 = vmul.f32 %v8593_v8, %v2016_v34  ;;  %v2035_v32 = vmul.f32 %v8593_v8, %v2017_v47 }
 0x85f   :  { %v2036_v9 = vmul.f32 %v8593_v8, %v2018_v5  ;;  %v2037_v54 = vmul.f32 %v8593_v8, %v2019_v41  ;;  %v2038_v61 = vmul.f32 %v8593_v8, %v2020_v53  ;;  %v2039_v19 = vmul.f32 %v8593_v8, %v2021_v48 }
 0x860   :  { %v2055_v22 = vmul.f32 %v9836_v15, %v2033_v40  ;;  %v2056_v11 = vmul.f32 %v9836_v15, %v2034_v60  ;;  %v2057_v59 = vmul.f32 %v9836_v15, %v2035_v32  ;;  %v2040_v28 = vmul.f32 %v8593_v8, %v2022_v55 }
 0x861   :  { %v2058_v33 = vmul.f32 %v9836_v15, %v2036_v9  ;;  %v2059_v52 = vmul.f32 %v9836_v15, %v2037_v54  ;;  %v2060_v37 = vmul.f32 %v9836_v15, %v2038_v61  ;;  %v2061_v34 = vmul.f32 %v9836_v15, %v2039_v19 }
 0x862   :  { %v2077_v10 = vadd.f32 %v9843_v39, %v2055_v22  ;;  %v2078_v2 = vadd.f32 %v9843_v39, %v2056_v11  ;;  %v2079_v30 = vadd.f32 %v9843_v39, %v2057_v59  ;;  %v2041_v5 = vmul.f32 %v8593_v8, %v2023_v18 }
 0x863   :  { %v2080_v38 = vadd.f32 %v9843_v39, %v2058_v33  ;;  %v2081_v24 = vadd.f32 %v9843_v39, %v2059_v52  ;;  %v2042_v41 = vmul.f32 %v8593_v8, %v2024_v25  ;;  %v2043_v44 = vmul.f32 %v8593_v8, %v2025_v29 }
 0x864   :  { %v2093_v3 = vmax.f32 %v2077_v10, 0.0  ;;  %v2094_v12 = vmax.f32 %v2078_v2, 0.0  ;;  %v2095_v47 = vmax.f32 %v2079_v30, 0.0  ;;  %v2044_v53 = vmul.f32 %v8593_v8, %v2026_v51 }
 0x865   :  { %v2045_v48 = vmul.f32 %v8593_v8, %v2027_v46  ;;  %v2046_v55 = vmul.f32 %v8593_v8, %v2028_v31  ;;  %v2048_v45 = vmul.f32 %v8593_v8, %v2030_v62  ;;  %v2096_v4 = vmax.f32 %v2080_v38, 0.0 }
 0x866   :  { %7116 = vmatprep.mubr.f32.mxu1 %v2093_v3  ;;  %v2082_v40 = vadd.f32 %v9843_v39, %v2060_v37  ;;  %v2062_v60 = vmul.f32 %v9836_v15, %v2040_v28  ;;  %v2097_v32 = vmax.f32 %v2081_v24, 0.0  ;;  %v2083_v9 = vadd.f32 %v9843_v39, %v2061_v34 }
 0x867   :  { %7117 = vmatmul.mubr.f32.vlgmr.msra.gmra.mrb[48].mxu1 %v2094_v12  ;;  %v2063_v54 = vmul.f32 %v9836_v15, %v2041_v5  ;;  %v2064_v29 = vmul.f32 %v9836_v15, %v2042_v41  ;;  %v2065_v31 = vmul.f32 %v9836_v15, %v2043_v44  ;;  %v2066_v61 = vmul.f32 %v9836_v15, %v2044_v53 }
 0x868   :  { %7119 = vmatprep.mubr.f32.mxu1 %v2095_v47  ;;  %v2098_v18 = vmax.f32 %v2082_v40, 0.0  ;;  %v2084_v25 = vadd.f32 %v9843_v39, %v2062_v60  ;;  %v2099_v51 = vmax.f32 %v2083_v9, 0.0  ;;  %v2067_v11 = vmul.f32 %v9836_v15, %v2045_v48 }
 0x869   :  { %v2085_v46 = vadd.f32 %v9843_v39, %v2063_v54  ;;  %v2086_v8 = vadd.f32 %v9843_v39, %v2064_v29  ;;  %v2087_v22 = vadd.f32 %v9843_v39, %v2065_v31  ;;  %v2088_v28 = vadd.f32 %v9843_v39, %v2066_v61 }
 0x86a   :  { %v2100_v62 = vmax.f32 %v2084_v25, 0.0  ;;  %v2068_v33 = vmul.f32 %v9836_v15, %v2046_v55  ;;  %v2089_v10 = vadd.f32 %v9843_v39, %v2067_v11  ;;  %v2069_v2 = vmul.f32 %v9836_v15, %v9838_v1  ;;  %v9882_v1 = vld [vmem:[%s11385_s12 + $0x1] ss:$0 sm:$0xff] }
 0x86b   :  { %7120 = vmatmul.mubr.f32.gmra.mrb[50].mxu1 %v2096_v4  ;;  %v2101_v19 = vmax.f32 %v2085_v46, 0.0  ;;  %v2102_v59 = vmax.f32 %v2086_v8, 0.0  ;;  %v2103_v52 = vmax.f32 %v2087_v22, 0.0  ;;  %v2104_v30 = vmax.f32 %v2088_v28, 0.0 }
 0x86c   :  { %7122 = vmatprep.mubr.f32.mxu1 %v2097_v32  ;;  %v2090_v3 = vadd.f32 %v9843_v39, %v2068_v33  ;;  %v2070_v12 = vmul.f32 %v9836_v15, %v2048_v45  ;;  %v2105_v38 = vmax.f32 %v2089_v10, 0.0  ;;  %v2091_v24 = vadd.f32 %v9843_v39, %v2069_v2 }
 0x86e   :  { %v2106_v37 = vmax.f32 %v2090_v3, 0.0  ;;  %v2092_v34 = vadd.f32 %v9843_v39, %v2070_v12  ;;  %v2107_v47 = vmax.f32 %v2091_v24, 0.0 }
 0x86f   :  { %7123 = vmatmul.mubr.f32.gmra.mrb[52].mxu1 %v2098_v18 }
 0x870   :  { %7125 = vmatprep.mubr.f32.mxu1 %v2099_v51  ;;  %v2108_v5 = vmax.f32 %v2092_v34, 0.0 }
 0x873   :  { %7126 = vmatmul.mubr.f32.gmra.mrb[54].mxu1 %v2100_v62 }
 0x874   :  { %7128 = vmatprep.mubr.f32.mxu1 %v2101_v19 }
 0x877   :  { %7129 = vmatmul.mubr.f32.gmra.mrb[56].mxu1 %v2102_v59 }
 0x878   :  { %7131 = vmatprep.mubr.f32.mxu1 %v2103_v52 }
 0x87b   :  { %7132 = vmatmul.mubr.f32.gmra.mrb[58].mxu1 %v2104_v30 }
 0x87c   :  { %7134 = vmatprep.mubr.f32.mxu1 %v2105_v38 }
 0x87f   :  { %7135 = vmatmul.mubr.f32.gmra.mrb[60].mxu1 %v2106_v37 }
 0x880   :  { %7137 = vmatprep.mubr.f32.mxu1 %v2107_v47 }
 0x883   :  { %7138 = vmatmul.mubr.f32.gmra.mrb[62].mxu1 %v2108_v5 }
 0x884   :  { %7228 = vmatprep.mubr.f32.mxu1 %v9251_v58 }
 0x93a   :  { %v7118_v15 = vpop.f32.mrb[48].mxu1 }
 0x93b   :  { %v9885_v41 = vadd.f32 %v7118_v15, %v9882_v1  ;;  %v2200_v44 = vpop.f32.mrb[49].mxu1 }
 0x93c   :  { %v9888_v53 = vadd.f32 %v9882_v1, %v2200_v44 }
 0x93d   :  { %v2284_v39 = vmul.f32 %v9885_v41, %v9076_v27 }
 0x93e   :  { %v2283_v48 = vmul.f32 %v9888_v53, %v9060_v21  ;;  %v7121_v55 = vpop.f32.mrb[50].mxu1 }
 0x93f   :  { %v2322_v45 = vmul.f32 %v2284_v39, %v2284_v39  ;;  %v9895_v4 = vadd.f32 %v7121_v55, %v9882_v1  ;;  %v2210_v40 = vpop.f32.mrb[51].mxu1 }
 0x940   :  { %v2299_v60 = vadd.f32 %v2284_v39, %v2283_v48  ;;  %v2321_v32 = vmul.f32 %v2283_v48, %v2283_v48  ;;  %v9898_v9 = vadd.f32 %v9882_v1, %v2210_v40 }
 0x941   :  { %v2286_v18 = vmul.f32 %v9895_v4, %v9074_v26 }
 0x942   :  { %v2337_v54 = vadd.f32 %v2322_v45, %v2321_v32  ;;  %v2285_v25 = vmul.f32 %v9898_v9, %v9058_v20  ;;  %v7124_v29 = vpop.f32.mrb[52].mxu1 }
 0x943   :  { %v9905_v51 = vadd.f32 %v7124_v29, %v9882_v1  ;;  %v2220_v46 = vpop.f32.mrb[53].mxu1  ;;  %v2324_v19 = vmul.f32 %v2286_v18, %v2286_v18 }
 0x944   :  { %v2300_v31 = vadd.f32 %v2299_v60, %v2285_v25  ;;  %v2323_v62 = vmul.f32 %v2285_v25, %v2285_v25  ;;  %v9908_v8 = vadd.f32 %v9882_v1, %v2220_v46 }
 0x945   :  { %v2288_v61 = vmul.f32 %v9905_v51, %v9098_v35 }
 0x946   :  { %v2338_v22 = vadd.f32 %v2337_v54, %v2323_v62  ;;  %v2287_v11 = vmul.f32 %v9908_v8, %v9100_v36  ;;  %v2301_v59 = vadd.f32 %v2300_v31, %v2286_v18  ;;  %v7127_v28 = vpop.f32.mrb[54].mxu1 }
 0x947   :  { %v9915_v33 = vadd.f32 %v7127_v28, %v9882_v1  ;;  %v2230_v52 = vpop.f32.mrb[55].mxu1  ;;  %v2326_v12 = vmul.f32 %v2288_v61, %v2288_v61 }
 0x948   :  { %v2302_v10 = vadd.f32 %v2301_v59, %v2287_v11  ;;  %v2325_v2 = vmul.f32 %v2287_v11, %v2287_v11  ;;  %v2339_v30 = vadd.f32 %v2338_v22, %v2324_v19  ;;  %v9918_v3 = vadd.f32 %v9882_v1, %v2230_v52 }
 0x949   :  { %v2290_v24 = vmul.f32 %v9915_v33, %v9116_v42 }
 0x94a   :  { %v2340_v38 = vadd.f32 %v2339_v30, %v2325_v2  ;;  %v2289_v37 = vmul.f32 %v9918_v3, %v9118_v43  ;;  %v2303_v34 = vadd.f32 %v2302_v10, %v2288_v61  ;;  %v7130_v47 = vpop.f32.mrb[56].mxu1 }
 0x94b   :  { %v9925_v5 = vadd.f32 %v7130_v47, %v9882_v1  ;;  %v2240_v15 = vpop.f32.mrb[57].mxu1  ;;  %v2328_v40 = vmul.f32 %v2290_v24, %v2290_v24 }
 0x94c   :  { %v2304_v44 = vadd.f32 %v2303_v34, %v2289_v37  ;;  %v2327_v39 = vmul.f32 %v2289_v37, %v2289_v37  ;;  %v2341_v48 = vadd.f32 %v2340_v38, %v2326_v12  ;;  %v9928_v55 = vadd.f32 %v9882_v1, %v2240_v15 }
 0x94d   :  { %v2292_v45 = vmul.f32 %v9925_v5, %v9134_v49 }
 0x94e   :  { %v2342_v60 = vadd.f32 %v2341_v48, %v2327_v39  ;;  %v2291_v32 = vmul.f32 %v9928_v55, %v9136_v50  ;;  %v2305_v54 = vadd.f32 %v2304_v44, %v2290_v24  ;;  %v7133_v18 = vpop.f32.mrb[58].mxu1 }
 0x94f   :  { %v9935_v25 = vadd.f32 %v7133_v18, %v9882_v1  ;;  %v2250_v29 = vpop.f32.mrb[59].mxu1  ;;  %v2330_v19 = vmul.f32 %v2292_v45, %v2292_v45 }
 0x950   :  { %v2306_v46 = vadd.f32 %v2305_v54, %v2291_v32  ;;  %v2329_v31 = vmul.f32 %v2291_v32, %v2291_v32  ;;  %v2343_v62 = vadd.f32 %v2342_v60, %v2328_v40  ;;  %v9938_v61 = vadd.f32 %v9882_v1, %v2250_v29 }
 0x951   :  { %v2294_v11 = vmul.f32 %v9935_v25, %v9152_v56 }
 0x952   :  { %v2344_v22 = vadd.f32 %v2343_v62, %v2329_v31  ;;  %v2293_v59 = vmul.f32 %v9938_v61, %v9154_v57  ;;  %v2307_v28 = vadd.f32 %v2306_v46, %v2292_v45  ;;  %v7136_v52 = vpop.f32.mrb[60].mxu1 }
 0x953   :  { %v9945_v10 = vadd.f32 %v7136_v52, %v9882_v1  ;;  %v2260_v2 = vpop.f32.mrb[61].mxu1  ;;  %v2332_v34 = vmul.f32 %v2294_v11, %v2294_v11 }
 0x954   :  { %v2308_v30 = vadd.f32 %v2307_v28, %v2293_v59  ;;  %v2331_v12 = vmul.f32 %v2293_v59, %v2293_v59  ;;  %v2345_v38 = vadd.f32 %v2344_v22, %v2330_v19  ;;  %v9948_v24 = vadd.f32 %v9882_v1, %v2260_v2 }
 0x955   :  { %v2296_v37 = vmul.f32 %v9945_v10, %v9170_v63 }
 0x956   :  { %v2346_v47 = vadd.f32 %v2345_v38, %v2331_v12  ;;  %v2295_v15 = vmul.f32 %v9948_v24, %v9172_v0  ;;  %v2309_v44 = vadd.f32 %v2308_v30, %v2294_v11  ;;  %v7139_v39 = vpop.f32.mrb[62].mxu1 }
 0x957   :  { %v9955_v48 = vadd.f32 %v7139_v39, %v9882_v1  ;;  %v2270_v45 = vpop.f32.mrb[63].mxu1  ;;  %v2334_v18 = vmul.f32 %v2296_v37, %v2296_v37 }
 0x958   :  { %v2310_v40 = vadd.f32 %v2309_v44, %v2295_v15  ;;  %v2333_v60 = vmul.f32 %v2295_v15, %v2295_v15  ;;  %v2347_v32 = vadd.f32 %v2346_v47, %v2332_v34  ;;  %v2271_v54 = vadd.f32 %v9882_v1, %v2270_v45 }
 0x959   :  { %v2298_v46 = vmul.f32 %v9955_v48, %v9188_v6 }
 0x95a   :  { %v2348_v29 = vadd.f32 %v2347_v32, %v2333_v60  ;;  %v2297_v31 = vmul.f32 %v2271_v54, %v9190_v7  ;;  %v2311_v62 = vadd.f32 %v2310_v40, %v2296_v37 }
 0x95b   :  { %v2336_v59 = vmul.f32 %v2298_v46, %v2298_v46 }
 0x95c   :  { %v2312_v19 = vadd.f32 %v2311_v62, %v2297_v31  ;;  %v2335_v22 = vmul.f32 %v2297_v31, %v2297_v31  ;;  %v2349_v11 = vadd.f32 %v2348_v29, %v2334_v18 }
 0x95e   :  { %v2313_v28 = vadd.f32 %v2312_v19, %v2298_v46  ;;  %v2350_v52 = vadd.f32 %v2349_v11, %v2335_v22 }
 0x960   :  { %v2314_v2 = vrot.slane %v2313_v28, 4  ;;  %v2351_v30 = vadd.f32 %v2350_v52, %v2336_v59 }
 0x962   :  { %v2315_v12 = vadd.f32 %v2314_v2, %v2313_v28  ;;  %v2352_v38 = vrot.slane %v2351_v30, 4 }
 0x964   :  { %v2316_v34 = vrot.slane %v2315_v12, 2  ;;  %v2353_v1 = vadd.f32 %v2352_v38, %v2351_v30 }
 0x966   :  { %v2317_v47 = vadd.f32 %v2316_v34, %v2315_v12  ;;  %v2354_v15 = vrot.slane %v2353_v1, 2 }
 0x968   :  { %v2318_v44 = vrot.slane %v2317_v47, 1  ;;  %v2355_v39 = vadd.f32 %v2354_v15, %v2353_v1 }
 0x96a   :  { %v2319_v45 = vadd.f32 %v2318_v44, %v2317_v47  ;;  %v2356_v60 = vrot.slane %v2355_v39, 1 }
 0x96c   :  { %v9961_v32 = vmul.f32 0.0625, %v2319_v45  ;;  %v2357_v37 = vadd.f32 %v2356_v60, %v2355_v39 }
 0x96e   :  { %v2358_v40 = vmul.f32 0.0625, %v2357_v37  ;;  %v2359_v18 = vmul.f32 %v9961_v32, %v9961_v32  ;;  %v2376_v29 = vsub.f32 %v2271_v54, %v9961_v32  ;;  %v2362_v46 = vsub.f32 %v9888_v53, %v9961_v32 }
 0x96f   :  { %v2363_v31 = vsub.f32 %v9885_v41, %v9961_v32  ;;  %v2364_v62 = vsub.f32 %v9898_v9, %v9961_v32  ;;  %v2365_v19 = vsub.f32 %v9895_v4, %v9961_v32  ;;  %v2366_v22 = vsub.f32 %v9908_v8, %v9961_v32 }
 0x970   :  { %v2360_v11 = vsub.f32 %v2358_v40, %v2359_v18  ;;  %v2367_v59 = vsub.f32 %v9905_v51, %v9961_v32  ;;  %v2368_v54 = vsub.f32 %v9918_v3, %v9961_v32  ;;  %v2369_v53 = vsub.f32 %v9915_v33, %v9961_v32 }
 0x971   :  { %v2370_v41 = vsub.f32 %v9928_v55, %v9961_v32  ;;  %v2371_v9 = vsub.f32 %v9925_v5, %v9961_v32  ;;  %v2372_v4 = vsub.f32 %v9938_v61, %v9961_v32  ;;  %v2373_v8 = vsub.f32 %v9935_v25, %v9961_v32  ;;  %v9999_v5 = vld [vmem:[%s11386_s13 + $0x1] ss:$0 sm:$0xff] }
 0x972   :  { %v2361_v28 = vmax.f32 %v2360_v11, 0.0  ;;  %v2374_v51 = vsub.f32 %v9948_v24, %v9961_v32  ;;  %v2375_v3 = vsub.f32 %v9945_v10, %v9961_v32  ;;  %v2377_v33 = vsub.f32 %v9955_v48, %v9961_v32  ;;  %v10004_v24 = vld [vmem:[%s11387_s14 + $0x1] ss:$0 sm:$0xff] }
 0x974   :  { %v2378_v55 = vadd.f32 1e-05, %v2361_v28 }
 0x976   :  { %8594 = vrsqrt.f32 %v2378_v55 }
 0x980   :  { %v8595_v52 = vpop.eup %8594 }
 0x981   :  { %v2394_v61 = vmul.f32 %v8595_v52, %v2376_v29  ;;  %v2380_v25 = vmul.f32 %v8595_v52, %v2362_v46  ;;  %v2381_v2 = vmul.f32 %v8595_v52, %v2363_v31  ;;  %v2382_v30 = vmul.f32 %v8595_v52, %v2364_v62 }
 0x982   :  { %v2383_v12 = vmul.f32 %v8595_v52, %v2365_v19  ;;  %v2384_v38 = vmul.f32 %v8595_v52, %v2366_v22  ;;  %v2385_v34 = vmul.f32 %v8595_v52, %v2367_v59  ;;  %v2386_v1 = vmul.f32 %v8595_v52, %v2368_v54 }
 0x983   :  { %v2416_v47 = vmul.f32 %v9999_v5, %v2394_v61  ;;  %v2402_v15 = vmul.f32 %v9999_v5, %v2380_v25  ;;  %v2403_v44 = vmul.f32 %v9999_v5, %v2381_v2  ;;  %v2404_v39 = vmul.f32 %v9999_v5, %v2382_v30 }
 0x984   :  { %v2405_v45 = vmul.f32 %v9999_v5, %v2383_v12  ;;  %v2406_v60 = vmul.f32 %v9999_v5, %v2384_v38  ;;  %v2407_v37 = vmul.f32 %v9999_v5, %v2385_v34  ;;  %v2387_v40 = vmul.f32 %v8595_v52, %v2369_v53 }
 0x985   :  { %v2424_v18 = vadd.f32 %v10004_v24, %v2402_v15  ;;  %v2425_v29 = vadd.f32 %v10004_v24, %v2403_v44  ;;  %v2426_v46 = vadd.f32 %v10004_v24, %v2404_v39  ;;  %v2408_v31 = vmul.f32 %v9999_v5, %v2386_v1 }
 0x986   :  { %v2427_v62 = vadd.f32 %v10004_v24, %v2405_v45  ;;  %v2428_v19 = vadd.f32 %v10004_v24, %v2406_v60  ;;  %v2429_v22 = vadd.f32 %v10004_v24, %v2407_v37  ;;  %v2409_v11 = vmul.f32 %v9999_v5, %v2387_v40 }
 0x987   :  { %v2440_v59 = vmax.f32 %v2424_v18, 0.0  ;;  %v2441_v54 = vmax.f32 %v2425_v29, 0.0  ;;  %v2442_v28 = vmax.f32 %v2426_v46, 0.0  ;;  %v2430_v53 = vadd.f32 %v10004_v24, %v2408_v31 }
 0x988   :  { %v2443_v55 = vmax.f32 %v2427_v62, 0.0  ;;  %v2444_v61 = vmax.f32 %v2428_v19, 0.0  ;;  %v2445_v25 = vmax.f32 %v2429_v22, 0.0  ;;  %v2431_v2 = vadd.f32 %v10004_v24, %v2409_v11 }
 0x989   :  { %v10024_v30 = vmul.f32 %v2440_v59, %v9060_v21  ;;  %v10027_v12 = vmul.f32 %v2441_v54, %v9076_v27  ;;  %v10030_v38 = vmul.f32 %v2442_v28, %v9058_v20  ;;  %v2446_v34 = vmax.f32 %v2430_v53, 0.0 }
 0x98a   :  { %v10033_v1 = vmul.f32 %v2443_v55, %v9074_v26  ;;  %v10036_v15 = vmul.f32 %v2444_v61, %v9100_v36  ;;  %v10039_v44 = vmul.f32 %v2445_v25, %v9098_v35  ;;  %v2447_v39 = vmax.f32 %v2431_v2, 0.0 }
 0x98b   :  { %v8138_v45 = vpack.c.bf16 %v10027_v12, %v10024_v30  ;;  %v10044_v60 = vmul.f32 %v2446_v34, %v9118_v43  ;;  %v2388_v37 = vmul.f32 %v8595_v52, %v2370_v41  ;;  %v2389_v40 = vmul.f32 %v8595_v52, %v2371_v9 }
 0x98c   :  { %v8142_v18 = vpack.c.bf16 %v10033_v1, %v10030_v38  ;;  %v8146_v29 = vpack.c.bf16 %v10039_v44, %v10036_v15  ;;  %v10051_v46 = vmul.f32 %v2447_v39, %v9116_v42  ;;  %v2390_v31 = vmul.f32 %v8595_v52, %v2372_v4 }
 0x98d   :  { %8139 = vmatprep.subr.bf16.mxu0 %v8138_v45  ;;  %v2410_v62 = vmul.f32 %v9999_v5, %v2388_v37  ;;  %v2411_v19 = vmul.f32 %v9999_v5, %v2389_v40  ;;  %v2391_v22 = vmul.f32 %v8595_v52, %v2373_v8  ;;  %v2392_v11 = vmul.f32 %v8595_v52, %v2374_v51 }
 0x98e   :  { %8141 = vmatpush3.bf16.msra.mxu0 %v8138_v45  ;;  %v8150_v41 = vpack.c.bf16 %v10051_v46, %v10044_v60  ;;  %v2412_v9 = vmul.f32 %v9999_v5, %v2390_v31  ;;  %v2393_v59 = vmul.f32 %v8595_v52, %v2375_v3  ;;  %v2395_v4 = vmul.f32 %v8595_v52, %v2377_v33 }
 0x98f   :  { %8143 = vmatprep.subr.bf16.mxu0 %v8142_v18  ;;  %v2432_v54 = vadd.f32 %v10004_v24, %v2410_v62  ;;  %v2433_v8 = vadd.f32 %v10004_v24, %v2411_v19  ;;  %v2413_v51 = vmul.f32 %v9999_v5, %v2391_v22  ;;  %v2414_v28 = vmul.f32 %v9999_v5, %v2392_v11 }
 0x990   :  { %v2434_v53 = vadd.f32 %v10004_v24, %v2412_v9  ;;  %v2415_v55 = vmul.f32 %v9999_v5, %v2393_v59  ;;  %v2417_v10 = vmul.f32 %v9999_v5, %v2395_v4  ;;  %v2438_v3 = vadd.f32 %v10004_v24, %v2416_v47 }
 0x991   :  { %v2448_v61 = vmax.f32 %v2432_v54, 0.0  ;;  %v2449_v48 = vmax.f32 %v2433_v8, 0.0  ;;  %v2435_v32 = vadd.f32 %v10004_v24, %v2413_v51  ;;  %v2436_v33 = vadd.f32 %v10004_v24, %v2414_v28  ;;  %v11517_v54 = vld [vmem:[#allocation25_spill] sm:$0xff]  ;;  %v11518_v8 = vld [vmem:[#allocation26_spill] sm:$0xff]  ;;  %v11519_v51 = vld [vmem:[#allocation27_spill] sm:$0xff] }
 0x992   :  { %8145 = vmatpush3.bf16.msra.mxu0 %v8142_v18  ;;  %v2450_v52 = vmax.f32 %v2434_v53, 0.0  ;;  %v2437_v25 = vadd.f32 %v10004_v24, %v2415_v55  ;;  %v2439_v2 = vadd.f32 %v10004_v24, %v2417_v10  ;;  %v2454_v34 = vmax.f32 %v2438_v3, 0.0  ;;  %v11520_v28 = vld [vmem:[#allocation28_spill] sm:$0xff]  ;;  %v11521_v53 = vld [vmem:[#allocation29_spill] sm:$0xff]  ;;  %v11522_v55 = vld [vmem:[#allocation30_spill] sm:$0xff] }
 0x993   :  { %8147 = vmatprep.subr.bf16.mxu0 %v8146_v29  ;;  %v10077_v39 = vmul.f32 %v2448_v61, %v9136_v50  ;;  %v10080_v5 = vmul.f32 %v2449_v48, %v9134_v49  ;;  %v2451_v47 = vmax.f32 %v2435_v32, 0.0  ;;  %v2452_v45 = vmax.f32 %v2436_v33, 0.0  ;;  %v11523_v10 = vld [vmem:[#allocation31_spill] sm:$0xff]  ;;  %v11524_v3 = vld [vmem:[#allocation32_spill] sm:$0xff]  ;;  %v2831_v61 = vld [vmem:[#allocation10 + $0x100] sm:$0xff] }
 0x994   :  { %v10083_v37 = vmul.f32 %v2450_v52, %v9154_v57  ;;  %v2453_v40 = vmax.f32 %v2437_v25, 0.0  ;;  %v2455_v18 = vmax.f32 %v2439_v2, 0.0  ;;  %v10086_v31 = vmul.f32 %v2454_v34, %v9190_v7  ;;  %v2832_v48 = vld [vmem:[#allocation10 + $0x108] sm:$0xff]  ;;  %v2833_v32 = vld [vmem:[#allocation10 + $0x110] sm:$0xff]  ;;  %v2834_v52 = vld [vmem:[#allocation10 + $0x118] sm:$0xff] }
 0x995   :  { %v8154_v24 = vpack.c.bf16 %v10080_v5, %v10077_v39  ;;  %v10091_v62 = vmul.f32 %v2451_v47, %v9152_v56  ;;  %v10094_v19 = vmul.f32 %v2452_v45, %v9172_v0  ;;  %v8202_v33 = vpack.c.bf16 %v2832_v48, %v2831_v61  ;;  %v2835_v2 = vld [vmem:[#allocation10 + $0x120] sm:$0xff]  ;;  %v2836_v34 = vld [vmem:[#allocation10 + $0x128] sm:$0xff]  ;;  %v2837_v45 = vld [vmem:[#allocation10 + $0x130] sm:$0xff] }
 0x996   :  { %8149 = vmatpush3.bf16.msra.mxu0 %v8146_v29  ;;  %v10097_v22 = vmul.f32 %v2453_v40, %v9170_v63  ;;  %v10100_v11 = vmul.f32 %v2455_v18, %v9188_v6  ;;  %v11515_v29 = vld [vmem:[#allocation23_spill] sm:$0xff]  ;;  %v8206_v25 = vpack.c.bf16 %v2834_v52, %v2833_v32  ;;  %v8210_v47 = vpack.c.bf16 %v2836_v34, %v2835_v2  ;;  %v2838_v40 = vld [vmem:[#allocation10 + $0x138] sm:$0xff]  ;;  %v2843_v32 = vld [vmem:[#allocation10 + $0x160] sm:$0xff] }
 0x997   :  { %8151 = vmatprep.subr.bf16.mxu0 %v8150_v41  ;;  %v8158_v9 = vpack.c.bf16 %v10091_v62, %v10083_v37  ;;  %v8214_v18 = vpack.c.bf16 %v2838_v40, %v2837_v45  ;;  %v2842_v61 = vld [vmem:[#allocation10 + $0x158] sm:$0xff]  ;;  %v2844_v52 = vld [vmem:[#allocation10 + $0x168] sm:$0xff]  ;;  %v2473_v2 = vld [vmem:[#allocation9 + $0x100] sm:$0xff] }
 0x998   :  { %v8162_v59 = vpack.c.bf16 %v10097_v22, %v10094_v19  ;;  %v8166_v4 = vpack.c.bf16 %v10100_v11, %v10086_v31 }
 0x99a   :  { %8153 = vmatpush3.bf16.msra.mxu0 %v8150_v41  ;;  %v11516_v41 = vld [vmem:[#allocation24_spill] sm:$0xff] }
 0x99b   :  { %8155 = vmatprep.subr.bf16.mxu0 %v8154_v24 }
 0x99e   :  { %8157 = vmatpush3.bf16.msra.mxu0 %v8154_v24  ;;  %v2839_v24 = vld [vmem:[#allocation10 + $0x140] sm:$0xff] }
 0x99f   :  { %8159 = vmatprep.subr.bf16.mxu0 %v8158_v9 }
 0x9a2   :  { %8161 = vmatpush3.bf16.msra.mxu0 %v8158_v9  ;;  %v2840_v9 = vld [vmem:[#allocation10 + $0x148] sm:$0xff] }
 0x9a3   :  { %8163 = vmatprep.subr.bf16.mxu0 %v8162_v59 }
 0x9a6   :  { %8165 = vmatpush3.bf16.msra.mxu0 %v8162_v59  ;;  %v8218_v59 = vpack.c.bf16 %v2840_v9, %v2839_v24  ;;  %v2476_v24 = vld [vmem:[#allocation9 + $0x118] sm:$0xff] }
 0x9a7   :  { %8167 = vmatprep.subr.bf16.mxu0 %v8166_v4 }
 0x9aa   :  { %8169 = vmatpush3.bf16.msra.mxu0 %v8166_v4  ;;  %v2841_v4 = vld [vmem:[#allocation10 + $0x150] sm:$0xff] }
 0x9ab   :  { %8203 = vmatprep.subr.bf16.mxu0 %v8202_v33  ;;  %v8222_v48 = vpack.c.bf16 %v2842_v61, %v2841_v4 }
 0x9ad   :  { %7173 = vmatmul.mubr.f32.vlgmr.msra.gmra.mrb[64].mxu0 %v9203_v13 }
 0x9ae   :  { %7175 = vmatprep.mubr.f32.mxu0 %v9205_v14  ;;  %8205 = vmatpush3.bf16.msra.mxu0 %v8202_v33  ;;  %v8226_v33 = vpack.c.bf16 %v2844_v52, %v2843_v32 }
 0x9af   :  { %8207 = vmatprep.subr.bf16.mxu0 %v8206_v25 }
 0x9b1   :  { %7176 = vmatmul.mubr.f32.gmra.mrb[66].mxu0 %v9208_v16 }
 0x9b2   :  { %7178 = vmatprep.mubr.f32.mxu0 %v9211_v17  ;;  %8209 = vmatpush3.bf16.msra.mxu0 %v8206_v25  ;;  %v2474_v25 = vld [vmem:[#allocation9 + $0x108] sm:$0xff] }
 0x9b3   :  { %8211 = vmatprep.subr.bf16.mxu0 %v8210_v47 }
 0x9b5   :  { %7179 = vmatmul.mubr.f32.gmra.mrb[68].mxu0 %v9214_v23 }
 0x9b6   :  { %7181 = vmatprep.mubr.f32.mxu0 %v11515_v29  ;;  %8213 = vmatpush3.bf16.msra.mxu0 %v8210_v47 }
 0x9b7   :  { %8215 = vmatprep.subr.bf16.mxu0 %v8214_v18 }
 0x9b9   :  { %7182 = vmatmul.mubr.f32.gmra.mrb[70].mxu0 %v11516_v41 }
 0x9ba   :  { %7184 = vmatprep.mubr.f32.mxu0 %v11517_v54  ;;  %8217 = vmatpush3.bf16.msra.mxu0 %v8214_v18 }
 0x9bb   :  { %8219 = vmatprep.subr.bf16.mxu0 %v8218_v59 }
 0x9bd   :  { %7185 = vmatmul.mubr.f32.gmra.mrb[72].mxu0 %v11518_v8 }
 0x9be   :  { %7187 = vmatprep.mubr.f32.mxu0 %v11519_v51  ;;  %8221 = vmatpush3.bf16.msra.mxu0 %v8218_v59 }
 0x9bf   :  { %8223 = vmatprep.subr.bf16.mxu0 %v8222_v48 }
 0x9c1   :  { %7188 = vmatmul.mubr.f32.gmra.mrb[74].mxu0 %v11520_v28 }
 0x9c2   :  { %7190 = vmatprep.mubr.f32.mxu0 %v11521_v53  ;;  %8225 = vmatpush3.bf16.msra.mxu0 %v8222_v48  ;;  %v2478_v53 = vld [vmem:[#allocation9 + $0x128] sm:$0xff]  ;;  %v2477_v48 = vld [vmem:[#allocation9 + $0x120] sm:$0xff] }
 0x9c3   :  { %8227 = vmatprep.subr.bf16.mxu0 %v8226_v33 }
 0x9c5   :  { %7191 = vmatmul.mubr.f32.gmra.mrb[76].mxu0 %v11522_v55 }
 0x9c6   :  { %7193 = vmatprep.mubr.f32.mxu0 %v11523_v10  ;;  %8229 = vmatpush3.bf16.msra.mxu0 %v8226_v33 }
 0x9c9   :  { %7194 = vmatmul.mubr.f32.gmra.mrb[78].mxu0 %v11524_v3  ;;  %v2475_v3 = vld [vmem:[#allocation9 + $0x110] sm:$0xff] }
 0xa80   :  { %v7174_v34 = vpop.f32.mrb[64].mxu0 }
 0xa81   :  { %v2561_v45 = vadd.f32 %v7174_v34, %v2474_v25  ;;  %v2555_v47 = vpop.f32.mrb[65].mxu0  ;;  %v2480_v34 = vld [vmem:[#allocation9 + $0x138] sm:$0xff] }
 0xa82   :  { %v2556_v40 = vadd.f32 %v2555_v47, %v2473_v2  ;;  %v2479_v47 = vld [vmem:[#allocation9 + $0x130] sm:$0xff] }
 0xa83   :  { %v2635_v9 = vmax.f32 %v2561_v45, 0.0 }
 0xa84   :  { %v2634_v18 = vmax.f32 %v2556_v40, 0.0  ;;  %v7177_v10 = vpop.f32.mrb[66].mxu0 }
 0xa85   :  { %v2571_v4 = vadd.f32 %v7177_v10, %v2476_v24  ;;  %v2565_v61 = vpop.f32.mrb[67].mxu0 }
 0xa86   :  { %v8170_v55 = vpack.c.bf16 %v2635_v9, %v2634_v18  ;;  %v2566_v59 = vadd.f32 %v2565_v61, %v2475_v3  ;;  %v2482_v18 = vld [vmem:[#allocation9 + $0x148] sm:$0xff]  ;;  %v2481_v61 = vld [vmem:[#allocation9 + $0x140] sm:$0xff] }
 0xa87   :  { %v2637_v32 = vmax.f32 %v2571_v4, 0.0 }
 0xa88   :  { %v2636_v52 = vmax.f32 %v2566_v59, 0.0  ;;  %v7180_v33 = vpop.f32.mrb[68].mxu0  ;;  %8171 = vmatprep.subr.bf16.mxu1 %v8170_v55 }
 0xa89   :  { %v2581_v28 = vadd.f32 %v7180_v33, %v2478_v53  ;;  %v2575_v51 = vpop.f32.mrb[69].mxu0  ;;  %8173 = vmatpush3.bf16.msra.mxu1 %v8170_v55  ;;  %v2483_v33 = vld [vmem:[#allocation9 + $0x150] sm:$0xff] }
 0xa8a   :  { %v8174_v25 = vpack.c.bf16 %v2637_v32, %v2636_v52  ;;  %v2576_v2 = vadd.f32 %v2575_v51, %v2477_v48  ;;  %v2484_v48 = vld [vmem:[#allocation9 + $0x158] sm:$0xff] }
 0xa8b   :  { %v2639_v45 = vmax.f32 %v2581_v28, 0.0 }
 0xa8c   :  { %v2638_v40 = vmax.f32 %v2576_v2, 0.0  ;;  %v7183_v8 = vpop.f32.mrb[70].mxu0  ;;  %8175 = vmatprep.subr.bf16.mxu1 %v8174_v25 }
 0xa8d   :  { %v2591_v10 = vadd.f32 %v7183_v8, %v2480_v34  ;;  %v2585_v24 = vpop.f32.mrb[71].mxu0  ;;  %8177 = vmatpush3.bf16.msra.mxu1 %v8174_v25 }
 0xa8e   :  { %v8178_v3 = vpack.c.bf16 %v2639_v45, %v2638_v40  ;;  %v2586_v9 = vadd.f32 %v2585_v24, %v2479_v47  ;;  %v2486_v40 = vld [vmem:[#allocation9 + $0x168] sm:$0xff]  ;;  %v2485_v24 = vld [vmem:[#allocation9 + $0x160] sm:$0xff] }
 0xa8f   :  { %v2641_v4 = vmax.f32 %v2591_v10, 0.0 }
 0xa90   :  { %v2640_v59 = vmax.f32 %v2586_v9, 0.0  ;;  %v7186_v53 = vpop.f32.mrb[72].mxu0  ;;  %8179 = vmatprep.subr.bf16.mxu1 %v8178_v3 }
 0xa91   :  { %v2601_v55 = vadd.f32 %v7186_v53, %v2482_v18  ;;  %v2595_v32 = vpop.f32.mrb[73].mxu0  ;;  %8181 = vmatpush3.bf16.msra.mxu1 %v8178_v3  ;;  %v2488_v53 = vld [vmem:[#allocation9 + $0x178] sm:$0xff] }
 0xa92   :  { %v8182_v51 = vpack.c.bf16 %v2641_v4, %v2640_v59  ;;  %v2596_v28 = vadd.f32 %v2595_v32, %v2481_v61  ;;  %v2487_v32 = vld [vmem:[#allocation9 + $0x170] sm:$0xff] }
 0xa93   :  { %v2643_v52 = vmax.f32 %v2601_v55, 0.0 }
 0xa94   :  { %v2642_v2 = vmax.f32 %v2596_v28, 0.0  ;;  %v7189_v8 = vpop.f32.mrb[74].mxu0  ;;  %8183 = vmatprep.subr.bf16.mxu1 %v8182_v51 }
 0xa95   :  { %v2611_v25 = vadd.f32 %v7189_v8, %v2484_v48  ;;  %v2605_v34 = vpop.f32.mrb[75].mxu0  ;;  %8185 = vmatpush3.bf16.msra.mxu1 %v8182_v51 }
 0xa96   :  { %v8186_v45 = vpack.c.bf16 %v2643_v52, %v2642_v2  ;;  %v2606_v47 = vadd.f32 %v2605_v34, %v2483_v33 }
 0xa97   :  { %v2645_v10 = vmax.f32 %v2611_v25, 0.0 }
 0xa98   :  { %v2644_v9 = vmax.f32 %v2606_v47, 0.0  ;;  %v7192_v18 = vpop.f32.mrb[76].mxu0  ;;  %8187 = vmatprep.subr.bf16.mxu1 %v8186_v45  ;;  %v11526_v47 = vld [vmem:[#allocation34_spill] sm:$0xff] }
 0xa99   :  { %v2621_v3 = vadd.f32 %v7192_v18, %v2486_v40  ;;  %v2615_v4 = vpop.f32.mrb[77].mxu0  ;;  %8189 = vmatpush3.bf16.msra.mxu1 %v8186_v45  ;;  %v11525_v45 = vld [vmem:[#allocation33_spill] sm:$0xff]  ;;  %v11527_v40 = vld [vmem:[#allocation35_spill] sm:$0xff] }
 0xa9a   :  { %v8190_v61 = vpack.c.bf16 %v2645_v10, %v2644_v9  ;;  %v2616_v59 = vadd.f32 %v2615_v4, %v2485_v24  ;;  %v11528_v10 = vld [vmem:[#allocation36_spill] sm:$0xff]  ;;  %v11529_v24 = vld [vmem:[#allocation37_spill] sm:$0xff]  ;;  %v11530_v9 = vld [vmem:[#allocation38_spill] sm:$0xff] }
 0xa9b   :  { %v2647_v55 = vmax.f32 %v2621_v3, 0.0  ;;  %v11531_v18 = vld [vmem:[#allocation39_spill] sm:$0xff]  ;;  %v11532_v3 = vld [vmem:[#allocation40_spill] sm:$0xff]  ;;  %v11533_v4 = vld [vmem:[#allocation41_spill] sm:$0xff] }
 0xa9c   :  { %v2646_v28 = vmax.f32 %v2616_v59, 0.0  ;;  %v7195_v48 = vpop.f32.mrb[78].mxu0  ;;  %8191 = vmatprep.subr.bf16.mxu1 %v8190_v61  ;;  %v11535_v59 = vld [vmem:[#allocation43_spill] sm:$0xff] }
 0xa9d   :  { %v2631_v51 = vadd.f32 %v7195_v48, %v2488_v53  ;;  %v2625_v52 = vpop.f32.mrb[79].mxu0  ;;  %8193 = vmatpush3.bf16.msra.mxu1 %v8190_v61  ;;  %v11534_v61 = vld [vmem:[#allocation42_spill] sm:$0xff]  ;;  %v11536_v53 = vld [vmem:[#allocation44_spill] sm:$0xff]  ;;  %v2845_v48 = vld [vmem:[#allocation10 + $0x170] sm:$0xff] }
 0xa9e   :  { %v8194_v33 = vpack.c.bf16 %v2647_v55, %v2646_v28  ;;  %v2626_v2 = vadd.f32 %v2625_v52, %v2487_v32  ;;  %v11537_v55 = vld [vmem:[#allocation45_spill] sm:$0xff]  ;;  %v11538_v32 = vld [vmem:[#allocation46_spill] sm:$0xff]  ;;  %v11539_v28 = vld [vmem:[#allocation47_spill] sm:$0xff] }
 0xa9f   :  { %v2649_v8 = vmax.f32 %v2631_v51, 0.0  ;;  %v2846_v51 = vld [vmem:[#allocation10 + $0x178] sm:$0xff] }
 0xaa0   :  { %v2648_v25 = vmax.f32 %v2626_v2, 0.0  ;;  %8195 = vmatprep.subr.bf16.mxu1 %v8194_v33  ;;  %v8230_v52 = vpack.c.bf16 %v2846_v51, %v2845_v48 }
 0xaa1   :  { %8197 = vmatpush3.bf16.msra.mxu1 %v8194_v33  ;;  %v2797_v33 = vstv %s2796_s20 }
 0xaa2   :  { %v8198_v34 = vpack.c.bf16 %v2649_v8, %v2648_v25  ;;  %8231 = vmatprep.subr.bf16.mxu0 %v8230_v52  ;;  %v2799_v2 = vmul.f32 %v2797_v33, %v10027_v12  ;;  %v2798_v25 = vmul.f32 %v2797_v33, %v10024_v30  ;;  %v2802_v12 = vmul.f32 %v2797_v33, %v10036_v15 }
 0xaa3   :  { %8233 = vmatpush3.bf16.msra.mxu0 %v8230_v52  ;;  %v2806_v15 = vmul.f32 %v2797_v33, %v10077_v39  ;;  %v2810_v39 = vmul.f32 %v2797_v33, %v10094_v19  ;;  %v3179_v19 = vld [vmem:[#allocation12 + $0x108] sm:$0xff] }
 0xaa4   :  { %8199 = vmatprep.subr.bf16.mxu1 %v8198_v34 }
 0xaa5   :  { %8201 = vmatpush3.bf16.msra.mxu1 %v8198_v34 }
 0xaa8   :  { %7229 = vmatmul.mubr.f32.vlgmr.msra.gmra.mrb[64].mxu1 %v11525_v45 }
 0xaa9   :  { %7231 = vmatprep.mubr.f32.mxu1 %v11526_v47 }
 0xaac   :  { %7232 = vmatmul.mubr.f32.gmra.mrb[66].mxu1 %v11527_v40 }
 0xaad   :  { %7234 = vmatprep.mubr.f32.mxu1 %v11528_v10 }
 0xab0   :  { %7235 = vmatmul.mubr.f32.gmra.mrb[68].mxu1 %v11529_v24 }
 0xab1   :  { %7237 = vmatprep.mubr.f32.mxu1 %v11530_v9 }
 0xab4   :  { %7238 = vmatmul.mubr.f32.gmra.mrb[70].mxu1 %v11531_v18 }
 0xab5   :  { %7240 = vmatprep.mubr.f32.mxu1 %v11532_v3 }
 0xab8   :  { %7241 = vmatmul.mubr.f32.gmra.mrb[72].mxu1 %v11533_v4 }
 0xab9   :  { %7243 = vmatprep.mubr.f32.mxu1 %v11534_v61  ;;  %v2803_v61 = vmul.f32 %v2797_v33, %v10039_v44  ;;  %v2807_v44 = vmul.f32 %v2797_v33, %v10080_v5  ;;  %v2811_v5 = vmul.f32 %v2797_v33, %v10097_v22  ;;  %v11540_v22 = vld [vmem:[#allocation22_spill] sm:$0xff] }
 0xabc   :  { %7244 = vmatmul.mubr.f32.gmra.mrb[74].mxu1 %v11535_v59 }
 0xabd   :  { %7246 = vmatprep.mubr.f32.mxu1 %v11536_v53 }
 0xac0   :  { %7247 = vmatmul.mubr.f32.gmra.mrb[76].mxu1 %v11537_v55 }
 0xac1   :  { %7249 = vmatprep.mubr.f32.mxu1 %v11538_v32  ;;  %v2801_v32 = vmul.f32 %v2797_v33, %v10033_v1  ;;  %v2805_v1 = vmul.f32 %v2797_v33, %v10051_v46  ;;  %v2809_v46 = vmul.f32 %v2797_v33, %v10091_v62  ;;  %v2813_v62 = vmul.f32 %v2797_v33, %v10100_v11 }
 0xac4   :  { %7250 = vmatmul.mubr.f32.gmra.mrb[78].mxu1 %v11539_v28  ;;  %v2800_v28 = vmul.f32 %v2797_v33, %v10030_v38  ;;  %v2804_v38 = vmul.f32 %v2797_v33, %v10044_v60  ;;  %v2808_v60 = vmul.f32 %v2797_v33, %v10083_v37  ;;  %v2812_v37 = vmul.f32 %v2797_v33, %v10086_v31  ;;  %v3183_v31 = vld [vmem:[#allocation12 + $0x128] sm:$0xff] }
 0xb7b   :  { %v7230_v8 = vpop.f32.mrb[64].mxu1 }
 0xb7c   :  { %v2815_v34 = vadd.f32 %v7230_v8, %v2799_v2  ;;  %v2716_v53 = vpop.f32.mrb[65].mxu1 }
 0xb7d   :  { %v2814_v55 = vadd.f32 %v2798_v25, %v2716_v53 }
 0xb7f   :  { %v7233_v59 = vpop.f32.mrb[66].mxu1  ;;  %7284 = vmatprep.mubr.f32.mxu0 %v2814_v55 }
 0xb80   :  { %v2817_v48 = vadd.f32 %v7233_v59, %v2801_v32  ;;  %v2726_v51 = vpop.f32.mrb[67].mxu1  ;;  %7285 = vmatmul.mubr.f32.vlgmr.msra.gmra.mrb[80].mxu0 %v2815_v34 }
 0xb81   :  { %v2816_v52 = vadd.f32 %v2800_v28, %v2726_v51 }
 0xb83   :  { %v7236_v4 = vpop.f32.mrb[68].mxu1  ;;  %7287 = vmatprep.mubr.f32.mxu0 %v2816_v52 }
 0xb84   :  { %v2819_v30 = vadd.f32 %v7236_v4, %v2803_v61  ;;  %v2736_v2 = vpop.f32.mrb[69].mxu1  ;;  %7288 = vmatmul.mubr.f32.gmra.mrb[82].mxu0 %v2817_v48 }
 0xb85   :  { %v2818_v53 = vadd.f32 %v2802_v12, %v2736_v2 }
 0xb87   :  { %v7239_v8 = vpop.f32.mrb[70].mxu1  ;;  %7290 = vmatprep.mubr.f32.mxu0 %v2818_v53 }
 0xb88   :  { %v2821_v59 = vadd.f32 %v7239_v8, %v2805_v1  ;;  %v2746_v55 = vpop.f32.mrb[71].mxu1  ;;  %7291 = vmatmul.mubr.f32.gmra.mrb[84].mxu0 %v2819_v30 }
 0xb89   :  { %v2820_v32 = vadd.f32 %v2804_v38, %v2746_v55  ;;  %v3178_v55 = vld [vmem:[#allocation12 + $0x100] sm:$0xff] }
 0xb8b   :  { %v7242_v28 = vpop.f32.mrb[72].mxu1  ;;  %7293 = vmatprep.mubr.f32.mxu0 %v2820_v32  ;;  %v8234_v32 = vpack.c.bf16 %v3179_v19, %v3178_v55 }
 0xb8c   :  { %v2823_v4 = vadd.f32 %v7242_v28, %v2807_v44  ;;  %v2756_v61 = vpop.f32.mrb[73].mxu1  ;;  %7294 = vmatmul.mubr.f32.gmra.mrb[86].mxu0 %v2821_v59  ;;  %v3180_v44 = vld [vmem:[#allocation12 + $0x110] sm:$0xff]  ;;  %v3181_v28 = vld [vmem:[#allocation12 + $0x118] sm:$0xff] }
 0xb8d   :  { %v2822_v25 = vadd.f32 %v2806_v15, %v2756_v61  ;;  %8235 = vmatprep.subr.bf16.mxu1 %v8234_v32  ;;  %v8238_v11 = vpack.c.bf16 %v3181_v28, %v3180_v44  ;;  %v3182_v15 = vld [vmem:[#allocation12 + $0x120] sm:$0xff]  ;;  %v3185_v61 = vld [vmem:[#allocation12 + $0x138] sm:$0xff] }
 0xb8e   :  { %8237 = vmatpush3.bf16.msra.mxu1 %v8234_v32  ;;  %v8242_v33 = vpack.c.bf16 %v3183_v31, %v3182_v15 }
 0xb8f   :  { %v7245_v34 = vpop.f32.mrb[74].mxu1  ;;  %7296 = vmatprep.mubr.f32.mxu0 %v2822_v25  ;;  %8239 = vmatprep.subr.bf16.mxu1 %v8238_v11  ;;  %v3186_v25 = vld [vmem:[#allocation12 + $0x140] sm:$0xff] }
 0xb90   :  { %v2825_v48 = vadd.f32 %v7245_v34, %v2809_v46  ;;  %v2766_v51 = vpop.f32.mrb[75].mxu1  ;;  %7297 = vmatmul.mubr.f32.gmra.mrb[88].mxu0 %v2823_v4  ;;  %v3184_v4 = vld [vmem:[#allocation12 + $0x130] sm:$0xff]  ;;  %v3187_v34 = vld [vmem:[#allocation12 + $0x148] sm:$0xff] }
 0xb91   :  { %v2824_v52 = vadd.f32 %v2808_v60, %v2766_v51  ;;  %v8246_v46 = vpack.c.bf16 %v3185_v61, %v3184_v4  ;;  %v8250_v60 = vpack.c.bf16 %v3187_v34, %v3186_v25  ;;  %v3189_v51 = vld [vmem:[#allocation12 + $0x158] sm:$0xff] }
 0xb92   :  { %8241 = vmatpush3.bf16.msra.mxu1 %v8238_v11 }
 0xb93   :  { %v7248_v12 = vpop.f32.mrb[76].mxu1  ;;  %7299 = vmatprep.mubr.f32.mxu0 %v2824_v52  ;;  %8243 = vmatprep.subr.bf16.mxu1 %v8242_v33 }
 0xb94   :  { %v2827_v30 = vadd.f32 %v7248_v12, %v2811_v5  ;;  %v2776_v2 = vpop.f32.mrb[77].mxu1  ;;  %7300 = vmatmul.mubr.f32.gmra.mrb[90].mxu0 %v2825_v48  ;;  %v3188_v48 = vld [vmem:[#allocation12 + $0x150] sm:$0xff]  ;;  %v3190_v5 = vld [vmem:[#allocation12 + $0x160] sm:$0xff]  ;;  %v3191_v12 = vld [vmem:[#allocation12 + $0x168] sm:$0xff] }
 0xb95   :  { %v2826_v53 = vadd.f32 %v2810_v39, %v2776_v2  ;;  %v8254_v52 = vpack.c.bf16 %v3189_v51, %v3188_v48  ;;  %v8258_v39 = vpack.c.bf16 %v3191_v12, %v3190_v5  ;;  %v3193_v2 = vld [vmem:[#allocation12 + $0x178] sm:$0xff] }
 0xb96   :  { %8245 = vmatpush3.bf16.msra.mxu1 %v8242_v33 }
 0xb97   :  { %v7251_v1 = vpop.f32.mrb[78].mxu1  ;;  %7302 = vmatprep.mubr.f32.mxu0 %v2826_v53  ;;  %8247 = vmatprep.subr.bf16.mxu1 %v8246_v46 }
 0xb98   :  { %v2829_v8 = vadd.f32 %v7251_v1, %v2813_v62  ;;  %v2786_v38 = vpop.f32.mrb[79].mxu1  ;;  %7303 = vmatmul.mubr.f32.gmra.mrb[92].mxu0 %v2827_v30  ;;  %v3192_v30 = vld [vmem:[#allocation12 + $0x170] sm:$0xff]  ;;  %v10158_v62 = vld [vmem:[%s11381_s8 + $0x2] ss:$0 sm:$0xff] }
 0xb99   :  { %v2828_v59 = vadd.f32 %v2812_v37, %v2786_v38  ;;  %v8262_v53 = vpack.c.bf16 %v3193_v2, %v3192_v30 }
 0xb9a   :  { %8249 = vmatpush3.bf16.msra.mxu1 %v8246_v46 }
 0xb9b   :  { %7305 = vmatprep.mubr.f32.mxu0 %v2828_v59  ;;  %8251 = vmatprep.subr.bf16.mxu1 %v8250_v60 }
 0xb9c   :  { %7306 = vmatmul.mubr.f32.gmra.mrb[94].mxu0 %v2829_v8 }
 0xb9d   :  { %7396 = vmatprep.mubr.f32.mxu0 %v11540_v22 }
 0xb9e   :  { %8253 = vmatpush3.bf16.msra.mxu1 %v8250_v60 }
 0xb9f   :  { %8255 = vmatprep.subr.bf16.mxu1 %v8254_v52 }
 0xba2   :  { %8257 = vmatpush3.bf16.msra.mxu1 %v8254_v52 }
 0xba3   :  { %8259 = vmatprep.subr.bf16.mxu1 %v8258_v39 }
 0xba6   :  { %8261 = vmatpush3.bf16.msra.mxu1 %v8258_v39 }
 0xba7   :  { %8263 = vmatprep.subr.bf16.mxu1 %v8262_v53 }
 0xbaa   :  { %8265 = vmatpush3.bf16.msra.mxu1 %v8262_v53 }
 0xc53   :  { %v7286_v1 = vpop.f32.mrb[80].mxu0 }
 0xc54   :  { %v10161_v37 = vadd.f32 %v7286_v1, %v10158_v62  ;;  %v2921_v8 = vpop.f32.mrb[81].mxu0 }
 0xc55   :  { %v10164_v38 = vadd.f32 %v10158_v62, %v2921_v8 }
 0xc56   :  { %v3005_v59 = vmul.f32 %v10161_v37, %v9076_v27 }
 0xc57   :  { %v3004_v55 = vmul.f32 %v10164_v38, %v9060_v21  ;;  %v7289_v19 = vpop.f32.mrb[82].mxu0 }
 0xc58   :  { %v3043_v32 = vmul.f32 %v3005_v59, %v3005_v59  ;;  %v10171_v44 = vadd.f32 %v7289_v19, %v10158_v62  ;;  %v2931_v28 = vpop.f32.mrb[83].mxu0 }
 0xc59   :  { %v3020_v11 = vadd.f32 %v3005_v59, %v3004_v55  ;;  %v3042_v15 = vmul.f32 %v3004_v55, %v3004_v55  ;;  %v10174_v31 = vadd.f32 %v10158_v62, %v2931_v28 }
 0xc5a   :  { %v3007_v4 = vmul.f32 %v10171_v44, %v9074_v26 }
 0xc5b   :  { %v3058_v33 = vadd.f32 %v3043_v32, %v3042_v15  ;;  %v3006_v61 = vmul.f32 %v10174_v31, %v9058_v20  ;;  %v7292_v25 = vpop.f32.mrb[84].mxu0 }
 0xc5c   :  { %v10181_v46 = vadd.f32 %v7292_v25, %v10158_v62  ;;  %v2941_v34 = vpop.f32.mrb[85].mxu0  ;;  %v3045_v5 = vmul.f32 %v3007_v4, %v3007_v4 }
 0xc5d   :  { %v3021_v60 = vadd.f32 %v3020_v11, %v3006_v61  ;;  %v3044_v48 = vmul.f32 %v3006_v61, %v3006_v61  ;;  %v10184_v51 = vadd.f32 %v10158_v62, %v2941_v34 }
 0xc5e   :  { %v3009_v52 = vmul.f32 %v10181_v46, %v9098_v35 }
 0xc5f   :  { %v3059_v12 = vadd.f32 %v3058_v33, %v3044_v48  ;;  %v3008_v39 = vmul.f32 %v10184_v51, %v9100_v36  ;;  %v3022_v30 = vadd.f32 %v3021_v60, %v3007_v4  ;;  %v7295_v2 = vpop.f32.mrb[86].mxu0 }
 0xc60   :  { %v10191_v53 = vadd.f32 %v7295_v2, %v10158_v62  ;;  %v2951_v1 = vpop.f32.mrb[87].mxu0  ;;  %v3047_v32 = vmul.f32 %v3009_v52, %v3009_v52 }
 0xc61   :  { %v3023_v8 = vadd.f32 %v3022_v30, %v3008_v39  ;;  %v3046_v59 = vmul.f32 %v3008_v39, %v3008_v39  ;;  %v3060_v55 = vadd.f32 %v3059_v12, %v3045_v5  ;;  %v10194_v19 = vadd.f32 %v10158_v62, %v2951_v1 }
 0xc62   :  { %v3011_v11 = vmul.f32 %v10191_v53, %v9116_v42 }
 0xc63   :  { %v3061_v28 = vadd.f32 %v3060_v55, %v3046_v59  ;;  %v3010_v15 = vmul.f32 %v10194_v19, %v9118_v43  ;;  %v3024_v33 = vadd.f32 %v3023_v8, %v3009_v52  ;;  %v7298_v4 = vpop.f32.mrb[88].mxu0 }
 0xc64   :  { %v10201_v61 = vadd.f32 %v7298_v4, %v10158_v62  ;;  %v2961_v25 = vpop.f32.mrb[89].mxu0  ;;  %v3049_v39 = vmul.f32 %v3011_v11, %v3011_v11 }
 0xc65   :  { %v3025_v34 = vadd.f32 %v3024_v33, %v3010_v15  ;;  %v3048_v60 = vmul.f32 %v3010_v15, %v3010_v15  ;;  %v3062_v48 = vadd.f32 %v3061_v28, %v3047_v32  ;;  %v10204_v5 = vadd.f32 %v10158_v62, %v2961_v25 }
 0xc66   :  { %v3013_v12 = vmul.f32 %v10201_v61, %v9134_v49 }
 0xc67   :  { %v3063_v30 = vadd.f32 %v3062_v48, %v3048_v60  ;;  %v3012_v2 = vmul.f32 %v10204_v5, %v9136_v50  ;;  %v3026_v52 = vadd.f32 %v3025_v34, %v3011_v11  ;;  %v7301_v1 = vpop.f32.mrb[90].mxu0 }
 0xc68   :  { %v10211_v8 = vadd.f32 %v7301_v1, %v10158_v62  ;;  %v2971_v59 = vpop.f32.mrb[91].mxu0  ;;  %v3051_v33 = vmul.f32 %v3013_v12, %v3013_v12 }
 0xc69   :  { %v3027_v55 = vadd.f32 %v3026_v52, %v3012_v2  ;;  %v3050_v15 = vmul.f32 %v3012_v2, %v3012_v2  ;;  %v3064_v32 = vadd.f32 %v3063_v30, %v3049_v39  ;;  %v10214_v28 = vadd.f32 %v10158_v62, %v2971_v59 }
 0xc6a   :  { %v3015_v25 = vmul.f32 %v10211_v8, %v9152_v56 }
 0xc6b   :  { %v3065_v4 = vadd.f32 %v3064_v32, %v3050_v15  ;;  %v3014_v60 = vmul.f32 %v10214_v28, %v9154_v57  ;;  %v3028_v11 = vadd.f32 %v3027_v55, %v3013_v12  ;;  %v7304_v34 = vpop.f32.mrb[92].mxu0 }
 0xc6c   :  { %v10221_v48 = vadd.f32 %v7304_v34, %v10158_v62  ;;  %v2981_v1 = vpop.f32.mrb[93].mxu0  ;;  %v3053_v15 = vmul.f32 %v3015_v25, %v3015_v25 }
 0xc6d   :  { %v3029_v52 = vadd.f32 %v3028_v11, %v3014_v60  ;;  %v3052_v2 = vmul.f32 %v3014_v60, %v3014_v60  ;;  %v3066_v39 = vadd.f32 %v3065_v4, %v3051_v33  ;;  %v10224_v30 = vadd.f32 %v10158_v62, %v2981_v1 }
 0xc6e   :  { %v3017_v59 = vmul.f32 %v10221_v48, %v9170_v63 }
 0xc6f   :  { %v3067_v32 = vadd.f32 %v3066_v39, %v3052_v2  ;;  %v3016_v22 = vmul.f32 %v10224_v30, %v9172_v0  ;;  %v3030_v12 = vadd.f32 %v3029_v52, %v3015_v25  ;;  %v7307_v55 = vpop.f32.mrb[94].mxu0 }
 0xc70   :  { %v10231_v34 = vadd.f32 %v7307_v55, %v10158_v62  ;;  %v2991_v3 = vpop.f32.mrb[95].mxu0  ;;  %v3055_v1 = vmul.f32 %v3017_v59, %v3017_v59 }
 0xc71   :  { %v3031_v11 = vadd.f32 %v3030_v12, %v3016_v22  ;;  %v3054_v60 = vmul.f32 %v3016_v22, %v3016_v22  ;;  %v3068_v33 = vadd.f32 %v3067_v32, %v3053_v15  ;;  %v2992_v4 = vadd.f32 %v10158_v62, %v2991_v3 }
 0xc72   :  { %v3019_v9 = vmul.f32 %v10231_v34, %v9188_v6 }
 0xc73   :  { %v3069_v18 = vadd.f32 %v3068_v33, %v3054_v60  ;;  %v3018_v2 = vmul.f32 %v2992_v4, %v9190_v7  ;;  %v3032_v39 = vadd.f32 %v3031_v11, %v3017_v59 }
 0xc74   :  { %v3057_v10 = vmul.f32 %v3019_v9, %v3019_v9 }
 0xc75   :  { %v3033_v24 = vadd.f32 %v3032_v39, %v3018_v2  ;;  %v3056_v25 = vmul.f32 %v3018_v2, %v3018_v2  ;;  %v3070_v52 = vadd.f32 %v3069_v18, %v3055_v1 }
 0xc77   :  { %v3034_v55 = vadd.f32 %v3033_v24, %v3019_v9  ;;  %v3071_v40 = vadd.f32 %v3070_v52, %v3056_v25 }
 0xc79   :  { %v3035_v47 = vrot.slane %v3034_v55, 4  ;;  %v3072_v12 = vadd.f32 %v3071_v40, %v3057_v10 }
 0xc7b   :  { %v3036_v22 = vadd.f32 %v3035_v47, %v3034_v55  ;;  %v3073_v15 = vrot.slane %v3072_v12, 4 }
 0xc7d   :  { %v3037_v32 = vrot.slane %v3036_v22, 2  ;;  %v3074_v3 = vadd.f32 %v3073_v15, %v3072_v12 }
 0xc7f   :  { %v3038_v62 = vadd.f32 %v3037_v32, %v3036_v22  ;;  %v3075_v60 = vrot.slane %v3074_v3, 2 }
 0xc81   :  { %v3039_v33 = vrot.slane %v3038_v62, 1  ;;  %v3076_v45 = vadd.f32 %v3075_v60, %v3074_v3 }
 0xc83   :  { %v3040_v54 = vadd.f32 %v3039_v33, %v3038_v62  ;;  %v3077_v41 = vrot.slane %v3076_v45, 1 }
 0xc85   :  { %v3041_v29 = vmul.f32 0.0625, %v3040_v54  ;;  %v3078_v59 = vadd.f32 %v3077_v41, %v3076_v45 }
 0xc87   :  { %v3079_v11 = vmul.f32 0.0625, %v3078_v59  ;;  %v3080_v2 = vmul.f32 %v3041_v29, %v3041_v29  ;;  %v3097_v18 = vsub.f32 %v2992_v4, %v3041_v29  ;;  %v3083_v24 = vsub.f32 %v10164_v38, %v3041_v29 }
 0xc88   :  { %v3084_v9 = vsub.f32 %v10161_v37, %v3041_v29  ;;  %v3085_v47 = vsub.f32 %v10174_v31, %v3041_v29  ;;  %v3086_v40 = vsub.f32 %v10171_v44, %v3041_v29  ;;  %v3087_v10 = vsub.f32 %v10184_v51, %v3041_v29 }
 0xc89   :  { %v3081_v1 = vsub.f32 %v3079_v11, %v3080_v2  ;;  %v3088_v39 = vsub.f32 %v10181_v46, %v3041_v29  ;;  %v3089_v25 = vsub.f32 %v10194_v19, %v3041_v29  ;;  %v3090_v41 = vsub.f32 %v10191_v53, %v3041_v29  ;;  %v10255_v53 = vld [vmem:[%s11382_s9 + $0x2] ss:$0 sm:$0xff] }
 0xc8a   :  { %v3091_v54 = vsub.f32 %v10204_v5, %v3041_v29  ;;  %v3092_v45 = vsub.f32 %v10201_v61, %v3041_v29  ;;  %v3093_v38 = vsub.f32 %v10214_v28, %v3041_v29  ;;  %v3094_v37 = vsub.f32 %v10211_v8, %v3041_v29 }
 0xc8b   :  { %v3082_v31 = vmax.f32 %v3081_v1, 0.0  ;;  %v3095_v44 = vsub.f32 %v10224_v30, %v3041_v29  ;;  %v3096_v51 = vsub.f32 %v10221_v48, %v3041_v29  ;;  %v3098_v4 = vsub.f32 %v10231_v34, %v3041_v29  ;;  %v10262_v30 = vld [vmem:[%s11383_s10 + $0x2] ss:$0 sm:$0xff] }
 0xc8d   :  { %v3099_v46 = vadd.f32 1e-05, %v3082_v31 }
 0xc8f   :  { %8596 = vrsqrt.f32 %v3099_v46 }
 0xc99   :  { %v8597_v19 = vpop.eup %8596 }
 0xc9a   :  { %v10257_v61 = vmul.f32 %v8597_v19, %v3097_v18  ;;  %v3101_v5 = vmul.f32 %v8597_v19, %v3083_v24  ;;  %v3102_v28 = vmul.f32 %v8597_v19, %v3084_v9  ;;  %v3103_v8 = vmul.f32 %v8597_v19, %v3085_v47 }
 0xc9b   :  { %v3104_v48 = vmul.f32 %v8597_v19, %v3086_v40  ;;  %v3105_v29 = vmul.f32 %v8597_v19, %v3087_v10  ;;  %v3106_v34 = vmul.f32 %v8597_v19, %v3088_v39  ;;  %v3107_v52 = vmul.f32 %v8597_v19, %v3089_v25 }
 0xc9c   :  { %v3123_v55 = vmul.f32 %v10255_v53, %v3101_v5  ;;  %v3124_v12 = vmul.f32 %v10255_v53, %v3102_v28  ;;  %v3125_v22 = vmul.f32 %v10255_v53, %v3103_v8  ;;  %v3108_v15 = vmul.f32 %v8597_v19, %v3090_v41 }
 0xc9d   :  { %v3126_v32 = vmul.f32 %v10255_v53, %v3104_v48  ;;  %v3127_v3 = vmul.f32 %v10255_v53, %v3105_v29  ;;  %v3128_v24 = vmul.f32 %v10255_v53, %v3106_v34  ;;  %v3129_v9 = vmul.f32 %v10255_v53, %v3107_v52 }
 0xc9e   :  { %v3145_v62 = vadd.f32 %v10262_v30, %v3123_v55  ;;  %v3146_v60 = vadd.f32 %v10262_v30, %v3124_v12  ;;  %v3147_v33 = vadd.f32 %v10262_v30, %v3125_v22  ;;  %v3109_v40 = vmul.f32 %v8597_v19, %v3091_v54 }
 0xc9f   :  { %v3148_v2 = vadd.f32 %v10262_v30, %v3126_v32  ;;  %v3149_v18 = vadd.f32 %v10262_v30, %v3127_v3  ;;  %v3110_v10 = vmul.f32 %v8597_v19, %v3092_v45  ;;  %v3111_v1 = vmul.f32 %v8597_v19, %v3093_v38 }
 0xca0   :  { %v3161_v59 = vmax.f32 %v3145_v62, 0.0  ;;  %v3162_v11 = vmax.f32 %v3146_v60, 0.0  ;;  %v3163_v47 = vmax.f32 %v3147_v33, 0.0  ;;  %v3112_v39 = vmul.f32 %v8597_v19, %v3094_v37 }
 0xca1   :  { %v3113_v25 = vmul.f32 %v8597_v19, %v3095_v44  ;;  %v3114_v41 = vmul.f32 %v8597_v19, %v3096_v51  ;;  %v3116_v31 = vmul.f32 %v8597_v19, %v3098_v4  ;;  %v3164_v46 = vmax.f32 %v3148_v2, 0.0 }
 0xca2   :  { %7340 = vmatprep.mubr.f32.mxu1 %v3161_v59  ;;  %v3150_v5 = vadd.f32 %v10262_v30, %v3128_v24  ;;  %v3130_v28 = vmul.f32 %v10255_v53, %v3108_v15  ;;  %v3165_v8 = vmax.f32 %v3149_v18, 0.0  ;;  %v3151_v48 = vadd.f32 %v10262_v30, %v3129_v9 }
 0xca3   :  { %7341 = vmatmul.mubr.f32.vlgmr.msra.gmra.mrb[80].mxu1 %v3162_v11  ;;  %v3131_v29 = vmul.f32 %v10255_v53, %v3109_v40  ;;  %v3132_v38 = vmul.f32 %v10255_v53, %v3110_v10  ;;  %v3133_v51 = vmul.f32 %v10255_v53, %v3111_v1  ;;  %v3134_v34 = vmul.f32 %v10255_v53, %v3112_v39 }
 0xca4   :  { %7343 = vmatprep.mubr.f32.mxu1 %v3163_v47  ;;  %v3166_v54 = vmax.f32 %v3150_v5, 0.0  ;;  %v3152_v45 = vadd.f32 %v10262_v30, %v3130_v28  ;;  %v3167_v37 = vmax.f32 %v3151_v48, 0.0  ;;  %v3135_v12 = vmul.f32 %v10255_v53, %v3113_v25 }
 0xca5   :  { %v3153_v44 = vadd.f32 %v10262_v30, %v3131_v29  ;;  %v3154_v19 = vadd.f32 %v10262_v30, %v3132_v38  ;;  %v3155_v55 = vadd.f32 %v10262_v30, %v3133_v51  ;;  %v3156_v15 = vadd.f32 %v10262_v30, %v3134_v34 }
 0xca6   :  { %v3168_v4 = vmax.f32 %v3152_v45, 0.0  ;;  %v3136_v32 = vmul.f32 %v10255_v53, %v3114_v41  ;;  %v3157_v62 = vadd.f32 %v10262_v30, %v3135_v12  ;;  %v3137_v60 = vmul.f32 %v10255_v53, %v10257_v61  ;;  %v10301_v61 = vld [vmem:[%s11385_s12 + $0x2] ss:$0 sm:$0xff] }
 0xca7   :  { %7344 = vmatmul.mubr.f32.gmra.mrb[82].mxu1 %v3164_v46  ;;  %v3169_v52 = vmax.f32 %v3153_v44, 0.0  ;;  %v3170_v22 = vmax.f32 %v3154_v19, 0.0  ;;  %v3171_v3 = vmax.f32 %v3155_v55, 0.0  ;;  %v3172_v33 = vmax.f32 %v3156_v15, 0.0 }
 0xca8   :  { %7346 = vmatprep.mubr.f32.mxu1 %v3165_v8  ;;  %v3158_v59 = vadd.f32 %v10262_v30, %v3136_v32  ;;  %v3138_v11 = vmul.f32 %v10255_v53, %v3116_v31  ;;  %v3173_v2 = vmax.f32 %v3157_v62, 0.0  ;;  %v3159_v18 = vadd.f32 %v10262_v30, %v3137_v60 }
 0xcaa   :  { %v3174_v24 = vmax.f32 %v3158_v59, 0.0  ;;  %v3160_v9 = vadd.f32 %v10262_v30, %v3138_v11  ;;  %v3175_v47 = vmax.f32 %v3159_v18, 0.0 }
 0xcab   :  { %7347 = vmatmul.mubr.f32.gmra.mrb[84].mxu1 %v3166_v54 }
 0xcac   :  { %7349 = vmatprep.mubr.f32.mxu1 %v3167_v37  ;;  %v3176_v40 = vmax.f32 %v3160_v9, 0.0 }
 0xcaf   :  { %7350 = vmatmul.mubr.f32.gmra.mrb[86].mxu1 %v3168_v4 }
 0xcb0   :  { %7352 = vmatprep.mubr.f32.mxu1 %v3169_v52 }
 0xcb3   :  { %7353 = vmatmul.mubr.f32.gmra.mrb[88].mxu1 %v3170_v22 }
 0xcb4   :  { %7355 = vmatprep.mubr.f32.mxu1 %v3171_v3 }
 0xcb7   :  { %7356 = vmatmul.mubr.f32.gmra.mrb[90].mxu1 %v3172_v33 }
 0xcb8   :  { %7358 = vmatprep.mubr.f32.mxu1 %v3173_v2 }
 0xcbb   :  { %7359 = vmatmul.mubr.f32.gmra.mrb[92].mxu1 %v3174_v24 }
 0xcbc   :  { %7361 = vmatprep.mubr.f32.mxu1 %v3175_v47 }
 0xcbf   :  { %7362 = vmatmul.mubr.f32.gmra.mrb[94].mxu1 %v3176_v40 }
 0xcc0   :  { %7452 = vmatprep.mubr.f32.mxu1 %v9251_v58 }
 0xd76   :  { %v7342_v53 = vpop.f32.mrb[80].mxu1 }
 0xd77   :  { %v10304_v10 = vadd.f32 %v7342_v53, %v10301_v61  ;;  %v3268_v1 = vpop.f32.mrb[81].mxu1 }
 0xd78   :  { %v10307_v39 = vadd.f32 %v10301_v61, %v3268_v1 }
 0xd79   :  { %v3352_v30 = vmul.f32 %v10304_v10, %v9076_v27 }
 0xd7a   :  { %v3351_v25 = vmul.f32 %v10307_v39, %v9060_v21  ;;  %v7345_v41 = vpop.f32.mrb[82].mxu1 }
 0xd7b   :  { %v3390_v31 = vmul.f32 %v3352_v30, %v3352_v30  ;;  %v10314_v46 = vadd.f32 %v7345_v41, %v10301_v61  ;;  %v3278_v5 = vpop.f32.mrb[83].mxu1 }
 0xd7c   :  { %v3367_v28 = vadd.f32 %v3352_v30, %v3351_v25  ;;  %v3389_v8 = vmul.f32 %v3351_v25, %v3351_v25  ;;  %v10317_v48 = vadd.f32 %v10301_v61, %v3278_v5 }
 0xd7d   :  { %v3354_v54 = vmul.f32 %v10314_v46, %v9074_v26 }
 0xd7e   :  { %v3405_v29 = vadd.f32 %v3390_v31, %v3389_v8  ;;  %v3353_v45 = vmul.f32 %v10317_v48, %v9058_v20  ;;  %v7348_v38 = vpop.f32.mrb[84].mxu1 }
 0xd7f   :  { %v10324_v37 = vadd.f32 %v7348_v38, %v10301_v61  ;;  %v3288_v44 = vpop.f32.mrb[85].mxu1  ;;  %v3392_v52 = vmul.f32 %v3354_v54, %v3354_v54 }
 0xd80   :  { %v3368_v51 = vadd.f32 %v3367_v28, %v3353_v45  ;;  %v3391_v4 = vmul.f32 %v3353_v45, %v3353_v45  ;;  %v10327_v19 = vadd.f32 %v10301_v61, %v3288_v44 }
 0xd81   :  { %v3356_v34 = vmul.f32 %v10324_v37, %v9098_v35 }
 0xd82   :  { %v3406_v55 = vadd.f32 %v3405_v29, %v3391_v4  ;;  %v3355_v12 = vmul.f32 %v10327_v19, %v9100_v36  ;;  %v3369_v22 = vadd.f32 %v3368_v51, %v3354_v54  ;;  %v7351_v15 = vpop.f32.mrb[86].mxu1 }
 0xd83   :  { %v10334_v32 = vadd.f32 %v7351_v15, %v10301_v61  ;;  %v3298_v3 = vpop.f32.mrb[87].mxu1  ;;  %v3394_v11 = vmul.f32 %v3356_v34, %v3356_v34 }
 0xd84   :  { %v3370_v62 = vadd.f32 %v3369_v22, %v3355_v12  ;;  %v3393_v60 = vmul.f32 %v3355_v12, %v3355_v12  ;;  %v3407_v33 = vadd.f32 %v3406_v55, %v3392_v52  ;;  %v10337_v59 = vadd.f32 %v10301_v61, %v3298_v3 }
 0xd85   :  { %v3358_v18 = vmul.f32 %v10334_v32, %v9116_v42 }
 0xd86   :  { %v3408_v2 = vadd.f32 %v3407_v33, %v3393_v60  ;;  %v3357_v24 = vmul.f32 %v10337_v59, %v9118_v43  ;;  %v3371_v9 = vadd.f32 %v3370_v62, %v3356_v34  ;;  %v7354_v47 = vpop.f32.mrb[88].mxu1 }
 0xd87   :  { %v10344_v40 = vadd.f32 %v7354_v47, %v10301_v61  ;;  %v3308_v53 = vpop.f32.mrb[89].mxu1  ;;  %v3396_v5 = vmul.f32 %v3358_v18, %v3358_v18 }
 0xd88   :  { %v3372_v1 = vadd.f32 %v3371_v9, %v3357_v24  ;;  %v3395_v30 = vmul.f32 %v3357_v24, %v3357_v24  ;;  %v3409_v25 = vadd.f32 %v3408_v2, %v3394_v11  ;;  %v10347_v41 = vadd.f32 %v10301_v61, %v3308_v53 }
 0xd89   :  { %v3360_v31 = vmul.f32 %v10344_v40, %v9134_v49 }
 0xd8a   :  { %v3410_v28 = vadd.f32 %v3409_v25, %v3395_v30  ;;  %v3359_v8 = vmul.f32 %v10347_v41, %v9136_v50  ;;  %v3373_v29 = vadd.f32 %v3372_v1, %v3358_v18  ;;  %v7357_v54 = vpop.f32.mrb[90].mxu1 }
 0xd8b   :  { %v10354_v45 = vadd.f32 %v7357_v54, %v10301_v61  ;;  %v3318_v38 = vpop.f32.mrb[91].mxu1  ;;  %v3398_v52 = vmul.f32 %v3360_v31, %v3360_v31 }
 0xd8c   :  { %v3374_v44 = vadd.f32 %v3373_v29, %v3359_v8  ;;  %v3397_v51 = vmul.f32 %v3359_v8, %v3359_v8  ;;  %v3411_v4 = vadd.f32 %v3410_v28, %v3396_v5  ;;  %v10357_v34 = vadd.f32 %v10301_v61, %v3318_v38 }
 0xd8d   :  { %v3362_v12 = vmul.f32 %v10354_v45, %v9152_v56 }
 0xd8e   :  { %v3412_v55 = vadd.f32 %v3411_v4, %v3397_v51  ;;  %v3361_v22 = vmul.f32 %v10357_v34, %v9154_v57  ;;  %v3375_v15 = vadd.f32 %v3374_v44, %v3360_v31  ;;  %v7360_v3 = vpop.f32.mrb[92].mxu1 }
 0xd8f   :  { %v10364_v62 = vadd.f32 %v7360_v3, %v10301_v61  ;;  %v3328_v60 = vpop.f32.mrb[93].mxu1  ;;  %v3400_v9 = vmul.f32 %v3362_v12, %v3362_v12 }
 0xd90   :  { %v3376_v33 = vadd.f32 %v3375_v15, %v3361_v22  ;;  %v3399_v11 = vmul.f32 %v3361_v22, %v3361_v22  ;;  %v3413_v2 = vadd.f32 %v3412_v55, %v3398_v52  ;;  %v10367_v18 = vadd.f32 %v10301_v61, %v3328_v60 }
 0xd91   :  { %v3364_v24 = vmul.f32 %v10364_v62, %v9170_v63 }
 0xd92   :  { %v3414_v47 = vadd.f32 %v3413_v2, %v3399_v11  ;;  %v3363_v53 = vmul.f32 %v10367_v18, %v9172_v0  ;;  %v3377_v1 = vadd.f32 %v3376_v33, %v3362_v12  ;;  %v7363_v30 = vpop.f32.mrb[94].mxu1 }
 0xd93   :  { %v10374_v25 = vadd.f32 %v7363_v30, %v10301_v61  ;;  %v3338_v31 = vpop.f32.mrb[95].mxu1  ;;  %v3402_v54 = vmul.f32 %v3364_v24, %v3364_v24 }
 0xd94   :  { %v3378_v5 = vadd.f32 %v3377_v1, %v3363_v53  ;;  %v3401_v28 = vmul.f32 %v3363_v53, %v3363_v53  ;;  %v3415_v8 = vadd.f32 %v3414_v47, %v3400_v9  ;;  %v3339_v29 = vadd.f32 %v10301_v61, %v3338_v31 }
 0xd95   :  { %v3366_v44 = vmul.f32 %v10374_v25, %v9188_v6 }
 0xd96   :  { %v3416_v38 = vadd.f32 %v3415_v8, %v3401_v28  ;;  %v3365_v51 = vmul.f32 %v3339_v29, %v9190_v7  ;;  %v3379_v4 = vadd.f32 %v3378_v5, %v3364_v24 }
 0xd97   :  { %v3404_v22 = vmul.f32 %v3366_v44, %v3366_v44 }
 0xd98   :  { %v3380_v52 = vadd.f32 %v3379_v4, %v3365_v51  ;;  %v3403_v55 = vmul.f32 %v3365_v51, %v3365_v51  ;;  %v3417_v12 = vadd.f32 %v3416_v38, %v3402_v54 }
 0xd9a   :  { %v3381_v15 = vadd.f32 %v3380_v52, %v3366_v44  ;;  %v3418_v3 = vadd.f32 %v3417_v12, %v3403_v55 }
 0xd9c   :  { %v3382_v60 = vrot.slane %v3381_v15, 4  ;;  %v3419_v33 = vadd.f32 %v3418_v3, %v3404_v22 }
 0xd9e   :  { %v3383_v11 = vadd.f32 %v3382_v60, %v3381_v15  ;;  %v3420_v2 = vrot.slane %v3419_v33, 4 }
 0xda0   :  { %v3384_v9 = vrot.slane %v3383_v11, 2  ;;  %v3421_v61 = vadd.f32 %v3420_v2, %v3419_v33 }
 0xda2   :  { %v3385_v47 = vadd.f32 %v3384_v9, %v3383_v11  ;;  %v3422_v53 = vrot.slane %v3421_v61, 2 }
 0xda4   :  { %v3386_v1 = vrot.slane %v3385_v47, 1  ;;  %v3423_v30 = vadd.f32 %v3422_v53, %v3421_v61 }
 0xda6   :  { %v3387_v31 = vadd.f32 %v3386_v1, %v3385_v47  ;;  %v3424_v28 = vrot.slane %v3423_v30, 1 }
 0xda8   :  { %v10380_v8 = vmul.f32 0.0625, %v3387_v31  ;;  %v3425_v24 = vadd.f32 %v3424_v28, %v3423_v30 }
 0xdaa   :  { %v3426_v5 = vmul.f32 0.0625, %v3425_v24  ;;  %v3427_v54 = vmul.f32 %v10380_v8, %v10380_v8  ;;  %v3444_v38 = vsub.f32 %v3339_v29, %v10380_v8  ;;  %v3430_v44 = vsub.f32 %v10307_v39, %v10380_v8 }
 0xdab   :  { %v3431_v51 = vsub.f32 %v10304_v10, %v10380_v8  ;;  %v3432_v4 = vsub.f32 %v10317_v48, %v10380_v8  ;;  %v3433_v52 = vsub.f32 %v10314_v46, %v10380_v8  ;;  %v3434_v55 = vsub.f32 %v10327_v19, %v10380_v8 }
 0xdac   :  { %v3428_v12 = vsub.f32 %v3426_v5, %v3427_v54  ;;  %v3435_v22 = vsub.f32 %v10324_v37, %v10380_v8  ;;  %v3436_v29 = vsub.f32 %v10337_v59, %v10380_v8  ;;  %v3437_v39 = vsub.f32 %v10334_v32, %v10380_v8 }
 0xdad   :  { %v3438_v10 = vsub.f32 %v10347_v41, %v10380_v8  ;;  %v3439_v48 = vsub.f32 %v10344_v40, %v10380_v8  ;;  %v3440_v46 = vsub.f32 %v10357_v34, %v10380_v8  ;;  %v3441_v19 = vsub.f32 %v10354_v45, %v10380_v8  ;;  %v10418_v40 = vld [vmem:[%s11386_s13 + $0x2] ss:$0 sm:$0xff] }
 0xdae   :  { %v3429_v15 = vmax.f32 %v3428_v12, 0.0  ;;  %v3442_v37 = vsub.f32 %v10367_v18, %v10380_v8  ;;  %v3443_v59 = vsub.f32 %v10364_v62, %v10380_v8  ;;  %v3445_v32 = vsub.f32 %v10374_v25, %v10380_v8  ;;  %v10423_v18 = vld [vmem:[%s11387_s14 + $0x2] ss:$0 sm:$0xff] }
 0xdb0   :  { %v3446_v41 = vadd.f32 1e-05, %v3429_v15 }
 0xdb2   :  { %8598 = vrsqrt.f32 %v3446_v41 }
 0xdbc   :  { %v8599_v3 = vpop.eup %8598 }
 0xdbd   :  { %v3462_v34 = vmul.f32 %v8599_v3, %v3444_v38  ;;  %v3448_v45 = vmul.f32 %v8599_v3, %v3430_v44  ;;  %v3449_v60 = vmul.f32 %v8599_v3, %v3431_v51  ;;  %v3450_v33 = vmul.f32 %v8599_v3, %v3432_v4 }
 0xdbe   :  { %v3451_v11 = vmul.f32 %v8599_v3, %v3433_v52  ;;  %v3452_v2 = vmul.f32 %v8599_v3, %v3434_v55  ;;  %v3453_v9 = vmul.f32 %v8599_v3, %v3435_v22  ;;  %v3454_v61 = vmul.f32 %v8599_v3, %v3436_v29 }
 0xdbf   :  { %v3484_v47 = vmul.f32 %v10418_v40, %v3462_v34  ;;  %v3470_v53 = vmul.f32 %v10418_v40, %v3448_v45  ;;  %v3471_v1 = vmul.f32 %v10418_v40, %v3449_v60  ;;  %v3472_v30 = vmul.f32 %v10418_v40, %v3450_v33 }
 0xdc0   :  { %v3473_v31 = vmul.f32 %v10418_v40, %v3451_v11  ;;  %v3474_v28 = vmul.f32 %v10418_v40, %v3452_v2  ;;  %v3475_v24 = vmul.f32 %v10418_v40, %v3453_v9  ;;  %v3455_v5 = vmul.f32 %v8599_v3, %v3437_v39 }
 0xdc1   :  { %v3492_v54 = vadd.f32 %v10423_v18, %v3470_v53  ;;  %v3493_v38 = vadd.f32 %v10423_v18, %v3471_v1  ;;  %v3494_v44 = vadd.f32 %v10423_v18, %v3472_v30  ;;  %v3476_v51 = vmul.f32 %v10418_v40, %v3454_v61 }
 0xdc2   :  { %v3495_v4 = vadd.f32 %v10423_v18, %v3473_v31  ;;  %v3496_v52 = vadd.f32 %v10423_v18, %v3474_v28  ;;  %v3497_v55 = vadd.f32 %v10423_v18, %v3475_v24  ;;  %v3477_v12 = vmul.f32 %v10418_v40, %v3455_v5 }
 0xdc3   :  { %v3508_v22 = vmax.f32 %v3492_v54, 0.0  ;;  %v3509_v29 = vmax.f32 %v3493_v38, 0.0  ;;  %v3510_v15 = vmax.f32 %v3494_v44, 0.0  ;;  %v3498_v39 = vadd.f32 %v10423_v18, %v3476_v51 }
 0xdc4   :  { %v3511_v41 = vmax.f32 %v3495_v4, 0.0  ;;  %v3512_v34 = vmax.f32 %v3496_v52, 0.0  ;;  %v3513_v45 = vmax.f32 %v3497_v55, 0.0  ;;  %v3499_v60 = vadd.f32 %v10423_v18, %v3477_v12 }
 0xdc5   :  { %v10443_v33 = vmul.f32 %v3508_v22, %v9060_v21  ;;  %v10446_v11 = vmul.f32 %v3509_v29, %v9076_v27  ;;  %v10449_v2 = vmul.f32 %v3510_v15, %v9058_v20  ;;  %v3514_v9 = vmax.f32 %v3498_v39, 0.0 }
 0xdc6   :  { %v10452_v61 = vmul.f32 %v3511_v41, %v9074_v26  ;;  %v10455_v53 = vmul.f32 %v3512_v34, %v9100_v36  ;;  %v10458_v1 = vmul.f32 %v3513_v45, %v9098_v35  ;;  %v3515_v30 = vmax.f32 %v3499_v60, 0.0 }
 0xdc7   :  { %v8266_v31 = vpack.c.bf16 %v10446_v11, %v10443_v33  ;;  %v10463_v28 = vmul.f32 %v3514_v9, %v9118_v43  ;;  %v3456_v24 = vmul.f32 %v8599_v3, %v3438_v10  ;;  %v3457_v5 = vmul.f32 %v8599_v3, %v3439_v48 }
 0xdc8   :  { %v8270_v54 = vpack.c.bf16 %v10452_v61, %v10449_v2  ;;  %v8274_v38 = vpack.c.bf16 %v10458_v1, %v10455_v53  ;;  %v10470_v44 = vmul.f32 %v3515_v30, %v9116_v42  ;;  %v3458_v51 = vmul.f32 %v8599_v3, %v3440_v46 }
 0xdc9   :  { %8267 = vmatprep.subr.bf16.mxu0 %v8266_v31  ;;  %v3478_v4 = vmul.f32 %v10418_v40, %v3456_v24  ;;  %v3479_v52 = vmul.f32 %v10418_v40, %v3457_v5  ;;  %v3459_v55 = vmul.f32 %v8599_v3, %v3441_v19  ;;  %v3460_v12 = vmul.f32 %v8599_v3, %v3442_v37 }
 0xdca   :  { %8269 = vmatpush3.bf16.msra.mxu0 %v8266_v31  ;;  %v8278_v10 = vpack.c.bf16 %v10470_v44, %v10463_v28  ;;  %v3480_v48 = vmul.f32 %v10418_v40, %v3458_v51  ;;  %v3461_v22 = vmul.f32 %v8599_v3, %v3443_v59  ;;  %v3463_v46 = vmul.f32 %v8599_v3, %v3445_v32 }
 0xdcb   :  { %8271 = vmatprep.subr.bf16.mxu0 %v8270_v54  ;;  %v3500_v29 = vadd.f32 %v10423_v18, %v3478_v4  ;;  %v3501_v19 = vadd.f32 %v10423_v18, %v3479_v52  ;;  %v3481_v37 = vmul.f32 %v10418_v40, %v3459_v55  ;;  %v3482_v15 = vmul.f32 %v10418_v40, %v3460_v12 }
 0xdcc   :  { %v3502_v39 = vadd.f32 %v10423_v18, %v3480_v48  ;;  %v3483_v41 = vmul.f32 %v10418_v40, %v3461_v22  ;;  %v3485_v62 = vmul.f32 %v10418_v40, %v3463_v46  ;;  %v3506_v59 = vadd.f32 %v10423_v18, %v3484_v47 }
 0xdcd   :  { %v3516_v34 = vmax.f32 %v3500_v29, 0.0  ;;  %v3517_v25 = vmax.f32 %v3501_v19, 0.0  ;;  %v3503_v8 = vadd.f32 %v10423_v18, %v3481_v37  ;;  %v3504_v32 = vadd.f32 %v10423_v18, %v3482_v15  ;;  %v11543_v29 = vld [vmem:[#allocation25_spill] sm:$0xff]  ;;  %v11544_v19 = vld [vmem:[#allocation26_spill] sm:$0xff]  ;;  %v11545_v37 = vld [vmem:[#allocation27_spill] sm:$0xff] }
 0xdce   :  { %8273 = vmatpush3.bf16.msra.mxu0 %v8270_v54  ;;  %v3518_v3 = vmax.f32 %v3502_v39, 0.0  ;;  %v3505_v45 = vadd.f32 %v10423_v18, %v3483_v41  ;;  %v3507_v60 = vadd.f32 %v10423_v18, %v3485_v62  ;;  %v3522_v9 = vmax.f32 %v3506_v59, 0.0  ;;  %v11546_v15 = vld [vmem:[#allocation28_spill] sm:$0xff]  ;;  %v11547_v39 = vld [vmem:[#allocation29_spill] sm:$0xff]  ;;  %v11548_v41 = vld [vmem:[#allocation30_spill] sm:$0xff] }
 0xdcf   :  { %8275 = vmatprep.subr.bf16.mxu0 %v8274_v38  ;;  %v10496_v30 = vmul.f32 %v3516_v34, %v9136_v50  ;;  %v10499_v40 = vmul.f32 %v3517_v25, %v9134_v49  ;;  %v3519_v47 = vmax.f32 %v3503_v8, 0.0  ;;  %v3520_v31 = vmax.f32 %v3504_v32, 0.0  ;;  %v11549_v62 = vld [vmem:[#allocation31_spill] sm:$0xff]  ;;  %v11550_v59 = vld [vmem:[#allocation32_spill] sm:$0xff]  ;;  %v3899_v34 = vld [vmem:[#allocation10 + $0x180] sm:$0xff] }
 0xdd0   :  { %v10502_v24 = vmul.f32 %v3518_v3, %v9154_v57  ;;  %v3521_v5 = vmax.f32 %v3505_v45, 0.0  ;;  %v3523_v54 = vmax.f32 %v3507_v60, 0.0  ;;  %v10505_v51 = vmul.f32 %v3522_v9, %v9190_v7  ;;  %v3900_v25 = vld [vmem:[#allocation10 + $0x188] sm:$0xff]  ;;  %v3901_v8 = vld [vmem:[#allocation10 + $0x190] sm:$0xff]  ;;  %v3902_v3 = vld [vmem:[#allocation10 + $0x198] sm:$0xff] }
 0xdd1   :  { %v8282_v18 = vpack.c.bf16 %v10499_v40, %v10496_v30  ;;  %v10510_v4 = vmul.f32 %v3519_v47, %v9152_v56  ;;  %v10513_v52 = vmul.f32 %v3520_v31, %v9172_v0  ;;  %v8330_v32 = vpack.c.bf16 %v3900_v25, %v3899_v34  ;;  %v3903_v60 = vld [vmem:[#allocation10 + $0x1a0] sm:$0xff]  ;;  %v3904_v9 = vld [vmem:[#allocation10 + $0x1a8] sm:$0xff]  ;;  %v3905_v31 = vld [vmem:[#allocation10 + $0x1b0] sm:$0xff] }
 0xdd2   :  { %8277 = vmatpush3.bf16.msra.mxu0 %v8274_v38  ;;  %v10516_v55 = vmul.f32 %v3521_v5, %v9170_v63  ;;  %v10519_v12 = vmul.f32 %v3523_v54, %v9188_v6  ;;  %v11541_v38 = vld [vmem:[#allocation23_spill] sm:$0xff]  ;;  %v8334_v45 = vpack.c.bf16 %v3902_v3, %v3901_v8  ;;  %v8338_v47 = vpack.c.bf16 %v3904_v9, %v3903_v60  ;;  %v3906_v5 = vld [vmem:[#allocation10 + $0x1b8] sm:$0xff]  ;;  %v3911_v8 = vld [vmem:[#allocation10 + $0x1e0] sm:$0xff] }
 0xdd3   :  { %8279 = vmatprep.subr.bf16.mxu0 %v8278_v10  ;;  %v8286_v48 = vpack.c.bf16 %v10510_v4, %v10502_v24  ;;  %v8342_v54 = vpack.c.bf16 %v3906_v5, %v3905_v31  ;;  %v3910_v34 = vld [vmem:[#allocation10 + $0x1d8] sm:$0xff]  ;;  %v3912_v3 = vld [vmem:[#allocation10 + $0x1e8] sm:$0xff]  ;;  %v3541_v60 = vld [vmem:[#allocation9 + $0x180] sm:$0xff] }
 0xdd4   :  { %v8290_v22 = vpack.c.bf16 %v10516_v55, %v10513_v52  ;;  %v8294_v46 = vpack.c.bf16 %v10519_v12, %v10505_v51 }
 0xdd6   :  { %8281 = vmatpush3.bf16.msra.mxu0 %v8278_v10  ;;  %v11542_v10 = vld [vmem:[#allocation24_spill] sm:$0xff] }
 0xdd7   :  { %8283 = vmatprep.subr.bf16.mxu0 %v8282_v18 }
 0xdda   :  { %8285 = vmatpush3.bf16.msra.mxu0 %v8282_v18  ;;  %v3907_v18 = vld [vmem:[#allocation10 + $0x1c0] sm:$0xff] }
 0xddb   :  { %8287 = vmatprep.subr.bf16.mxu0 %v8286_v48 }
 0xdde   :  { %8289 = vmatpush3.bf16.msra.mxu0 %v8286_v48  ;;  %v3908_v48 = vld [vmem:[#allocation10 + $0x1c8] sm:$0xff] }
 0xddf   :  { %8291 = vmatprep.subr.bf16.mxu0 %v8290_v22 }
 0xde2   :  { %8293 = vmatpush3.bf16.msra.mxu0 %v8290_v22  ;;  %v8346_v22 = vpack.c.bf16 %v3908_v48, %v3907_v18  ;;  %v3544_v18 = vld [vmem:[#allocation9 + $0x198] sm:$0xff] }
 0xde3   :  { %8295 = vmatprep.subr.bf16.mxu0 %v8294_v46 }
 0xde6   :  { %8297 = vmatpush3.bf16.msra.mxu0 %v8294_v46  ;;  %v3909_v46 = vld [vmem:[#allocation10 + $0x1d0] sm:$0xff] }
 0xde7   :  { %8331 = vmatprep.subr.bf16.mxu0 %v8330_v32  ;;  %v8350_v25 = vpack.c.bf16 %v3910_v34, %v3909_v46 }
 0xde9   :  { %7397 = vmatmul.mubr.f32.vlgmr.msra.gmra.mrb[96].mxu0 %v9203_v13 }
 0xdea   :  { %7399 = vmatprep.mubr.f32.mxu0 %v9205_v14  ;;  %8333 = vmatpush3.bf16.msra.mxu0 %v8330_v32  ;;  %v8354_v32 = vpack.c.bf16 %v3912_v3, %v3911_v8 }
 0xdeb   :  { %8335 = vmatprep.subr.bf16.mxu0 %v8334_v45 }
 0xded   :  { %7400 = vmatmul.mubr.f32.gmra.mrb[98].mxu0 %v9208_v16 }
 0xdee   :  { %7402 = vmatprep.mubr.f32.mxu0 %v9211_v17  ;;  %8337 = vmatpush3.bf16.msra.mxu0 %v8334_v45  ;;  %v3542_v45 = vld [vmem:[#allocation9 + $0x188] sm:$0xff] }
 0xdef   :  { %8339 = vmatprep.subr.bf16.mxu0 %v8338_v47 }
 0xdf1   :  { %7403 = vmatmul.mubr.f32.gmra.mrb[100].mxu0 %v9214_v23 }
 0xdf2   :  { %7405 = vmatprep.mubr.f32.mxu0 %v11541_v38  ;;  %8341 = vmatpush3.bf16.msra.mxu0 %v8338_v47 }
 0xdf3   :  { %8343 = vmatprep.subr.bf16.mxu0 %v8342_v54 }
 0xdf5   :  { %7406 = vmatmul.mubr.f32.gmra.mrb[102].mxu0 %v11542_v10 }
 0xdf6   :  { %7408 = vmatprep.mubr.f32.mxu0 %v11543_v29  ;;  %8345 = vmatpush3.bf16.msra.mxu0 %v8342_v54 }
 0xdf7   :  { %8347 = vmatprep.subr.bf16.mxu0 %v8346_v22 }
 0xdf9   :  { %7409 = vmatmul.mubr.f32.gmra.mrb[104].mxu0 %v11544_v19 }
 0xdfa   :  { %7411 = vmatprep.mubr.f32.mxu0 %v11545_v37  ;;  %8349 = vmatpush3.bf16.msra.mxu0 %v8346_v22 }
 0xdfb   :  { %8351 = vmatprep.subr.bf16.mxu0 %v8350_v25 }
 0xdfd   :  { %7412 = vmatmul.mubr.f32.gmra.mrb[106].mxu0 %v11546_v15 }
 0xdfe   :  { %7414 = vmatprep.mubr.f32.mxu0 %v11547_v39  ;;  %8353 = vmatpush3.bf16.msra.mxu0 %v8350_v25  ;;  %v3546_v39 = vld [vmem:[#allocation9 + $0x1a8] sm:$0xff]  ;;  %v3545_v25 = vld [vmem:[#allocation9 + $0x1a0] sm:$0xff] }
 0xdff   :  { %8355 = vmatprep.subr.bf16.mxu0 %v8354_v32 }
 0xe01   :  { %7415 = vmatmul.mubr.f32.gmra.mrb[108].mxu0 %v11548_v41 }
 0xe02   :  { %7417 = vmatprep.mubr.f32.mxu0 %v11549_v62  ;;  %8357 = vmatpush3.bf16.msra.mxu0 %v8354_v32 }
 0xe05   :  { %7418 = vmatmul.mubr.f32.gmra.mrb[110].mxu0 %v11550_v59  ;;  %v3543_v59 = vld [vmem:[#allocation9 + $0x190] sm:$0xff] }
 0xebc   :  { %v7398_v9 = vpop.f32.mrb[96].mxu0 }
 0xebd   :  { %v3629_v31 = vadd.f32 %v7398_v9, %v3542_v45  ;;  %v3623_v47 = vpop.f32.mrb[97].mxu0  ;;  %v3548_v9 = vld [vmem:[#allocation9 + $0x1b8] sm:$0xff] }
 0xebe   :  { %v3624_v5 = vadd.f32 %v3623_v47, %v3541_v60  ;;  %v3547_v47 = vld [vmem:[#allocation9 + $0x1b0] sm:$0xff] }
 0xebf   :  { %v3703_v48 = vmax.f32 %v3629_v31, 0.0 }
 0xec0   :  { %v3702_v54 = vmax.f32 %v3624_v5, 0.0  ;;  %v7401_v62 = vpop.f32.mrb[98].mxu0 }
 0xec1   :  { %v3639_v46 = vadd.f32 %v7401_v62, %v3544_v18  ;;  %v3633_v34 = vpop.f32.mrb[99].mxu0 }
 0xec2   :  { %v8298_v41 = vpack.c.bf16 %v3703_v48, %v3702_v54  ;;  %v3634_v22 = vadd.f32 %v3633_v34, %v3543_v59  ;;  %v3550_v54 = vld [vmem:[#allocation9 + $0x1c8] sm:$0xff]  ;;  %v3549_v34 = vld [vmem:[#allocation9 + $0x1c0] sm:$0xff] }
 0xec3   :  { %v3705_v8 = vmax.f32 %v3639_v46, 0.0 }
 0xec4   :  { %v3704_v3 = vmax.f32 %v3634_v22, 0.0  ;;  %v7404_v32 = vpop.f32.mrb[100].mxu0  ;;  %8299 = vmatprep.subr.bf16.mxu1 %v8298_v41 }
 0xec5   :  { %v3649_v15 = vadd.f32 %v7404_v32, %v3546_v39  ;;  %v3643_v37 = vpop.f32.mrb[101].mxu0  ;;  %8301 = vmatpush3.bf16.msra.mxu1 %v8298_v41  ;;  %v3551_v32 = vld [vmem:[#allocation9 + $0x1d0] sm:$0xff] }
 0xec6   :  { %v8302_v45 = vpack.c.bf16 %v3705_v8, %v3704_v3  ;;  %v3644_v60 = vadd.f32 %v3643_v37, %v3545_v25  ;;  %v3552_v25 = vld [vmem:[#allocation9 + $0x1d8] sm:$0xff] }
 0xec7   :  { %v3707_v31 = vmax.f32 %v3649_v15, 0.0 }
 0xec8   :  { %v3706_v5 = vmax.f32 %v3644_v60, 0.0  ;;  %v7407_v19 = vpop.f32.mrb[102].mxu0  ;;  %8303 = vmatprep.subr.bf16.mxu1 %v8302_v45 }
 0xec9   :  { %v3659_v62 = vadd.f32 %v7407_v19, %v3548_v9  ;;  %v3653_v18 = vpop.f32.mrb[103].mxu0  ;;  %8305 = vmatpush3.bf16.msra.mxu1 %v8302_v45 }
 0xeca   :  { %v8306_v59 = vpack.c.bf16 %v3707_v31, %v3706_v5  ;;  %v3654_v48 = vadd.f32 %v3653_v18, %v3547_v47  ;;  %v3554_v5 = vld [vmem:[#allocation9 + $0x1e8] sm:$0xff]  ;;  %v3553_v18 = vld [vmem:[#allocation9 + $0x1e0] sm:$0xff] }
 0xecb   :  { %v3709_v46 = vmax.f32 %v3659_v62, 0.0 }
 0xecc   :  { %v3708_v22 = vmax.f32 %v3654_v48, 0.0  ;;  %v7410_v39 = vpop.f32.mrb[104].mxu0  ;;  %8307 = vmatprep.subr.bf16.mxu1 %v8306_v59 }
 0xecd   :  { %v3669_v41 = vadd.f32 %v7410_v39, %v3550_v54  ;;  %v3663_v8 = vpop.f32.mrb[105].mxu0  ;;  %8309 = vmatpush3.bf16.msra.mxu1 %v8306_v59  ;;  %v3556_v39 = vld [vmem:[#allocation9 + $0x1f8] sm:$0xff] }
 0xece   :  { %v8310_v37 = vpack.c.bf16 %v3709_v46, %v3708_v22  ;;  %v3664_v15 = vadd.f32 %v3663_v8, %v3549_v34  ;;  %v3555_v8 = vld [vmem:[#allocation9 + $0x1f0] sm:$0xff] }
 0xecf   :  { %v3711_v3 = vmax.f32 %v3669_v41, 0.0 }
 0xed0   :  { %v3710_v60 = vmax.f32 %v3664_v15, 0.0  ;;  %v7413_v19 = vpop.f32.mrb[106].mxu0  ;;  %8311 = vmatprep.subr.bf16.mxu1 %v8310_v37 }
 0xed1   :  { %v3679_v45 = vadd.f32 %v7413_v19, %v3552_v25  ;;  %v3673_v9 = vpop.f32.mrb[107].mxu0  ;;  %8313 = vmatpush3.bf16.msra.mxu1 %v8310_v37 }
 0xed2   :  { %v8314_v31 = vpack.c.bf16 %v3711_v3, %v3710_v60  ;;  %v3674_v47 = vadd.f32 %v3673_v9, %v3551_v32 }
 0xed3   :  { %v3713_v62 = vmax.f32 %v3679_v45, 0.0 }
 0xed4   :  { %v3712_v48 = vmax.f32 %v3674_v47, 0.0  ;;  %v7416_v54 = vpop.f32.mrb[108].mxu0  ;;  %8315 = vmatprep.subr.bf16.mxu1 %v8314_v31  ;;  %v11552_v47 = vld [vmem:[#allocation34_spill] sm:$0xff] }
 0xed5   :  { %v3689_v59 = vadd.f32 %v7416_v54, %v3554_v5  ;;  %v3683_v46 = vpop.f32.mrb[109].mxu0  ;;  %8317 = vmatpush3.bf16.msra.mxu1 %v8314_v31  ;;  %v11551_v31 = vld [vmem:[#allocation33_spill] sm:$0xff]  ;;  %v11553_v5 = vld [vmem:[#allocation35_spill] sm:$0xff] }
 0xed6   :  { %v8318_v34 = vpack.c.bf16 %v3713_v62, %v3712_v48  ;;  %v3684_v22 = vadd.f32 %v3683_v46, %v3553_v18  ;;  %v11554_v62 = vld [vmem:[#allocation36_spill] sm:$0xff]  ;;  %v11555_v18 = vld [vmem:[#allocation37_spill] sm:$0xff]  ;;  %v11556_v48 = vld [vmem:[#allocation38_spill] sm:$0xff] }
 0xed7   :  { %v3715_v41 = vmax.f32 %v3689_v59, 0.0  ;;  %v11557_v54 = vld [vmem:[#allocation39_spill] sm:$0xff]  ;;  %v11558_v59 = vld [vmem:[#allocation40_spill] sm:$0xff]  ;;  %v11559_v46 = vld [vmem:[#allocation41_spill] sm:$0xff] }
 0xed8   :  { %v3714_v15 = vmax.f32 %v3684_v22, 0.0  ;;  %v7419_v25 = vpop.f32.mrb[110].mxu0  ;;  %8319 = vmatprep.subr.bf16.mxu1 %v8318_v34  ;;  %v11561_v22 = vld [vmem:[#allocation43_spill] sm:$0xff] }
 0xed9   :  { %v3699_v37 = vadd.f32 %v7419_v25, %v3556_v39  ;;  %v3693_v3 = vpop.f32.mrb[111].mxu0  ;;  %8321 = vmatpush3.bf16.msra.mxu1 %v8318_v34  ;;  %v11560_v34 = vld [vmem:[#allocation42_spill] sm:$0xff]  ;;  %v11562_v39 = vld [vmem:[#allocation44_spill] sm:$0xff]  ;;  %v3913_v25 = vld [vmem:[#allocation10 + $0x1f0] sm:$0xff] }
 0xeda   :  { %v8322_v32 = vpack.c.bf16 %v3715_v41, %v3714_v15  ;;  %v3694_v60 = vadd.f32 %v3693_v3, %v3555_v8  ;;  %v11563_v41 = vld [vmem:[#allocation45_spill] sm:$0xff]  ;;  %v11564_v8 = vld [vmem:[#allocation46_spill] sm:$0xff]  ;;  %v11565_v15 = vld [vmem:[#allocation47_spill] sm:$0xff] }
 0xedb   :  { %v3717_v19 = vmax.f32 %v3699_v37, 0.0  ;;  %v3914_v37 = vld [vmem:[#allocation10 + $0x1f8] sm:$0xff] }
 0xedc   :  { %v3716_v45 = vmax.f32 %v3694_v60, 0.0  ;;  %8323 = vmatprep.subr.bf16.mxu1 %v8322_v32  ;;  %v8358_v3 = vpack.c.bf16 %v3914_v37, %v3913_v25 }
 0xedd   :  { %8325 = vmatpush3.bf16.msra.mxu1 %v8322_v32  ;;  %v3865_v32 = vstv %s3864_s6 }
 0xede   :  { %v8326_v9 = vpack.c.bf16 %v3717_v19, %v3716_v45  ;;  %8359 = vmatprep.subr.bf16.mxu0 %v8358_v3  ;;  %v3867_v60 = vmul.f32 %v3865_v32, %v10446_v11  ;;  %v3866_v45 = vmul.f32 %v3865_v32, %v10443_v33  ;;  %v3870_v11 = vmul.f32 %v3865_v32, %v10455_v53 }
 0xedf   :  { %8361 = vmatpush3.bf16.msra.mxu0 %v8358_v3  ;;  %v3874_v53 = vmul.f32 %v3865_v32, %v10496_v30  ;;  %v3878_v30 = vmul.f32 %v3865_v32, %v10513_v52  ;;  %v4247_v52 = vld [vmem:[#allocation12 + $0x188] sm:$0xff] }
 0xee0   :  { %8327 = vmatprep.subr.bf16.mxu1 %v8326_v9 }
 0xee1   :  { %8329 = vmatpush3.bf16.msra.mxu1 %v8326_v9 }
 0xee4   :  { %7453 = vmatmul.mubr.f32.vlgmr.msra.gmra.mrb[96].mxu1 %v11551_v31 }
 0xee5   :  { %7455 = vmatprep.mubr.f32.mxu1 %v11552_v47 }
 0xee8   :  { %7456 = vmatmul.mubr.f32.gmra.mrb[98].mxu1 %v11553_v5 }
 0xee9   :  { %7458 = vmatprep.mubr.f32.mxu1 %v11554_v62 }
 0xeec   :  { %7459 = vmatmul.mubr.f32.gmra.mrb[100].mxu1 %v11555_v18 }
 0xeed   :  { %7461 = vmatprep.mubr.f32.mxu1 %v11556_v48 }
 0xef0   :  { %7462 = vmatmul.mubr.f32.gmra.mrb[102].mxu1 %v11557_v54 }
 0xef1   :  { %7464 = vmatprep.mubr.f32.mxu1 %v11558_v59 }
 0xef4   :  { %7465 = vmatmul.mubr.f32.gmra.mrb[104].mxu1 %v11559_v46 }
 0xef5   :  { %7467 = vmatprep.mubr.f32.mxu1 %v11560_v34  ;;  %v3871_v34 = vmul.f32 %v3865_v32, %v10458_v1  ;;  %v3875_v1 = vmul.f32 %v3865_v32, %v10499_v40  ;;  %v3879_v40 = vmul.f32 %v3865_v32, %v10516_v55  ;;  %v11566_v55 = vld [vmem:[#allocation22_spill] sm:$0xff] }
 0xef8   :  { %7468 = vmatmul.mubr.f32.gmra.mrb[106].mxu1 %v11561_v22 }
 0xef9   :  { %7470 = vmatprep.mubr.f32.mxu1 %v11562_v39 }
 0xefc   :  { %7471 = vmatmul.mubr.f32.gmra.mrb[108].mxu1 %v11563_v41 }
 0xefd   :  { %7473 = vmatprep.mubr.f32.mxu1 %v11564_v8  ;;  %v3869_v8 = vmul.f32 %v3865_v32, %v10452_v61  ;;  %v3873_v61 = vmul.f32 %v3865_v32, %v10470_v44  ;;  %v3877_v44 = vmul.f32 %v3865_v32, %v10510_v4  ;;  %v3881_v4 = vmul.f32 %v3865_v32, %v10519_v12 }
 0xf00   :  { %7474 = vmatmul.mubr.f32.gmra.mrb[110].mxu1 %v11565_v15  ;;  %v3868_v15 = vmul.f32 %v3865_v32, %v10449_v2  ;;  %v3872_v2 = vmul.f32 %v3865_v32, %v10463_v28  ;;  %v3876_v28 = vmul.f32 %v3865_v32, %v10502_v24  ;;  %v3880_v24 = vmul.f32 %v3865_v32, %v10505_v51  ;;  %v4251_v51 = vld [vmem:[#allocation12 + $0x1a8] sm:$0xff] }
 0xfb7   :  { %v7454_v19 = vpop.f32.mrb[96].mxu1 }
 0xfb8   :  { %v3883_v9 = vadd.f32 %v7454_v19, %v3867_v60  ;;  %v3784_v39 = vpop.f32.mrb[97].mxu1 }
 0xfb9   :  { %v3882_v41 = vadd.f32 %v3866_v45, %v3784_v39 }
 0xfbb   :  { %v7457_v22 = vpop.f32.mrb[98].mxu1  ;;  %7508 = vmatprep.mubr.f32.mxu0 %v3882_v41 }
 0xfbc   :  { %v3885_v25 = vadd.f32 %v7457_v22, %v3869_v8  ;;  %v3794_v37 = vpop.f32.mrb[99].mxu1  ;;  %7509 = vmatmul.mubr.f32.vlgmr.msra.gmra.mrb[112].mxu0 %v3883_v9 }
 0xfbd   :  { %v3884_v3 = vadd.f32 %v3868_v15, %v3794_v37 }
 0xfbf   :  { %v7460_v46 = vpop.f32.mrb[100].mxu1  ;;  %7511 = vmatprep.mubr.f32.mxu0 %v3884_v3 }
 0xfc0   :  { %v3887_v33 = vadd.f32 %v7460_v46, %v3871_v34  ;;  %v3804_v60 = vpop.f32.mrb[101].mxu1  ;;  %7512 = vmatmul.mubr.f32.gmra.mrb[114].mxu0 %v3885_v25 }
 0xfc1   :  { %v3886_v39 = vadd.f32 %v3870_v11, %v3804_v60 }
 0xfc3   :  { %v7463_v19 = vpop.f32.mrb[102].mxu1  ;;  %7514 = vmatprep.mubr.f32.mxu0 %v3886_v39 }
 0xfc4   :  { %v3889_v22 = vadd.f32 %v7463_v19, %v3873_v61  ;;  %v3814_v41 = vpop.f32.mrb[103].mxu1  ;;  %7515 = vmatmul.mubr.f32.gmra.mrb[116].mxu0 %v3887_v33 }
 0xfc5   :  { %v3888_v8 = vadd.f32 %v3872_v2, %v3814_v41  ;;  %v4246_v41 = vld [vmem:[#allocation12 + $0x180] sm:$0xff] }
 0xfc7   :  { %v7466_v15 = vpop.f32.mrb[104].mxu1  ;;  %7517 = vmatprep.mubr.f32.mxu0 %v3888_v8  ;;  %v8362_v8 = vpack.c.bf16 %v4247_v52, %v4246_v41 }
 0xfc8   :  { %v3891_v46 = vadd.f32 %v7466_v15, %v3875_v1  ;;  %v3824_v34 = vpop.f32.mrb[105].mxu1  ;;  %7518 = vmatmul.mubr.f32.gmra.mrb[118].mxu0 %v3889_v22  ;;  %v4248_v1 = vld [vmem:[#allocation12 + $0x190] sm:$0xff]  ;;  %v4249_v15 = vld [vmem:[#allocation12 + $0x198] sm:$0xff] }
 0xfc9   :  { %v3890_v45 = vadd.f32 %v3874_v53, %v3824_v34  ;;  %8363 = vmatprep.subr.bf16.mxu1 %v8362_v8  ;;  %v8366_v12 = vpack.c.bf16 %v4249_v15, %v4248_v1  ;;  %v4250_v53 = vld [vmem:[#allocation12 + $0x1a0] sm:$0xff]  ;;  %v4253_v34 = vld [vmem:[#allocation12 + $0x1b8] sm:$0xff] }
 0xfca   :  { %8365 = vmatpush3.bf16.msra.mxu1 %v8362_v8  ;;  %v8370_v32 = vpack.c.bf16 %v4251_v51, %v4250_v53 }
 0xfcb   :  { %v7469_v9 = vpop.f32.mrb[106].mxu1  ;;  %7520 = vmatprep.mubr.f32.mxu0 %v3890_v45  ;;  %8367 = vmatprep.subr.bf16.mxu1 %v8366_v12  ;;  %v4254_v45 = vld [vmem:[#allocation12 + $0x1c0] sm:$0xff] }
 0xfcc   :  { %v3893_v25 = vadd.f32 %v7469_v9, %v3877_v44  ;;  %v3834_v37 = vpop.f32.mrb[107].mxu1  ;;  %7521 = vmatmul.mubr.f32.gmra.mrb[120].mxu0 %v3891_v46  ;;  %v4252_v46 = vld [vmem:[#allocation12 + $0x1b0] sm:$0xff]  ;;  %v4255_v9 = vld [vmem:[#allocation12 + $0x1c8] sm:$0xff] }
 0xfcd   :  { %v3892_v3 = vadd.f32 %v3876_v28, %v3834_v37  ;;  %v8374_v44 = vpack.c.bf16 %v4253_v34, %v4252_v46  ;;  %v8378_v28 = vpack.c.bf16 %v4255_v9, %v4254_v45  ;;  %v4257_v37 = vld [vmem:[#allocation12 + $0x1d8] sm:$0xff] }
 0xfce   :  { %8369 = vmatpush3.bf16.msra.mxu1 %v8366_v12 }
 0xfcf   :  { %v7472_v11 = vpop.f32.mrb[108].mxu1  ;;  %7523 = vmatprep.mubr.f32.mxu0 %v3892_v3  ;;  %8371 = vmatprep.subr.bf16.mxu1 %v8370_v32 }
 0xfd0   :  { %v3895_v33 = vadd.f32 %v7472_v11, %v3879_v40  ;;  %v3844_v60 = vpop.f32.mrb[109].mxu1  ;;  %7524 = vmatmul.mubr.f32.gmra.mrb[122].mxu0 %v3893_v25  ;;  %v4256_v25 = vld [vmem:[#allocation12 + $0x1d0] sm:$0xff]  ;;  %v4258_v40 = vld [vmem:[#allocation12 + $0x1e0] sm:$0xff]  ;;  %v4259_v11 = vld [vmem:[#allocation12 + $0x1e8] sm:$0xff] }
 0xfd1   :  { %v3894_v39 = vadd.f32 %v3878_v30, %v3844_v60  ;;  %v8382_v3 = vpack.c.bf16 %v4257_v37, %v4256_v25  ;;  %v8386_v30 = vpack.c.bf16 %v4259_v11, %v4258_v40  ;;  %v4261_v60 = vld [vmem:[#allocation12 + $0x1f8] sm:$0xff] }
 0xfd2   :  { %8373 = vmatpush3.bf16.msra.mxu1 %v8370_v32 }
 0xfd3   :  { %v7475_v61 = vpop.f32.mrb[110].mxu1  ;;  %7526 = vmatprep.mubr.f32.mxu0 %v3894_v39  ;;  %8375 = vmatprep.subr.bf16.mxu1 %v8374_v44 }
 0xfd4   :  { %v3897_v19 = vadd.f32 %v7475_v61, %v3881_v4  ;;  %v3854_v2 = vpop.f32.mrb[111].mxu1  ;;  %7527 = vmatmul.mubr.f32.gmra.mrb[124].mxu0 %v3895_v33  ;;  %v4260_v33 = vld [vmem:[#allocation12 + $0x1f0] sm:$0xff]  ;;  %v10577_v4 = vld [vmem:[%s11381_s8 + $0x3] ss:$0 sm:$0xff] }
 0xfd5   :  { %v3896_v22 = vadd.f32 %v3880_v24, %v3854_v2  ;;  %v8390_v39 = vpack.c.bf16 %v4261_v60, %v4260_v33 }
 0xfd6   :  { %8377 = vmatpush3.bf16.msra.mxu1 %v8374_v44 }
 0xfd7   :  { %7529 = vmatprep.mubr.f32.mxu0 %v3896_v22  ;;  %8379 = vmatprep.subr.bf16.mxu1 %v8378_v28 }
 0xfd8   :  { %7530 = vmatmul.mubr.f32.gmra.mrb[126].mxu0 %v3897_v19 }
 0xfd9   :  { %7620 = vmatprep.mubr.f32.mxu0 %v11566_v55 }
 0xfda   :  { %8381 = vmatpush3.bf16.msra.mxu1 %v8378_v28 }
 0xfdb   :  { %8383 = vmatprep.subr.bf16.mxu1 %v8382_v3 }
 0xfde   :  { %8385 = vmatpush3.bf16.msra.mxu1 %v8382_v3 }
 0xfdf   :  { %8387 = vmatprep.subr.bf16.mxu1 %v8386_v30 }
 0xfe2   :  { %8389 = vmatpush3.bf16.msra.mxu1 %v8386_v30 }
 0xfe3   :  { %8391 = vmatprep.subr.bf16.mxu1 %v8390_v39 }
 0xfe6   :  { %8393 = vmatpush3.bf16.msra.mxu1 %v8390_v39 }
0x108f   :  { %v7510_v61 = vpop.f32.mrb[112].mxu0 }
0x1090   :  { %v10580_v24 = vadd.f32 %v7510_v61, %v10577_v4  ;;  %v3989_v19 = vpop.f32.mrb[113].mxu0 }
0x1091   :  { %v10583_v2 = vadd.f32 %v10577_v4, %v3989_v19 }
0x1092   :  { %v4073_v22 = vmul.f32 %v10580_v24, %v9076_v27 }
0x1093   :  { %v4072_v55 = vmul.f32 %v10583_v2, %v9060_v21  ;;  %v7513_v41 = vpop.f32.mrb[114].mxu0 }
0x1094   :  { %v4111_v52 = vmul.f32 %v4073_v22, %v4073_v22  ;;  %v10590_v8 = vadd.f32 %v7513_v41, %v10577_v4  ;;  %v3999_v1 = vpop.f32.mrb[115].mxu0 }
0x1095   :  { %v4088_v15 = vadd.f32 %v4073_v22, %v4072_v55  ;;  %v4110_v12 = vmul.f32 %v4072_v55, %v4072_v55  ;;  %v10593_v53 = vadd.f32 %v10577_v4, %v3999_v1 }
0x1096   :  { %v4075_v32 = vmul.f32 %v10590_v8, %v9074_v26 }
0x1097   :  { %v4126_v51 = vadd.f32 %v4111_v52, %v4110_v12  ;;  %v4074_v46 = vmul.f32 %v10593_v53, %v9058_v20  ;;  %v7516_v34 = vpop.f32.mrb[116].mxu0 }
0x1098   :  { %v10600_v45 = vadd.f32 %v7516_v34, %v10577_v4  ;;  %v4009_v44 = vpop.f32.mrb[117].mxu0  ;;  %v4113_v3 = vmul.f32 %v4075_v32, %v4075_v32 }
0x1099   :  { %v4089_v9 = vadd.f32 %v4088_v15, %v4074_v46  ;;  %v4112_v28 = vmul.f32 %v4074_v46, %v4074_v46  ;;  %v10603_v25 = vadd.f32 %v10577_v4, %v4009_v44 }
0x109a   :  { %v4077_v37 = vmul.f32 %v10600_v45, %v9098_v35 }
0x109b   :  { %v4127_v40 = vadd.f32 %v4126_v51, %v4112_v28  ;;  %v4076_v11 = vmul.f32 %v10603_v25, %v9100_v36  ;;  %v4090_v30 = vadd.f32 %v4089_v9, %v4075_v32  ;;  %v7519_v33 = vpop.f32.mrb[118].mxu0 }
0x109c   :  { %v10610_v60 = vadd.f32 %v7519_v33, %v10577_v4  ;;  %v4019_v39 = vpop.f32.mrb[119].mxu0  ;;  %v4115_v41 = vmul.f32 %v4077_v37, %v4077_v37 }
0x109d   :  { %v4091_v61 = vadd.f32 %v4090_v30, %v4076_v11  ;;  %v4114_v19 = vmul.f32 %v4076_v11, %v4076_v11  ;;  %v4128_v22 = vadd.f32 %v4127_v40, %v4113_v3  ;;  %v10613_v55 = vadd.f32 %v10577_v4, %v4019_v39 }
0x109e   :  { %v4079_v1 = vmul.f32 %v10610_v60, %v9116_v42 }
0x109f   :  { %v4129_v52 = vadd.f32 %v4128_v22, %v4114_v19  ;;  %v4078_v15 = vmul.f32 %v10613_v55, %v9118_v43  ;;  %v4092_v12 = vadd.f32 %v4091_v61, %v4077_v37  ;;  %v7522_v51 = vpop.f32.mrb[120].mxu0 }
0x10a0   :  { %v10620_v32 = vadd.f32 %v7522_v51, %v10577_v4  ;;  %v4029_v46 = vpop.f32.mrb[121].mxu0  ;;  %v4117_v40 = vmul.f32 %v4079_v1, %v4079_v1 }
0x10a1   :  { %v4093_v34 = vadd.f32 %v4092_v12, %v4078_v15  ;;  %v4116_v44 = vmul.f32 %v4078_v15, %v4078_v15  ;;  %v4130_v9 = vadd.f32 %v4129_v52, %v4115_v41  ;;  %v10623_v28 = vadd.f32 %v10577_v4, %v4029_v46 }
0x10a2   :  { %v4081_v3 = vmul.f32 %v10620_v32, %v9134_v49 }
0x10a3   :  { %v4131_v11 = vadd.f32 %v4130_v9, %v4116_v44  ;;  %v4080_v30 = vmul.f32 %v10623_v28, %v9136_v50  ;;  %v4094_v37 = vadd.f32 %v4093_v34, %v4079_v1  ;;  %v7525_v33 = vpop.f32.mrb[122].mxu0 }
0x10a4   :  { %v10630_v39 = vadd.f32 %v7525_v33, %v10577_v4  ;;  %v4039_v61 = vpop.f32.mrb[123].mxu0  ;;  %v4119_v15 = vmul.f32 %v4081_v3, %v4081_v3 }
0x10a5   :  { %v4095_v19 = vadd.f32 %v4094_v37, %v4080_v30  ;;  %v4118_v22 = vmul.f32 %v4080_v30, %v4080_v30  ;;  %v4132_v41 = vadd.f32 %v4131_v11, %v4117_v40  ;;  %v10633_v52 = vadd.f32 %v10577_v4, %v4039_v61 }
0x10a6   :  { %v4083_v51 = vmul.f32 %v10630_v39, %v9152_v56 }
0x10a7   :  { %v4133_v12 = vadd.f32 %v4132_v41, %v4118_v22  ;;  %v4082_v46 = vmul.f32 %v10633_v52, %v9154_v57  ;;  %v4096_v1 = vadd.f32 %v4095_v19, %v4081_v3  ;;  %v7528_v34 = vpop.f32.mrb[124].mxu0 }
0x10a8   :  { %v10640_v44 = vadd.f32 %v7528_v34, %v10577_v4  ;;  %v4049_v9 = vpop.f32.mrb[125].mxu0  ;;  %v4121_v61 = vmul.f32 %v4083_v51, %v4083_v51 }
0x10a9   :  { %v4097_v37 = vadd.f32 %v4096_v1, %v4082_v46  ;;  %v4120_v30 = vmul.f32 %v4082_v46, %v4082_v46  ;;  %v4134_v40 = vadd.f32 %v4133_v12, %v4119_v15  ;;  %v10643_v11 = vadd.f32 %v10577_v4, %v4049_v9 }
0x10aa   :  { %v4085_v33 = vmul.f32 %v10640_v44, %v9170_v63 }
0x10ab   :  { %v4135_v22 = vadd.f32 %v4134_v40, %v4120_v30  ;;  %v4084_v41 = vmul.f32 %v10643_v11, %v9172_v0  ;;  %v4098_v3 = vadd.f32 %v4097_v37, %v4083_v51  ;;  %v7531_v19 = vpop.f32.mrb[126].mxu0 }
0x10ac   :  { %v10650_v34 = vadd.f32 %v7531_v19, %v10577_v4  ;;  %v4059_v59 = vpop.f32.mrb[127].mxu0  ;;  %v4123_v9 = vmul.f32 %v4085_v33, %v4085_v33 }
0x10ad   :  { %v4099_v1 = vadd.f32 %v4098_v3, %v4084_v41  ;;  %v4122_v46 = vmul.f32 %v4084_v41, %v4084_v41  ;;  %v4136_v15 = vadd.f32 %v4135_v22, %v4121_v61  ;;  %v4060_v12 = vadd.f32 %v10577_v4, %v4059_v59 }
0x10ae   :  { %v4087_v48 = vmul.f32 %v10650_v34, %v9188_v6 }
0x10af   :  { %v4137_v54 = vadd.f32 %v4136_v15, %v4122_v46  ;;  %v4086_v30 = vmul.f32 %v4060_v12, %v9190_v7  ;;  %v4100_v40 = vadd.f32 %v4099_v1, %v4085_v33 }
0x10b0   :  { %v4125_v62 = vmul.f32 %v4087_v48, %v4087_v48 }
0x10b1   :  { %v4101_v18 = vadd.f32 %v4100_v40, %v4086_v30  ;;  %v4124_v51 = vmul.f32 %v4086_v30, %v4086_v30  ;;  %v4138_v37 = vadd.f32 %v4137_v54, %v4123_v9 }
0x10b3   :  { %v4102_v19 = vadd.f32 %v4101_v18, %v4087_v48  ;;  %v4139_v5 = vadd.f32 %v4138_v37, %v4124_v51 }
0x10b5   :  { %v4103_v47 = vrot.slane %v4102_v19, 4  ;;  %v4140_v3 = vadd.f32 %v4139_v5, %v4125_v62 }
0x10b7   :  { %v4104_v41 = vadd.f32 %v4103_v47, %v4102_v19  ;;  %v4141_v61 = vrot.slane %v4140_v3, 4 }
0x10b9   :  { %v4105_v22 = vrot.slane %v4104_v41, 2  ;;  %v4142_v59 = vadd.f32 %v4141_v61, %v4140_v3 }
0x10bb   :  { %v4106_v4 = vadd.f32 %v4105_v22, %v4104_v41  ;;  %v4143_v46 = vrot.slane %v4142_v59, 2 }
0x10bd   :  { %v4107_v15 = vrot.slane %v4106_v4, 1  ;;  %v4144_v31 = vadd.f32 %v4143_v46, %v4142_v59 }
0x10bf   :  { %v4108_v29 = vadd.f32 %v4107_v15, %v4106_v4  ;;  %v4145_v10 = vrot.slane %v4144_v31, 1 }
0x10c1   :  { %v4109_v38 = vmul.f32 0.0625, %v4108_v29  ;;  %v4146_v33 = vadd.f32 %v4145_v10, %v4144_v31 }
0x10c3   :  { %v4147_v1 = vmul.f32 0.0625, %v4146_v33  ;;  %v4148_v30 = vmul.f32 %v4109_v38, %v4109_v38  ;;  %v4165_v54 = vsub.f32 %v4060_v12, %v4109_v38  ;;  %v4151_v18 = vsub.f32 %v10583_v2, %v4109_v38 }
0x10c4   :  { %v4152_v48 = vsub.f32 %v10580_v24, %v4109_v38  ;;  %v4153_v47 = vsub.f32 %v10593_v53, %v4109_v38  ;;  %v4154_v5 = vsub.f32 %v10590_v8, %v4109_v38  ;;  %v4155_v62 = vsub.f32 %v10603_v25, %v4109_v38 }
0x10c5   :  { %v4149_v9 = vsub.f32 %v4147_v1, %v4148_v30  ;;  %v4156_v40 = vsub.f32 %v10600_v45, %v4109_v38  ;;  %v4157_v51 = vsub.f32 %v10613_v55, %v4109_v38  ;;  %v4158_v10 = vsub.f32 %v10610_v60, %v4109_v38  ;;  %v10674_v60 = vld [vmem:[%s11382_s9 + $0x3] ss:$0 sm:$0xff] }
0x10c6   :  { %v4159_v29 = vsub.f32 %v10623_v28, %v4109_v38  ;;  %v4160_v31 = vsub.f32 %v10620_v32, %v4109_v38  ;;  %v4161_v2 = vsub.f32 %v10633_v52, %v4109_v38  ;;  %v4162_v24 = vsub.f32 %v10630_v39, %v4109_v38 }
0x10c7   :  { %v4150_v53 = vmax.f32 %v4149_v9, 0.0  ;;  %v4163_v8 = vsub.f32 %v10643_v11, %v4109_v38  ;;  %v4164_v25 = vsub.f32 %v10640_v44, %v4109_v38  ;;  %v4166_v12 = vsub.f32 %v10650_v34, %v4109_v38  ;;  %v10681_v11 = vld [vmem:[%s11383_s10 + $0x3] ss:$0 sm:$0xff] }
0x10c9   :  { %v4167_v45 = vadd.f32 1e-05, %v4150_v53 }
0x10cb   :  { %8600 = vrsqrt.f32 %v4167_v45 }
0x10d5   :  { %v8601_v55 = vpop.eup %8600 }
0x10d6   :  { %v10676_v32 = vmul.f32 %v8601_v55, %v4165_v54  ;;  %v4169_v28 = vmul.f32 %v8601_v55, %v4151_v18  ;;  %v4170_v52 = vmul.f32 %v8601_v55, %v4152_v48  ;;  %v4171_v39 = vmul.f32 %v8601_v55, %v4153_v47 }
0x10d7   :  { %v4172_v44 = vmul.f32 %v8601_v55, %v4154_v5  ;;  %v4173_v38 = vmul.f32 %v8601_v55, %v4155_v62  ;;  %v4174_v34 = vmul.f32 %v8601_v55, %v4156_v40  ;;  %v4175_v37 = vmul.f32 %v8601_v55, %v4157_v51 }
0x10d8   :  { %v4191_v19 = vmul.f32 %v10674_v60, %v4169_v28  ;;  %v4192_v3 = vmul.f32 %v10674_v60, %v4170_v52  ;;  %v4193_v41 = vmul.f32 %v10674_v60, %v4171_v39  ;;  %v4176_v61 = vmul.f32 %v8601_v55, %v4158_v10 }
0x10d9   :  { %v4194_v22 = vmul.f32 %v10674_v60, %v4172_v44  ;;  %v4195_v59 = vmul.f32 %v10674_v60, %v4173_v38  ;;  %v4196_v18 = vmul.f32 %v10674_v60, %v4174_v34  ;;  %v4197_v48 = vmul.f32 %v10674_v60, %v4175_v37 }
0x10da   :  { %v4213_v4 = vadd.f32 %v10681_v11, %v4191_v19  ;;  %v4214_v46 = vadd.f32 %v10681_v11, %v4192_v3  ;;  %v4215_v15 = vadd.f32 %v10681_v11, %v4193_v41  ;;  %v4177_v5 = vmul.f32 %v8601_v55, %v4159_v29 }
0x10db   :  { %v4216_v30 = vadd.f32 %v10681_v11, %v4194_v22  ;;  %v4217_v54 = vadd.f32 %v10681_v11, %v4195_v59  ;;  %v4178_v62 = vmul.f32 %v8601_v55, %v4160_v31  ;;  %v4179_v9 = vmul.f32 %v8601_v55, %v4161_v2 }
0x10dc   :  { %v4229_v33 = vmax.f32 %v4213_v4, 0.0  ;;  %v4230_v1 = vmax.f32 %v4214_v46, 0.0  ;;  %v4231_v47 = vmax.f32 %v4215_v15, 0.0  ;;  %v4180_v40 = vmul.f32 %v8601_v55, %v4162_v24 }
0x10dd   :  { %v4181_v51 = vmul.f32 %v8601_v55, %v4163_v8  ;;  %v4182_v10 = vmul.f32 %v8601_v55, %v4164_v25  ;;  %v4184_v53 = vmul.f32 %v8601_v55, %v4166_v12  ;;  %v4232_v45 = vmax.f32 %v4216_v30, 0.0 }
0x10de   :  { %7564 = vmatprep.mubr.f32.mxu1 %v4229_v33  ;;  %v4218_v28 = vadd.f32 %v10681_v11, %v4196_v18  ;;  %v4198_v52 = vmul.f32 %v10674_v60, %v4176_v61  ;;  %v4233_v39 = vmax.f32 %v4217_v54, 0.0  ;;  %v4219_v44 = vadd.f32 %v10681_v11, %v4197_v48 }
0x10df   :  { %7565 = vmatmul.mubr.f32.vlgmr.msra.gmra.mrb[112].mxu1 %v4230_v1  ;;  %v4199_v38 = vmul.f32 %v10674_v60, %v4177_v5  ;;  %v4200_v2 = vmul.f32 %v10674_v60, %v4178_v62  ;;  %v4201_v25 = vmul.f32 %v10674_v60, %v4179_v9  ;;  %v4202_v34 = vmul.f32 %v10674_v60, %v4180_v40 }
0x10e0   :  { %7567 = vmatprep.mubr.f32.mxu1 %v4231_v47  ;;  %v4234_v29 = vmax.f32 %v4218_v28, 0.0  ;;  %v4220_v31 = vadd.f32 %v10681_v11, %v4198_v52  ;;  %v4235_v24 = vmax.f32 %v4219_v44, 0.0  ;;  %v4203_v3 = vmul.f32 %v10674_v60, %v4181_v51 }
0x10e1   :  { %v4221_v8 = vadd.f32 %v10681_v11, %v4199_v38  ;;  %v4222_v55 = vadd.f32 %v10681_v11, %v4200_v2  ;;  %v4223_v19 = vadd.f32 %v10681_v11, %v4201_v25  ;;  %v4224_v61 = vadd.f32 %v10681_v11, %v4202_v34 }
0x10e2   :  { %v4236_v12 = vmax.f32 %v4220_v31, 0.0  ;;  %v4204_v22 = vmul.f32 %v10674_v60, %v4182_v10  ;;  %v4225_v4 = vadd.f32 %v10681_v11, %v4203_v3  ;;  %v4205_v46 = vmul.f32 %v10674_v60, %v10676_v32  ;;  %v10720_v32 = vld [vmem:[%s11385_s12 + $0x3] ss:$0 sm:$0xff] }
0x10e3   :  { %7568 = vmatmul.mubr.f32.gmra.mrb[114].mxu1 %v4232_v45  ;;  %v4237_v37 = vmax.f32 %v4221_v8, 0.0  ;;  %v4238_v41 = vmax.f32 %v4222_v55, 0.0  ;;  %v4239_v59 = vmax.f32 %v4223_v19, 0.0  ;;  %v4240_v15 = vmax.f32 %v4224_v61, 0.0 }
0x10e4   :  { %7570 = vmatprep.mubr.f32.mxu1 %v4233_v39  ;;  %v4226_v33 = vadd.f32 %v10681_v11, %v4204_v22  ;;  %v4206_v1 = vmul.f32 %v10674_v60, %v4184_v53  ;;  %v4241_v30 = vmax.f32 %v4225_v4, 0.0  ;;  %v4227_v54 = vadd.f32 %v10681_v11, %v4205_v46 }
0x10e6   :  { %v4242_v18 = vmax.f32 %v4226_v33, 0.0  ;;  %v4228_v48 = vadd.f32 %v10681_v11, %v4206_v1  ;;  %v4243_v47 = vmax.f32 %v4227_v54, 0.0 }
0x10e7   :  { %7571 = vmatmul.mubr.f32.gmra.mrb[116].mxu1 %v4234_v29 }
0x10e8   :  { %7573 = vmatprep.mubr.f32.mxu1 %v4235_v24  ;;  %v4244_v5 = vmax.f32 %v4228_v48, 0.0 }
0x10eb   :  { %7574 = vmatmul.mubr.f32.gmra.mrb[118].mxu1 %v4236_v12 }
0x10ec   :  { %7576 = vmatprep.mubr.f32.mxu1 %v4237_v37 }
0x10ef   :  { %7577 = vmatmul.mubr.f32.gmra.mrb[120].mxu1 %v4238_v41 }
0x10f0   :  { %7579 = vmatprep.mubr.f32.mxu1 %v4239_v59 }
0x10f3   :  { %7580 = vmatmul.mubr.f32.gmra.mrb[122].mxu1 %v4240_v15 }
0x10f4   :  { %7582 = vmatprep.mubr.f32.mxu1 %v4241_v30 }
0x10f7   :  { %7583 = vmatmul.mubr.f32.gmra.mrb[124].mxu1 %v4242_v18 }
0x10f8   :  { %7585 = vmatprep.mubr.f32.mxu1 %v4243_v47 }
0x10fb   :  { %7586 = vmatmul.mubr.f32.gmra.mrb[126].mxu1 %v4244_v5 }
0x10fc   :  { %7676 = vmatprep.mubr.f32.mxu1 %v9251_v58 }
0x11b2   :  { %v7566_v60 = vpop.f32.mrb[112].mxu1 }
0x11b3   :  { %v10723_v62 = vadd.f32 %v7566_v60, %v10720_v32  ;;  %v4336_v9 = vpop.f32.mrb[113].mxu1 }
0x11b4   :  { %v10726_v40 = vadd.f32 %v10720_v32, %v4336_v9 }
0x11b5   :  { %v4420_v11 = vmul.f32 %v10723_v62, %v9076_v27 }
0x11b6   :  { %v4419_v51 = vmul.f32 %v10726_v40, %v9060_v21  ;;  %v7569_v58 = vpop.f32.mrb[114].mxu1 }
0x11b7   :  { %v4458_v10 = vmul.f32 %v4420_v11, %v4420_v11  ;;  %v10733_v53 = vadd.f32 %v7569_v58, %v10720_v32  ;;  %v4346_v45 = vpop.f32.mrb[115].mxu1 }
0x11b8   :  { %v4435_v28 = vadd.f32 %v4420_v11, %v4419_v51  ;;  %v4457_v52 = vmul.f32 %v4419_v51, %v4419_v51  ;;  %v10736_v39 = vadd.f32 %v10720_v32, %v4346_v45 }
0x11b9   :  { %v4422_v38 = vmul.f32 %v10733_v53, %v9074_v26 }
0x11ba   :  { %v4473_v44 = vadd.f32 %v4458_v10, %v4457_v52  ;;  %v4421_v29 = vmul.f32 %v10736_v39, %v9058_v20  ;;  %v7572_v31 = vpop.f32.mrb[116].mxu1 }
0x11bb   :  { %v10743_v2 = vadd.f32 %v7572_v31, %v10720_v32  ;;  %v4356_v24 = vpop.f32.mrb[117].mxu1  ;;  %v4460_v34 = vmul.f32 %v4422_v38, %v4422_v38 }
0x11bc   :  { %v4436_v8 = vadd.f32 %v4435_v28, %v4421_v29  ;;  %v4459_v25 = vmul.f32 %v4421_v29, %v4421_v29  ;;  %v10746_v12 = vadd.f32 %v10720_v32, %v4356_v24 }
0x11bd   :  { %v4424_v55 = vmul.f32 %v10743_v2, %v9098_v35 }
0x11be   :  { %v4474_v37 = vadd.f32 %v4473_v44, %v4459_v25  ;;  %v4423_v19 = vmul.f32 %v10746_v12, %v9100_v36  ;;  %v4437_v3 = vadd.f32 %v4436_v8, %v4422_v38  ;;  %v7575_v41 = vpop.f32.mrb[118].mxu1 }
0x11bf   :  { %v10753_v61 = vadd.f32 %v7575_v41, %v10720_v32  ;;  %v4366_v22 = vpop.f32.mrb[119].mxu1  ;;  %v4462_v33 = vmul.f32 %v4424_v55, %v4424_v55 }
0x11c0   :  { %v4438_v59 = vadd.f32 %v4437_v3, %v4423_v19  ;;  %v4461_v4 = vmul.f32 %v4423_v19, %v4423_v19  ;;  %v4475_v46 = vadd.f32 %v4474_v37, %v4460_v34  ;;  %v10756_v15 = vadd.f32 %v10720_v32, %v4366_v22 }
0x11c1   :  { %v4426_v30 = vmul.f32 %v10753_v61, %v9116_v42 }
0x11c2   :  { %v4476_v1 = vadd.f32 %v4475_v46, %v4461_v4  ;;  %v4425_v54 = vmul.f32 %v10756_v15, %v9118_v43  ;;  %v4439_v18 = vadd.f32 %v4438_v59, %v4424_v55  ;;  %v7578_v48 = vpop.f32.mrb[120].mxu1 }
0x11c3   :  { %v10763_v47 = vadd.f32 %v7578_v48, %v10720_v32  ;;  %v4376_v5 = vpop.f32.mrb[121].mxu1  ;;  %v4464_v10 = vmul.f32 %v4426_v30, %v4426_v30 }
0x11c4   :  { %v4440_v60 = vadd.f32 %v4439_v18, %v4425_v54  ;;  %v4463_v9 = vmul.f32 %v4425_v54, %v4425_v54  ;;  %v4477_v11 = vadd.f32 %v4476_v1, %v4462_v33  ;;  %v10766_v51 = vadd.f32 %v10720_v32, %v4376_v5 }
0x11c5   :  { %v4428_v58 = vmul.f32 %v10763_v47, %v9134_v49 }
0x11c6   :  { %v4478_v45 = vadd.f32 %v4477_v11, %v4463_v9  ;;  %v4427_v28 = vmul.f32 %v10766_v51, %v9136_v50  ;;  %v4441_v52 = vadd.f32 %v4440_v60, %v4426_v30  ;;  %v7581_v44 = vpop.f32.mrb[122].mxu1 }
0x11c7   :  { %v10773_v38 = vadd.f32 %v7581_v44, %v10720_v32  ;;  %v4386_v29 = vpop.f32.mrb[123].mxu1  ;;  %v4466_v55 = vmul.f32 %v4428_v58, %v4428_v58 }
0x11c8   :  { %v4442_v31 = vadd.f32 %v4441_v52, %v4427_v28  ;;  %v4465_v24 = vmul.f32 %v4427_v28, %v4427_v28  ;;  %v4479_v8 = vadd.f32 %v4478_v45, %v4464_v10  ;;  %v10776_v25 = vadd.f32 %v10720_v32, %v4386_v29 }
0x11c9   :  { %v4430_v37 = vmul.f32 %v10773_v38, %v9152_v56 }
0x11ca   :  { %v4480_v34 = vadd.f32 %v4479_v8, %v4465_v24  ;;  %v4429_v19 = vmul.f32 %v10776_v25, %v9154_v57  ;;  %v4443_v3 = vadd.f32 %v4442_v31, %v4428_v58  ;;  %v7584_v41 = vpop.f32.mrb[124].mxu1 }
0x11cb   :  { %v10783_v22 = vadd.f32 %v7584_v41, %v10720_v32  ;;  %v4396_v59 = vpop.f32.mrb[125].mxu1  ;;  %v4468_v54 = vmul.f32 %v4430_v37, %v4430_v37 }
0x11cc   :  { %v4444_v4 = vadd.f32 %v4443_v3, %v4429_v19  ;;  %v4467_v46 = vmul.f32 %v4429_v19, %v4429_v19  ;;  %v4481_v33 = vadd.f32 %v4480_v34, %v4466_v55  ;;  %v10786_v1 = vadd.f32 %v10720_v32, %v4396_v59 }
0x11cd   :  { %v4432_v30 = vmul.f32 %v10783_v22, %v9170_v63 }
0x11ce   :  { %v4482_v18 = vadd.f32 %v4481_v33, %v4467_v46  ;;  %v4431_v48 = vmul.f32 %v10786_v1, %v9172_v0  ;;  %v4445_v5 = vadd.f32 %v4444_v4, %v4430_v37  ;;  %v7587_v60 = vpop.f32.mrb[126].mxu1 }
0x11cf   :  { %v10793_v9 = vadd.f32 %v7587_v60, %v10720_v32  ;;  %v4406_v11 = vpop.f32.mrb[127].mxu1  ;;  %v4470_v52 = vmul.f32 %v4432_v30, %v4432_v30 }
0x11d0   :  { %v4446_v58 = vadd.f32 %v4445_v5, %v4431_v48  ;;  %v4469_v10 = vmul.f32 %v4431_v48, %v4431_v48  ;;  %v4483_v45 = vadd.f32 %v4482_v18, %v4468_v54  ;;  %v4407_v28 = vadd.f32 %v10720_v32, %v4406_v11 }
0x11d1   :  { %v4434_v29 = vmul.f32 %v10793_v9, %v9188_v6 }
0x11d2   :  { %v4484_v44 = vadd.f32 %v4483_v45, %v4469_v10  ;;  %v4433_v31 = vmul.f32 %v4407_v28, %v9190_v7  ;;  %v4447_v24 = vadd.f32 %v4446_v58, %v4432_v30 }
0x11d3   :  { %v4472_v37 = vmul.f32 %v4434_v29, %v4434_v29 }
0x11d4   :  { %v4448_v8 = vadd.f32 %v4447_v24, %v4433_v31  ;;  %v4471_v55 = vmul.f32 %v4433_v31, %v4433_v31  ;;  %v4485_v34 = vadd.f32 %v4484_v44, %v4470_v52 }
0x11d6   :  { %v4449_v19 = vadd.f32 %v4448_v8, %v4434_v29  ;;  %v4486_v3 = vadd.f32 %v4485_v34, %v4471_v55 }
0x11d8   :  { %v4450_v41 = vrot.slane %v4449_v19, 4  ;;  %v4487_v59 = vadd.f32 %v4486_v3, %v4472_v37 }
0x11da   :  { %v4451_v4 = vadd.f32 %v4450_v41, %v4449_v19  ;;  %v4488_v46 = vrot.slane %v4487_v59, 4 }
0x11dc   :  { %v4452_v33 = vrot.slane %v4451_v4, 2  ;;  %v4489_v32 = vadd.f32 %v4488_v46, %v4487_v59 }
0x11de   :  { %v4453_v54 = vadd.f32 %v4452_v33, %v4451_v4  ;;  %v4490_v18 = vrot.slane %v4489_v32, 2 }
0x11e0   :  { %v4454_v48 = vrot.slane %v4453_v54, 1  ;;  %v4491_v5 = vadd.f32 %v4490_v18, %v4489_v32 }
0x11e2   :  { %v4455_v60 = vadd.f32 %v4454_v48, %v4453_v54  ;;  %v4492_v11 = vrot.slane %v4491_v5, 1 }
0x11e4   :  { %v10799_v10 = vmul.f32 0.0625, %v4455_v60  ;;  %v4493_v30 = vadd.f32 %v4492_v11, %v4491_v5 }
0x11e6   :  { %v4494_v58 = vmul.f32 0.0625, %v4493_v30  ;;  %v4495_v45 = vmul.f32 %v10799_v10, %v10799_v10  ;;  %v4512_v52 = vsub.f32 %v4407_v28, %v10799_v10  ;;  %v4498_v44 = vsub.f32 %v10726_v40, %v10799_v10 }
0x11e7   :  { %v4499_v29 = vsub.f32 %v10723_v62, %v10799_v10  ;;  %v4500_v31 = vsub.f32 %v10736_v39, %v10799_v10  ;;  %v4501_v24 = vsub.f32 %v10733_v53, %v10799_v10  ;;  %v4502_v8 = vsub.f32 %v10746_v12, %v10799_v10 }
0x11e8   :  { %v4496_v55 = vsub.f32 %v4494_v58, %v4495_v45  ;;  %v4503_v34 = vsub.f32 %v10743_v2, %v10799_v10  ;;  %v4504_v28 = vsub.f32 %v10756_v15, %v10799_v10  ;;  %v4505_v40 = vsub.f32 %v10753_v61, %v10799_v10 }
0x11e9   :  { %v4506_v62 = vsub.f32 %v10766_v51, %v10799_v10  ;;  %v4507_v39 = vsub.f32 %v10763_v47, %v10799_v10  ;;  %v4508_v53 = vsub.f32 %v10776_v25, %v10799_v10  ;;  %v4509_v12 = vsub.f32 %v10773_v38, %v10799_v10  ;;  %v10837_v47 = vld [vmem:[%s11386_s13 + $0x3] ss:$0 sm:$0xff] }
0x11ea   :  { %v4497_v37 = vmax.f32 %v4496_v55, 0.0  ;;  %v4510_v2 = vsub.f32 %v10786_v1, %v10799_v10  ;;  %v4511_v15 = vsub.f32 %v10783_v22, %v10799_v10  ;;  %v4513_v61 = vsub.f32 %v10793_v9, %v10799_v10  ;;  %v10842_v1 = vld [vmem:[%s11387_s14 + $0x3] ss:$0 sm:$0xff] }
0x11ec   :  { %v4514_v51 = vadd.f32 1e-05, %v4497_v37 }
0x11ee   :  { %8602 = vrsqrt.f32 %v4514_v51 }
0x11f8   :  { %v8603_v19 = vpop.eup %8602 }
0x11f9   :  { %v4530_v25 = vmul.f32 %v8603_v19, %v4512_v52  ;;  %v4516_v38 = vmul.f32 %v8603_v19, %v4498_v44  ;;  %v4517_v3 = vmul.f32 %v8603_v19, %v4499_v29  ;;  %v4518_v41 = vmul.f32 %v8603_v19, %v4500_v31 }
0x11fa   :  { %v4519_v59 = vmul.f32 %v8603_v19, %v4501_v24  ;;  %v4520_v4 = vmul.f32 %v8603_v19, %v4502_v8  ;;  %v4521_v46 = vmul.f32 %v8603_v19, %v4503_v34  ;;  %v4522_v33 = vmul.f32 %v8603_v19, %v4504_v28 }
0x11fb   :  { %v4552_v32 = vmul.f32 %v10837_v47, %v4530_v25  ;;  %v4538_v54 = vmul.f32 %v10837_v47, %v4516_v38  ;;  %v4539_v18 = vmul.f32 %v10837_v47, %v4517_v3  ;;  %v4540_v48 = vmul.f32 %v10837_v47, %v4518_v41 }
0x11fc   :  { %v4541_v5 = vmul.f32 %v10837_v47, %v4519_v59  ;;  %v4542_v60 = vmul.f32 %v10837_v47, %v4520_v4  ;;  %v4543_v11 = vmul.f32 %v10837_v47, %v4521_v46  ;;  %v4523_v30 = vmul.f32 %v8603_v19, %v4505_v40 }
0x11fd   :  { %v4560_v58 = vadd.f32 %v10842_v1, %v4538_v54  ;;  %v4561_v45 = vadd.f32 %v10842_v1, %v4539_v18  ;;  %v4562_v52 = vadd.f32 %v10842_v1, %v4540_v48  ;;  %v4544_v44 = vmul.f32 %v10837_v47, %v4522_v33 }
0x11fe   :  { %v4563_v29 = vadd.f32 %v10842_v1, %v4541_v5  ;;  %v4564_v31 = vadd.f32 %v10842_v1, %v4542_v60  ;;  %v4565_v24 = vadd.f32 %v10842_v1, %v4543_v11  ;;  %v4545_v8 = vmul.f32 %v10837_v47, %v4523_v30 }
0x11ff   :  { %v4576_v55 = vmax.f32 %v4560_v58, 0.0  ;;  %v4577_v34 = vmax.f32 %v4561_v45, 0.0  ;;  %v4578_v28 = vmax.f32 %v4562_v52, 0.0  ;;  %v4566_v40 = vadd.f32 %v10842_v1, %v4544_v44 }
0x1200   :  { %v4579_v37 = vmax.f32 %v4563_v29, 0.0  ;;  %v4580_v51 = vmax.f32 %v4564_v31, 0.0  ;;  %v4581_v25 = vmax.f32 %v4565_v24, 0.0  ;;  %v4567_v38 = vadd.f32 %v10842_v1, %v4545_v8 }
0x1201   :  { %v10862_v3 = vmul.f32 %v4576_v55, %v9060_v21  ;;  %v10865_v41 = vmul.f32 %v4577_v34, %v9076_v27  ;;  %v10868_v59 = vmul.f32 %v4578_v28, %v9058_v20  ;;  %v4582_v4 = vmax.f32 %v4566_v40, 0.0 }
0x1202   :  { %v10871_v46 = vmul.f32 %v4579_v37, %v9074_v26  ;;  %v10874_v33 = vmul.f32 %v4580_v51, %v9100_v36  ;;  %v10877_v54 = vmul.f32 %v4581_v25, %v9098_v35  ;;  %v4583_v18 = vmax.f32 %v4567_v38, 0.0 }
0x1203   :  { %v8394_v48 = vpack.c.bf16 %v10865_v41, %v10862_v3  ;;  %v10882_v5 = vmul.f32 %v4582_v4, %v9118_v43  ;;  %v4524_v60 = vmul.f32 %v8603_v19, %v4506_v62  ;;  %v4525_v11 = vmul.f32 %v8603_v19, %v4507_v39 }
0x1204   :  { %v8398_v30 = vpack.c.bf16 %v10871_v46, %v10868_v59  ;;  %v8402_v58 = vpack.c.bf16 %v10877_v54, %v10874_v33  ;;  %v10889_v45 = vmul.f32 %v4583_v18, %v9116_v42  ;;  %v4526_v52 = vmul.f32 %v8603_v19, %v4508_v53 }
0x1205   :  { %8395 = vmatprep.subr.bf16.mxu0 %v8394_v48  ;;  %v4546_v44 = vmul.f32 %v10837_v47, %v4524_v60  ;;  %v4547_v29 = vmul.f32 %v10837_v47, %v4525_v11  ;;  %v4527_v31 = vmul.f32 %v8603_v19, %v4509_v12  ;;  %v4528_v24 = vmul.f32 %v8603_v19, %v4510_v2 }
0x1206   :  { %8397 = vmatpush3.bf16.msra.mxu0 %v8394_v48  ;;  %v8406_v62 = vpack.c.bf16 %v10889_v45, %v10882_v5  ;;  %v4548_v39 = vmul.f32 %v10837_v47, %v4526_v52  ;;  %v4529_v8 = vmul.f32 %v8603_v19, %v4511_v15  ;;  %v4531_v53 = vmul.f32 %v8603_v19, %v4513_v61 }
0x1207   :  { %8399 = vmatprep.subr.bf16.mxu0 %v8398_v30  ;;  %v4568_v55 = vadd.f32 %v10842_v1, %v4546_v44  ;;  %v4569_v12 = vadd.f32 %v10842_v1, %v4547_v29  ;;  %v4549_v2 = vmul.f32 %v10837_v47, %v4527_v31  ;;  %v4550_v34 = vmul.f32 %v10837_v47, %v4528_v24 }
0x1208   :  { %v4570_v28 = vadd.f32 %v10842_v1, %v4548_v39  ;;  %v4551_v40 = vmul.f32 %v10837_v47, %v4529_v8  ;;  %v4553_v22 = vmul.f32 %v10837_v47, %v4531_v53  ;;  %v4574_v15 = vadd.f32 %v10842_v1, %v4552_v32  ;;  %v11569_v53 = vld [vmem:[#allocation25_spill] sm:$0xff] }
0x1209   :  { %v4584_v37 = vmax.f32 %v4568_v55, 0.0  ;;  %v4585_v9 = vmax.f32 %v4569_v12, 0.0  ;;  %v4571_v10 = vadd.f32 %v10842_v1, %v4549_v2  ;;  %v4572_v61 = vadd.f32 %v10842_v1, %v4550_v34  ;;  %v11570_v55 = vld [vmem:[#allocation26_spill] sm:$0xff]  ;;  %v11571_v12 = vld [vmem:[#allocation27_spill] sm:$0xff]  ;;  %v11572_v2 = vld [vmem:[#allocation28_spill] sm:$0xff] }
0x120a   :  { %8401 = vmatpush3.bf16.msra.mxu0 %v8398_v30  ;;  %v4586_v19 = vmax.f32 %v4570_v28, 0.0  ;;  %v4573_v51 = vadd.f32 %v10842_v1, %v4551_v40  ;;  %v4575_v25 = vadd.f32 %v10842_v1, %v4553_v22  ;;  %v4590_v38 = vmax.f32 %v4574_v15, 0.0  ;;  %v4968_v34 = vld [vmem:[#allocation10 + $0x208] sm:$0xff]  ;;  %v4969_v28 = vld [vmem:[#allocation10 + $0x210] sm:$0xff]  ;;  %v4970_v22 = vld [vmem:[#allocation10 + $0x218] sm:$0xff] }
0x120b   :  { %8403 = vmatprep.subr.bf16.mxu0 %v8402_v58  ;;  %v10915_v4 = vmul.f32 %v4584_v37, %v9136_v50  ;;  %v10918_v47 = vmul.f32 %v4585_v9, %v9134_v49  ;;  %v4587_v32 = vmax.f32 %v4571_v10, 0.0  ;;  %v4588_v18 = vmax.f32 %v4572_v61, 0.0  ;;  %v4971_v37 = vld [vmem:[#allocation10 + $0x220] sm:$0xff]  ;;  %v4972_v9 = vld [vmem:[#allocation10 + $0x228] sm:$0xff]  ;;  %v4973_v61 = vld [vmem:[#allocation10 + $0x230] sm:$0xff] }
0x120c   :  { %v10921_v48 = vmul.f32 %v4586_v19, %v9154_v57  ;;  %v4589_v60 = vmax.f32 %v4573_v51, 0.0  ;;  %v4591_v11 = vmax.f32 %v4575_v25, 0.0  ;;  %v10924_v30 = vmul.f32 %v4590_v38, %v9190_v7  ;;  %v4974_v19 = vld [vmem:[#allocation10 + $0x238] sm:$0xff]  ;;  %v4975_v25 = vld [vmem:[#allocation10 + $0x240] sm:$0xff]  ;;  %v4976_v38 = vld [vmem:[#allocation10 + $0x248] sm:$0xff] }
0x120d   :  { %v8410_v1 = vpack.c.bf16 %v10918_v47, %v10915_v4  ;;  %v10929_v52 = vmul.f32 %v4587_v32, %v9152_v56  ;;  %v10932_v44 = vmul.f32 %v4588_v18, %v9172_v0  ;;  %v8462_v15 = vpack.c.bf16 %v4970_v22, %v4969_v28  ;;  %v4977_v18 = vld [vmem:[#allocation10 + $0x250] sm:$0xff]  ;;  %v4614_v22 = vld [vmem:[#allocation9 + $0x228] sm:$0xff] }
0x120e   :  { %8405 = vmatpush3.bf16.msra.mxu0 %v8402_v58  ;;  %v10935_v29 = vmul.f32 %v4589_v60, %v9170_v63  ;;  %v10938_v31 = vmul.f32 %v4591_v11, %v9188_v6  ;;  %v11567_v58 = vld [vmem:[#allocation23_spill] sm:$0xff]  ;;  %v8466_v10 = vpack.c.bf16 %v4972_v9, %v4971_v37  ;;  %v8470_v51 = vpack.c.bf16 %v4974_v19, %v4973_v61  ;;  %v4978_v60 = vld [vmem:[#allocation10 + $0x258] sm:$0xff]  ;;  %v4613_v37 = vld [vmem:[#allocation9 + $0x220] sm:$0xff] }
0x120f   :  { %8407 = vmatprep.subr.bf16.mxu0 %v8406_v62  ;;  %v8414_v24 = vpack.c.bf16 %v10929_v52, %v10921_v48  ;;  %v8474_v32 = vpack.c.bf16 %v4976_v38, %v4975_v25  ;;  %v8478_v11 = vpack.c.bf16 %v4978_v60, %v4977_v18  ;;  %v4616_v38 = vld [vmem:[#allocation9 + $0x238] sm:$0xff]  ;;  %v4615_v18 = vld [vmem:[#allocation9 + $0x230] sm:$0xff] }
0x1210   :  { %v8418_v39 = vpack.c.bf16 %v10935_v29, %v10932_v44  ;;  %v8422_v8 = vpack.c.bf16 %v10938_v31, %v10924_v30 }
0x1212   :  { %8409 = vmatpush3.bf16.msra.mxu0 %v8406_v62  ;;  %v11568_v62 = vld [vmem:[#allocation24_spill] sm:$0xff] }
0x1213   :  { %8411 = vmatprep.subr.bf16.mxu0 %v8410_v1 }
0x1216   :  { %8413 = vmatpush3.bf16.msra.mxu0 %v8410_v1  ;;  %v4979_v1 = vld [vmem:[#allocation10 + $0x260] sm:$0xff] }
0x1217   :  { %8415 = vmatprep.subr.bf16.mxu0 %v8414_v24 }
0x121a   :  { %8417 = vmatpush3.bf16.msra.mxu0 %v8414_v24  ;;  %v4980_v24 = vld [vmem:[#allocation10 + $0x268] sm:$0xff] }
0x121b   :  { %8419 = vmatprep.subr.bf16.mxu0 %v8418_v39 }
0x121e   :  { %8421 = vmatpush3.bf16.msra.mxu0 %v8418_v39  ;;  %v8482_v39 = vpack.c.bf16 %v4980_v24, %v4979_v1 }
0x121f   :  { %8423 = vmatprep.subr.bf16.mxu0 %v8422_v8 }
0x1222   :  { %8425 = vmatpush3.bf16.msra.mxu0 %v8422_v8  ;;  %v4610_v8 = vld [vmem:[#allocation9 + $0x208] sm:$0xff] }
0x1225   :  { %7621 = vmatmul.mubr.f32.vlgmr.msra.gmra.mrb[128].mxu0 %v9203_v13  ;;  %v11573_v13 = vld [vmem:[#allocation29_spill] sm:$0xff] }
0x1226   :  { %7623 = vmatprep.mubr.f32.mxu0 %v9205_v14  ;;  %v11574_v14 = vld [vmem:[#allocation30_spill] sm:$0xff] }
0x1229   :  { %7624 = vmatmul.mubr.f32.gmra.mrb[130].mxu0 %v9208_v16  ;;  %v11575_v16 = vld [vmem:[#allocation31_spill] sm:$0xff] }
0x122a   :  { %7626 = vmatprep.mubr.f32.mxu0 %v9211_v17  ;;  %v11576_v17 = vld [vmem:[#allocation32_spill] sm:$0xff] }
0x122d   :  { %7627 = vmatmul.mubr.f32.gmra.mrb[132].mxu0 %v9214_v23  ;;  %v4967_v23 = vld [vmem:[#allocation10 + $0x200] sm:$0xff] }
0x122e   :  { %7629 = vmatprep.mubr.f32.mxu0 %v11567_v58  ;;  %v8458_v40 = vpack.c.bf16 %v4968_v34, %v4967_v23  ;;  %v4609_v58 = vld [vmem:[#allocation9 + $0x200] sm:$0xff] }
0x1230   :  { %8459 = vmatprep.subr.bf16.mxu0 %v8458_v40 }
0x1231   :  { %7630 = vmatmul.mubr.f32.gmra.mrb[134].mxu0 %v11568_v62 }
0x1232   :  { %7632 = vmatprep.mubr.f32.mxu0 %v11569_v53  ;;  %8461 = vmatpush3.bf16.msra.mxu0 %v8458_v40 }
0x1233   :  { %8463 = vmatprep.subr.bf16.mxu0 %v8462_v15 }
0x1235   :  { %7633 = vmatmul.mubr.f32.gmra.mrb[136].mxu0 %v11570_v55 }
0x1236   :  { %7635 = vmatprep.mubr.f32.mxu0 %v11571_v12  ;;  %8465 = vmatpush3.bf16.msra.mxu0 %v8462_v15 }
0x1237   :  { %8467 = vmatprep.subr.bf16.mxu0 %v8466_v10 }
0x1239   :  { %7636 = vmatmul.mubr.f32.gmra.mrb[138].mxu0 %v11572_v2  ;;  %v4612_v2 = vld [vmem:[#allocation9 + $0x218] sm:$0xff] }
0x123a   :  { %7638 = vmatprep.mubr.f32.mxu0 %v11573_v13  ;;  %8469 = vmatpush3.bf16.msra.mxu0 %v8466_v10 }
0x123b   :  { %8471 = vmatprep.subr.bf16.mxu0 %v8470_v51 }
0x123d   :  { %7639 = vmatmul.mubr.f32.gmra.mrb[140].mxu0 %v11574_v14  ;;  %v4611_v14 = vld [vmem:[#allocation9 + $0x210] sm:$0xff] }
0x123e   :  { %7641 = vmatprep.mubr.f32.mxu0 %v11575_v16  ;;  %8473 = vmatpush3.bf16.msra.mxu0 %v8470_v51 }
0x123f   :  { %8475 = vmatprep.subr.bf16.mxu0 %v8474_v32 }
0x1241   :  { %7642 = vmatmul.mubr.f32.gmra.mrb[142].mxu0 %v11576_v17 }
0x1242   :  { %8477 = vmatpush3.bf16.msra.mxu0 %v8474_v32 }
0x1243   :  { %8479 = vmatprep.subr.bf16.mxu0 %v8478_v11 }
0x1246   :  { %8481 = vmatpush3.bf16.msra.mxu0 %v8478_v11 }
0x1247   :  { %8483 = vmatprep.subr.bf16.mxu0 %v8482_v39 }
0x124a   :  { %8485 = vmatpush3.bf16.msra.mxu0 %v8482_v39 }
0x12f8   :  { %v7622_v62 = vpop.f32.mrb[128].mxu0 }
0x12f9   :  { %v4697_v53 = vadd.f32 %v7622_v62, %v4610_v8  ;;  %v4691_v55 = vpop.f32.mrb[129].mxu0 }
0x12fa   :  { %v4692_v12 = vadd.f32 %v4691_v55, %v4609_v58  ;;  %v4618_v58 = vld [vmem:[#allocation9 + $0x248] sm:$0xff] }
0x12fb   :  { %v4771_v13 = vmax.f32 %v4697_v53, 0.0  ;;  %v4617_v53 = vld [vmem:[#allocation9 + $0x240] sm:$0xff] }
0x12fc   :  { %v4770_v16 = vmax.f32 %v4692_v12, 0.0  ;;  %v7625_v17 = vpop.f32.mrb[130].mxu0 }
0x12fd   :  { %v4707_v23 = vadd.f32 %v7625_v17, %v4612_v2  ;;  %v4701_v34 = vpop.f32.mrb[131].mxu0  ;;  %v4620_v17 = vld [vmem:[#allocation9 + $0x258] sm:$0xff] }
0x12fe   :  { %v8426_v28 = vpack.c.bf16 %v4771_v13, %v4770_v16  ;;  %v4702_v40 = vadd.f32 %v4701_v34, %v4611_v14  ;;  %v4619_v34 = vld [vmem:[#allocation9 + $0x250] sm:$0xff] }
0x12ff   :  { %v4773_v15 = vmax.f32 %v4707_v23, 0.0 }
0x1300   :  { %v4772_v9 = vmax.f32 %v4702_v40, 0.0  ;;  %v7628_v10 = vpop.f32.mrb[132].mxu0  ;;  %8427 = vmatprep.subr.bf16.mxu1 %v8426_v28 }
0x1301   :  { %v4717_v61 = vadd.f32 %v7628_v10, %v4614_v22  ;;  %v4711_v19 = vpop.f32.mrb[133].mxu0  ;;  %8429 = vmatpush3.bf16.msra.mxu1 %v8426_v28  ;;  %v4622_v10 = vld [vmem:[#allocation9 + $0x268] sm:$0xff] }
0x1302   :  { %v8430_v51 = vpack.c.bf16 %v4773_v15, %v4772_v9  ;;  %v4712_v25 = vadd.f32 %v4711_v19, %v4613_v37  ;;  %v4621_v19 = vld [vmem:[#allocation9 + $0x260] sm:$0xff] }
0x1303   :  { %v4775_v32 = vmax.f32 %v4717_v61, 0.0 }
0x1304   :  { %v4774_v60 = vmax.f32 %v4712_v25, 0.0  ;;  %v7631_v11 = vpop.f32.mrb[134].mxu0  ;;  %8431 = vmatprep.subr.bf16.mxu1 %v8430_v51 }
0x1305   :  { %v4727_v1 = vadd.f32 %v7631_v11, %v4616_v38  ;;  %v4721_v24 = vpop.f32.mrb[135].mxu0  ;;  %8433 = vmatpush3.bf16.msra.mxu1 %v8430_v51  ;;  %v4624_v11 = vld [vmem:[#allocation9 + $0x278] sm:$0xff] }
0x1306   :  { %v8434_v39 = vpack.c.bf16 %v4775_v32, %v4774_v60  ;;  %v4722_v8 = vadd.f32 %v4721_v24, %v4615_v18  ;;  %v4623_v24 = vld [vmem:[#allocation9 + $0x270] sm:$0xff] }
0x1307   :  { %v4777_v62 = vmax.f32 %v4727_v1, 0.0 }
0x1308   :  { %v4776_v55 = vmax.f32 %v4722_v8, 0.0  ;;  %v7634_v12 = vpop.f32.mrb[136].mxu0  ;;  %8435 = vmatprep.subr.bf16.mxu1 %v8434_v39 }
0x1309   :  { %v4737_v2 = vadd.f32 %v7634_v12, %v4618_v58  ;;  %v4731_v13 = vpop.f32.mrb[137].mxu0  ;;  %8437 = vmatpush3.bf16.msra.mxu1 %v8434_v39 }
0x130a   :  { %v8438_v14 = vpack.c.bf16 %v4777_v62, %v4776_v55  ;;  %v4732_v16 = vadd.f32 %v4731_v13, %v4617_v53 }
0x130b   :  { %v4779_v23 = vmax.f32 %v4737_v2, 0.0 }
0x130c   :  { %v4778_v28 = vmax.f32 %v4732_v16, 0.0  ;;  %v7637_v40 = vpop.f32.mrb[138].mxu0  ;;  %8439 = vmatprep.subr.bf16.mxu1 %v8438_v14  ;;  %v11578_v16 = vld [vmem:[#allocation34_spill] sm:$0xff] }
0x130d   :  { %v4747_v22 = vadd.f32 %v7637_v40, %v4620_v17  ;;  %v4741_v15 = vpop.f32.mrb[139].mxu0  ;;  %8441 = vmatpush3.bf16.msra.mxu1 %v8438_v14  ;;  %v11577_v14 = vld [vmem:[#allocation33_spill] sm:$0xff]  ;;  %v11579_v17 = vld [vmem:[#allocation35_spill] sm:$0xff] }
0x130e   :  { %v8442_v37 = vpack.c.bf16 %v4779_v23, %v4778_v28  ;;  %v4742_v9 = vadd.f32 %v4741_v15, %v4619_v34  ;;  %v11580_v23 = vld [vmem:[#allocation36_spill] sm:$0xff]  ;;  %v11581_v34 = vld [vmem:[#allocation37_spill] sm:$0xff]  ;;  %v11582_v28 = vld [vmem:[#allocation38_spill] sm:$0xff] }
0x130f   :  { %v4781_v61 = vmax.f32 %v4747_v22, 0.0  ;;  %v11583_v40 = vld [vmem:[#allocation39_spill] sm:$0xff]  ;;  %v11584_v22 = vld [vmem:[#allocation40_spill] sm:$0xff]  ;;  %v11585_v15 = vld [vmem:[#allocation41_spill] sm:$0xff] }
0x1310   :  { %v4780_v51 = vmax.f32 %v4742_v9, 0.0  ;;  %v7640_v25 = vpop.f32.mrb[140].mxu0  ;;  %8443 = vmatprep.subr.bf16.mxu1 %v8442_v37  ;;  %v11587_v9 = vld [vmem:[#allocation43_spill] sm:$0xff] }
0x1311   :  { %v4757_v38 = vadd.f32 %v7640_v25, %v4622_v10  ;;  %v4751_v32 = vpop.f32.mrb[141].mxu0  ;;  %8445 = vmatpush3.bf16.msra.mxu1 %v8442_v37  ;;  %v11586_v37 = vld [vmem:[#allocation42_spill] sm:$0xff]  ;;  %v11588_v10 = vld [vmem:[#allocation44_spill] sm:$0xff]  ;;  %v4981_v25 = vld [vmem:[#allocation10 + $0x270] sm:$0xff] }
0x1312   :  { %v8446_v18 = vpack.c.bf16 %v4781_v61, %v4780_v51  ;;  %v4752_v60 = vadd.f32 %v4751_v32, %v4621_v19  ;;  %v11589_v61 = vld [vmem:[#allocation45_spill] sm:$0xff]  ;;  %v11590_v19 = vld [vmem:[#allocation46_spill] sm:$0xff]  ;;  %v11591_v51 = vld [vmem:[#allocation47_spill] sm:$0xff] }
0x1313   :  { %v4783_v1 = vmax.f32 %v4757_v38, 0.0  ;;  %v4982_v38 = vld [vmem:[#allocation10 + $0x278] sm:$0xff] }
0x1314   :  { %v4782_v39 = vmax.f32 %v4752_v60, 0.0  ;;  %v7643_v8 = vpop.f32.mrb[142].mxu0  ;;  %8447 = vmatprep.subr.bf16.mxu1 %v8446_v18  ;;  %v8486_v32 = vpack.c.bf16 %v4982_v38, %v4981_v25 }
0x1315   :  { %v4767_v58 = vadd.f32 %v7643_v8, %v4624_v11  ;;  %v4761_v62 = vpop.f32.mrb[143].mxu0  ;;  %8449 = vmatpush3.bf16.msra.mxu1 %v8446_v18  ;;  %v4933_v18 = vstv %s4932_s7 }
0x1316   :  { %v8450_v53 = vpack.c.bf16 %v4783_v1, %v4782_v39  ;;  %v4762_v55 = vadd.f32 %v4761_v62, %v4623_v24  ;;  %8487 = vmatprep.subr.bf16.mxu0 %v8486_v32  ;;  %v4935_v60 = vmul.f32 %v4933_v18, %v10865_v41  ;;  %v4934_v1 = vmul.f32 %v4933_v18, %v10862_v3 }
0x1317   :  { %v4785_v12 = vmax.f32 %v4767_v58, 0.0  ;;  %8489 = vmatpush3.bf16.msra.mxu0 %v8486_v32  ;;  %v4937_v58 = vmul.f32 %v4933_v18, %v10871_v46  ;;  %v4938_v41 = vmul.f32 %v4933_v18, %v10874_v33  ;;  %v4941_v46 = vmul.f32 %v4933_v18, %v10889_v45 }
0x1318   :  { %v4784_v2 = vmax.f32 %v4762_v55, 0.0  ;;  %8451 = vmatprep.subr.bf16.mxu1 %v8450_v53  ;;  %v4942_v33 = vmul.f32 %v4933_v18, %v10915_v4  ;;  %v4945_v45 = vmul.f32 %v4933_v18, %v10929_v52  ;;  %v4946_v4 = vmul.f32 %v4933_v18, %v10932_v44  ;;  %v5316_v44 = vld [vmem:[#allocation12 + $0x210] sm:$0xff] }
0x1319   :  { %8453 = vmatpush3.bf16.msra.mxu1 %v8450_v53  ;;  %v4936_v53 = vmul.f32 %v4933_v18, %v10868_v59  ;;  %v4940_v59 = vmul.f32 %v4933_v18, %v10882_v5  ;;  %v4944_v5 = vmul.f32 %v4933_v18, %v10921_v48  ;;  %v4949_v52 = vmul.f32 %v4933_v18, %v10938_v31  ;;  %v5318_v31 = vld [vmem:[#allocation12 + $0x220] sm:$0xff] }
0x131a   :  { %v8454_v13 = vpack.c.bf16 %v4785_v12, %v4784_v2  ;;  %v4948_v48 = vmul.f32 %v4933_v18, %v10924_v30  ;;  %v5320_v30 = vld [vmem:[#allocation12 + $0x230] sm:$0xff] }
0x131c   :  { %8455 = vmatprep.subr.bf16.mxu1 %v8454_v13 }
0x131d   :  { %8457 = vmatpush3.bf16.msra.mxu1 %v8454_v13  ;;  %v4939_v13 = vmul.f32 %v4933_v18, %v10877_v54  ;;  %v4943_v54 = vmul.f32 %v4933_v18, %v10918_v47  ;;  %v4947_v47 = vmul.f32 %v4933_v18, %v10935_v29  ;;  %v5314_v29 = vld [vmem:[#allocation12 + $0x200] sm:$0xff]  ;;  %v5321_v18 = vld [vmem:[#allocation12 + $0x238] sm:$0xff] }
0x1320   :  { %7677 = vmatmul.mubr.f32.vlgmr.msra.gmra.mrb[128].mxu1 %v11577_v14 }
0x1321   :  { %7679 = vmatprep.mubr.f32.mxu1 %v11578_v16 }
0x1324   :  { %7680 = vmatmul.mubr.f32.gmra.mrb[130].mxu1 %v11579_v17 }
0x1325   :  { %7682 = vmatprep.mubr.f32.mxu1 %v11580_v23 }
0x1328   :  { %7683 = vmatmul.mubr.f32.gmra.mrb[132].mxu1 %v11581_v34 }
0x1329   :  { %7685 = vmatprep.mubr.f32.mxu1 %v11582_v28 }
0x132c   :  { %7686 = vmatmul.mubr.f32.gmra.mrb[134].mxu1 %v11583_v40 }
0x132d   :  { %7688 = vmatprep.mubr.f32.mxu1 %v11584_v22 }
0x1330   :  { %7689 = vmatmul.mubr.f32.gmra.mrb[136].mxu1 %v11585_v15 }
0x1331   :  { %7691 = vmatprep.mubr.f32.mxu1 %v11586_v37 }
0x1334   :  { %7692 = vmatmul.mubr.f32.gmra.mrb[138].mxu1 %v11587_v9 }
0x1335   :  { %7694 = vmatprep.mubr.f32.mxu1 %v11588_v10 }
0x1338   :  { %7695 = vmatmul.mubr.f32.gmra.mrb[140].mxu1 %v11589_v61 }
0x1339   :  { %7697 = vmatprep.mubr.f32.mxu1 %v11590_v19 }
0x133c   :  { %7698 = vmatmul.mubr.f32.gmra.mrb[142].mxu1 %v11591_v51 }
0x13f3   :  { %v7678_v11 = vpop.f32.mrb[128].mxu1 }
0x13f4   :  { %v4951_v24 = vadd.f32 %v7678_v11, %v4935_v60  ;;  %v4852_v39 = vpop.f32.mrb[129].mxu1 }
0x13f5   :  { %v4950_v8 = vadd.f32 %v4934_v1, %v4852_v39 }
0x13f7   :  { %v7681_v62 = vpop.f32.mrb[130].mxu1  ;;  %7732 = vmatprep.mubr.f32.mxu0 %v4950_v8  ;;  %v5315_v8 = vld [vmem:[#allocation12 + $0x208] sm:$0xff] }
0x13f8   :  { %v4953_v55 = vadd.f32 %v7681_v62, %v4937_v58  ;;  %v4862_v12 = vpop.f32.mrb[131].mxu1  ;;  %7733 = vmatmul.mubr.f32.vlgmr.msra.gmra.mrb[144].mxu0 %v4951_v24  ;;  %v8490_v58 = vpack.c.bf16 %v5315_v8, %v5314_v29  ;;  %v5317_v62 = vld [vmem:[#allocation12 + $0x218] sm:$0xff] }
0x13f9   :  { %v4952_v2 = vadd.f32 %v4936_v53, %v4862_v12  ;;  %v8494_v53 = vpack.c.bf16 %v5317_v62, %v5316_v44 }
0x13fa   :  { %8491 = vmatprep.subr.bf16.mxu1 %v8490_v58 }
0x13fb   :  { %v7684_v14 = vpop.f32.mrb[132].mxu1  ;;  %7735 = vmatprep.mubr.f32.mxu0 %v4952_v2  ;;  %8493 = vmatpush3.bf16.msra.mxu1 %v8490_v58  ;;  %v5322_v2 = vld [vmem:[#allocation12 + $0x240] sm:$0xff] }
0x13fc   :  { %v4955_v3 = vadd.f32 %v7684_v14, %v4939_v13  ;;  %v4872_v16 = vpop.f32.mrb[133].mxu1  ;;  %7736 = vmatmul.mubr.f32.gmra.mrb[146].mxu0 %v4953_v55  ;;  %8495 = vmatprep.subr.bf16.mxu1 %v8494_v53  ;;  %v5319_v55 = vld [vmem:[#allocation12 + $0x228] sm:$0xff]  ;;  %v8502_v13 = vpack.c.bf16 %v5321_v18, %v5320_v30 }
0x13fd   :  { %v4954_v17 = vadd.f32 %v4938_v41, %v4872_v16  ;;  %v8498_v12 = vpack.c.bf16 %v5319_v55, %v5318_v31  ;;  %v5323_v14 = vld [vmem:[#allocation12 + $0x248] sm:$0xff]  ;;  %v5325_v16 = vld [vmem:[#allocation12 + $0x258] sm:$0xff] }
0x13fe   :  { %v8506_v41 = vpack.c.bf16 %v5323_v14, %v5322_v2 }
0x13ff   :  { %v7687_v23 = vpop.f32.mrb[134].mxu1  ;;  %7738 = vmatprep.mubr.f32.mxu0 %v4954_v17  ;;  %8497 = vmatpush3.bf16.msra.mxu1 %v8494_v53 }
0x1400   :  { %v4957_v34 = vadd.f32 %v7687_v23, %v4941_v46  ;;  %v4882_v28 = vpop.f32.mrb[135].mxu1  ;;  %7739 = vmatmul.mubr.f32.gmra.mrb[148].mxu0 %v4955_v3  ;;  %8499 = vmatprep.subr.bf16.mxu1 %v8498_v12  ;;  %v5324_v3 = vld [vmem:[#allocation12 + $0x250] sm:$0xff]  ;;  %v5326_v46 = vld [vmem:[#allocation12 + $0x260] sm:$0xff]  ;;  %v5327_v23 = vld [vmem:[#allocation12 + $0x268] sm:$0xff] }
0x1401   :  { %v4956_v40 = vadd.f32 %v4940_v59, %v4882_v28  ;;  %v8510_v17 = vpack.c.bf16 %v5325_v16, %v5324_v3  ;;  %v8514_v59 = vpack.c.bf16 %v5327_v23, %v5326_v46  ;;  %v5329_v28 = vld [vmem:[#allocation12 + $0x278] sm:$0xff] }
0x1403   :  { %v7690_v22 = vpop.f32.mrb[136].mxu1  ;;  %7741 = vmatprep.mubr.f32.mxu0 %v4956_v40  ;;  %8501 = vmatpush3.bf16.msra.mxu1 %v8498_v12 }
0x1404   :  { %v4959_v15 = vadd.f32 %v7690_v22, %v4943_v54  ;;  %v4892_v37 = vpop.f32.mrb[137].mxu1  ;;  %7742 = vmatmul.mubr.f32.gmra.mrb[150].mxu0 %v4957_v34  ;;  %8503 = vmatprep.subr.bf16.mxu1 %v8502_v13  ;;  %v5328_v34 = vld [vmem:[#allocation12 + $0x270] sm:$0xff]  ;;  %v10995_v54 = vld [vmem:[%s11381_s8 + $0x4] ss:$0 sm:$0xff] }
0x1405   :  { %v4958_v9 = vadd.f32 %v4942_v33, %v4892_v37  ;;  %v8518_v40 = vpack.c.bf16 %v5329_v28, %v5328_v34 }
0x1407   :  { %v7693_v10 = vpop.f32.mrb[138].mxu1  ;;  %7744 = vmatprep.mubr.f32.mxu0 %v4958_v9  ;;  %8505 = vmatpush3.bf16.msra.mxu1 %v8502_v13 }
0x1408   :  { %v4961_v61 = vadd.f32 %v7693_v10, %v4945_v45  ;;  %v4902_v19 = vpop.f32.mrb[139].mxu1  ;;  %7745 = vmatmul.mubr.f32.gmra.mrb[152].mxu0 %v4959_v15  ;;  %8507 = vmatprep.subr.bf16.mxu1 %v8506_v41 }
0x1409   :  { %v4960_v51 = vadd.f32 %v4944_v5, %v4902_v19 }
0x140b   :  { %v7696_v25 = vpop.f32.mrb[140].mxu1  ;;  %7747 = vmatprep.mubr.f32.mxu0 %v4960_v51  ;;  %8509 = vmatpush3.bf16.msra.mxu1 %v8506_v41 }
0x140c   :  { %v4963_v38 = vadd.f32 %v7696_v25, %v4947_v47  ;;  %v4912_v32 = vpop.f32.mrb[141].mxu1  ;;  %7748 = vmatmul.mubr.f32.gmra.mrb[154].mxu0 %v4961_v61  ;;  %8511 = vmatprep.subr.bf16.mxu1 %v8510_v17 }
0x140d   :  { %v4962_v60 = vadd.f32 %v4946_v4, %v4912_v32 }
0x140f   :  { %v7699_v11 = vpop.f32.mrb[142].mxu1  ;;  %7750 = vmatprep.mubr.f32.mxu0 %v4962_v60  ;;  %8513 = vmatpush3.bf16.msra.mxu1 %v8510_v17 }
0x1410   :  { %v4965_v1 = vadd.f32 %v7699_v11, %v4949_v52  ;;  %v4922_v24 = vpop.f32.mrb[143].mxu1  ;;  %7751 = vmatmul.mubr.f32.gmra.mrb[156].mxu0 %v4963_v38  ;;  %8515 = vmatprep.subr.bf16.mxu1 %v8514_v59 }
0x1411   :  { %v4964_v39 = vadd.f32 %v4948_v48, %v4922_v24 }
0x1413   :  { %7753 = vmatprep.mubr.f32.mxu0 %v4964_v39  ;;  %8517 = vmatpush3.bf16.msra.mxu1 %v8514_v59 }
0x1414   :  { %7754 = vmatmul.mubr.f32.gmra.mrb[158].mxu0 %v4965_v1  ;;  %8519 = vmatprep.subr.bf16.mxu1 %v8518_v40 }
0x1417   :  { %8521 = vmatpush3.bf16.msra.mxu1 %v8518_v40 }
0x14cb   :  { %v7734_v22 = vpop.f32.mrb[144].mxu0 }
0x14cc   :  { %v10998_v33 = vadd.f32 %v7734_v22, %v10995_v54  ;;  %v5057_v15 = vpop.f32.mrb[145].mxu0 }
0x14cd   :  { %v11001_v37 = vadd.f32 %v10995_v54, %v5057_v15 }
0x14ce   :  { %v5141_v9 = vmul.f32 %v10998_v33, %v9076_v27 }
0x14cf   :  { %v5140_v45 = vmul.f32 %v11001_v37, %v9060_v21  ;;  %v7737_v10 = vpop.f32.mrb[146].mxu0 }
0x14d0   :  { %v5179_v5 = vmul.f32 %v5141_v9, %v5141_v9  ;;  %v11008_v61 = vadd.f32 %v7737_v10, %v10995_v54  ;;  %v5067_v19 = vpop.f32.mrb[147].mxu0 }
0x14d1   :  { %v5156_v51 = vadd.f32 %v5141_v9, %v5140_v45  ;;  %v5178_v47 = vmul.f32 %v5140_v45, %v5140_v45  ;;  %v11011_v25 = vadd.f32 %v10995_v54, %v5067_v19 }
0x14d2   :  { %v5143_v38 = vmul.f32 %v11008_v61, %v9074_v26 }
0x14d3   :  { %v5194_v4 = vadd.f32 %v5179_v5, %v5178_v47  ;;  %v5142_v32 = vmul.f32 %v11011_v25, %v9058_v20  ;;  %v7740_v60 = vpop.f32.mrb[148].mxu0 }
0x14d4   :  { %v11018_v52 = vadd.f32 %v7740_v60, %v10995_v54  ;;  %v5077_v11 = vpop.f32.mrb[149].mxu0  ;;  %v5181_v29 = vmul.f32 %v5143_v38, %v5143_v38 }
0x14d5   :  { %v5157_v48 = vadd.f32 %v5156_v51, %v5142_v32  ;;  %v5180_v1 = vmul.f32 %v5142_v32, %v5142_v32  ;;  %v11021_v24 = vadd.f32 %v10995_v54, %v5077_v11 }
0x14d6   :  { %v5145_v39 = vmul.f32 %v11018_v52, %v9098_v35 }
0x14d7   :  { %v5195_v8 = vadd.f32 %v5194_v4, %v5180_v1  ;;  %v5144_v58 = vmul.f32 %v11021_v24, %v9100_v36  ;;  %v5158_v44 = vadd.f32 %v5157_v48, %v5143_v38  ;;  %v7743_v62 = vpop.f32.mrb[150].mxu0 }
0x14d8   :  { %v11028_v53 = vadd.f32 %v7743_v62, %v10995_v54  ;;  %v5087_v31 = vpop.f32.mrb[151].mxu0  ;;  %v5183_v2 = vmul.f32 %v5145_v39, %v5145_v39 }
0x14d9   :  { %v5159_v55 = vadd.f32 %v5158_v44, %v5144_v58  ;;  %v5182_v12 = vmul.f32 %v5144_v58, %v5144_v58  ;;  %v5196_v30 = vadd.f32 %v5195_v8, %v5181_v29  ;;  %v11031_v18 = vadd.f32 %v10995_v54, %v5087_v31 }
0x14da   :  { %v5147_v14 = vmul.f32 %v11028_v53, %v9116_v42 }
0x14db   :  { %v5197_v13 = vadd.f32 %v5196_v30, %v5182_v12  ;;  %v5146_v41 = vmul.f32 %v11031_v18, %v9118_v43  ;;  %v5160_v3 = vadd.f32 %v5159_v55, %v5145_v39  ;;  %v7746_v16 = vpop.f32.mrb[152].mxu0 }
0x14dc   :  { %v11038_v17 = vadd.f32 %v7746_v16, %v10995_v54  ;;  %v5097_v46 = vpop.f32.mrb[153].mxu0  ;;  %v5185_v22 = vmul.f32 %v5147_v14, %v5147_v14 }
0x14dd   :  { %v5161_v23 = vadd.f32 %v5160_v3, %v5146_v41  ;;  %v5184_v59 = vmul.f32 %v5146_v41, %v5146_v41  ;;  %v5198_v34 = vadd.f32 %v5197_v13, %v5183_v2  ;;  %v11041_v28 = vadd.f32 %v10995_v54, %v5097_v46 }
0x14de   :  { %v5149_v40 = vmul.f32 %v11038_v17, %v9134_v49 }
0x14df   :  { %v5199_v15 = vadd.f32 %v5198_v34, %v5184_v59  ;;  %v5148_v9 = vmul.f32 %v11041_v28, %v9136_v50  ;;  %v5162_v45 = vadd.f32 %v5161_v23, %v5147_v14  ;;  %v7749_v10 = vpop.f32.mrb[154].mxu0 }
0x14e0   :  { %v11048_v5 = vadd.f32 %v7749_v10, %v10995_v54  ;;  %v5107_v19 = vpop.f32.mrb[155].mxu0  ;;  %v5187_v32 = vmul.f32 %v5149_v40, %v5149_v40 }
0x14e1   :  { %v5163_v51 = vadd.f32 %v5162_v45, %v5148_v9  ;;  %v5186_v47 = vmul.f32 %v5148_v9, %v5148_v9  ;;  %v5200_v4 = vadd.f32 %v5199_v15, %v5185_v22  ;;  %v11051_v38 = vadd.f32 %v10995_v54, %v5107_v19 }
0x14e2   :  { %v5151_v11 = vmul.f32 %v11048_v5, %v9152_v56 }
0x14e3   :  { %v5201_v60 = vadd.f32 %v5200_v4, %v5186_v47  ;;  %v5150_v48 = vmul.f32 %v11051_v38, %v9154_v57  ;;  %v5164_v1 = vadd.f32 %v5163_v51, %v5149_v40  ;;  %v7752_v39 = vpop.f32.mrb[156].mxu0 }
0x14e4   :  { %v11058_v29 = vadd.f32 %v7752_v39, %v10995_v54  ;;  %v5117_v8 = vpop.f32.mrb[157].mxu0  ;;  %v5189_v12 = vmul.f32 %v5151_v11, %v5151_v11 }
0x14e5   :  { %v5165_v58 = vadd.f32 %v5164_v1, %v5150_v48  ;;  %v5188_v44 = vmul.f32 %v5150_v48, %v5150_v48  ;;  %v5202_v62 = vadd.f32 %v5201_v60, %v5187_v32  ;;  %v11061_v31 = vadd.f32 %v10995_v54, %v5117_v8 }
0x14e6   :  { %v5153_v55 = vmul.f32 %v11058_v29, %v9170_v63 }
0x14e7   :  { %v5203_v30 = vadd.f32 %v5202_v62, %v5188_v44  ;;  %v5152_v2 = vmul.f32 %v11061_v31, %v9172_v0  ;;  %v5166_v13 = vadd.f32 %v5165_v58, %v5151_v11  ;;  %v7755_v14 = vpop.f32.mrb[158].mxu0 }
0x14e8   :  { %v11068_v41 = vadd.f32 %v7755_v14, %v10995_v54  ;;  %v5127_v3 = vpop.f32.mrb[159].mxu0  ;;  %v5191_v34 = vmul.f32 %v5153_v55, %v5153_v55 }
0x14e9   :  { %v5167_v16 = vadd.f32 %v5166_v13, %v5152_v2  ;;  %v5190_v46 = vmul.f32 %v5152_v2, %v5152_v2  ;;  %v5204_v23 = vadd.f32 %v5203_v30, %v5189_v12  ;;  %v5128_v59 = vadd.f32 %v10995_v54, %v5127_v3 }
0x14ea   :  { %v5155_v22 = vmul.f32 %v11068_v41, %v9188_v6 }
0x14eb   :  { %v5205_v40 = vadd.f32 %v5204_v23, %v5190_v46  ;;  %v5154_v15 = vmul.f32 %v5128_v59, %v9190_v7  ;;  %v5168_v9 = vadd.f32 %v5167_v16, %v5153_v55 }
0x14ec   :  { %v5193_v51 = vmul.f32 %v5155_v22, %v5155_v22 }
0x14ed   :  { %v5169_v45 = vadd.f32 %v5168_v9, %v5154_v15  ;;  %v5192_v10 = vmul.f32 %v5154_v15, %v5154_v15  ;;  %v5206_v19 = vadd.f32 %v5205_v40, %v5191_v34 }
0x14ef   :  { %v5170_v47 = vadd.f32 %v5169_v45, %v5155_v22  ;;  %v5207_v4 = vadd.f32 %v5206_v19, %v5192_v10 }
0x14f1   :  { %v5171_v32 = vrot.slane %v5170_v47, 4  ;;  %v5208_v60 = vadd.f32 %v5207_v4, %v5193_v51 }
0x14f3   :  { %v5172_v11 = vadd.f32 %v5171_v32, %v5170_v47  ;;  %v5209_v48 = vrot.slane %v5208_v60, 4 }
0x14f5   :  { %v5173_v1 = vrot.slane %v5172_v11, 2  ;;  %v5210_v54 = vadd.f32 %v5209_v48, %v5208_v60 }
0x14f7   :  { %v5174_v39 = vadd.f32 %v5173_v1, %v5172_v11  ;;  %v5211_v8 = vrot.slane %v5210_v54, 2 }
0x14f9   :  { %v5175_v58 = vrot.slane %v5174_v39, 1  ;;  %v5212_v44 = vadd.f32 %v5211_v8, %v5210_v54 }
0x14fb   :  { %v5176_v62 = vadd.f32 %v5175_v58, %v5174_v39  ;;  %v5213_v12 = vrot.slane %v5212_v44, 1 }
0x14fd   :  { %v5177_v30 = vmul.f32 0.0625, %v5176_v62  ;;  %v5214_v55 = vadd.f32 %v5213_v12, %v5212_v44 }
0x14ff   :  { %v5215_v2 = vmul.f32 0.0625, %v5214_v55  ;;  %v5216_v13 = vmul.f32 %v5177_v30, %v5177_v30  ;;  %v5233_v14 = vsub.f32 %v5128_v59, %v5177_v30  ;;  %v5219_v3 = vsub.f32 %v11001_v37, %v5177_v30 }
0x1500   :  { %v5220_v16 = vsub.f32 %v10998_v33, %v5177_v30  ;;  %v5221_v46 = vsub.f32 %v11011_v25, %v5177_v30  ;;  %v5222_v23 = vsub.f32 %v11008_v61, %v5177_v30  ;;  %v5223_v34 = vsub.f32 %v11021_v24, %v5177_v30 }
0x1501   :  { %v5217_v40 = vsub.f32 %v5215_v2, %v5216_v13  ;;  %v5224_v22 = vsub.f32 %v11018_v52, %v5177_v30  ;;  %v5225_v15 = vsub.f32 %v11031_v18, %v5177_v30  ;;  %v5226_v9 = vsub.f32 %v11028_v53, %v5177_v30  ;;  %v11092_v53 = vld [vmem:[%s11382_s9 + $0x4] ss:$0 sm:$0xff] }
0x1502   :  { %v5227_v45 = vsub.f32 %v11041_v28, %v5177_v30  ;;  %v5228_v59 = vsub.f32 %v11038_v17, %v5177_v30  ;;  %v5229_v37 = vsub.f32 %v11051_v38, %v5177_v30  ;;  %v5230_v33 = vsub.f32 %v11048_v5, %v5177_v30 }
0x1503   :  { %v5218_v25 = vmax.f32 %v5217_v40, 0.0  ;;  %v5231_v61 = vsub.f32 %v11061_v31, %v5177_v30  ;;  %v5232_v24 = vsub.f32 %v11058_v29, %v5177_v30  ;;  %v5234_v10 = vsub.f32 %v11068_v41, %v5177_v30  ;;  %v11099_v31 = vld [vmem:[%s11383_s10 + $0x4] ss:$0 sm:$0xff] }
0x1505   :  { %v5235_v52 = vadd.f32 1e-05, %v5218_v25 }
0x1507   :  { %8604 = vrsqrt.f32 %v5235_v52 }
0x1511   :  { %v8605_v18 = vpop.eup %8604 }
0x1512   :  { %v11094_v17 = vmul.f32 %v8605_v18, %v5233_v14  ;;  %v5237_v28 = vmul.f32 %v8605_v18, %v5219_v3  ;;  %v5238_v38 = vmul.f32 %v8605_v18, %v5220_v16  ;;  %v5239_v5 = vmul.f32 %v8605_v18, %v5221_v46 }
0x1513   :  { %v5240_v29 = vmul.f32 %v8605_v18, %v5222_v23  ;;  %v5241_v41 = vmul.f32 %v8605_v18, %v5223_v34  ;;  %v5242_v19 = vmul.f32 %v8605_v18, %v5224_v22  ;;  %v5243_v51 = vmul.f32 %v8605_v18, %v5225_v15 }
0x1514   :  { %v5259_v47 = vmul.f32 %v11092_v53, %v5237_v28  ;;  %v5260_v4 = vmul.f32 %v11092_v53, %v5238_v38  ;;  %v5261_v32 = vmul.f32 %v11092_v53, %v5239_v5  ;;  %v5244_v60 = vmul.f32 %v8605_v18, %v5226_v9 }
0x1515   :  { %v5262_v11 = vmul.f32 %v11092_v53, %v5240_v29  ;;  %v5263_v48 = vmul.f32 %v11092_v53, %v5241_v41  ;;  %v5264_v12 = vmul.f32 %v11092_v53, %v5242_v19  ;;  %v5265_v30 = vmul.f32 %v11092_v53, %v5243_v51 }
0x1516   :  { %v5281_v1 = vadd.f32 %v11099_v31, %v5259_v47  ;;  %v5282_v54 = vadd.f32 %v11099_v31, %v5260_v4  ;;  %v5283_v39 = vadd.f32 %v11099_v31, %v5261_v32  ;;  %v5245_v2 = vmul.f32 %v8605_v18, %v5227_v45 }
0x1517   :  { %v5284_v44 = vadd.f32 %v11099_v31, %v5262_v11  ;;  %v5285_v62 = vadd.f32 %v11099_v31, %v5263_v48  ;;  %v5246_v13 = vmul.f32 %v8605_v18, %v5228_v59  ;;  %v5247_v14 = vmul.f32 %v8605_v18, %v5229_v37 }
0x1518   :  { %v5297_v8 = vmax.f32 %v5281_v1, 0.0  ;;  %v5298_v58 = vmax.f32 %v5282_v54, 0.0  ;;  %v5299_v55 = vmax.f32 %v5283_v39, 0.0  ;;  %v5248_v3 = vmul.f32 %v8605_v18, %v5230_v33 }
0x1519   :  { %v5249_v16 = vmul.f32 %v8605_v18, %v5231_v61  ;;  %v5250_v46 = vmul.f32 %v8605_v18, %v5232_v24  ;;  %v5252_v23 = vmul.f32 %v8605_v18, %v5234_v10  ;;  %v5300_v34 = vmax.f32 %v5284_v44, 0.0  ;;  %v5755_v44 = vld [vmem:[#allocation13] sm:$0xff] }
0x151a   :  { %7788 = vmatprep.mubr.f32.mxu1 %v5297_v8  ;;  %v5286_v40 = vadd.f32 %v11099_v31, %v5264_v12  ;;  %v5266_v22 = vmul.f32 %v11092_v53, %v5244_v60  ;;  %v5301_v15 = vmax.f32 %v5285_v62, 0.0  ;;  %v5287_v9 = vadd.f32 %v11099_v31, %v5265_v30  ;;  %v5756_v62 = vld [vmem:[#allocation13 + $0x8] sm:$0xff]  ;;  %v5757_v12 = vld [vmem:[#allocation13 + $0x10] sm:$0xff] }
0x151b   :  { %7789 = vmatmul.mubr.f32.vlgmr.msra.gmra.mrb[144].mxu1 %v5298_v58  ;;  %v5267_v25 = vmul.f32 %v11092_v53, %v5245_v2  ;;  %v5268_v37 = vmul.f32 %v11092_v53, %v5246_v13  ;;  %v5269_v24 = vmul.f32 %v11092_v53, %v5247_v14  ;;  %v5270_v18 = vmul.f32 %v11092_v53, %v5248_v3  ;;  %v5759_v2 = vld [vmem:[#allocation13 + $0x20] sm:$0xff]  ;;  %v5760_v13 = vld [vmem:[#allocation13 + $0x28] sm:$0xff]  ;;  %v5761_v3 = vld [vmem:[#allocation13 + $0x30] sm:$0xff] }
0x151c   :  { %7791 = vmatprep.mubr.f32.mxu1 %v5299_v55  ;;  %v5302_v45 = vmax.f32 %v5286_v40, 0.0  ;;  %v5288_v59 = vadd.f32 %v11099_v31, %v5266_v22  ;;  %v5303_v33 = vmax.f32 %v5287_v9, 0.0  ;;  %v5271_v5 = vmul.f32 %v11092_v53, %v5249_v16  ;;  %v5758_v55 = vld [vmem:[#allocation13 + $0x18] sm:$0xff]  ;;  %v5764_v40 = vld [vmem:[#allocation13 + $0x48] sm:$0xff] }
0x151d   :  { %v5289_v61 = vadd.f32 %v11099_v31, %v5267_v25  ;;  %v5290_v52 = vadd.f32 %v11099_v31, %v5268_v37  ;;  %v5291_v38 = vadd.f32 %v11099_v31, %v5269_v24  ;;  %v5292_v41 = vadd.f32 %v11099_v31, %v5270_v18  ;;  %v5762_v16 = vld [vmem:[#allocation13 + $0x38] sm:$0xff] }
0x151e   :  { %v5304_v10 = vmax.f32 %v5288_v59, 0.0  ;;  %v5272_v19 = vmul.f32 %v11092_v53, %v5250_v46  ;;  %v5293_v47 = vadd.f32 %v11099_v31, %v5271_v5  ;;  %v5273_v4 = vmul.f32 %v11092_v53, %v11094_v17  ;;  %v5765_v59 = vld [vmem:[#allocation13 + $0x50] sm:$0xff]  ;;  %v5766_v37 = vld [vmem:[#allocation13 + $0x58] sm:$0xff] }
0x151f   :  { %7792 = vmatmul.mubr.f32.gmra.mrb[146].mxu1 %v5300_v34  ;;  %v5305_v28 = vmax.f32 %v5289_v61, 0.0  ;;  %v5306_v29 = vmax.f32 %v5290_v52, 0.0  ;;  %v5307_v51 = vmax.f32 %v5291_v38, 0.0  ;;  %v5308_v32 = vmax.f32 %v5292_v41, 0.0  ;;  %v5763_v34 = vld [vmem:[#allocation13 + $0x40] sm:$0xff] }
0x1520   :  { %7794 = vmatprep.mubr.f32.mxu1 %v5301_v15  ;;  %v5294_v60 = vadd.f32 %v11099_v31, %v5272_v19  ;;  %v5274_v11 = vmul.f32 %v11092_v53, %v5252_v23  ;;  %v5309_v48 = vmax.f32 %v5293_v47, 0.0  ;;  %v5295_v1 = vadd.f32 %v11099_v31, %v5273_v4  ;;  %v11141_v23 = vld [vmem:[%s11385_s12 + $0x4] ss:$0 sm:$0xff]  ;;  %v5768_v19 = vld [vmem:[#allocation13 + $0x68] sm:$0xff] }
0x1521   :  { %v8800_v17 = vmov 0.0|0.0   ;;  %v8802_v53 = vmov 0.0   ;;  %v8547_v30 = vpack.c.bf16 %v5756_v62, %v5755_v44  ;;  %v8553_v14 = vpack.c.bf16 %v5760_v13, %v5759_v2  ;;  %v5767_v41 = vld [vmem:[#allocation13 + $0x60] sm:$0xff] }
0x1522   :  { %v5310_v54 = vmax.f32 %v5294_v60, 0.0  ;;  %v5296_v39 = vadd.f32 %v11099_v31, %v5274_v11  ;;  %v5311_v8 = vmax.f32 %v5295_v1, 0.0  ;;  %8522 = vmatprep.subr.bf16.mxu0 %v8800_v17  ;;  %8546 = vmatprep.subr.bf16.mxu1 %v8800_v17  ;;  %v8550_v31 = vpack.c.bf16 %v5758_v55, %v5757_v12 }
0x1523   :  { %7795 = vmatmul.mubr.f32.gmra.mrb[148].mxu1 %v5302_v45  ;;  %7844 = vmatprep.mubr.msk.f32.mxu0 %vm8801_vm0, %v8802_v53  ;;  %v8556_v46 = vpack.c.bf16 %v5762_v16, %v5761_v3  ;;  %v8559_v25 = vpack.c.bf16 %v5764_v40, %v5763_v34 }
0x1524   :  { %7797 = vmatprep.mubr.f32.mxu1 %v5303_v33  ;;  %v5312_v58 = vmax.f32 %v5296_v39, 0.0  ;;  %8548 = vmatpush3.bf16.msra.mxu1 %v8547_v30 }
0x1525   :  { %8549 = vmatprep.subr.bf16.mxu1 %v8800_v17 }
0x1527   :  { %7798 = vmatmul.mubr.f32.gmra.mrb[150].mxu1 %v5304_v10 }
0x1528   :  { %7800 = vmatprep.mubr.f32.mxu1 %v5305_v28  ;;  %8551 = vmatpush3.bf16.msra.mxu1 %v8550_v31  ;;  %v8562_v28 = vpack.c.bf16 %v5766_v37, %v5765_v59 }
0x1529   :  { %8552 = vmatprep.subr.bf16.mxu1 %v8800_v17 }
0x152b   :  { %7801 = vmatmul.mubr.f32.gmra.mrb[152].mxu1 %v5306_v29 }
0x152c   :  { %7803 = vmatprep.mubr.f32.mxu1 %v5307_v51  ;;  %8554 = vmatpush3.bf16.msra.mxu1 %v8553_v14 }
0x152d   :  { %8555 = vmatprep.subr.bf16.mxu1 %v8800_v17 }
0x152f   :  { %7804 = vmatmul.mubr.f32.gmra.mrb[154].mxu1 %v5308_v32 }
0x1530   :  { %7806 = vmatprep.mubr.f32.mxu1 %v5309_v48  ;;  %8557 = vmatpush3.bf16.msra.mxu1 %v8556_v46  ;;  %v8565_v48 = vpack.c.bf16 %v5768_v19, %v5767_v41 }
0x1531   :  { %8558 = vmatprep.subr.bf16.mxu1 %v8800_v17 }
0x1533   :  { %7807 = vmatmul.mubr.f32.gmra.mrb[156].mxu1 %v5310_v54 }
0x1534   :  { %7809 = vmatprep.mubr.f32.mxu1 %v5311_v8  ;;  %8560 = vmatpush3.bf16.msra.mxu1 %v8559_v25 }
0x1535   :  { %8561 = vmatprep.subr.bf16.mxu1 %v8800_v17 }
0x1537   :  { %7810 = vmatmul.mubr.f32.gmra.mrb[158].mxu1 %v5312_v58 }
0x1538   :  { %7879 = vmatprep.mubr.msk.f32.mxu1 %vm8801_vm0, %v8802_v53  ;;  %8563 = vmatpush3.bf16.msra.mxu1 %v8562_v28 }
0x1539   :  { %8564 = vmatprep.subr.bf16.mxu1 %v8800_v17 }
0x153c   :  { %8566 = vmatpush3.bf16.msra.mxu1 %v8565_v48 }
0x153d   :  { %8567 = vmatprep.subr.bf16.mxu1 %v8800_v17 }
0x15ee   :  { %v7790_v22 = vpop.f32.mrb[144].mxu1 }
0x15ef   :  { %v11145_v15 = vadd.f32 %v7790_v22, %v11141_v23  ;;  %v5404_v9 = vpop.f32.mrb[145].mxu1 }
0x15f0   :  { %v11148_v45 = vadd.f32 %v11141_v23, %v5404_v9 }
0x15f1   :  { %v5488_v33 = vmul.f32 %v11145_v15, %v9076_v27 }
0x15f2   :  { %v5487_v61 = vmul.f32 %v11148_v45, %v9060_v21  ;;  %v7793_v24 = vpop.f32.mrb[146].mxu1 }
0x15f3   :  { %v5526_v10 = vmul.f32 %v5488_v33, %v5488_v33  ;;  %v11156_v52 = vadd.f32 %v7793_v24, %v11141_v23  ;;  %v5414_v18 = vpop.f32.mrb[147].mxu1 }
0x15f4   :  { %v5503_v38 = vadd.f32 %v5488_v33, %v5487_v61  ;;  %v5525_v5 = vmul.f32 %v5487_v61, %v5487_v61  ;;  %v11159_v29 = vadd.f32 %v11141_v23, %v5414_v18 }
0x15f5   :  { %v5490_v47 = vmul.f32 %v11156_v52, %v9074_v26 }
0x15f6   :  { %v5541_v51 = vadd.f32 %v5526_v10, %v5525_v5  ;;  %v5489_v4 = vmul.f32 %v11159_v29, %v9058_v20  ;;  %v7796_v32 = vpop.f32.mrb[148].mxu1 }
0x15f7   :  { %v11167_v60 = vadd.f32 %v7796_v32, %v11141_v23  ;;  %v5424_v11 = vpop.f32.mrb[149].mxu1  ;;  %v5528_v58 = vmul.f32 %v5490_v47, %v5490_v47 }
0x15f8   :  { %v5504_v1 = vadd.f32 %v5503_v38, %v5489_v4  ;;  %v5527_v54 = vmul.f32 %v5489_v4, %v5489_v4  ;;  %v11170_v39 = vadd.f32 %v11141_v23, %v5424_v11 }
0x15f9   :  { %v5492_v8 = vmul.f32 %v11167_v60, %v9098_v35 }
0x15fa   :  { %v5542_v53 = vadd.f32 %v5541_v51, %v5527_v54  ;;  %v5491_v44 = vmul.f32 %v11170_v39, %v9100_v36  ;;  %v5505_v62 = vadd.f32 %v5504_v1, %v5490_v47  ;;  %v7799_v12 = vpop.f32.mrb[150].mxu1 }
0x15fb   :  { %v11178_v30 = vadd.f32 %v7799_v12, %v11141_v23  ;;  %v5434_v55 = vpop.f32.mrb[151].mxu1  ;;  %v5530_v3 = vmul.f32 %v5492_v8, %v5492_v8 }
0x15fc   :  { %v5506_v31 = vadd.f32 %v5505_v62, %v5491_v44  ;;  %v5529_v2 = vmul.f32 %v5491_v44, %v5491_v44  ;;  %v5543_v13 = vadd.f32 %v5542_v53, %v5528_v58  ;;  %v11181_v14 = vadd.f32 %v11141_v23, %v5434_v55 }
0x15fd   :  { %v5494_v46 = vmul.f32 %v11178_v30, %v9116_v42 }
0x15fe   :  { %v5544_v16 = vadd.f32 %v5543_v13, %v5529_v2  ;;  %v5493_v34 = vmul.f32 %v11181_v14, %v9118_v43  ;;  %v5507_v40 = vadd.f32 %v5506_v31, %v5492_v8  ;;  %v7802_v22 = vpop.f32.mrb[152].mxu1 }
0x15ff   :  { %v11189_v9 = vadd.f32 %v7802_v22, %v11141_v23  ;;  %v5444_v25 = vpop.f32.mrb[153].mxu1  ;;  %v5532_v10 = vmul.f32 %v5494_v46, %v5494_v46 }
0x1600   :  { %v5508_v59 = vadd.f32 %v5507_v40, %v5493_v34  ;;  %v5531_v37 = vmul.f32 %v5493_v34, %v5493_v34  ;;  %v5545_v33 = vadd.f32 %v5544_v16, %v5530_v3  ;;  %v11192_v61 = vadd.f32 %v11141_v23, %v5444_v25 }
0x1601   :  { %v5496_v24 = vmul.f32 %v11189_v9, %v9134_v49 }
0x1602   :  { %v5546_v18 = vadd.f32 %v5545_v33, %v5531_v37  ;;  %v5495_v28 = vmul.f32 %v11192_v61, %v9136_v50  ;;  %v5509_v38 = vadd.f32 %v5508_v59, %v5494_v46  ;;  %v7805_v5 = vpop.f32.mrb[154].mxu1 }
0x1603   :  { %v11199_v41 = vadd.f32 %v7805_v5, %v11141_v23  ;;  %v5454_v19 = vpop.f32.mrb[155].mxu1  ;;  %v5534_v11 = vmul.f32 %v5496_v24, %v5496_v24 }
0x1604   :  { %v5510_v51 = vadd.f32 %v5509_v38, %v5495_v28  ;;  %v5533_v47 = vmul.f32 %v5495_v28, %v5495_v28  ;;  %v5547_v4 = vadd.f32 %v5546_v18, %v5532_v10  ;;  %v11202_v32 = vadd.f32 %v11141_v23, %v5454_v19 }
0x1605   :  { %v5498_v1 = vmul.f32 %v11199_v41, %v9152_v56 }
0x1606   :  { %v5548_v48 = vadd.f32 %v5547_v4, %v5533_v47  ;;  %v5497_v54 = vmul.f32 %v11202_v32, %v9154_v57  ;;  %v5511_v8 = vadd.f32 %v5510_v51, %v5496_v24  ;;  %v7808_v58 = vpop.f32.mrb[156].mxu1 }
0x1607   :  { %v11209_v53 = vadd.f32 %v7808_v58, %v11141_v23  ;;  %v5464_v44 = vpop.f32.mrb[157].mxu1  ;;  %v5536_v13 = vmul.f32 %v5498_v1, %v5498_v1 }
0x1608   :  { %v5512_v62 = vadd.f32 %v5511_v8, %v5497_v54  ;;  %v5535_v12 = vmul.f32 %v5497_v54, %v5497_v54  ;;  %v5549_v55 = vadd.f32 %v5548_v48, %v5534_v11  ;;  %v11212_v31 = vadd.f32 %v11141_v23, %v5464_v44 }
0x1609   :  { %v5500_v2 = vmul.f32 %v11209_v53, %v9170_v63 }
0x160a   :  { %v5550_v3 = vadd.f32 %v5549_v55, %v5535_v12  ;;  %v5499_v16 = vmul.f32 %v11212_v31, %v9172_v0  ;;  %v5513_v46 = vadd.f32 %v5512_v62, %v5498_v1  ;;  %v7811_v34 = vpop.f32.mrb[158].mxu1 }
0x160b   :  { %v11219_v40 = vadd.f32 %v7811_v34, %v11141_v23  ;;  %v5474_v22 = vpop.f32.mrb[159].mxu1  ;;  %v5538_v24 = vmul.f32 %v5500_v2, %v5500_v2 }
0x160c   :  { %v5514_v25 = vadd.f32 %v5513_v46, %v5499_v16  ;;  %v5537_v59 = vmul.f32 %v5499_v16, %v5499_v16  ;;  %v5551_v37 = vadd.f32 %v5550_v3, %v5536_v13  ;;  %v5475_v33 = vadd.f32 %v11141_v23, %v5474_v22 }
0x160d   :  { %v5502_v18 = vmul.f32 %v11219_v40, %v9188_v6 }
0x160e   :  { %v5552_v10 = vadd.f32 %v5551_v37, %v5537_v59  ;;  %v5501_v28 = vmul.f32 %v5475_v33, %v9190_v7  ;;  %v5515_v38 = vadd.f32 %v5514_v25, %v5500_v2 }
0x160f   :  { %v5540_v47 = vmul.f32 %v5502_v18, %v5502_v18 }
0x1610   :  { %v5516_v5 = vadd.f32 %v5515_v38, %v5501_v28  ;;  %v5539_v19 = vmul.f32 %v5501_v28, %v5501_v28  ;;  %v5553_v51 = vadd.f32 %v5552_v10, %v5538_v24 }
0x1612   :  { %v5517_v4 = vadd.f32 %v5516_v5, %v5502_v18  ;;  %v5554_v11 = vadd.f32 %v5553_v51, %v5539_v19 }
0x1614   :  { %v5518_v48 = vrot.slane %v5517_v4, 4  ;;  %v5555_v1 = vadd.f32 %v5554_v11, %v5540_v47  ;;  %v11274_v47 = vld [vmem:[%s11387_s14 + $0x4] ss:$0 sm:$0xff] }
0x1616   :  { %v5519_v54 = vadd.f32 %v5518_v48, %v5517_v4  ;;  %v5556_v8 = vrot.slane %v5555_v1, 4 }
0x1618   :  { %v5520_v58 = vrot.slane %v5519_v54, 2  ;;  %v5557_v23 = vadd.f32 %v5556_v8, %v5555_v1 }
0x161a   :  { %v5521_v44 = vadd.f32 %v5520_v58, %v5519_v54  ;;  %v5558_v62 = vrot.slane %v5557_v23, 2 }
0x161c   :  { %v5522_v12 = vrot.slane %v5521_v44, 1  ;;  %v5559_v55 = vadd.f32 %v5558_v62, %v5557_v23 }
0x161e   :  { %v5523_v13 = vadd.f32 %v5522_v12, %v5521_v44  ;;  %v5560_v3 = vrot.slane %v5559_v55, 1 }
0x1620   :  { %v11225_v16 = vmul.f32 0.0625, %v5523_v13  ;;  %v5561_v2 = vadd.f32 %v5560_v3, %v5559_v55 }
0x1622   :  { %v5562_v46 = vmul.f32 0.0625, %v5561_v2  ;;  %v5563_v34 = vmul.f32 %v11225_v16, %v11225_v16  ;;  %v5580_v22 = vsub.f32 %v5475_v33, %v11225_v16  ;;  %v5566_v25 = vsub.f32 %v11148_v45, %v11225_v16 }
0x1623   :  { %v5567_v59 = vsub.f32 %v11145_v15, %v11225_v16  ;;  %v5568_v37 = vsub.f32 %v11159_v29, %v11225_v16  ;;  %v5569_v24 = vsub.f32 %v11156_v52, %v11225_v16  ;;  %v5570_v10 = vsub.f32 %v11170_v39, %v11225_v16 }
0x1624   :  { %v5564_v18 = vsub.f32 %v5562_v46, %v5563_v34  ;;  %v5571_v28 = vsub.f32 %v11167_v60, %v11225_v16  ;;  %v5572_v33 = vsub.f32 %v11181_v14, %v11225_v16  ;;  %v5573_v45 = vsub.f32 %v11178_v30, %v11225_v16 }
0x1625   :  { %v5574_v15 = vsub.f32 %v11192_v61, %v11225_v16  ;;  %v5575_v29 = vsub.f32 %v11189_v9, %v11225_v16  ;;  %v5576_v52 = vsub.f32 %v11202_v32, %v11225_v16  ;;  %v5577_v39 = vsub.f32 %v11199_v41, %v11225_v16  ;;  %v11265_v9 = vld [vmem:[%s11386_s13 + $0x4] ss:$0 sm:$0xff] }
0x1626   :  { %v5565_v38 = vmax.f32 %v5564_v18, 0.0  ;;  %v5578_v60 = vsub.f32 %v11212_v31, %v11225_v16  ;;  %v5579_v14 = vsub.f32 %v11209_v53, %v11225_v16  ;;  %v5581_v30 = vsub.f32 %v11219_v40, %v11225_v16 }
0x1628   :  { %v5582_v61 = vadd.f32 1e-05, %v5565_v38 }
0x162a   :  { %8606 = vrsqrt.f32 %v5582_v61 }
0x1634   :  { %v11260_v5 = vpop.eup %8606 }
0x1635   :  { %v5598_v41 = vmul.f32 %v11260_v5, %v5580_v22  ;;  %v5584_v32 = vmul.f32 %v11260_v5, %v5566_v25  ;;  %v5585_v19 = vmul.f32 %v11260_v5, %v5567_v59  ;;  %v5586_v51 = vmul.f32 %v11260_v5, %v5568_v37 }
0x1636   :  { %v5587_v4 = vmul.f32 %v11260_v5, %v5569_v24  ;;  %v5588_v11 = vmul.f32 %v11260_v5, %v5570_v10  ;;  %v5589_v48 = vmul.f32 %v11260_v5, %v5571_v28  ;;  %v5590_v1 = vmul.f32 %v11260_v5, %v5572_v33 }
0x1637   :  { %v5620_v54 = vmul.f32 %v11265_v9, %v5598_v41  ;;  %v5606_v8 = vmul.f32 %v11265_v9, %v5584_v32  ;;  %v5607_v58 = vmul.f32 %v11265_v9, %v5585_v19  ;;  %v5608_v23 = vmul.f32 %v11265_v9, %v5586_v51 }
0x1638   :  { %v5609_v44 = vmul.f32 %v11265_v9, %v5587_v4  ;;  %v5610_v62 = vmul.f32 %v11265_v9, %v5588_v11  ;;  %v5611_v12 = vmul.f32 %v11265_v9, %v5589_v48  ;;  %v5591_v55 = vmul.f32 %v11260_v5, %v5573_v45 }
0x1639   :  { %v11289_v13 = vadd.f32 %v11274_v47, %v5620_v54  ;;  %v5628_v3 = vadd.f32 %v11274_v47, %v5606_v8  ;;  %v5629_v2 = vadd.f32 %v11274_v47, %v5607_v58  ;;  %v5630_v46 = vadd.f32 %v11274_v47, %v5608_v23 }
0x163a   :  { %v5631_v34 = vadd.f32 %v11274_v47, %v5609_v44  ;;  %v5632_v22 = vadd.f32 %v11274_v47, %v5610_v62  ;;  %v5633_v25 = vadd.f32 %v11274_v47, %v5611_v12  ;;  %v5612_v59 = vmul.f32 %v11265_v9, %v5590_v1 }
0x163b   :  { %v5658_v37 = vmax.f32 %v11289_v13, 0.0  ;;  %v5644_v24 = vmax.f32 %v5628_v3, 0.0  ;;  %v5645_v10 = vmax.f32 %v5629_v2, 0.0  ;;  %v5646_v18 = vmax.f32 %v5630_v46, 0.0 }
0x163c   :  { %v5647_v28 = vmax.f32 %v5631_v34, 0.0  ;;  %v5648_v33 = vmax.f32 %v5632_v22, 0.0  ;;  %v5649_v45 = vmax.f32 %v5633_v25, 0.0  ;;  %v5613_v38 = vmul.f32 %v11265_v9, %v5591_v55 }
0x163d   :  { %v5660_v61 = vmul.f32 %v5644_v24, %v9060_v21  ;;  %v5661_v41 = vmul.f32 %v5645_v10, %v9076_v27  ;;  %v5662_v32 = vmul.f32 %v5646_v18, %v9058_v20  ;;  %v5634_v19 = vadd.f32 %v11274_v47, %v5612_v59 }
0x163e   :  { %v5663_v51 = vmul.f32 %v5647_v28, %v9074_v26  ;;  %v5664_v4 = vmul.f32 %v5648_v33, %v9100_v36  ;;  %v5665_v11 = vmul.f32 %v5649_v45, %v9098_v35  ;;  %v5635_v48 = vadd.f32 %v11274_v47, %v5613_v38 }
0x163f   :  { %v8523_v1 = vpack.c.bf16 %v5661_v41, %v5660_v61  ;;  %v5650_v54 = vmax.f32 %v5634_v19, 0.0  ;;  %v5592_v8 = vmul.f32 %v11260_v5, %v5574_v15  ;;  %v5593_v21 = vmul.f32 %v11260_v5, %v5575_v29 }
0x1640   :  { %v8526_v58 = vpack.c.bf16 %v5663_v51, %v5662_v32  ;;  %v8529_v27 = vpack.c.bf16 %v5665_v11, %v5664_v4  ;;  %v5651_v23 = vmax.f32 %v5635_v48, 0.0  ;;  %v5594_v20 = vmul.f32 %v11260_v5, %v5576_v52  ;;  %v5939_v32 = vld [vmem:[%s11390_s17] ss:$0 sm:$0xff] }
0x1641   :  { %8524 = vmatpush3.bf16.msra.mxu0 %v8523_v1  ;;  %v5666_v26 = vmul.f32 %v5650_v54, %v9118_v43  ;;  %v5614_v36 = vmul.f32 %v11265_v9, %v5592_v8  ;;  %v5615_v35 = vmul.f32 %v11265_v9, %v5593_v21  ;;  %v5595_v44 = vmul.f32 %v11260_v5, %v5577_v39 }
0x1642   :  { %8525 = vmatprep.subr.bf16.mxu0 %v8800_v17  ;;  %v5667_v15 = vmul.f32 %v5651_v23, %v9116_v42  ;;  %v5616_v29 = vmul.f32 %v11265_v9, %v5594_v20  ;;  %v5596_v52 = vmul.f32 %v11260_v5, %v5578_v60  ;;  %v5597_v43 = vmul.f32 %v11260_v5, %v5579_v14 }
0x1643   :  { %v5636_v62 = vadd.f32 %v11274_v47, %v5614_v36  ;;  %v5637_v39 = vadd.f32 %v11274_v47, %v5615_v35  ;;  %v5617_v12 = vmul.f32 %v11265_v9, %v5595_v44  ;;  %v5599_v42 = vmul.f32 %v11260_v5, %v5581_v30 }
0x1644   :  { %v8532_v55 = vpack.c.bf16 %v5667_v15, %v5666_v26  ;;  %v5638_v31 = vadd.f32 %v11274_v47, %v5616_v29  ;;  %v5618_v60 = vmul.f32 %v11265_v9, %v5596_v52  ;;  %v5619_v53 = vmul.f32 %v11265_v9, %v5597_v43 }
0x1645   :  { %8527 = vmatpush3.bf16.msra.mxu0 %v8526_v58  ;;  %v5652_v14 = vmax.f32 %v5636_v62, 0.0  ;;  %v5653_v13 = vmax.f32 %v5637_v39, 0.0  ;;  %v5639_v3 = vadd.f32 %v11274_v47, %v5617_v12  ;;  %v5621_v2 = vmul.f32 %v11265_v9, %v5599_v42 }
0x1646   :  { %8528 = vmatprep.subr.bf16.mxu0 %v8800_v17  ;;  %v5654_v46 = vmax.f32 %v5638_v31, 0.0  ;;  %v5640_v40 = vadd.f32 %v11274_v47, %v5618_v60  ;;  %v5641_v16 = vadd.f32 %v11274_v47, %v5619_v53  ;;  %v5674_v28 = vmul.f32 %v5658_v37, %v9190_v7  ;;  %v5752_v37 = vpop.permute.xlu0 %5751 }
0x1647   :  { %v5668_v30 = vmul.f32 %v5652_v14, %v9136_v50  ;;  %v5669_v5 = vmul.f32 %v5653_v13, %v9134_v49  ;;  %v5655_v34 = vmax.f32 %v5639_v3, 0.0  ;;  %v5643_v22 = vadd.f32 %v11274_v47, %v5621_v2 }
0x1648   :  { %v5670_v25 = vmul.f32 %v5654_v46, %v9154_v57  ;;  %v5656_v59 = vmax.f32 %v5640_v40, 0.0  ;;  %v5657_v24 = vmax.f32 %v5641_v16, 0.0 }
0x1649   :  { %8530 = vmatpush3.bf16.msra.mxu0 %v8529_v27  ;;  %v8535_v9 = vpack.c.bf16 %v5669_v5, %v5668_v30  ;;  %v5671_v10 = vmul.f32 %v5655_v34, %v9152_v56  ;;  %v5659_v18 = vmax.f32 %v5643_v22, 0.0  ;;  %v5676_v56 = vld [vmem:[%s11388_s15] sm:$0xf]  ;;  %s8803_s15 = smov [#allocation15]  }
0x164a   :  { %8531 = vmatprep.subr.bf16.mxu0 %v8800_v17  ;;  %v5672_v50 = vmul.f32 %v5656_v59, %v9172_v0  ;;  %v5673_v49 = vmul.f32 %v5657_v24, %v9170_v63  ;;  %v5677_v63 = vunpack.c.l.bf16 %v5676_v56  ;;  %v5769_v0 = vld [vmem:[#allocation13 + $0x70] sm:$0xff]  ;;  %s5868_s27 = sshll.u32 %s8803_s15, 4  ;;  %s5869_s27 = int_to_ptr.vmem [resolvable:$true] %s5868_s27 }
0x164b   :  { %v8538_v33 = vpack.c.bf16 %v5671_v10, %v5670_v25  ;;  %v5675_v47 = vmul.f32 %v5659_v18, %v9188_v6  ;;  %v5770_v6 = vld [vmem:[#allocation13 + $0x78] sm:$0xff]  ;;  %s8754_s17 = scalar_lea.vmem %s5869_s27, 128  ;;  %p8759_p10 = scmp.lt.s32.totalorder %s5869_s27, %s5869_s27 }
0x164c   :  { %v8541_v45 = vpack.c.bf16 %v5673_v49, %v5672_v50  ;;  %v8568_v7 = vpack.c.bf16 %v5770_v6, %v5769_v0  ;;  %p8755_p9 = scmp.ne.s32.totalorder %s5869_s27, %s8754_s17  ;;  %p8760_p11 = scmp.lt.s32.totalorder %s8754_s17, %s8754_s17 }
0x164d   :  { %8533 = vmatpush3.bf16.msra.mxu0 %v8532_v55  ;;  %v8544_v57 = vpack.c.bf16 %v5675_v47, %v5674_v28 }
0x164e   :  { %8534 = vmatprep.subr.bf16.mxu0 %v8800_v17  ;;  %8569 = vmatpush3.bf16.msra.mxu1 %v8568_v7  ;;  %p8761_p12 = por %p8760_p11, %p8759_p10 }
0x1650   :  { %p8762_p13 = pnand %p8761_p12, %p8755_p9 }
0x1651   :  { %8536 = vmatpush3.bf16.msra.mxu0 %v8535_v9 }
0x1652   :  { %8537 = vmatprep.subr.bf16.mxu0 %v8800_v17 }
0x1655   :  { %8539 = vmatpush3.bf16.msra.mxu0 %v8538_v33 }
0x1656   :  { %8540 = vmatprep.subr.bf16.mxu0 %v8800_v17 }
0x1659   :  { %8542 = vmatpush3.bf16.msra.mxu0 %v8541_v45 }
0x165a   :  { %8543 = vmatprep.subr.bf16.mxu0 %v8800_v17 }
0x165d   :  { %8545 = vmatpush3.bf16.msra.mxu0 %v8544_v57 }
0x1660   :  { %7845 = vmatmul.mubr.f32.vlgmr.msra.gmra.mrb[160].mxu0 %v5677_v63 }
0x1733   :  { %v5744_v38 = vpop.f32.mrb[160].mxu0 }
0x1734   :  { %v5754_v61 = vmul.f32 %v5752_v37, %v5744_v38  ;;  %v7846_v41 = vpop.f32.mrb[161].mxu0 }
0x1736   :  { %7880 = vmatmul.mubr.f32.vlgmr.msra.gmra.mrb[160].mxu1 %v5754_v61 }
0x1809   :  { %v5844_v19 = vpop.f32.mrb[160].mxu1 }
0x180a   :  { %v5845_v51 = vadd.f32 %v5939_v32, %v5844_v19  ;;  %v7881_v4 = vpop.f32.mrb[161].mxu1 }
0x180c   :  { %v5848_v17 = vmul.f32 %v5845_v51, %v5845_v51 }
0x180e   :  { %5849 = vadd.xlane.f32.xlu1 %v5848_v17 }
0x189b   :  { %v5850_v11 = vpop.xlane.xlu1 %5849 }
0x189c   :  { %8608 = vrsqrt.f32 %v5850_v11  ;;  %vm5853_vm1 = vcmp.eq.f32.partialorder %v5850_v11, inf  ;;  %v5856_v54 = vand.u32 2147483648, %v5850_v11  ;;  %vm5855_vm2 = vcmp.eq.f32.partialorder %v5850_v11, 0.0 }
0x18a6   :  { %v8609_v48 = vpop.eup %8608 }
0x18a7   :  { %v5852_v1 = vmul.f32 %v8609_v48, %v5850_v11 }
0x18a9   :  { %v5854_v8 = vsel %vm5853_vm1, %v5850_v11, %v5852_v1 }
0x18aa   :  { %v5857_v21 = vsel %vm5855_vm2, %v5856_v54, %v5854_v8 }
0x18ab   :  { %v5858_v58 = vmax.f32 %v5857_v21, 1e-12 }
0x18ad   :  { %8610 = vrcp.f32 %v5858_v58 }
0x18b7   :  { %v8611_v27 = vpop.eup %8610 }
0x18b8   :  { %v5860_v23 = vmul.f32 %v8611_v27, %v5845_v51 }
0x18ba   :  { %5861 = vst [vmem:[#allocation15] sm:$0xff] %v5860_v23 }
0x18bb   :  { %8765 = shalt.err (!%p8762_p13)
}
0x18bc   :  { %s8766_s25 = scalar_lea.hbm %s11391_s18, 128 }
0x18bd   :  { %p8767_p0 = scmp.ne.s32.totalorder %s11391_s18, %s8766_s25  ;;  %p8770_p1 = scmp.lt.u32.totalorder %s8766_s25, %s11391_s18 }
0x18bf   :  { %p8772_p2 = pnand %p8770_p1, %p8767_p0 }
0x18c1   :  { %8775 = shalt.err (!%p8772_p2)
}
0x18c2   :  { %5871 = dma.vmem_to_hbm [thread:$0]  %s5869_s27, 128, %s11391_s18, [#allocation4]  }
0x18c3   :  { %8786 = dma.done.wait [#allocation4], 128  }
0x18c4   :  { %8787 = vsyncadd [#allocation4], 4294967168 }
0x18c5   :  { %5875 = vsyncpa [#allocation3], 1 }
0x18c6   :  { %5876 = vsyncpa [#allocation8], 1 }
0x18c7   :  { %5877 = vsyncpa [#allocation11], 1 }
0x18c8   :  { %5878 = vsyncpa [#allocation14], 1 }
0x18c9   :  { %5879 = vsyncpa [#allocation4], 1 }
0x18ca   :  { %5880 = vsyncpa [#allocation5], 1 }

</bundles_post_ra>
